<compile_context>
chip_gen: v6e
topology: v6e:2x2x1
jax: 0.10.0
libtpu: 0.0.40
codegen_flags: <defaults>
</compile_context>

<pallas_src>
import functools

import numpy as np

import jax
import jax.numpy as jnp
from jax.experimental import pallas as pl
from jax.experimental.pallas import tpu as pltpu

_VMEM_LIMIT = 48 * 1024 * 1024  # explicit cap; leaves headroom on v7x (64 MiB physical)


# ----------------------------------------------------------------------------
# constant 0/1 gather matrices: conv2 spatial shift + zero-pad + 2x2 maxpool
# window offset + stride-2 selection, one (256, 512) matrix per 2x2 kernel tap.
# Column layout: w*128 + (i*8 + jj) for window offset w = wr*2+ws, output (i,jj).
# ----------------------------------------------------------------------------
@functools.lru_cache(maxsize=None)
def _conv2_pool_gather():
    g = np.zeros((4, 256, 512), np.float32)
    for kh in range(2):
        for kw in range(2):
            t = kh * 2 + kw
            for wr in range(2):
                for ws in range(2):
                    w = wr * 2 + ws
                    for i in range(7):
                        for jj in range(7):
                            gy = 2 * i + wr + kh       # padded-grid row read by conv2
                            gx = 2 * jj + ws + kw      # padded-grid col read by conv2
                            # pad ring (gy==0 / gx==0) contributes exactly zero ->
                            # simply leave those entries 0 (implements the padding).
                            if gy >= 1 and gx >= 1:
                                g[t, gy * 16 + gx, w * 128 + i * 8 + jj] = 1.0
    return g


# ----------------------------------------------------------------------------
# Stage 1 kernel: conv1+ReLU+pool1 and conv2+ReLU+pool2, fused per batch tile
# ----------------------------------------------------------------------------
def _conv_stage_kernel(t_ref, w1_ref, b1_ref, w2_ref, g_ref, b2_ref, o_ref):
    # t_ref : (9, BT*256) f32  conv1 taps on the padded 16x16 pool grid, batch-major lanes
    # w1_ref: (4, 64, 1)  f32  conv1 weight, one (Cout,1) column per tap kh*2+kw
    # b1_ref: (64, 1)     f32
    # w2_ref: (128, 64)  bf16  conv2 weight, rows = tap*32 + Cout2
    # g_ref : (4, 256, 512) bf16  per-tap shift + pad + pool-window + stride-2 gather
    # b2_ref: (32, 1)     f32
    # o_ref : (BT, 32, 128) bf16  pool2, channel-major on an 8x8 (lane-padded) grid
    t = t_ref[...]                                       # (9, BT*256)

    # ---- layer 1: conv1 + bias + ReLU + 2x2 maxpool (VPU only, Cin=1) ------
    p1_pre = None
    for r in range(2):                                   # parity row inside pool window
        for s in range(2):                               # parity col inside pool window
            acc = None
            for kh in range(2):
                for kw in range(2):
                    k = (r + kh) * 3 + (s + kw)
                    term = w1_ref[kh * 2 + kw] * t[k:k + 1, :]      # (64, BT*256)
                    acc = term if acc is None else acc + term
            p1_pre = acc if p1_pre is None else jnp.maximum(p1_pre, acc)
    p1 = jnp.maximum(p1_pre + b1_ref[...], 0.0)          # (64, BT*256) = pool1 on padded grid
    p1 = p1.astype(jnp.bfloat16)
    # NOTE: values at the pad-ring lanes are garbage, but the gather matrices
    # carry zeros for those source rows, so they are never consumed.

    # ---- layer 2: channel contraction for all 4 conv2 kernel taps at once ---
    v = jnp.dot(w2_ref[...], p1, preferred_element_type=jnp.float32)  # (128, BT*256)
    v = v.astype(jnp.bfloat16)

    # ---- per-sample: shift + zero-pad + maxpool window + stride-2 selection --
    bt = o_ref.shape[0]
    b2 = b2_ref[...]
    for b in range(bt):
        vb = v[:, b * 256:(b + 1) * 256]                 # (128, 256), 256-aligned slice
        acc = None
        for tp in range(4):
            term = jnp.dot(vb[tp * 32:(tp + 1) * 32, :], g_ref[tp],
                           preferred_element_type=jnp.float32)        # (32, 512)
            acc = term if acc is None else acc + term
        m = jnp.maximum(acc[:, :256], acc[:, 256:])      # max over window row offset
        m = jnp.maximum(m[:, :128], m[:, 128:])          # max over window col offset
        o_ref[b] = jnp.maximum(m + b2, 0.0).astype(o_ref.dtype)       # (32, 128)


def _conv_stage(t2d, w1m, b1c, w2s, gt, b2c, bt):
    b_pad = t2d.shape[1] // 256
    return pl.pallas_call(
        _conv_stage_kernel,
        out_shape=jax.ShapeDtypeStruct((b_pad, 32, 128), jnp.bfloat16),
        grid=(b_pad // bt,),
        in_specs=[
            pl.BlockSpec((9, bt * 256), lambda i: (0, i)),
            pl.BlockSpec((4, 64, 1), lambda i: (0, 0, 0)),
            pl.BlockSpec((64, 1), lambda i: (0, 0)),
            pl.BlockSpec((128, 64), lambda i: (0, 0)),
            pl.BlockSpec((4, 256, 512), lambda i: (0, 0, 0)),
            pl.BlockSpec((32, 1), lambda i: (0, 0)),
        ],
        out_specs=pl.BlockSpec((bt, 32, 128), lambda i: (i, 0, 0)),
        compiler_params=pltpu.CompilerParams(
            dimension_semantics=("parallel",),
            vmem_limit_bytes=_VMEM_LIMIT,
        ),
    )(t2d, w1m, b1c, w2s, gt, b2c)


# ----------------------------------------------------------------------------
# Stage 2 kernel: fc1 + ReLU + fc2 + softmax (lane-dense padded output)
# ----------------------------------------------------------------------------
def _fc_stage_kernel(x_ref, w3_ref, b3_ref, w4_ref, b4_ref, o_ref):
    # x_ref : (bm, 4096) bf16 ; w3_ref: (4096, 256) bf16 ; b3_ref: (1, 256) f32
    # w4_ref: (256, 128) bf16 (zero-padded classes)
    # b4_ref: (1, 128) f32   (padded classes carry -1e9 so softmax ignores them)
    # o_ref : (bm, 128) f32
    h = jnp.dot(x_ref[...], w3_ref[...], preferred_element_type=jnp.float32)
    h = jnp.maximum(h + b3_ref[...], 0.0)                            # fc1 + ReLU
    logits = jnp.dot(h.astype(jnp.bfloat16), w4_ref[...],
                     preferred_element_type=jnp.float32) + b4_ref[...]
    m = jnp.max(logits, axis=-1, keepdims=True)
    e = jnp.exp(logits - m)
    denom = jnp.sum(e, axis=-1, keepdims=True)
    o_ref[...] = (e * pl.reciprocal(denom, approx=True)).astype(o_ref.dtype)


def _fc_stage(xfc, w3p, b3r, w4p, b4p):
    B, K = xfc.shape
    N1 = w3p.shape[1]
    NP = w4p.shape[1]
    bm = min(B, 256)
    return pl.pallas_call(
        _fc_stage_kernel,
        out_shape=jax.ShapeDtypeStruct((B, NP), jnp.float32),
        grid=(pl.cdiv(B, bm),),
        in_specs=[
            pl.BlockSpec((bm, K), lambda i: (i, 0)),
            pl.BlockSpec((K, N1), lambda i: (0, 0)),
            pl.BlockSpec((1, N1), lambda i: (0, 0)),
            pl.BlockSpec((N1, NP), lambda i: (0, 0)),
            pl.BlockSpec((1, NP), lambda i: (0, 0)),
        ],
        out_specs=pl.BlockSpec((bm, NP), lambda i: (i, 0)),
        compiler_params=pltpu.CompilerParams(
            dimension_semantics=("parallel",),
            vmem_limit_bytes=_VMEM_LIMIT,
        ),
    )(xfc, w3p, b3r, w4p, b4p)


# ----------------------------------------------------------------------------
# Full forward pass
# ----------------------------------------------------------------------------
def fashion_mnist_forward(x, params):
    """(B,1,28,28) float32 -> (B, num_class) softmax probabilities."""
    w1, b1, w2, b2, w3, b3, w4, b4 = params
    assert x.shape[1:] == (1, 28, 28), x.shape
    B = x.shape[0]
    num_class = w4.shape[0]
    assert num_class <= 128

    bt = min(8, B)                                   # samples per stage-1 grid step
    b_pad = pl.cdiv(B, bt) * bt

    # tiny XLA-side prep: pad + parity-decompose the 28x28 input onto the padded
    # 16x16 pool-1 grid (zero ring = conv2 padding), batch-major on lanes.
    xpad = jnp.pad(x[:, 0], ((0, 0), (1, 1), (1, 1)))                # (B,30,30)
    taps = [xpad[:, u:u + 27:2, v:v + 27:2]                          # (B,14,14) each
            for u in range(3) for v in range(3)]
    t = jnp.stack(taps, axis=1)                                      # (B,9,14,14)
    t = jnp.pad(t, ((0, b_pad - B), (0, 0), (1, 1), (1, 1)))         # (b_pad,9,16,16)
    t2d = jnp.transpose(t, (1, 0, 2, 3)).reshape(9, b_pad * 256)     # (9, b_pad*256)

    w1m = w1.reshape(64, 4).T.reshape(4, 64, 1)                      # [tap, Cout, 1]
    b1c = b1.reshape(64, 1)
    w2s = jnp.transpose(w2, (2, 3, 0, 1)).reshape(128, 64).astype(jnp.bfloat16)
    b2c = b2.reshape(32, 1)
    gt = jnp.asarray(_conv2_pool_gather(), dtype=jnp.bfloat16)       # (4,256,512)

    pool2 = _conv_stage(t2d, w1m, b1c, w2s, gt, b2c, bt)             # (b_pad,32,128) bf16
    # TODO(synk): Dropout(p=0.3) after each pool is identity in inference mode.

    xfc = pool2.reshape(b_pad, 32 * 128)                             # (b_pad, 4096)

    # fc1 weight permuted/zero-padded to the kernel's (32, 8x8 -> 128) feature layout
    w3r = w3.reshape(256, 32, 7, 7)
    w3grid = jnp.zeros((256, 32, 8, 8), w3.dtype).at[:, :, :7, :7].set(w3r)
    w3grid = jnp.pad(w3grid.reshape(256, 32, 64), ((0, 0), (0, 0), (0, 64)))
    w3p = w3grid.reshape(256, 4096).T.astype(jnp.bfloat16)           # (4096, 256)
    b3r = b3.reshape(1, 256)

    npad = 128                                                       # lane-dense fc2 output
    w4p = jnp.zeros((256, npad), jnp.float32).at[:, :num_class].set(w4.T)
    w4p = w4p.astype(jnp.bfloat16)
    b4p = jnp.full((1, npad), -1e9, jnp.float32).at[0, :num_class].set(b4)

    out_pad = _fc_stage(xfc, w3p, b3r, w4p, b4p)                     # (b_pad,128) f32
    return out_pad[:B, :num_class]


# ----------------------------------------------------------------------------
# pure-JAX (f32) reference of the PyTorch module, for correctness check
# ----------------------------------------------------------------------------
def _reference_forward(x, params):
    w1, b1, w2, b2, w3, b3, w4, b4 = params
    dn = ("NCHW", "OIHW", "NCHW")
    y = jax.lax.conv_general_dilated(x, w1, (1, 1), [(1, 1), (1, 1)], dimension_numbers=dn)
    y = jax.nn.relu(y + b1.reshape(1, -1, 1, 1))
    y = jax.lax.reduce_window(y, -jnp.inf, jax.lax.max, (1, 1, 2, 2), (1, 1, 2, 2), "VALID")
    y = jax.lax.conv_general_dilated(y, w2, (1, 1), [(1, 1), (1, 1)], dimension_numbers=dn)
    y = jax.nn.relu(y + b2.reshape(1, -1, 1, 1))
    y = jax.lax.reduce_window(y, -jnp.inf, jax.lax.max, (1, 1, 2, 2), (1, 1, 2, 2), "VALID")
    y = y.reshape(x.shape[0], -1)
    y = jax.nn.relu(y @ w3.T + b3)
    return jax.nn.softmax(y @ w4.T + b4, axis=-1)


def init_params(key, num_class=10):
    ks = jax.random.split(key, 8)
    scale = 0.05
    w1 = scale * jax.random.normal(ks[0], (64, 1, 2, 2), jnp.float32)
    b1 = scale * jax.random.normal(ks[1], (64,), jnp.float32)
    w2 = scale * jax.random.normal(ks[2], (32, 64, 2, 2), jnp.float32)
    b2 = scale * jax.random.normal(ks[3], (32,), jnp.float32)
    w3 = scale * jax.random.normal(ks[4], (256, 7 * 7 * 32), jnp.float32)
    b3 = scale * jax.random.normal(ks[5], (256,), jnp.float32)
    w4 = scale * jax.random.normal(ks[6], (num_class, 256), jnp.float32)
    b4 = scale * jax.random.normal(ks[7], (num_class,), jnp.float32)
    return (w1, b1, w2, b2, w3, b3, w4, b4)


if __name__ == "__main__":
    num_class = 10
    key = jax.random.PRNGKey(0)
    k_x, k_p = jax.random.split(key)
    # Input must be (B, 1, 28, 28): the module hard-codes the 7*7*32 flatten size.
    x = jax.random.normal(k_x, (2, 1, 28, 28), jnp.float32)
    params = init_params(k_p, num_class)

    fwd = jax.jit(fashion_mnist_forward)
    out = jax.block_until_ready(fwd(x, params))

    assert out.shape == (2, num_class), out.shape
    # softmax rows sum to ~1 (approx reciprocal on the EUP -> loose tolerance)
    assert jnp.allclose(jnp.sum(out, axis=-1), 1.0, atol=1e-2)

    ref = _reference_forward(x, params)
    assert jnp.allclose(out, ref, atol=2e-2), float(jnp.max(jnp.abs(out - ref)))
    print("KERNEL_OK")
</pallas_src>

<mosaic_0001>
module attributes {stable_mosaic.version = 11 : i64} {
  func.func @_conv_stage_kernel(%arg0: i32, %arg1: memref<9x512xf32, #tpu.memory_space<vmem>>, %arg2: memref<4x64x1xf32, #tpu.memory_space<vmem>>, %arg3: memref<64x1xf32, #tpu.memory_space<vmem>>, %arg4: memref<128x64xbf16, #tpu.memory_space<vmem>>, %arg5: memref<4x256x512xbf16, #tpu.memory_space<vmem>>, %arg6: memref<32x1xf32, #tpu.memory_space<vmem>>, %arg7: memref<2x32x128xbf16, #tpu.memory_space<vmem>>) attributes {dimension_semantics = [#tpu.dimension_semantics<parallel>], iteration_bounds = array<i64: 1>, scalar_prefetch = 0 : i64, scratch_operands = 0 : i64, tpu.core_type = #tpu.core_type<tc>, window_params = [{transform_indices = @transform_0, window_bounds = array<i64: 9, 512>}, {pipeline_mode = #tpu.pipeline_mode<synchronous>, transform_indices = @transform_1, window_bounds = array<i64: 4, 64, 1>}, {pipeline_mode = #tpu.pipeline_mode<synchronous>, transform_indices = @transform_2, window_bounds = array<i64: 64, 1>}, {pipeline_mode = #tpu.pipeline_mode<synchronous>, transform_indices = @transform_3, window_bounds = array<i64: 128, 64>}, {pipeline_mode = #tpu.pipeline_mode<synchronous>, transform_indices = @transform_4, window_bounds = array<i64: 4, 256, 512>}, {pipeline_mode = #tpu.pipeline_mode<synchronous>, transform_indices = @transform_5, window_bounds = array<i64: 32, 1>}, {transform_indices = @transform_6, window_bounds = array<i64: 2, 32, 128>}]} {
    %c0 = arith.constant 0 : index
    %c0_0 = arith.constant 0 : index
    %0 = vector.load %arg1[%c0, %c0_0] : memref<9x512xf32, #tpu.memory_space<vmem>>, vector<9x512xf32>
    %c0_1 = arith.constant 0 : index
    %c0_2 = arith.constant 0 : index
    %c0_3 = arith.constant 0 : index
    %1 = vector.load %arg2[%c0_1, %c0_2, %c0_3] : memref<4x64x1xf32, #tpu.memory_space<vmem>>, vector<1x64x1xf32>
    %2 = vector.shape_cast %1 : vector<1x64x1xf32> to vector<64x1xf32>
    %3 = vector.extract_strided_slice %0 {offsets = [0, 0], sizes = [1, 512], strides = [1, 1]} : vector<9x512xf32> to vector<1x512xf32>
    %4 = vector.broadcast %2 : vector<64x1xf32> to vector<64x512xf32>
    %5 = vector.broadcast %3 : vector<1x512xf32> to vector<64x512xf32>
    %6 = arith.mulf %4, %5 : vector<64x512xf32>
    %c1 = arith.constant 1 : index
    %c0_4 = arith.constant 0 : index
    %c0_5 = arith.constant 0 : index
    %7 = vector.load %arg2[%c1, %c0_4, %c0_5] : memref<4x64x1xf32, #tpu.memory_space<vmem>>, vector<1x64x1xf32>
    %8 = vector.shape_cast %7 : vector<1x64x1xf32> to vector<64x1xf32>
    %9 = vector.extract_strided_slice %0 {offsets = [1, 0], sizes = [1, 512], strides = [1, 1]} : vector<9x512xf32> to vector<1x512xf32>
    %10 = vector.broadcast %8 : vector<64x1xf32> to vector<64x512xf32>
    %11 = vector.broadcast %9 : vector<1x512xf32> to vector<64x512xf32>
    %12 = arith.mulf %10, %11 : vector<64x512xf32>
    %13 = arith.addf %6, %12 : vector<64x512xf32>
    %c2 = arith.constant 2 : index
    %c0_6 = arith.constant 0 : index
    %c0_7 = arith.constant 0 : index
    %14 = vector.load %arg2[%c2, %c0_6, %c0_7] : memref<4x64x1xf32, #tpu.memory_space<vmem>>, vector<1x64x1xf32>
    %15 = vector.shape_cast %14 : vector<1x64x1xf32> to vector<64x1xf32>
    %16 = vector.extract_strided_slice %0 {offsets = [3, 0], sizes = [1, 512], strides = [1, 1]} : vector<9x512xf32> to vector<1x512xf32>
    %17 = vector.broadcast %15 : vector<64x1xf32> to vector<64x512xf32>
    %18 = vector.broadcast %16 : vector<1x512xf32> to vector<64x512xf32>
    %19 = arith.mulf %17, %18 : vector<64x512xf32>
    %20 = arith.addf %13, %19 : vector<64x512xf32>
    %c3 = arith.constant 3 : index
    %c0_8 = arith.constant 0 : index
    %c0_9 = arith.constant 0 : index
    %21 = vector.load %arg2[%c3, %c0_8, %c0_9] : memref<4x64x1xf32, #tpu.memory_space<vmem>>, vector<1x64x1xf32>
    %22 = vector.shape_cast %21 : vector<1x64x1xf32> to vector<64x1xf32>
    %23 = vector.extract_strided_slice %0 {offsets = [4, 0], sizes = [1, 512], strides = [1, 1]} : vector<9x512xf32> to vector<1x512xf32>
    %24 = vector.broadcast %22 : vector<64x1xf32> to vector<64x512xf32>
    %25 = vector.broadcast %23 : vector<1x512xf32> to vector<64x512xf32>
    %26 = arith.mulf %24, %25 : vector<64x512xf32>
    %27 = arith.addf %20, %26 : vector<64x512xf32>
    %c0_10 = arith.constant 0 : index
    %c0_11 = arith.constant 0 : index
    %c0_12 = arith.constant 0 : index
    %28 = vector.load %arg2[%c0_10, %c0_11, %c0_12] : memref<4x64x1xf32, #tpu.memory_space<vmem>>, vector<1x64x1xf32>
    %29 = vector.shape_cast %28 : vector<1x64x1xf32> to vector<64x1xf32>
    %30 = vector.extract_strided_slice %0 {offsets = [1, 0], sizes = [1, 512], strides = [1, 1]} : vector<9x512xf32> to vector<1x512xf32>
    %31 = vector.broadcast %29 : vector<64x1xf32> to vector<64x512xf32>
    %32 = vector.broadcast %30 : vector<1x512xf32> to vector<64x512xf32>
    %33 = arith.mulf %31, %32 : vector<64x512xf32>
    %c1_13 = arith.constant 1 : index
    %c0_14 = arith.constant 0 : index
    %c0_15 = arith.constant 0 : index
    %34 = vector.load %arg2[%c1_13, %c0_14, %c0_15] : memref<4x64x1xf32, #tpu.memory_space<vmem>>, vector<1x64x1xf32>
    %35 = vector.shape_cast %34 : vector<1x64x1xf32> to vector<64x1xf32>
    %36 = vector.extract_strided_slice %0 {offsets = [2, 0], sizes = [1, 512], strides = [1, 1]} : vector<9x512xf32> to vector<1x512xf32>
    %37 = vector.broadcast %35 : vector<64x1xf32> to vector<64x512xf32>
    %38 = vector.broadcast %36 : vector<1x512xf32> to vector<64x512xf32>
    %39 = arith.mulf %37, %38 : vector<64x512xf32>
    %40 = arith.addf %33, %39 : vector<64x512xf32>
    %c2_16 = arith.constant 2 : index
    %c0_17 = arith.constant 0 : index
    %c0_18 = arith.constant 0 : index
    %41 = vector.load %arg2[%c2_16, %c0_17, %c0_18] : memref<4x64x1xf32, #tpu.memory_space<vmem>>, vector<1x64x1xf32>
    %42 = vector.shape_cast %41 : vector<1x64x1xf32> to vector<64x1xf32>
    %43 = vector.extract_strided_slice %0 {offsets = [4, 0], sizes = [1, 512], strides = [1, 1]} : vector<9x512xf32> to vector<1x512xf32>
    %44 = vector.broadcast %42 : vector<64x1xf32> to vector<64x512xf32>
    %45 = vector.broadcast %43 : vector<1x512xf32> to vector<64x512xf32>
    %46 = arith.mulf %44, %45 : vector<64x512xf32>
    %47 = arith.addf %40, %46 : vector<64x512xf32>
    %c3_19 = arith.constant 3 : index
    %c0_20 = arith.constant 0 : index
    %c0_21 = arith.constant 0 : index
    %48 = vector.load %arg2[%c3_19, %c0_20, %c0_21] : memref<4x64x1xf32, #tpu.memory_space<vmem>>, vector<1x64x1xf32>
    %49 = vector.shape_cast %48 : vector<1x64x1xf32> to vector<64x1xf32>
    %50 = vector.extract_strided_slice %0 {offsets = [5, 0], sizes = [1, 512], strides = [1, 1]} : vector<9x512xf32> to vector<1x512xf32>
    %51 = vector.broadcast %49 : vector<64x1xf32> to vector<64x512xf32>
    %52 = vector.broadcast %50 : vector<1x512xf32> to vector<64x512xf32>
    %53 = arith.mulf %51, %52 : vector<64x512xf32>
    %54 = arith.addf %47, %53 : vector<64x512xf32>
    %55 = arith.maximumf %27, %54 : vector<64x512xf32>
    %c0_22 = arith.constant 0 : index
    %c0_23 = arith.constant 0 : index
    %c0_24 = arith.constant 0 : index
    %56 = vector.load %arg2[%c0_22, %c0_23, %c0_24] : memref<4x64x1xf32, #tpu.memory_space<vmem>>, vector<1x64x1xf32>
    %57 = vector.shape_cast %56 : vector<1x64x1xf32> to vector<64x1xf32>
    %58 = vector.extract_strided_slice %0 {offsets = [3, 0], sizes = [1, 512], strides = [1, 1]} : vector<9x512xf32> to vector<1x512xf32>
    %59 = vector.broadcast %57 : vector<64x1xf32> to vector<64x512xf32>
    %60 = vector.broadcast %58 : vector<1x512xf32> to vector<64x512xf32>
    %61 = arith.mulf %59, %60 : vector<64x512xf32>
    %c1_25 = arith.constant 1 : index
    %c0_26 = arith.constant 0 : index
    %c0_27 = arith.constant 0 : index
    %62 = vector.load %arg2[%c1_25, %c0_26, %c0_27] : memref<4x64x1xf32, #tpu.memory_space<vmem>>, vector<1x64x1xf32>
    %63 = vector.shape_cast %62 : vector<1x64x1xf32> to vector<64x1xf32>
    %64 = vector.extract_strided_slice %0 {offsets = [4, 0], sizes = [1, 512], strides = [1, 1]} : vector<9x512xf32> to vector<1x512xf32>
    %65 = vector.broadcast %63 : vector<64x1xf32> to vector<64x512xf32>
    %66 = vector.broadcast %64 : vector<1x512xf32> to vector<64x512xf32>
    %67 = arith.mulf %65, %66 : vector<64x512xf32>
    %68 = arith.addf %61, %67 : vector<64x512xf32>
    %c2_28 = arith.constant 2 : index
    %c0_29 = arith.constant 0 : index
    %c0_30 = arith.constant 0 : index
    %69 = vector.load %arg2[%c2_28, %c0_29, %c0_30] : memref<4x64x1xf32, #tpu.memory_space<vmem>>, vector<1x64x1xf32>
    %70 = vector.shape_cast %69 : vector<1x64x1xf32> to vector<64x1xf32>
    %71 = vector.extract_strided_slice %0 {offsets = [6, 0], sizes = [1, 512], strides = [1, 1]} : vector<9x512xf32> to vector<1x512xf32>
    %72 = vector.broadcast %70 : vector<64x1xf32> to vector<64x512xf32>
    %73 = vector.broadcast %71 : vector<1x512xf32> to vector<64x512xf32>
    %74 = arith.mulf %72, %73 : vector<64x512xf32>
    %75 = arith.addf %68, %74 : vector<64x512xf32>
    %c3_31 = arith.constant 3 : index
    %c0_32 = arith.constant 0 : index
    %c0_33 = arith.constant 0 : index
    %76 = vector.load %arg2[%c3_31, %c0_32, %c0_33] : memref<4x64x1xf32, #tpu.memory_space<vmem>>, vector<1x64x1xf32>
    %77 = vector.shape_cast %76 : vector<1x64x1xf32> to vector<64x1xf32>
    %78 = vector.extract_strided_slice %0 {offsets = [7, 0], sizes = [1, 512], strides = [1, 1]} : vector<9x512xf32> to vector<1x512xf32>
    %79 = vector.broadcast %77 : vector<64x1xf32> to vector<64x512xf32>
    %80 = vector.broadcast %78 : vector<1x512xf32> to vector<64x512xf32>
    %81 = arith.mulf %79, %80 : vector<64x512xf32>
    %82 = arith.addf %75, %81 : vector<64x512xf32>
    %83 = arith.maximumf %55, %82 : vector<64x512xf32>
    %c0_34 = arith.constant 0 : index
    %c0_35 = arith.constant 0 : index
    %c0_36 = arith.constant 0 : index
    %84 = vector.load %arg2[%c0_34, %c0_35, %c0_36] : memref<4x64x1xf32, #tpu.memory_space<vmem>>, vector<1x64x1xf32>
    %85 = vector.shape_cast %84 : vector<1x64x1xf32> to vector<64x1xf32>
    %86 = vector.extract_strided_slice %0 {offsets = [4, 0], sizes = [1, 512], strides = [1, 1]} : vector<9x512xf32> to vector<1x512xf32>
    %87 = vector.broadcast %85 : vector<64x1xf32> to vector<64x512xf32>
    %88 = vector.broadcast %86 : vector<1x512xf32> to vector<64x512xf32>
    %89 = arith.mulf %87, %88 : vector<64x512xf32>
    %c1_37 = arith.constant 1 : index
    %c0_38 = arith.constant 0 : index
    %c0_39 = arith.constant 0 : index
    %90 = vector.load %arg2[%c1_37, %c0_38, %c0_39] : memref<4x64x1xf32, #tpu.memory_space<vmem>>, vector<1x64x1xf32>
    %91 = vector.shape_cast %90 : vector<1x64x1xf32> to vector<64x1xf32>
    %92 = vector.extract_strided_slice %0 {offsets = [5, 0], sizes = [1, 512], strides = [1, 1]} : vector<9x512xf32> to vector<1x512xf32>
    %93 = vector.broadcast %91 : vector<64x1xf32> to vector<64x512xf32>
    %94 = vector.broadcast %92 : vector<1x512xf32> to vector<64x512xf32>
    %95 = arith.mulf %93, %94 : vector<64x512xf32>
    %96 = arith.addf %89, %95 : vector<64x512xf32>
    %c2_40 = arith.constant 2 : index
    %c0_41 = arith.constant 0 : index
    %c0_42 = arith.constant 0 : index
    %97 = vector.load %arg2[%c2_40, %c0_41, %c0_42] : memref<4x64x1xf32, #tpu.memory_space<vmem>>, vector<1x64x1xf32>
    %98 = vector.shape_cast %97 : vector<1x64x1xf32> to vector<64x1xf32>
    %99 = vector.extract_strided_slice %0 {offsets = [7, 0], sizes = [1, 512], strides = [1, 1]} : vector<9x512xf32> to vector<1x512xf32>
    %100 = vector.broadcast %98 : vector<64x1xf32> to vector<64x512xf32>
    %101 = vector.broadcast %99 : vector<1x512xf32> to vector<64x512xf32>
    %102 = arith.mulf %100, %101 : vector<64x512xf32>
    %103 = arith.addf %96, %102 : vector<64x512xf32>
    %c3_43 = arith.constant 3 : index
    %c0_44 = arith.constant 0 : index
    %c0_45 = arith.constant 0 : index
    %104 = vector.load %arg2[%c3_43, %c0_44, %c0_45] : memref<4x64x1xf32, #tpu.memory_space<vmem>>, vector<1x64x1xf32>
    %105 = vector.shape_cast %104 : vector<1x64x1xf32> to vector<64x1xf32>
    %106 = vector.extract_strided_slice %0 {offsets = [8, 0], sizes = [1, 512], strides = [1, 1]} : vector<9x512xf32> to vector<1x512xf32>
    %107 = vector.broadcast %105 : vector<64x1xf32> to vector<64x512xf32>
    %108 = vector.broadcast %106 : vector<1x512xf32> to vector<64x512xf32>
    %109 = arith.mulf %107, %108 : vector<64x512xf32>
    %110 = arith.addf %103, %109 : vector<64x512xf32>
    %111 = arith.maximumf %83, %110 : vector<64x512xf32>
    %c0_46 = arith.constant 0 : index
    %c0_47 = arith.constant 0 : index
    %112 = vector.load %arg3[%c0_46, %c0_47] : memref<64x1xf32, #tpu.memory_space<vmem>>, vector<64x1xf32>
    %113 = vector.broadcast %112 : vector<64x1xf32> to vector<64x512xf32>
    %114 = arith.addf %111, %113 : vector<64x512xf32>
    %cst = arith.constant 0.000000e+00 : f32
    %115 = vector.broadcast %cst : f32 to vector<64x512xf32>
    %116 = arith.maximumf %114, %115 : vector<64x512xf32>
    %117 = arith.truncf %116 : vector<64x512xf32> to vector<64x512xbf16>
    %c0_48 = arith.constant 0 : index
    %c0_49 = arith.constant 0 : index
    %118 = vector.load %arg4[%c0_48, %c0_49] : memref<128x64xbf16, #tpu.memory_space<vmem>>, vector<128x64xbf16>
    %cst_50 = arith.constant dense<0.000000e+00> : vector<128x512xf32>
    %119 = tpu.matmul %118, %117, %cst_50 {dimension_numbers = #tpu.dot_dimension_numbers<[1], [0], [0], [1], [0, 0, 1, 1], [], []>} : vector<128x64xbf16>, vector<64x512xbf16>, vector<128x512xf32> -> vector<128x512xf32>
    %120 = arith.truncf %119 : vector<128x512xf32> to vector<128x512xbf16>
    %c0_51 = arith.constant 0 : index
    %c0_52 = arith.constant 0 : index
    %121 = vector.load %arg6[%c0_51, %c0_52] : memref<32x1xf32, #tpu.memory_space<vmem>>, vector<32x1xf32>
    %122 = vector.extract_strided_slice %120 {offsets = [0, 0], sizes = [128, 256], strides = [1, 1]} : vector<128x512xbf16> to vector<128x256xbf16>
    %123 = vector.extract_strided_slice %122 {offsets = [0, 0], sizes = [32, 256], strides = [1, 1]} : vector<128x256xbf16> to vector<32x256xbf16>
    %c0_53 = arith.constant 0 : index
    %c0_54 = arith.constant 0 : index
    %c0_55 = arith.constant 0 : index
    %124 = vector.load %arg5[%c0_53, %c0_54, %c0_55] : memref<4x256x512xbf16, #tpu.memory_space<vmem>>, vector<1x256x512xbf16>
    %125 = vector.shape_cast %124 : vector<1x256x512xbf16> to vector<256x512xbf16>
    %cst_56 = arith.constant dense<0.000000e+00> : vector<32x512xf32>
    %126 = tpu.matmul %123, %125, %cst_56 {dimension_numbers = #tpu.dot_dimension_numbers<[1], [0], [0], [1], [0, 0, 1, 1], [], []>} : vector<32x256xbf16>, vector<256x512xbf16>, vector<32x512xf32> -> vector<32x512xf32>
    %127 = vector.extract_strided_slice %122 {offsets = [32, 0], sizes = [32, 256], strides = [1, 1]} : vector<128x256xbf16> to vector<32x256xbf16>
    %c1_57 = arith.constant 1 : index
    %c0_58 = arith.constant 0 : index
    %c0_59 = arith.constant 0 : index
    %128 = vector.load %arg5[%c1_57, %c0_58, %c0_59] : memref<4x256x512xbf16, #tpu.memory_space<vmem>>, vector<1x256x512xbf16>
    %129 = vector.shape_cast %128 : vector<1x256x512xbf16> to vector<256x512xbf16>
    %cst_60 = arith.constant dense<0.000000e+00> : vector<32x512xf32>
    %130 = tpu.matmul %127, %129, %cst_60 {dimension_numbers = #tpu.dot_dimension_numbers<[1], [0], [0], [1], [0, 0, 1, 1], [], []>} : vector<32x256xbf16>, vector<256x512xbf16>, vector<32x512xf32> -> vector<32x512xf32>
    %131 = arith.addf %126, %130 : vector<32x512xf32>
    %132 = vector.extract_strided_slice %122 {offsets = [64, 0], sizes = [32, 256], strides = [1, 1]} : vector<128x256xbf16> to vector<32x256xbf16>
    %c2_61 = arith.constant 2 : index
    %c0_62 = arith.constant 0 : index
    %c0_63 = arith.constant 0 : index
    %133 = vector.load %arg5[%c2_61, %c0_62, %c0_63] : memref<4x256x512xbf16, #tpu.memory_space<vmem>>, vector<1x256x512xbf16>
    %134 = vector.shape_cast %133 : vector<1x256x512xbf16> to vector<256x512xbf16>
    %cst_64 = arith.constant dense<0.000000e+00> : vector<32x512xf32>
    %135 = tpu.matmul %132, %134, %cst_64 {dimension_numbers = #tpu.dot_dimension_numbers<[1], [0], [0], [1], [0, 0, 1, 1], [], []>} : vector<32x256xbf16>, vector<256x512xbf16>, vector<32x512xf32> -> vector<32x512xf32>
    %136 = arith.addf %131, %135 : vector<32x512xf32>
    %137 = vector.extract_strided_slice %122 {offsets = [96, 0], sizes = [32, 256], strides = [1, 1]} : vector<128x256xbf16> to vector<32x256xbf16>
    %c3_65 = arith.constant 3 : index
    %c0_66 = arith.constant 0 : index
    %c0_67 = arith.constant 0 : index
    %138 = vector.load %arg5[%c3_65, %c0_66, %c0_67] : memref<4x256x512xbf16, #tpu.memory_space<vmem>>, vector<1x256x512xbf16>
    %139 = vector.shape_cast %138 : vector<1x256x512xbf16> to vector<256x512xbf16>
    %cst_68 = arith.constant dense<0.000000e+00> : vector<32x512xf32>
    %140 = tpu.matmul %137, %139, %cst_68 {dimension_numbers = #tpu.dot_dimension_numbers<[1], [0], [0], [1], [0, 0, 1, 1], [], []>} : vector<32x256xbf16>, vector<256x512xbf16>, vector<32x512xf32> -> vector<32x512xf32>
    %141 = arith.addf %136, %140 : vector<32x512xf32>
    %142 = vector.extract_strided_slice %141 {offsets = [0, 0], sizes = [32, 256], strides = [1, 1]} : vector<32x512xf32> to vector<32x256xf32>
    %143 = vector.extract_strided_slice %141 {offsets = [0, 256], sizes = [32, 256], strides = [1, 1]} : vector<32x512xf32> to vector<32x256xf32>
    %144 = arith.maximumf %142, %143 : vector<32x256xf32>
    %145 = vector.extract_strided_slice %144 {offsets = [0, 0], sizes = [32, 128], strides = [1, 1]} : vector<32x256xf32> to vector<32x128xf32>
    %146 = vector.extract_strided_slice %144 {offsets = [0, 128], sizes = [32, 128], strides = [1, 1]} : vector<32x256xf32> to vector<32x128xf32>
    %147 = arith.maximumf %145, %146 : vector<32x128xf32>
    %148 = vector.broadcast %121 : vector<32x1xf32> to vector<32x128xf32>
    %149 = arith.addf %147, %148 : vector<32x128xf32>
    %cst_69 = arith.constant 0.000000e+00 : f32
    %150 = vector.broadcast %cst_69 : f32 to vector<32x128xf32>
    %151 = arith.maximumf %149, %150 : vector<32x128xf32>
    %152 = arith.truncf %151 : vector<32x128xf32> to vector<32x128xbf16>
    %c0_70 = arith.constant 0 : index
    %c0_71 = arith.constant 0 : index
    %c0_72 = arith.constant 0 : index
    %153 = vector.load %arg7[%c0_70, %c0_71, %c0_72] : memref<2x32x128xbf16, #tpu.memory_space<vmem>>, vector<1x32x128xbf16>
    %154 = vector.shape_cast %153 : vector<1x32x128xbf16> to vector<32x128xbf16>
    %155 = vector.shape_cast %152 : vector<32x128xbf16> to vector<1x32x128xbf16>
    tpu.vector_store %arg7[%c0_70, %c0_71, %c0_72], %155 {strides = array<i32>} : memref<2x32x128xbf16, #tpu.memory_space<vmem>>, vector<1x32x128xbf16>,
    %156 = vector.extract_strided_slice %120 {offsets = [0, 256], sizes = [128, 256], strides = [1, 1]} : vector<128x512xbf16> to vector<128x256xbf16>
    %157 = vector.extract_strided_slice %156 {offsets = [0, 0], sizes = [32, 256], strides = [1, 1]} : vector<128x256xbf16> to vector<32x256xbf16>
    %c0_73 = arith.constant 0 : index
    %c0_74 = arith.constant 0 : index
    %c0_75 = arith.constant 0 : index
    %158 = vector.load %arg5[%c0_73, %c0_74, %c0_75] : memref<4x256x512xbf16, #tpu.memory_space<vmem>>, vector<1x256x512xbf16>
    %159 = vector.shape_cast %158 : vector<1x256x512xbf16> to vector<256x512xbf16>
    %cst_76 = arith.constant dense<0.000000e+00> : vector<32x512xf32>
    %160 = tpu.matmul %157, %159, %cst_76 {dimension_numbers = #tpu.dot_dimension_numbers<[1], [0], [0], [1], [0, 0, 1, 1], [], []>} : vector<32x256xbf16>, vector<256x512xbf16>, vector<32x512xf32> -> vector<32x512xf32>
    %161 = vector.extract_strided_slice %156 {offsets = [32, 0], sizes = [32, 256], strides = [1, 1]} : vector<128x256xbf16> to vector<32x256xbf16>
    %c1_77 = arith.constant 1 : index
    %c0_78 = arith.constant 0 : index
    %c0_79 = arith.constant 0 : index
    %162 = vector.load %arg5[%c1_77, %c0_78, %c0_79] : memref<4x256x512xbf16, #tpu.memory_space<vmem>>, vector<1x256x512xbf16>
    %163 = vector.shape_cast %162 : vector<1x256x512xbf16> to vector<256x512xbf16>
    %cst_80 = arith.constant dense<0.000000e+00> : vector<32x512xf32>
    %164 = tpu.matmul %161, %163, %cst_80 {dimension_numbers = #tpu.dot_dimension_numbers<[1], [0], [0], [1], [0, 0, 1, 1], [], []>} : vector<32x256xbf16>, vector<256x512xbf16>, vector<32x512xf32> -> vector<32x512xf32>
    %165 = arith.addf %160, %164 : vector<32x512xf32>
    %166 = vector.extract_strided_slice %156 {offsets = [64, 0], sizes = [32, 256], strides = [1, 1]} : vector<128x256xbf16> to vector<32x256xbf16>
    %c2_81 = arith.constant 2 : index
    %c0_82 = arith.constant 0 : index
    %c0_83 = arith.constant 0 : index
    %167 = vector.load %arg5[%c2_81, %c0_82, %c0_83] : memref<4x256x512xbf16, #tpu.memory_space<vmem>>, vector<1x256x512xbf16>
    %168 = vector.shape_cast %167 : vector<1x256x512xbf16> to vector<256x512xbf16>
    %cst_84 = arith.constant dense<0.000000e+00> : vector<32x512xf32>
    %169 = tpu.matmul %166, %168, %cst_84 {dimension_numbers = #tpu.dot_dimension_numbers<[1], [0], [0], [1], [0, 0, 1, 1], [], []>} : vector<32x256xbf16>, vector<256x512xbf16>, vector<32x512xf32> -> vector<32x512xf32>
    %170 = arith.addf %165, %169 : vector<32x512xf32>
    %171 = vector.extract_strided_slice %156 {offsets = [96, 0], sizes = [32, 256], strides = [1, 1]} : vector<128x256xbf16> to vector<32x256xbf16>
    %c3_85 = arith.constant 3 : index
    %c0_86 = arith.constant 0 : index
    %c0_87 = arith.constant 0 : index
    %172 = vector.load %arg5[%c3_85, %c0_86, %c0_87] : memref<4x256x512xbf16, #tpu.memory_space<vmem>>, vector<1x256x512xbf16>
    %173 = vector.shape_cast %172 : vector<1x256x512xbf16> to vector<256x512xbf16>
    %cst_88 = arith.constant dense<0.000000e+00> : vector<32x512xf32>
    %174 = tpu.matmul %171, %173, %cst_88 {dimension_numbers = #tpu.dot_dimension_numbers<[1], [0], [0], [1], [0, 0, 1, 1], [], []>} : vector<32x256xbf16>, vector<256x512xbf16>, vector<32x512xf32> -> vector<32x512xf32>
    %175 = arith.addf %170, %174 : vector<32x512xf32>
    %176 = vector.extract_strided_slice %175 {offsets = [0, 0], sizes = [32, 256], strides = [1, 1]} : vector<32x512xf32> to vector<32x256xf32>
    %177 = vector.extract_strided_slice %175 {offsets = [0, 256], sizes = [32, 256], strides = [1, 1]} : vector<32x512xf32> to vector<32x256xf32>
    %178 = arith.maximumf %176, %177 : vector<32x256xf32>
    %179 = vector.extract_strided_slice %178 {offsets = [0, 0], sizes = [32, 128], strides = [1, 1]} : vector<32x256xf32> to vector<32x128xf32>
    %180 = vector.extract_strided_slice %178 {offsets = [0, 128], sizes = [32, 128], strides = [1, 1]} : vector<32x256xf32> to vector<32x128xf32>
    %181 = arith.maximumf %179, %180 : vector<32x128xf32>
    %182 = vector.broadcast %121 : vector<32x1xf32> to vector<32x128xf32>
    %183 = arith.addf %181, %182 : vector<32x128xf32>
    %cst_89 = arith.constant 0.000000e+00 : f32
    %184 = vector.broadcast %cst_89 : f32 to vector<32x128xf32>
    %185 = arith.maximumf %183, %184 : vector<32x128xf32>
    %186 = arith.truncf %185 : vector<32x128xf32> to vector<32x128xbf16>
    %c1_90 = arith.constant 1 : index
    %c0_91 = arith.constant 0 : index
    %c0_92 = arith.constant 0 : index
    %187 = vector.load %arg7[%c1_90, %c0_91, %c0_92] : memref<2x32x128xbf16, #tpu.memory_space<vmem>>, vector<1x32x128xbf16>
    %188 = vector.shape_cast %187 : vector<1x32x128xbf16> to vector<32x128xbf16>
    %189 = vector.shape_cast %186 : vector<32x128xbf16> to vector<1x32x128xbf16>
    tpu.vector_store %arg7[%c1_90, %c0_91, %c0_92], %189 {strides = array<i32>} : memref<2x32x128xbf16, #tpu.memory_space<vmem>>, vector<1x32x128xbf16>,
    return
  }
  func.func @transform_0(%arg0: i32) -> (i32, i32) {
    %c0_i32 = arith.constant 0 : i32
    %c0_i32_0 = arith.constant 0 : i32
    return %c0_i32, %arg0 : i32, i32
  }
  func.func @transform_1(%arg0: i32) -> (i32, i32, i32) {
    %c0_i32 = arith.constant 0 : i32
    %c0_i32_0 = arith.constant 0 : i32
    %c0_i32_1 = arith.constant 0 : i32
    %c0_i32_2 = arith.constant 0 : i32
    return %c0_i32, %c0_i32_0, %c0_i32_1 : i32, i32, i32
  }
  func.func @transform_2(%arg0: i32) -> (i32, i32) {
    %c0_i32 = arith.constant 0 : i32
    %c0_i32_0 = arith.constant 0 : i32
    %c0_i32_1 = arith.constant 0 : i32
    return %c0_i32, %c0_i32_0 : i32, i32
  }
  func.func @transform_3(%arg0: i32) -> (i32, i32) {
    %c0_i32 = arith.constant 0 : i32
    %c0_i32_0 = arith.constant 0 : i32
    %c0_i32_1 = arith.constant 0 : i32
    return %c0_i32, %c0_i32_0 : i32, i32
  }
  func.func @transform_4(%arg0: i32) -> (i32, i32, i32) {
    %c0_i32 = arith.constant 0 : i32
    %c0_i32_0 = arith.constant 0 : i32
    %c0_i32_1 = arith.constant 0 : i32
    %c0_i32_2 = arith.constant 0 : i32
    return %c0_i32, %c0_i32_0, %c0_i32_1 : i32, i32, i32
  }
  func.func @transform_5(%arg0: i32) -> (i32, i32) {
    %c0_i32 = arith.constant 0 : i32
    %c0_i32_0 = arith.constant 0 : i32
    %c0_i32_1 = arith.constant 0 : i32
    return %c0_i32, %c0_i32_0 : i32, i32
  }
  func.func @transform_6(%arg0: i32) -> (i32, i32, i32) {
    %c0_i32 = arith.constant 0 : i32
    %c0_i32_0 = arith.constant 0 : i32
    %c0_i32_1 = arith.constant 0 : i32
    return %arg0, %c0_i32, %c0_i32_0 : i32, i32, i32
  }
}

module attributes {stable_mosaic.version = 11 : i64} {
  func.func @_fc_stage_kernel(%arg0: i32, %arg1: memref<2x4096xbf16, #tpu.memory_space<vmem>>, %arg2: memref<4096x256xbf16, #tpu.memory_space<vmem>>, %arg3: memref<1x256xf32, #tpu.memory_space<vmem>>, %arg4: memref<256x128xbf16, #tpu.memory_space<vmem>>, %arg5: memref<1x128xf32, #tpu.memory_space<vmem>>, %arg6: memref<2x128xf32, #tpu.memory_space<vmem>>) attributes {dimension_semantics = [#tpu.dimension_semantics<parallel>], iteration_bounds = array<i64: 1>, scalar_prefetch = 0 : i64, scratch_operands = 0 : i64, tpu.core_type = #tpu.core_type<tc>, window_params = [{transform_indices = @transform_0, window_bounds = array<i64: 2, 4096>}, {pipeline_mode = #tpu.pipeline_mode<synchronous>, transform_indices = @transform_1, window_bounds = array<i64: 4096, 256>}, {pipeline_mode = #tpu.pipeline_mode<synchronous>, transform_indices = @transform_2, window_bounds = array<i64: 1, 256>}, {pipeline_mode = #tpu.pipeline_mode<synchronous>, transform_indices = @transform_3, window_bounds = array<i64: 256, 128>}, {pipeline_mode = #tpu.pipeline_mode<synchronous>, transform_indices = @transform_4, window_bounds = array<i64: 1, 128>}, {transform_indices = @transform_5, window_bounds = array<i64: 2, 128>}]} {
    %c0 = arith.constant 0 : index
    %c0_0 = arith.constant 0 : index
    %0 = vector.load %arg1[%c0, %c0_0] : memref<2x4096xbf16, #tpu.memory_space<vmem>>, vector<2x4096xbf16>
    %c0_1 = arith.constant 0 : index
    %c0_2 = arith.constant 0 : index
    %1 = vector.load %arg2[%c0_1, %c0_2] : memref<4096x256xbf16, #tpu.memory_space<vmem>>, vector<4096x256xbf16>
    %cst = arith.constant dense<0.000000e+00> : vector<2x256xf32>
    %2 = tpu.matmul %0, %1, %cst {dimension_numbers = #tpu.dot_dimension_numbers<[1], [0], [0], [1], [0, 0, 1, 1], [], []>} : vector<2x4096xbf16>, vector<4096x256xbf16>, vector<2x256xf32> -> vector<2x256xf32>
    %c0_3 = arith.constant 0 : index
    %c0_4 = arith.constant 0 : index
    %3 = vector.load %arg3[%c0_3, %c0_4] : memref<1x256xf32, #tpu.memory_space<vmem>>, vector<1x256xf32>
    %4 = vector.broadcast %3 : vector<1x256xf32> to vector<2x256xf32>
    %5 = arith.addf %2, %4 : vector<2x256xf32>
    %cst_5 = arith.constant 0.000000e+00 : f32
    %6 = vector.broadcast %cst_5 : f32 to vector<2x256xf32>
    %7 = arith.maximumf %5, %6 : vector<2x256xf32>
    %8 = arith.truncf %7 : vector<2x256xf32> to vector<2x256xbf16>
    %c0_6 = arith.constant 0 : index
    %c0_7 = arith.constant 0 : index
    %9 = vector.load %arg4[%c0_6, %c0_7] : memref<256x128xbf16, #tpu.memory_space<vmem>>, vector<256x128xbf16>
    %cst_8 = arith.constant dense<0.000000e+00> : vector<2x128xf32>
    %10 = tpu.matmul %8, %9, %cst_8 {dimension_numbers = #tpu.dot_dimension_numbers<[1], [0], [0], [1], [0, 0, 1, 1], [], []>} : vector<2x256xbf16>, vector<256x128xbf16>, vector<2x128xf32> -> vector<2x128xf32>
    %c0_9 = arith.constant 0 : index
    %c0_10 = arith.constant 0 : index
    %11 = vector.load %arg5[%c0_9, %c0_10] : memref<1x128xf32, #tpu.memory_space<vmem>>, vector<1x128xf32>
    %12 = vector.broadcast %11 : vector<1x128xf32> to vector<2x128xf32>
    %13 = arith.addf %10, %12 : vector<2x128xf32>
    %cst_11 = arith.constant dense<0xFF800000> : vector<2xf32>
    %14 = vector.multi_reduction <maximumf>, %13, %cst_11 [1] : vector<2x128xf32> to vector<2xf32>
    %15 = vector.shape_cast %14 : vector<2xf32> to vector<2x1xf32>
    %16 = vector.broadcast %15 : vector<2x1xf32> to vector<2x128xf32>
    %17 = arith.subf %13, %16 : vector<2x128xf32>
    %18 = math.exp %17 : vector<2x128xf32>
    %cst_12 = arith.constant dense<0.000000e+00> : vector<2xf32>
    %19 = vector.multi_reduction <add>, %18, %cst_12 [1] : vector<2x128xf32> to vector<2xf32>
    %20 = vector.shape_cast %19 : vector<2xf32> to vector<2x1xf32>
    %21 = tpu.reciprocal %20 {approx = true} : vector<2x1xf32> -> vector<2x1xf32>
    %22 = vector.broadcast %21 : vector<2x1xf32> to vector<2x128xf32>
    %23 = arith.mulf %18, %22 : vector<2x128xf32>
    %c0_13 = arith.constant 0 : index
    %c0_14 = arith.constant 0 : index
    %24 = vector.load %arg6[%c0_13, %c0_14] : memref<2x128xf32, #tpu.memory_space<vmem>>, vector<2x128xf32>
    tpu.vector_store %arg6[%c0_13, %c0_14], %23 {strides = array<i32>} : memref<2x128xf32, #tpu.memory_space<vmem>>, vector<2x128xf32>,
    return
  }
  func.func @transform_0(%arg0: i32) -> (i32, i32) {
    %c0_i32 = arith.constant 0 : i32
    %c0_i32_0 = arith.constant 0 : i32
    return %arg0, %c0_i32 : i32, i32
  }
  func.func @transform_1(%arg0: i32) -> (i32, i32) {
    %c0_i32 = arith.constant 0 : i32
    %c0_i32_0 = arith.constant 0 : i32
    %c0_i32_1 = arith.constant 0 : i32
    return %c0_i32, %c0_i32_0 : i32, i32
  }
  func.func @transform_2(%arg0: i32) -> (i32, i32) {
    %c0_i32 = arith.constant 0 : i32
    %c0_i32_0 = arith.constant 0 : i32
    %c0_i32_1 = arith.constant 0 : i32
    return %c0_i32, %c0_i32_0 : i32, i32
  }
  func.func @transform_3(%arg0: i32) -> (i32, i32) {
    %c0_i32 = arith.constant 0 : i32
    %c0_i32_0 = arith.constant 0 : i32
    %c0_i32_1 = arith.constant 0 : i32
    return %c0_i32, %c0_i32_0 : i32, i32
  }
  func.func @transform_4(%arg0: i32) -> (i32, i32) {
    %c0_i32 = arith.constant 0 : i32
    %c0_i32_0 = arith.constant 0 : i32
    %c0_i32_1 = arith.constant 0 : i32
    return %c0_i32, %c0_i32_0 : i32, i32
  }
  func.func @transform_5(%arg0: i32) -> (i32, i32) {
    %c0_i32 = arith.constant 0 : i32
    %c0_i32_0 = arith.constant 0 : i32
    return %arg0, %c0_i32 : i32, i32
  }
}

</mosaic_0001>

<bundles_post_ra>
// kernel: fashion_mnist_forward.2
= control target key start
LH: loop header
LB: loop body
LE: loop exit
PB: predicated region body
PF: predicated region fallthrough
CT: control target
= control target key end

     0   :  { %v11221_v0 = vmov 0   ;;  %v80_v5 = vlaneseq  ;;  %vm1547_vm0 = vcmask 523264   ;;  %s11214_s1 = inlined_call_operand.vmem [shape: f32[4,64,1], index: 1, kind: input, shape index: {}]   ;;  %s11215_s0 = inlined_call_operand.vmem [shape: f32[9,512], index: 0, kind: input, shape index: {}]   ;;  %s11216_s2 = inlined_call_operand.vmem [shape: f32[64,1], index: 2, kind: input, shape index: {}]   ;;  %s11217_s5 = inlined_call_operand.vmem [shape: f32[32,1], index: 5, kind: input, shape index: {}]   ;;  %s11218_s3 = inlined_call_operand.vmem [shape: bf16[128,64], index: 3, kind: input, shape index: {}]   ;;  %s11219_s4 = inlined_call_operand.vmem [shape: bf16[4,256,512], index: 4, kind: input, shape index: {}]   ;;  %s11220_s6 = inlined_call_operand.vmem [shape: bf16[2,32,128], index: 6, kind: output, shape index: {}]  }
   0x1   :  { %6919 = vset.pattern.permute.xlu1 %v11221_v0  ;;  %6918 = vset.pattern.permute.xlu0 %v11221_v0  ;;  %v5932_v1 = vld [vmem:[%s11214_s1 + $0x70] sm:$0xff]  ;;  %v5933_v3 = vld [vmem:[%s11214_s1 + $0x78] sm:$0xff]  ;;  %v37_v9 = vld [vmem:[%s11214_s1 + $0x28] sm:$0xff] }
   0x2   :  { %v38_v2 = vld [vmem:[%s11214_s1 + $0x30] sm:$0xff]  ;;  %169 = vperm.xlu1 %6919, %v5932_v1   ;;  %v39_v4 = vld [vmem:[%s11214_s1 + $0x38] sm:$0xff]  ;;  %1604 = vmatprep.mubr.bf16.mxu0 %v11221_v0  ;;  %v81_v8 = vshrl.u32 %v80_v5, 7  ;;  %v36_v10 = vld [vmem:[%s11214_s1 + $0x20] sm:$0xff] }
   0x3   :  { %72 = vperm.xlu0 %6918, %v38_v2   ;;  %1717 = vmatprep.mubr.bf16.mxu1 %v11221_v0  ;;  %v5941_v6 = vld [vmem:[%s11214_s1 + $0xb8] sm:$0xff]  ;;  %v5940_v7 = vld [vmem:[%s11214_s1 + $0xb0] sm:$0xff]  ;;  %v5931_v13 = vld [vmem:[%s11214_s1 + $0x68] sm:$0xff] }
   0x4   :  { %v7766_v11 = vsub.s32 1, %v81_v8  ;;  %v7768_v12 = vsub.s32 3, %v81_v8  ;;  %v5930_v14 = vld [vmem:[%s11214_s1 + $0x60] sm:$0xff]  ;;  %v7776_v15 = vsub.s32 4, %v81_v8  ;;  %v26_v16 = vld [vmem:[%s11215_s0 + $0x10] sm:$0xff]  ;;  %v7781_v17 = vsub.s32 5, %v81_v8 }
   0x5   :  { %v7786_v19 = vsub.s32 7, %v81_v8  ;;  %v5949_v21 = vld [vmem:[%s11214_s1 + $0xf8] sm:$0xff]  ;;  %v5948_v22 = vld [vmem:[%s11214_s1 + $0xf0] sm:$0xff]  ;;  %v7797_v23 = vsub.s32 0, %v81_v8  ;;  %v7802_v25 = vsub.s32 2, %v81_v8  ;;  %v5939_v28 = vld [vmem:[%s11214_s1 + $0xa8] sm:$0xff] }
   0x6   :  { %174 = vperm.xlu1 %6919, %v5933_v3   ;;  %v7784_v18 = vrot.slane %v26_v16, %v7766_v11  ;;  %v7789_v20 = vrot.slane %v26_v16, %v7768_v12  ;;  %v7800_v24 = vrot.slane %v26_v16, %v7776_v15  ;;  %v7805_v26 = vrot.slane %v26_v16, %v7781_v17  ;;  %v5938_v29 = vld [vmem:[%s11214_s1 + $0xa0] sm:$0xff]  ;;  %v35_v32 = vld [vmem:[%s11214_s1 + $0x18] sm:$0xff]  ;;  %v34_v33 = vld [vmem:[%s11214_s1 + $0x10] sm:$0xff] }
   0x7   :  { %77 = vperm.xlu0 %6918, %v39_v4   ;;  %v7808_v27 = vrot.slane %v26_v16, %v7786_v19  ;;  %v7817_v30 = vrot.slane %v26_v16, %v7797_v23  ;;  %v7820_v31 = vrot.slane %v26_v16, %v7802_v25  ;;  %v5929_v34 = vld [vmem:[%s11214_s1 + $0x58] sm:$0xff]  ;;  %v5928_v35 = vld [vmem:[%s11214_s1 + $0x50] sm:$0xff]  ;;  %v7834_v36 = vsub.s32 6, %v81_v8  ;;  %v5947_v37 = vld [vmem:[%s11214_s1 + $0xe8] sm:$0xff] }
   0x8   :  { %11305 = vst [vmem:[#allocation2_spill] sm:$0xff] %v7805_v26  ;;  %v5946_v38 = vld [vmem:[%s11214_s1 + $0xe0] sm:$0xff]  ;;  %v5937_v40 = vld [vmem:[%s11214_s1 + $0x98] sm:$0xff]  ;;  %v5936_v41 = vld [vmem:[%s11214_s1 + $0x90] sm:$0xff] }
   0x9   :  { %11306 = vst [vmem:[#allocation3_spill] sm:$0xff] %v7808_v27  ;;  %11307 = vst [vmem:[#allocation4_spill] sm:$0xff] %v7817_v30  ;;  %v7843_v39 = vrot.slane %v26_v16, %v7834_v36  ;;  %v33_v42 = vld [vmem:[%s11214_s1 + $0x8] sm:$0xff]  ;;  %v32_v43 = vld [vmem:[%s11214_s1] sm:$0xff] }
   0xa   :  { %303 = vperm.xlu1 %6919, %v5941_v6   ;;  %11308 = vst [vmem:[#allocation5_spill] sm:$0xff] %v7820_v31  ;;  %v5927_v44 = vld [vmem:[%s11214_s1 + $0x48] sm:$0xff]  ;;  %v5926_v45 = vld [vmem:[%s11214_s1 + $0x40] sm:$0xff]  ;;  %v5945_v46 = vld [vmem:[%s11214_s1 + $0xd8] sm:$0xff] }
   0xb   :  { %298 = vperm.xlu0 %6918, %v5940_v7   ;;  %11309 = vst [vmem:[#allocation6_spill] sm:$0xff] %v7843_v39  ;;  %v5944_v47 = vld [vmem:[%s11214_s1 + $0xd0] sm:$0xff]  ;;  %v5935_v48 = vld [vmem:[%s11214_s1 + $0x88] sm:$0xff]  ;;  %v5934_v49 = vld [vmem:[%s11214_s1 + $0x80] sm:$0xff] }
   0xc   :  { %v1370_v50 = vld [vmem:[%s11216_s2 + $0x38] sm:$0xff]  ;;  %v1369_v51 = vld [vmem:[%s11216_s2 + $0x30] sm:$0xff]  ;;  %v5943_v52 = vld [vmem:[%s11214_s1 + $0xc8] sm:$0xff] }
   0xd   :  { %v5942_v53 = vld [vmem:[%s11214_s1 + $0xc0] sm:$0xff]  ;;  %v1368_v54 = vld [vmem:[%s11216_s2 + $0x28] sm:$0xff]  ;;  %v1366_v56 = vld [vmem:[%s11216_s2 + $0x18] sm:$0xff] }
   0xe   :  { %67 = vperm.xlu1 %6919, %v37_v9   ;;  %v1367_v55 = vld [vmem:[%s11216_s2 + $0x20] sm:$0xff]  ;;  %v1365_v57 = vld [vmem:[%s11216_s2 + $0x10] sm:$0xff]  ;;  %v1364_v58 = vld [vmem:[%s11216_s2 + $0x8] sm:$0xff] }
   0xf   :  { %62 = vperm.xlu0 %6918, %v36_v10   ;;  %v1363_v59 = vld [vmem:[%s11216_s2] sm:$0xff]  ;;  %v1831_v60 = vld [vmem:[%s11217_s5 + $0x8] sm:$0xff]  ;;  %v1833_v62 = vld [vmem:[%s11217_s5 + $0x18] sm:$0xff] }
  0x10   :  { %v1830_v61 = vld [vmem:[%s11217_s5] sm:$0xff]  ;;  %v1832_v63 = vld [vmem:[%s11217_s5 + $0x10] sm:$0xff]  ;;  %v25_v2 = vld [vmem:[%s11215_s0 + $0x8] sm:$0xff] }
  0x11   :  { %v24_v1 = vld [vmem:[%s11215_s0] sm:$0xff]  ;;  %v27_v3 = vld [vmem:[%s11215_s0 + $0x18] sm:$0xff]  ;;  %v7939_v8 = vrot.slane %v25_v2, %v7797_v23  ;;  %v7942_v9 = vrot.slane %v25_v2, %v7766_v11  ;;  %v7954_v16 = vrot.slane %v25_v2, %v7776_v15 }
  0x12   :  { %164 = vperm.xlu1 %6919, %v5931_v13   ;;  %v7927_v4 = vrot.slane %v24_v1, %v7766_v11  ;;  %v7930_v5 = vrot.slane %v24_v1, %v7768_v12  ;;  %v7933_v6 = vrot.slane %v24_v1, %v7776_v15  ;;  %v7936_v7 = vrot.slane %v24_v1, %v7781_v17 }
  0x13   :  { %159 = vperm.xlu0 %6918, %v5930_v14   ;;  %11311 = vst [vmem:[#allocation8_spill] sm:$0xff] %v7939_v8  ;;  %v7945_v10 = vrot.slane %v27_v3, %v7766_v11  ;;  %v7948_v13 = vrot.slane %v25_v2, %v7768_v12  ;;  %v7951_v14 = vrot.slane %v27_v3, %v7768_v12 }
  0x14   :  { %11310 = vst [vmem:[#allocation7_spill] sm:$0xff] %v7936_v7  ;;  %v7966_v11 = vrot.slane %v27_v3, %v7781_v17  ;;  %v7972_v12 = vrot.slane %v24_v1, %v7786_v19 }
  0x16   :  { %432 = vperm.xlu1 %6919, %v5949_v21   ;;  %v7957_v21 = vrot.slane %v27_v3, %v7776_v15  ;;  %11314 = vst [vmem:[#allocation11_spill] sm:$0xff] %v7966_v11  ;;  %11316 = vst [vmem:[#allocation13_spill] sm:$0xff] %v7972_v12  ;;  %v7978_v15 = vrot.slane %v27_v3, %v7786_v19 }
  0x17   :  { %427 = vperm.xlu0 %6918, %v5948_v22   ;;  %v7960_v22 = vrot.slane %v25_v2, %v7802_v25 }
  0x18   :  { %11318 = vst [vmem:[#allocation15_spill] sm:$0xff] %v7978_v15 }
  0x19   :  { %11312 = vst [vmem:[#allocation9_spill] sm:$0xff] %v7960_v22 }
  0x1a   :  { %293 = vperm.xlu1 %6919, %v5939_v28   ;;  %v7963_v28 = vrot.slane %v25_v2, %v7781_v17 }
  0x1b   :  { %288 = vperm.xlu0 %6918, %v5938_v29   ;;  %v7969_v29 = vrot.slane %v25_v2, %v7834_v36 }
  0x1c   :  { %11313 = vst [vmem:[#allocation10_spill] sm:$0xff] %v7963_v28 }
  0x1d   :  { %11315 = vst [vmem:[#allocation12_spill] sm:$0xff] %v7969_v29 }
  0x1e   :  { %57 = vperm.xlu1 %6919, %v35_v32   ;;  %v7975_v32 = vrot.slane %v25_v2, %v7786_v19  ;;  %v8000_v19 = vrot.slane %v24_v1, %v7834_v36 }
  0x1f   :  { %52 = vperm.xlu0 %6918, %v34_v33   ;;  %v7981_v33 = vrot.slane %v27_v3, %v7797_v23 }
  0x20   :  { %11317 = vst [vmem:[#allocation14_spill] sm:$0xff] %v7975_v32  ;;  %11325 = vst [vmem:[#allocation22_spill] sm:$0xff] %v8000_v19 }
  0x21   :  { %11319 = vst [vmem:[#allocation16_spill] sm:$0xff] %v7981_v33 }
  0x22   :  { %154 = vperm.xlu1 %6919, %v5929_v34   ;;  %v7984_v34 = vrot.slane %v27_v3, %v7802_v25 }
  0x23   :  { %149 = vperm.xlu0 %6918, %v5928_v35  }
  0x24   :  { %11320 = vst [vmem:[#allocation17_spill] sm:$0xff] %v7984_v34 }
  0x26   :  { %422 = vperm.xlu1 %6919, %v5947_v37   ;;  %v7991_v37 = vrot.slane %v27_v3, %v7834_v36 }
  0x27   :  { %417 = vperm.xlu0 %6918, %v5946_v38   ;;  %v7994_v38 = vrot.slane %v24_v1, %v7797_v23 }
  0x28   :  { %11323 = vst [vmem:[#allocation20_spill] sm:$0xff] %v7991_v37 }
  0x29   :  { %11324 = vst [vmem:[#allocation21_spill] sm:$0xff] %v7994_v38 }
  0x2a   :  { %283 = vperm.xlu1 %6919, %v5937_v40   ;;  %v7997_v40 = vrot.slane %v24_v1, %v7802_v25 }
  0x2b   :  { %278 = vperm.xlu0 %6918, %v5936_v41  }
  0x2e   :  { %47 = vperm.xlu1 %6919, %v33_v42  }
  0x2f   :  { %42 = vperm.xlu0 %6918, %v32_v43  }
  0x32   :  { %144 = vperm.xlu1 %6919, %v5927_v44  }
  0x33   :  { %139 = vperm.xlu0 %6918, %v5926_v45  }
  0x36   :  { %412 = vperm.xlu1 %6919, %v5945_v46  }
  0x37   :  { %407 = vperm.xlu0 %6918, %v5944_v47  }
  0x3a   :  { %273 = vperm.xlu1 %6919, %v5935_v48  }
  0x3b   :  { %268 = vperm.xlu0 %6918, %v5934_v49  }
  0x3e   :  { %1408 = vperm.xlu1 %6919, %v1370_v50  }
  0x3f   :  { %1403 = vperm.xlu0 %6918, %v1369_v51  }
  0x42   :  { %402 = vperm.xlu1 %6919, %v5943_v52  }
  0x43   :  { %397 = vperm.xlu0 %6918, %v5942_v53  }
  0x46   :  { %1398 = vperm.xlu1 %6919, %v1368_v54  }
  0x47   :  { %1393 = vperm.xlu0 %6918, %v1367_v55  }
  0x4a   :  { %1388 = vperm.xlu1 %6919, %v1366_v56  }
  0x4b   :  { %1383 = vperm.xlu0 %6918, %v1365_v57  }
  0x4e   :  { %1378 = vperm.xlu1 %6919, %v1364_v58  }
  0x4f   :  { %1373 = vperm.xlu0 %6918, %v1363_v59  }
  0x52   :  { %3848 = vperm.xlu1 %6919, %v1831_v60  }
  0x53   :  { %3843 = vperm.xlu0 %6918, %v1830_v61  }
  0x56   :  { %3858 = vperm.xlu1 %6919, %v1833_v62  }
  0x57   :  { %3853 = vperm.xlu0 %6918, %v1832_v63  }
  0x7d   :  { %v7986_v17 = vpop.permute.xlu1 %169 }
  0x7e   :  { %11321 = vst [vmem:[#allocation18_spill] sm:$0xff] %v7986_v17  ;;  %v7988_v35 = vpop.permute.xlu0 %72  ;;  %v218_v42 = vmul.f32 %v7942_v9, %v7986_v17  ;;  %v588_v44 = vmul.f32 %v7960_v22, %v7986_v17  ;;  %v860_v25 = vmul.f32 %v7954_v16, %v7986_v17  ;;  %v1148_v45 = vmul.f32 %v7963_v28, %v7986_v17 }
  0x7f   :  { %11322 = vst [vmem:[#allocation19_spill] sm:$0xff] %v7988_v35  ;;  %v121_v41 = vmul.f32 %v7939_v8, %v7988_v35  ;;  %v540_v43 = vmul.f32 %v7942_v9, %v7988_v35  ;;  %v828_v23 = vmul.f32 %v7948_v13, %v7988_v35  ;;  %v1116_v36 = vmul.f32 %v7954_v16, %v7988_v35 }
  0x80   :  { %v123_v48 = vmul.f32 %v7981_v33, %v7988_v35  ;;  %v220_v49 = vmul.f32 %v7945_v10, %v7986_v17  ;;  %v542_v54 = vmul.f32 %v7945_v10, %v7988_v35  ;;  %v590_v55 = vmul.f32 %v7984_v34, %v7986_v17 }
  0x81   :  { %v250_v46 = vadd.f32 %v218_v42, %v121_v41  ;;  %v620_v47 = vadd.f32 %v588_v44, %v540_v43  ;;  %v8022_v50 = vpop.permute.xlu1 %174  ;;  %v892_v52 = vadd.f32 %v860_v25, %v828_v23  ;;  %v1180_v53 = vadd.f32 %v1148_v45, %v1116_v36 }
  0x82   :  { %11326 = vst [vmem:[#allocation23_spill] sm:$0xff] %v8022_v50  ;;  %v8024_v51 = vpop.permute.xlu0 %77  ;;  %v222_v57 = vmul.f32 %v7942_v9, %v8022_v50  ;;  %v592_v59 = vmul.f32 %v7960_v22, %v8022_v50  ;;  %v864_v61 = vmul.f32 %v7954_v16, %v8022_v50  ;;  %v1152_v63 = vmul.f32 %v7963_v28, %v8022_v50 }
  0x83   :  { %11327 = vst [vmem:[#allocation24_spill] sm:$0xff] %v8024_v51  ;;  %v125_v56 = vmul.f32 %v7939_v8, %v8024_v51  ;;  %v544_v58 = vmul.f32 %v7942_v9, %v8024_v51  ;;  %v832_v60 = vmul.f32 %v7948_v13, %v8024_v51  ;;  %v1120_v62 = vmul.f32 %v7954_v16, %v8024_v51 }
  0x84   :  { %v127_v3 = vmul.f32 %v7981_v33, %v8024_v51  ;;  %v224_v41 = vmul.f32 %v7945_v10, %v8022_v50  ;;  %v252_v25 = vadd.f32 %v220_v49, %v123_v48  ;;  %v546_v36 = vmul.f32 %v7945_v10, %v8024_v51 }
  0x85   :  { %v254_v1 = vadd.f32 %v222_v57, %v125_v56  ;;  %v624_v2 = vadd.f32 %v592_v59, %v544_v58  ;;  %v8050_v42 = vpop.permute.xlu1 %303  ;;  %v896_v44 = vadd.f32 %v864_v61, %v832_v60  ;;  %v1184_v23 = vadd.f32 %v1152_v63, %v1120_v62 }
  0x86   :  { %11328 = vst [vmem:[#allocation25_spill] sm:$0xff] %v8050_v42  ;;  %v8052_v43 = vpop.permute.xlu0 %298  ;;  %v351_v56 = vmul.f32 %v7948_v13, %v8050_v42  ;;  %v656_v58 = vmul.f32 %v7954_v16, %v8050_v42  ;;  %v944_v48 = vmul.f32 %v7969_v29, %v8050_v42  ;;  %v1216_v60 = vmul.f32 %v7975_v32, %v8050_v42 }
  0x87   :  { %11329 = vst [vmem:[#allocation26_spill] sm:$0xff] %v8052_v43  ;;  %v347_v45 = vmul.f32 %v7948_v13, %v8052_v43  ;;  %v652_v57 = vmul.f32 %v7954_v16, %v8052_v43  ;;  %v940_v59 = vmul.f32 %v7969_v29, %v8052_v43  ;;  %v1212_v49 = vmul.f32 %v7975_v32, %v8052_v43 }
  0x88   :  { %v383_v62 = vadd.f32 %v351_v56, %v254_v1  ;;  %v688_v0 = vadd.f32 %v656_v58, %v624_v2  ;;  %v976_v19 = vadd.f32 %v944_v48, %v896_v44  ;;  %v1248_v7 = vadd.f32 %v1216_v60, %v1184_v23 }
  0x89   :  { %v379_v61 = vadd.f32 %v347_v45, %v250_v46  ;;  %v684_v63 = vadd.f32 %v652_v57, %v620_v47  ;;  %v8072_v27 = vpop.permute.xlu1 %67  ;;  %v972_v39 = vadd.f32 %v940_v59, %v892_v52  ;;  %v1244_v26 = vadd.f32 %v1212_v49, %v1180_v53  ;;  %v8113_v49 = vld [vmem:[%s11215_s0 + $0x28] ss:$0 sm:$0xff] }
  0x8a   :  { %v8074_v12 = vpop.permute.xlu0 %62  ;;  %v256_v31 = vadd.f32 %v224_v41, %v127_v3  ;;  %v349_v29 = vmul.f32 %v7951_v14, %v8052_v43  ;;  %v353_v22 = vmul.f32 %v7951_v14, %v8050_v42  ;;  %v594_v46 = vmul.f32 %v7984_v34, %v8022_v50 }
  0x8b   :  { %11330 = vst [vmem:[#allocation27_spill] sm:$0xff] %v8074_v12  ;;  %v622_v47 = vadd.f32 %v590_v55, %v542_v54  ;;  %v654_v1 = vmul.f32 %v7957_v21, %v8052_v43  ;;  %v658_v52 = vmul.f32 %v7957_v21, %v8050_v42  ;;  %v830_v53 = vmul.f32 %v7951_v14, %v7988_v35 }
  0x8c   :  { %v381_v2 = vadd.f32 %v349_v29, %v252_v25  ;;  %v385_v3 = vadd.f32 %v353_v22, %v256_v31  ;;  %v626_v41 = vadd.f32 %v594_v46, %v546_v36  ;;  %v834_v44 = vmul.f32 %v7951_v14, %v8024_v51 }
  0x8d   :  { %v8090_v23 = vpop.permute.xlu1 %164  ;;  %v686_v54 = vadd.f32 %v654_v1, %v622_v47  ;;  %v862_v55 = vmul.f32 %v7957_v21, %v7986_v17  ;;  %v866_v56 = vmul.f32 %v7957_v21, %v8022_v50  ;;  %v942_v57 = vmul.f32 %v7991_v37, %v8052_v43 }
  0x8e   :  { %v8092_v45 = vpop.permute.xlu0 %159  ;;  %v690_v29 = vadd.f32 %v658_v52, %v626_v41  ;;  %v946_v31 = vmul.f32 %v7991_v37, %v8050_v42  ;;  %v1118_v22 = vmul.f32 %v7957_v21, %v7988_v35  ;;  %v1122_v25 = vmul.f32 %v7957_v21, %v8024_v51 }
  0x8f   :  { %11331 = vst [vmem:[#allocation28_spill] sm:$0xff] %v8092_v45  ;;  %v894_v36 = vadd.f32 %v862_v55, %v830_v53  ;;  %v898_v58 = vadd.f32 %v866_v56, %v834_v44  ;;  %v1150_v59 = vmul.f32 %v7966_v11, %v7986_v17  ;;  %v1154_v48 = vmul.f32 %v7966_v11, %v8022_v50 }
  0x90   :  { %v1214_v60 = vmul.f32 %v7978_v15, %v8052_v43  ;;  %v1218_v46 = vmul.f32 %v7978_v15, %v8050_v42  ;;  %v8121_v47 = vmul.f32 %v7994_v38, %v8072_v27  ;;  %v8125_v1 = vmul.f32 %v7939_v8, %v8072_v27 }
  0x91   :  { %v8127_v52 = vpop.permute.xlu1 %432  ;;  %v974_v41 = vadd.f32 %v942_v57, %v894_v36  ;;  %v978_v44 = vadd.f32 %v946_v31, %v898_v58  ;;  %v1182_v55 = vadd.f32 %v1150_v59, %v1118_v22  ;;  %v1186_v56 = vadd.f32 %v1154_v48, %v1122_v25 }
  0x92   :  { %11332 = vst [vmem:[#allocation29_spill] sm:$0xff] %v8127_v52  ;;  %v8129_v53 = vpop.permute.xlu0 %427  ;;  %v480_v42 = vmul.f32 %v7954_v16, %v8127_v52  ;;  %v736_v17 = vmul.f32 %v7963_v28, %v8127_v52  ;;  %v1024_v57 = vmul.f32 %v7975_v32, %v8127_v52  ;;  %v1296_v22 = vmul.f32 %v8113_v49, %v8127_v52 }
  0x93   :  { %11333 = vst [vmem:[#allocation30_spill] sm:$0xff] %v8129_v53  ;;  %v476_v43 = vmul.f32 %v7954_v16, %v8129_v53  ;;  %v732_v50 = vmul.f32 %v7963_v28, %v8129_v53  ;;  %v1020_v51 = vmul.f32 %v7975_v32, %v8129_v53  ;;  %v1292_v31 = vmul.f32 %v8113_v49, %v8129_v53 }
  0x94   :  { %v512_v36 = vadd.f32 %v480_v42, %v383_v62  ;;  %v768_v59 = vadd.f32 %v736_v17, %v688_v0  ;;  %v1056_v8 = vadd.f32 %v1024_v57, %v976_v19  ;;  %v8153_v12 = vadd.f32 %v1296_v22, %v1248_v7 }
  0x95   :  { %v508_v25 = vadd.f32 %v476_v43, %v379_v61  ;;  %v764_v58 = vadd.f32 %v732_v50, %v684_v63  ;;  %v8147_v48 = vpop.permute.xlu1 %293  ;;  %v1052_v45 = vadd.f32 %v1020_v51, %v972_v39  ;;  %v8151_v38 = vadd.f32 %v1292_v31, %v1244_v26  ;;  %v8174_v50 = vld [vmem:[%s11215_s0 + $0x38] ss:$0 sm:$0xff] }
  0x96   :  { %v8149_v35 = vpop.permute.xlu0 %288  ;;  %v800_v37 = vmax.f32 %v512_v36, %v768_v59  ;;  %v478_v28 = vmul.f32 %v7957_v21, %v8129_v53  ;;  %v482_v42 = vmul.f32 %v7957_v21, %v8127_v52  ;;  %v734_v0 = vmul.f32 %v7966_v11, %v8129_v53  ;;  %11334 = vst [vmem:[#allocation31_spill] sm:$0xff] %v8174_v50 }
  0x97   :  { %v796_v32 = vmax.f32 %v508_v25, %v764_v58  ;;  %v738_v17 = vmul.f32 %v7966_v11, %v8127_v52  ;;  %v1022_v26 = vmul.f32 %v7978_v15, %v8129_v53  ;;  %v1026_v39 = vmul.f32 %v7978_v15, %v8127_v52 }
  0x98   :  { %v8169_v19 = vmax.f32 %v800_v37, %v1056_v8  ;;  %v510_v51 = vadd.f32 %v478_v28, %v381_v2  ;;  %v514_v43 = vadd.f32 %v482_v42, %v385_v3  ;;  %v766_v63 = vadd.f32 %v734_v0, %v686_v54 }
  0x99   :  { %v8167_v7 = vmax.f32 %v796_v32, %v1052_v45  ;;  %v8176_v61 = vpop.permute.xlu1 %57  ;;  %v770_v57 = vadd.f32 %v738_v17, %v690_v29  ;;  %v1054_v31 = vadd.f32 %v1022_v26, %v974_v41  ;;  %v1058_v22 = vadd.f32 %v1026_v39, %v978_v44  ;;  %v11342_v26 = vld [vmem:[#allocation5_spill] sm:$0xff] }
  0x9a   :  { %11335 = vst [vmem:[#allocation32_spill] sm:$0xff] %v8176_v61  ;;  %v8178_v62 = vpop.permute.xlu0 %52  ;;  %v1246_v37 = vadd.f32 %v1214_v60, %v1182_v55  ;;  %v1250_v45 = vadd.f32 %v1218_v46, %v1186_v56  ;;  %v798_v25 = vmax.f32 %v510_v51, %v766_v63  ;;  %v1294_v28 = vmul.f32 %v8174_v50, %v8129_v53 }
  0x9b   :  { %11336 = vst [vmem:[#allocation33_spill] sm:$0xff] %v8178_v62  ;;  %v802_v36 = vmax.f32 %v514_v43, %v770_v57  ;;  %v1298_v2 = vmul.f32 %v8174_v50, %v8127_v52  ;;  %v118_v3 = vmul.f32 %v7817_v30, %v8072_v27  ;;  %v119_v54 = vmul.f32 %v7981_v33, %v8072_v27  ;;  %v11343_v62 = vld [vmem:[#allocation7_spill] sm:$0xff] }
  0x9c   :  { %v213_v29 = vmul.f32 %v7927_v4, %v8090_v23  ;;  %v214_v60 = vmul.f32 %v7942_v9, %v8090_v23  ;;  %v8200_v44 = vmax.f32 %v798_v25, %v1054_v31  ;;  %v8204_v56 = vadd.f32 %v1294_v28, %v1246_v37 }
  0x9d   :  { %v8196_v46 = vpop.permute.xlu1 %154  ;;  %v8202_v55 = vmax.f32 %v802_v36, %v1058_v22  ;;  %v8206_v58 = vadd.f32 %v1298_v2, %v1250_v45  ;;  %v215_v59 = vmul.f32 %v7784_v18, %v8090_v23  ;;  %v216_v42 = vmul.f32 %v7945_v10, %v8090_v23 }
  0x9e   :  { %11337 = vst [vmem:[#allocation34_spill] sm:$0xff] %v8196_v46  ;;  %v8198_v41 = vpop.permute.xlu0 %149  ;;  %v245_v0 = vadd.f32 %v213_v29, %v8121_v47  ;;  %v246_v17 = vadd.f32 %v214_v60, %v8125_v1  ;;  %v342_v51 = vmul.f32 %v7930_v5, %v8147_v48  ;;  %v343_v43 = vmul.f32 %v7948_v13, %v8147_v48 }
  0x9f   :  { %11338 = vst [vmem:[#allocation35_spill] sm:$0xff] %v8198_v41  ;;  %v247_v63 = vadd.f32 %v215_v59, %v118_v3  ;;  %v248_v57 = vadd.f32 %v216_v42, %v119_v54  ;;  %v344_v31 = vmul.f32 %v7789_v20, %v8147_v48  ;;  %v345_v47 = vmul.f32 %v7951_v14, %v8147_v48 }
  0xa0   :  { %v374_v37 = vadd.f32 %v342_v51, %v245_v0  ;;  %v375_v45 = vadd.f32 %v343_v43, %v246_v17  ;;  %v535_v25 = vmul.f32 %v7927_v4, %v8072_v27  ;;  %v536_v36 = vmul.f32 %v7942_v9, %v8072_v27  ;;  %v11339_v43 = vld [vmem:[#allocation9_spill] sm:$0xff] }
  0xa1   :  { %v8226_v1 = vpop.permute.xlu1 %422  ;;  %v376_v28 = vadd.f32 %v344_v31, %v247_v63  ;;  %v377_v2 = vadd.f32 %v345_v47, %v248_v57  ;;  %v537_v59 = vmul.f32 %v7784_v18, %v8072_v27  ;;  %v538_v42 = vmul.f32 %v7945_v10, %v8072_v27 }
  0xa2   :  { %v8228_v22 = vpop.permute.xlu0 %417  ;;  %v471_v3 = vmul.f32 %v7933_v6, %v8226_v1  ;;  %v472_v54 = vmul.f32 %v7954_v16, %v8226_v1  ;;  %v473_v29 = vmul.f32 %v7800_v24, %v8226_v1  ;;  %v474_v60 = vmul.f32 %v7957_v21, %v8226_v1 }
  0xa3   :  { %v583_v51 = vmul.f32 %v7997_v40, %v8090_v23  ;;  %v584_v63 = vmul.f32 %v11339_v43, %v8090_v23  ;;  %v647_v8 = vmul.f32 %v7933_v6, %v8147_v48  ;;  %v648_v32 = vmul.f32 %v7954_v16, %v8147_v48 }
  0xa4   :  { %v8246_v0 = vadd.f32 %v471_v3, %v374_v37  ;;  %v8248_v17 = vadd.f32 %v472_v54, %v375_v45  ;;  %v8258_v47 = vadd.f32 %v473_v29, %v376_v28  ;;  %v8260_v39 = vadd.f32 %v474_v60, %v377_v2 }
  0xa5   :  { %v8254_v57 = vpop.permute.xlu1 %283  ;;  %v585_v37 = vmul.f32 %v11342_v26, %v8090_v23  ;;  %v586_v45 = vmul.f32 %v7984_v34, %v8090_v23  ;;  %v615_v3 = vadd.f32 %v583_v51, %v535_v25  ;;  %v616_v54 = vadd.f32 %v584_v63, %v536_v36  ;;  %v11344_v36 = vld [vmem:[#allocation10_spill] sm:$0xff]  ;;  %v11354_v26 = vld [vmem:[#allocation13_spill] sm:$0xff] }
  0xa6   :  { %11340 = vst [vmem:[#allocation9_spill] sm:$0xff] %v8254_v57  ;;  %v8256_v31 = vpop.permute.xlu0 %278  ;;  %v649_v28 = vmul.f32 %v7800_v24, %v8147_v48  ;;  %v650_v2 = vmul.f32 %v7957_v21, %v8147_v48  ;;  %v727_v25 = vmul.f32 %v11343_v62, %v8226_v1  ;;  %v728_v51 = vmul.f32 %v11344_v36, %v8226_v1 }
  0xa7   :  { %11341 = vst [vmem:[#allocation36_spill] sm:$0xff] %v8256_v31  ;;  %v617_v41 = vadd.f32 %v585_v37, %v537_v59  ;;  %v618_v31 = vadd.f32 %v586_v45, %v538_v42  ;;  %v679_v29 = vadd.f32 %v647_v8, %v615_v3  ;;  %v680_v60 = vadd.f32 %v648_v32, %v616_v54  ;;  %v11347_v37 = vld [vmem:[#allocation2_spill] sm:$0xff] }
  0xa8   :  { %v729_v45 = vmul.f32 %v11347_v37, %v8226_v1  ;;  %v730_v46 = vmul.f32 %v7966_v11, %v8226_v1  ;;  %v823_v3 = vmul.f32 %v7930_v5, %v8072_v27  ;;  %v824_v54 = vmul.f32 %v7948_v13, %v8072_v27 }
  0xa9   :  { %v8278_v63 = vpop.permute.xlu1 %47  ;;  %v681_v59 = vadd.f32 %v649_v28, %v617_v41  ;;  %v682_v42 = vadd.f32 %v650_v2, %v618_v31  ;;  %v759_v8 = vadd.f32 %v727_v25, %v679_v29  ;;  %v760_v32 = vadd.f32 %v728_v51, %v680_v60 }
  0xaa   :  { %11345 = vst [vmem:[#allocation7_spill] sm:$0xff] %v8278_v63  ;;  %v8280_v57 = vpop.permute.xlu0 %42  ;;  %v825_v41 = vmul.f32 %v7789_v20, %v8072_v27  ;;  %v826_v31 = vmul.f32 %v7951_v14, %v8072_v27  ;;  %v855_v29 = vmul.f32 %v7933_v6, %v8090_v23  ;;  %v856_v60 = vmul.f32 %v7954_v16, %v8090_v23 }
  0xab   :  { %11346 = vst [vmem:[#allocation37_spill] sm:$0xff] %v8280_v57  ;;  %v761_v61 = vadd.f32 %v729_v45, %v681_v59  ;;  %v762_v63 = vadd.f32 %v730_v46, %v682_v42  ;;  %v791_v28 = vmax.f32 %v8246_v0, %v759_v8  ;;  %v792_v2 = vmax.f32 %v8248_v17, %v760_v32  ;;  %v11350_v8 = vld [vmem:[#allocation22_spill] sm:$0xff]  ;;  %v11351_v57 = vld [vmem:[#allocation12_spill] sm:$0xff] }
  0xac   :  { %v857_v42 = vmul.f32 %v7800_v24, %v8090_v23  ;;  %v858_v0 = vmul.f32 %v7957_v21, %v8090_v23  ;;  %v887_v17 = vadd.f32 %v855_v29, %v823_v3  ;;  %v888_v45 = vadd.f32 %v856_v60, %v824_v54  ;;  %v11355_v54 = vld [vmem:[#allocation14_spill] sm:$0xff] }
  0xad   :  { %v8300_v25 = vpop.permute.xlu1 %144  ;;  %v793_v46 = vmax.f32 %v8258_v47, %v761_v61  ;;  %v794_v59 = vmax.f32 %v8260_v39, %v762_v63  ;;  %v935_v32 = vmul.f32 %v11350_v8, %v8147_v48  ;;  %v11352_v61 = vld [vmem:[#allocation6_spill] sm:$0xff]  ;;  %v11353_v39 = vld [vmem:[#allocation20_spill] sm:$0xff]  ;;  %v1015_v3 = vmul.f32 %v11354_v26, %v8226_v1 }
  0xae   :  { %11348 = vst [vmem:[#allocation2_spill] sm:$0xff] %v8300_v25  ;;  %v8302_v51 = vpop.permute.xlu0 %139  ;;  %v936_v25 = vmul.f32 %v11351_v57, %v8147_v48  ;;  %v889_v52 = vadd.f32 %v857_v42, %v825_v41  ;;  %v937_v47 = vmul.f32 %v11352_v61, %v8147_v48  ;;  %v938_v63 = vmul.f32 %v11353_v39, %v8147_v48  ;;  %v11358_v42 = vld [vmem:[#allocation3_spill] sm:$0xff] }
  0xaf   :  { %11349 = vst [vmem:[#allocation38_spill] sm:$0xff] %v8302_v51  ;;  %v890_v51 = vadd.f32 %v858_v0, %v826_v31  ;;  %v967_v53 = vadd.f32 %v935_v32, %v887_v17  ;;  %v1016_v29 = vmul.f32 %v11355_v54, %v8226_v1  ;;  %v1017_v0 = vmul.f32 %v11358_v42, %v8226_v1 }
  0xb0   :  { %v968_v34 = vadd.f32 %v936_v25, %v888_v45  ;;  %v969_v41 = vadd.f32 %v937_v47, %v889_v52  ;;  %v1018_v39 = vmul.f32 %v7978_v15, %v8226_v1  ;;  %v1111_v45 = vmul.f32 %v7933_v6, %v8072_v27 }
  0xb1   :  { %v8322_v60 = vpop.permute.xlu1 %412  ;;  %v970_v31 = vadd.f32 %v938_v63, %v890_v51  ;;  %v1047_v17 = vadd.f32 %v1015_v3, %v967_v53  ;;  %v1112_v32 = vmul.f32 %v7954_v16, %v8072_v27  ;;  %v1113_v52 = vmul.f32 %v7800_v24, %v8072_v27 }
  0xb2   :  { %11356 = vst [vmem:[#allocation13_spill] sm:$0xff] %v8322_v60  ;;  %v8324_v8 = vpop.permute.xlu0 %407  ;;  %v1048_v25 = vadd.f32 %v1016_v29, %v968_v34  ;;  %v1049_v61 = vadd.f32 %v1017_v0, %v969_v41  ;;  %v1114_v51 = vmul.f32 %v7957_v21, %v8072_v27  ;;  %v1143_v34 = vmul.f32 %v11343_v62, %v8090_v23 }
  0xb3   :  { %11357 = vst [vmem:[#allocation39_spill] sm:$0xff] %v8324_v8  ;;  %v1050_v60 = vadd.f32 %v1018_v39, %v970_v31  ;;  %v8338_v47 = vmax.f32 %v791_v28, %v1047_v17  ;;  %v1144_v53 = vmul.f32 %v11344_v36, %v8090_v23  ;;  %v1145_v31 = vmul.f32 %v11347_v37, %v8090_v23 }
  0xb4   :  { %v8340_v63 = vmax.f32 %v792_v2, %v1048_v25  ;;  %v1081_v39 = vmax.f32 %v793_v46, %v1049_v61  ;;  %v1146_v27 = vmul.f32 %v7966_v11, %v8090_v23  ;;  %v1175_v28 = vadd.f32 %v1143_v34, %v1111_v45  ;;  %v8361_v25 = vld [vmem:[%s11215_s0 + $0x20] ss:$0 sm:$0xff] }
  0xb5   :  { %v8346_v3 = vpop.permute.xlu1 %273  ;;  %v1082_v41 = vmax.f32 %v794_v59, %v1050_v60  ;;  %v1176_v2 = vadd.f32 %v1144_v53, %v1112_v32  ;;  %v1207_v0 = vmul.f32 %v11354_v26, %v8147_v48  ;;  %v1208_v17 = vmul.f32 %v11355_v54, %v8147_v48  ;;  %v8370_v60 = vld [vmem:[%s11215_s0 + $0x30] ss:$0 sm:$0xff] }
  0xb6   :  { %11359 = vst [vmem:[#allocation3_spill] sm:$0xff] %v8346_v3  ;;  %v8348_v29 = vpop.permute.xlu0 %268  ;;  %v1177_v46 = vadd.f32 %v1145_v31, %v1113_v52  ;;  %v1178_v59 = vadd.f32 %v1146_v27, %v1114_v51  ;;  %v1209_v61 = vmul.f32 %v11358_v42, %v8147_v48  ;;  %v1210_v23 = vmul.f32 %v7978_v15, %v8147_v48 }
  0xb7   :  { %11360 = vst [vmem:[#allocation40_spill] sm:$0xff] %v8348_v29  ;;  %v1239_v45 = vadd.f32 %v1207_v0, %v1175_v28  ;;  %v1240_v32 = vadd.f32 %v1208_v17, %v1176_v2  ;;  %v1287_v34 = vmul.f32 %v8361_v25, %v8226_v1  ;;  %v1288_v52 = vmul.f32 %v8113_v49, %v8226_v1 }
  0xb8   :  { %v1241_v31 = vadd.f32 %v1209_v61, %v1177_v46  ;;  %v1242_v27 = vadd.f32 %v1210_v23, %v1178_v59  ;;  %v1289_v48 = vmul.f32 %v8370_v60, %v8226_v1  ;;  %v1290_v29 = vmul.f32 %v8174_v50, %v8226_v1 }
  0xb9   :  { %v8376_v51 = vpop.permute.xlu1 %1408  ;;  %v11362_v28 = vmax.f32 %v8167_v7, %v8151_v38  ;;  %v11363_v0 = vmax.f32 %v8169_v19, %v8153_v12  ;;  %v11364_v46 = vmax.f32 %v8200_v44, %v8204_v56  ;;  %v11365_v61 = vmax.f32 %v8202_v55, %v8206_v58  ;;  %v11367_v58 = vld [vmem:[#allocation27_spill] sm:$0xff] }
  0xba   :  { %v8378_v53 = vpop.permute.xlu0 %1403  ;;  %v1319_v23 = vadd.f32 %v1287_v34, %v1239_v45  ;;  %v1320_v3 = vadd.f32 %v1288_v52, %v1240_v32  ;;  %v1321_v38 = vadd.f32 %v1289_v48, %v1241_v31  ;;  %v1322_v7 = vadd.f32 %v1290_v29, %v1242_v27  ;;  %v11369_v32 = vld [vmem:[#allocation8_spill] sm:$0xff] }
  0xbb   :  { %11361 = vst [vmem:[#allocation41_spill] sm:$0xff] %v8378_v53  ;;  %v1436_v2 = vadd.f32 %v8378_v53, %v11362_v28  ;;  %v1440_v17 = vadd.f32 %v8376_v51, %v11363_v0  ;;  %v1438_v59 = vadd.f32 %v8378_v53, %v11364_v46  ;;  %v1442_v1 = vadd.f32 %v8376_v51, %v11365_v61  ;;  %v11368_v61 = vld [vmem:[#allocation21_spill] sm:$0xff]  ;;  %v11370_v31 = vld [vmem:[#allocation28_spill] sm:$0xff] }
  0xbc   :  { %v1351_v0 = vmax.f32 %v8338_v47, %v1319_v23  ;;  %v1352_v44 = vmax.f32 %v8340_v63, %v1320_v3  ;;  %v1353_v56 = vmax.f32 %v1081_v39, %v1321_v38  ;;  %v1354_v46 = vmax.f32 %v1082_v41, %v1322_v7 }
  0xbd   :  { %v1468_v28 = vmax.f32 %v1436_v2, 0.0  ;;  %v1472_v8 = vmax.f32 %v1440_v17, 0.0  ;;  %v1470_v50 = vmax.f32 %v1438_v59, 0.0  ;;  %v1474_v12 = vmax.f32 %v1442_v1, 0.0  ;;  %v8400_v19 = vpop.permute.xlu1 %402 }
  0xbe   :  { %11366 = vst [vmem:[#allocation42_spill] sm:$0xff] %v8400_v19  ;;  %v112_v45 = vmul.f32 %v11368_v61, %v11367_v58  ;;  %v113_v29 = vmul.f32 %v11369_v32, %v11367_v58  ;;  %v114_v34 = vmul.f32 %v7817_v30, %v11367_v58  ;;  %v115_v52 = vmul.f32 %v7981_v33, %v11367_v58 }
  0xbf   :  { %v1488_v53 = vpack.c.bf16 %v1472_v8, %v1468_v28  ;;  %v1490_v55 = vpack.c.bf16 %v1474_v12, %v1470_v50  ;;  %v209_v47 = vmul.f32 %v7927_v4, %v11370_v31  ;;  %v210_v63 = vmul.f32 %v7942_v9, %v11370_v31 }
  0xc0   :  { %v211_v50 = vmul.f32 %v7784_v18, %v11370_v31  ;;  %v212_v8 = vmul.f32 %v7945_v10, %v11370_v31  ;;  %v338_v3 = vmul.f32 %v7930_v5, %v8149_v35  ;;  %v339_v48 = vmul.f32 %v7948_v13, %v8149_v35 }
  0xc1   :  { %1580 = vmatprep.subr.bf16.mxu0 %v1488_v53  ;;  %1693 = vmatprep.subr.bf16.mxu1 %v1490_v55  ;;  %v1399_v39 = vpop.permute.xlu1 %1398  ;;  %v241_v41 = vadd.f32 %v209_v47, %v112_v45  ;;  %v242_v27 = vadd.f32 %v210_v63, %v113_v29  ;;  %v340_v2 = vmul.f32 %v7789_v20, %v8149_v35 }
  0xc2   :  { %v8426_v53 = vadd.f32 %v1399_v39, %v1351_v0  ;;  %v8428_v17 = vadd.f32 %v1399_v39, %v1352_v44  ;;  %v8430_v59 = vadd.f32 %v1399_v39, %v1353_v56  ;;  %v8432_v1 = vadd.f32 %v1399_v39, %v1354_v46 }
  0xc3   :  { %v243_v23 = vadd.f32 %v211_v50, %v114_v34  ;;  %v244_v38 = vadd.f32 %v212_v8, %v115_v52  ;;  %v341_v7 = vmul.f32 %v7951_v14, %v8149_v35  ;;  %v370_v28 = vadd.f32 %v338_v3, %v241_v41 }
  0xc4   :  { %11371 = vst [vmem:[#allocation27_spill] sm:$0xff] %v8426_v53  ;;  %11372 = vst [vmem:[#allocation21_spill] sm:$0xff] %v8428_v17  ;;  %v371_v12 = vadd.f32 %v339_v48, %v242_v27  ;;  %v467_v55 = vmul.f32 %v7933_v6, %v8228_v22  ;;  %v468_v0 = vmul.f32 %v7954_v16, %v8228_v22  ;;  %v11375_v27 = vld [vmem:[#allocation5_spill] sm:$0xff] }
  0xc5   :  { %11373 = vst [vmem:[#allocation8_spill] sm:$0xff] %v8430_v59  ;;  %11374 = vst [vmem:[#allocation28_spill] sm:$0xff] %v8432_v1  ;;  %v469_v44 = vmul.f32 %v7800_v24, %v8228_v22  ;;  %v372_v56 = vadd.f32 %v340_v2, %v243_v23  ;;  %v373_v45 = vadd.f32 %v341_v7, %v244_v38  ;;  %v11376_v2 = vld [vmem:[#allocation17_spill] sm:$0xff] }
  0xc6   :  { %v470_v46 = vmul.f32 %v7957_v21, %v8228_v22  ;;  %v531_v29 = vmul.f32 %v7927_v4, %v11367_v58  ;;  %v8446_v34 = vadd.f32 %v467_v55, %v370_v28  ;;  %v8448_v52 = vadd.f32 %v468_v0, %v371_v12 }
  0xc7   :  { %v532_v47 = vmul.f32 %v7942_v9, %v11367_v58  ;;  %v533_v63 = vmul.f32 %v7784_v18, %v11367_v58  ;;  %v8454_v50 = vadd.f32 %v469_v44, %v372_v56  ;;  %v534_v3 = vmul.f32 %v7945_v10, %v11367_v58 }
  0xc8   :  { %v8456_v8 = vadd.f32 %v470_v46, %v373_v45  ;;  %v579_v39 = vmul.f32 %v7997_v40, %v11370_v31  ;;  %v580_v41 = vmul.f32 %v11339_v43, %v11370_v31  ;;  %v581_v48 = vmul.f32 %v11375_v27, %v11370_v31 }
  0xc9   :  { %v582_v23 = vmul.f32 %v11376_v2, %v11370_v31  ;;  %v643_v38 = vmul.f32 %v7933_v6, %v8149_v35  ;;  %v644_v28 = vmul.f32 %v7954_v16, %v8149_v35  ;;  %v645_v12 = vmul.f32 %v7800_v24, %v8149_v35  ;;  %v11379_v2 = vld [vmem:[#allocation20_spill] sm:$0xff] }
  0xca   :  { %v611_v7 = vadd.f32 %v579_v39, %v531_v29  ;;  %v646_v55 = vmul.f32 %v7957_v21, %v8149_v35  ;;  %v612_v0 = vadd.f32 %v580_v41, %v532_v47  ;;  %v613_v44 = vadd.f32 %v581_v48, %v533_v63 }
  0xcb   :  { %v614_v56 = vadd.f32 %v582_v23, %v534_v3  ;;  %v723_v45 = vmul.f32 %v11343_v62, %v8228_v22  ;;  %v724_v59 = vmul.f32 %v11344_v36, %v8228_v22  ;;  %v725_v29 = vmul.f32 %v11347_v37, %v8228_v22 }
  0xcc   :  { %v675_v46 = vadd.f32 %v643_v38, %v611_v7  ;;  %v726_v39 = vmul.f32 %v7966_v11, %v8228_v22  ;;  %v676_v53 = vadd.f32 %v644_v28, %v612_v0  ;;  %v677_v19 = vadd.f32 %v645_v12, %v613_v44 }
  0xcd   :  { %v678_v1 = vadd.f32 %v646_v55, %v614_v56  ;;  %v819_v47 = vmul.f32 %v7930_v5, %v11367_v58  ;;  %v820_v3 = vmul.f32 %v7948_v13, %v11367_v58  ;;  %v821_v41 = vmul.f32 %v7789_v20, %v11367_v58 }
  0xce   :  { %v755_v63 = vadd.f32 %v723_v45, %v675_v46  ;;  %v822_v48 = vmul.f32 %v7951_v14, %v11367_v58  ;;  %v756_v23 = vadd.f32 %v724_v59, %v676_v53  ;;  %v757_v38 = vadd.f32 %v725_v29, %v677_v19 }
  0xcf   :  { %v758_v7 = vadd.f32 %v726_v39, %v678_v1  ;;  %v851_v28 = vmul.f32 %v7933_v6, %v11370_v31  ;;  %v852_v55 = vmul.f32 %v7954_v16, %v11370_v31  ;;  %v853_v0 = vmul.f32 %v7800_v24, %v11370_v31 }
  0xd0   :  { %v787_v12 = vmax.f32 %v8446_v34, %v755_v63  ;;  %v854_v44 = vmul.f32 %v7957_v21, %v11370_v31  ;;  %v788_v56 = vmax.f32 %v8448_v52, %v756_v23  ;;  %v789_v53 = vmax.f32 %v8454_v50, %v757_v38  ;;  %v11377_v34 = vld [vmem:[#allocation22_spill] sm:$0xff] }
  0xd1   :  { %v790_v19 = vmax.f32 %v8456_v8, %v758_v7  ;;  %v883_v59 = vadd.f32 %v851_v28, %v819_v47  ;;  %v884_v1 = vadd.f32 %v852_v55, %v820_v3  ;;  %v885_v45 = vadd.f32 %v853_v0, %v821_v41  ;;  %v11378_v63 = vld [vmem:[#allocation6_spill] sm:$0xff] }
  0xd2   :  { %v886_v46 = vadd.f32 %v854_v44, %v822_v48  ;;  %v931_v29 = vmul.f32 %v11377_v34, %v8149_v35  ;;  %v932_v39 = vmul.f32 %v11351_v57, %v8149_v35  ;;  %v933_v17 = vmul.f32 %v11378_v63, %v8149_v35  ;;  %v11388_v57 = vld [vmem:[#allocation30_spill] sm:$0xff] }
  0xd3   :  { %v934_v52 = vmul.f32 %v11379_v2, %v8149_v35  ;;  %v1011_v50 = vmul.f32 %v11354_v26, %v8228_v22  ;;  %v1012_v47 = vmul.f32 %v11355_v54, %v8228_v22  ;;  %v1013_v3 = vmul.f32 %v11358_v42, %v8228_v22 }
  0xd4   :  { %v963_v8 = vadd.f32 %v931_v29, %v883_v59  ;;  %v1014_v41 = vmul.f32 %v7978_v15, %v8228_v22  ;;  %v964_v48 = vadd.f32 %v932_v39, %v884_v1  ;;  %v965_v23 = vadd.f32 %v933_v17, %v885_v45 }
  0xd5   :  { %v966_v38 = vadd.f32 %v934_v52, %v886_v46  ;;  %v1107_v7 = vmul.f32 %v7933_v6, %v11367_v58  ;;  %v1108_v55 = vmul.f32 %v7954_v16, %v11367_v58  ;;  %v1109_v0 = vmul.f32 %v7800_v24, %v11367_v58  ;;  %v8536_v52 = vpop.permute.xlu0 %397 }
  0xd6   :  { %v1043_v28 = vadd.f32 %v1011_v50, %v963_v8  ;;  %v1110_v44 = vmul.f32 %v7957_v21, %v11367_v58  ;;  %v1044_v59 = vadd.f32 %v1012_v47, %v964_v48  ;;  %v1045_v29 = vadd.f32 %v1013_v3, %v965_v23  ;;  %11380 = vst [vmem:[#allocation5_spill] sm:$0xff] %v8536_v52 }
  0xd7   :  { %v1046_v2 = vadd.f32 %v1014_v41, %v966_v38  ;;  %v1139_v17 = vmul.f32 %v11343_v62, %v11370_v31  ;;  %v1140_v45 = vmul.f32 %v11344_v36, %v11370_v31  ;;  %v1141_v46 = vmul.f32 %v11347_v37, %v11370_v31 }
  0xd8   :  { %v1075_v1 = vmax.f32 %v787_v12, %v1043_v28  ;;  %v1142_v39 = vmul.f32 %v7966_v11, %v11370_v31  ;;  %v1076_v50 = vmax.f32 %v788_v56, %v1044_v59  ;;  %v1077_v58 = vmax.f32 %v789_v53, %v1045_v29  ;;  %v11382_v59 = vld [vmem:[#allocation19_spill] sm:$0xff] }
  0xd9   :  { %v1078_v8 = vmax.f32 %v790_v19, %v1046_v2  ;;  %v1171_v47 = vadd.f32 %v1139_v17, %v1107_v7  ;;  %v1172_v3 = vadd.f32 %v1140_v45, %v1108_v55  ;;  %v1173_v41 = vadd.f32 %v1141_v46, %v1109_v0  ;;  %v11381_v7 = vld [vmem:[#allocation31_spill] sm:$0xff]  ;;  %v11383_v17 = vld [vmem:[#allocation24_spill] sm:$0xff]  ;;  %v11384_v46 = vld [vmem:[#allocation18_spill] sm:$0xff] }
  0xda   :  { %v1174_v48 = vadd.f32 %v1142_v39, %v1110_v44  ;;  %v1203_v12 = vmul.f32 %v11354_v26, %v8149_v35  ;;  %v1204_v23 = vmul.f32 %v11355_v54, %v8149_v35  ;;  %v1205_v38 = vmul.f32 %v11358_v42, %v8149_v35 }
  0xdb   :  { %v1206_v31 = vmul.f32 %v7978_v15, %v8149_v35  ;;  %v1283_v56 = vmul.f32 %v8361_v25, %v8228_v22  ;;  %v1284_v53 = vmul.f32 %v8113_v49, %v8228_v22  ;;  %v1285_v19 = vmul.f32 %v8370_v60, %v8228_v22  ;;  %v11385_v49 = vld [vmem:[#allocation23_spill] sm:$0xff] }
  0xdc   :  { %v1235_v2 = vadd.f32 %v1203_v12, %v1171_v47  ;;  %v1286_v28 = vmul.f32 %v11381_v7, %v8228_v22  ;;  %v1236_v55 = vadd.f32 %v1204_v23, %v1172_v3  ;;  %v1237_v0 = vadd.f32 %v1205_v38, %v1173_v41  ;;  %v1394_v12 = vpop.permute.xlu0 %1393  ;;  %v11386_v3 = vld [vmem:[#allocation26_spill] sm:$0xff] }
  0xdd   :  { %v1238_v44 = vadd.f32 %v1206_v31, %v1174_v48  ;;  %v120_v29 = vmul.f32 %v11368_v61, %v11382_v59  ;;  %v124_v45 = vmul.f32 %v11368_v61, %v11383_v17  ;;  %v217_v39 = vmul.f32 %v7927_v4, %v11384_v46  ;;  %v11387_v31 = vld [vmem:[#allocation25_spill] sm:$0xff] }
  0xde   :  { %v1315_v35 = vadd.f32 %v1283_v56, %v1235_v2  ;;  %v221_v47 = vmul.f32 %v7927_v4, %v11385_v49  ;;  %v1316_v52 = vadd.f32 %v1284_v53, %v1236_v55  ;;  %v1317_v15 = vadd.f32 %v1285_v19, %v1237_v0 }
  0xdf   :  { %v1318_v22 = vadd.f32 %v1286_v28, %v1238_v44  ;;  %v346_v41 = vmul.f32 %v7930_v5, %v11386_v3  ;;  %v249_v23 = vadd.f32 %v217_v39, %v120_v29  ;;  %v350_v56 = vmul.f32 %v7930_v5, %v11387_v31  ;;  %v11390_v28 = vld [vmem:[#allocation29_spill] sm:$0xff] }
  0xe0   :  { %v1347_v48 = vmax.f32 %v1075_v1, %v1315_v35  ;;  %v253_v38 = vadd.f32 %v221_v47, %v124_v45  ;;  %v1348_v2 = vmax.f32 %v1076_v50, %v1316_v52  ;;  %v1349_v7 = vmax.f32 %v1077_v58, %v1317_v15 }
  0xe1   :  { %v1350_v54 = vmax.f32 %v1078_v8, %v1318_v22  ;;  %v475_v11 = vmul.f32 %v7933_v6, %v11388_v57  ;;  %v378_v53 = vadd.f32 %v346_v41, %v249_v23  ;;  %v479_v55 = vmul.f32 %v7933_v6, %v11390_v28 }
  0xe2   :  { %v8568_v36 = vadd.f32 %v1394_v12, %v1347_v48  ;;  %v382_v19 = vadd.f32 %v350_v56, %v253_v38  ;;  %v8572_v0 = vadd.f32 %v1394_v12, %v1348_v2  ;;  %v8574_v1 = vadd.f32 %v1394_v12, %v1349_v7 }
  0xe3   :  { %v8576_v44 = vadd.f32 %v1394_v12, %v1350_v54  ;;  %v539_v15 = vmul.f32 %v7927_v4, %v11382_v59  ;;  %v507_v52 = vadd.f32 %v475_v11, %v378_v53  ;;  %v543_v58 = vmul.f32 %v7927_v4, %v11383_v17 }
  0xe4   :  { %11389 = vst [vmem:[#allocation6_spill] sm:$0xff] %v8568_v36  ;;  %11391 = vst [vmem:[#allocation31_spill] sm:$0xff] %v8572_v0  ;;  %v511_v50 = vadd.f32 %v479_v55, %v382_v19  ;;  %v587_v8 = vmul.f32 %v7997_v40, %v11384_v46  ;;  %v591_v29 = vmul.f32 %v7997_v40, %v11385_v49 }
  0xe5   :  { %11392 = vst [vmem:[#allocation19_spill] sm:$0xff] %v8574_v1  ;;  %11393 = vst [vmem:[#allocation24_spill] sm:$0xff] %v8576_v44  ;;  %v651_v35 = vmul.f32 %v7933_v6, %v11386_v3  ;;  %v655_v54 = vmul.f32 %v7933_v6, %v11387_v31  ;;  %v731_v45 = vmul.f32 %v11343_v62, %v11388_v57 }
  0xe6   :  { %v619_v11 = vadd.f32 %v587_v8, %v539_v15  ;;  %v735_v39 = vmul.f32 %v11343_v62, %v11390_v28  ;;  %v827_v47 = vmul.f32 %v7930_v5, %v11382_v59  ;;  %v831_v12 = vmul.f32 %v7930_v5, %v11383_v17 }
  0xe7   :  { %v623_v22 = vadd.f32 %v591_v29, %v543_v58  ;;  %v859_v41 = vmul.f32 %v7933_v6, %v11384_v46  ;;  %v863_v48 = vmul.f32 %v7933_v6, %v11385_v49  ;;  %v939_v23 = vmul.f32 %v11377_v34, %v11386_v3 }
  0xe8   :  { %v683_v38 = vadd.f32 %v651_v35, %v619_v11  ;;  %v943_v56 = vmul.f32 %v11377_v34, %v11387_v31  ;;  %v1019_v2 = vmul.f32 %v11354_v26, %v11388_v57  ;;  %v1023_v7 = vmul.f32 %v11354_v26, %v11390_v28 }
  0xe9   :  { %v687_v53 = vadd.f32 %v655_v54, %v623_v22  ;;  %v891_v19 = vadd.f32 %v859_v41, %v827_v47  ;;  %v895_v55 = vadd.f32 %v863_v48, %v831_v12  ;;  %v1115_v15 = vmul.f32 %v7933_v6, %v11382_v59 }
  0xea   :  { %v763_v58 = vadd.f32 %v731_v45, %v683_v38  ;;  %v1119_v8 = vmul.f32 %v7933_v6, %v11383_v17  ;;  %v1147_v29 = vmul.f32 %v11343_v62, %v11384_v46  ;;  %v1151_v35 = vmul.f32 %v11343_v62, %v11385_v49 }
  0xeb   :  { %v767_v11 = vadd.f32 %v735_v39, %v687_v53  ;;  %v971_v1 = vadd.f32 %v939_v23, %v891_v19  ;;  %v975_v36 = vadd.f32 %v943_v56, %v895_v55  ;;  %v1211_v54 = vmul.f32 %v11354_v26, %v11386_v3 }
  0xec   :  { %v795_v47 = vmax.f32 %v507_v52, %v763_v58  ;;  %v1179_v12 = vadd.f32 %v1147_v29, %v1115_v15  ;;  %v1183_v22 = vadd.f32 %v1151_v35, %v1119_v8  ;;  %v1215_v45 = vmul.f32 %v11354_v26, %v11387_v31 }
  0xed   :  { %v799_v41 = vmax.f32 %v511_v50, %v767_v11  ;;  %v1051_v48 = vadd.f32 %v1019_v2, %v971_v1  ;;  %v1055_v38 = vadd.f32 %v1023_v7, %v975_v36  ;;  %v1291_v44 = vmul.f32 %v8361_v25, %v11388_v57 }
  0xee   :  { %v1243_v0 = vadd.f32 %v1211_v54, %v1179_v12  ;;  %v1247_v34 = vadd.f32 %v1215_v45, %v1183_v22  ;;  %v1295_v39 = vmul.f32 %v8361_v25, %v11390_v28  ;;  %v122_v23 = vmul.f32 %v7817_v30, %v11382_v59 }
  0xef   :  { %v1083_v52 = vmax.f32 %v795_v47, %v1051_v48  ;;  %v1087_v56 = vmax.f32 %v799_v41, %v1055_v38  ;;  %v126_v53 = vmul.f32 %v7817_v30, %v11383_v17  ;;  %v219_v1 = vmul.f32 %v7784_v18, %v11384_v46  ;;  %v11394_v47 = vld [vmem:[#allocation41_spill] sm:$0xff] }
  0xf0   :  { %v1323_v36 = vadd.f32 %v1291_v44, %v1243_v0  ;;  %v1327_v50 = vadd.f32 %v1295_v39, %v1247_v34  ;;  %v223_v2 = vmul.f32 %v7784_v18, %v11385_v49  ;;  %v348_v7 = vmul.f32 %v7789_v20, %v11386_v3 }
  0xf1   :  { %v251_v19 = vadd.f32 %v219_v1, %v122_v23  ;;  %v352_v55 = vmul.f32 %v7789_v20, %v11387_v31  ;;  %v477_v15 = vmul.f32 %v7800_v24, %v11388_v57  ;;  %v481_v58 = vmul.f32 %v7800_v24, %v11390_v28 }
  0xf2   :  { %v1355_v8 = vmax.f32 %v1083_v52, %v1323_v36  ;;  %v1359_v29 = vmax.f32 %v1087_v56, %v1327_v50  ;;  %v255_v0 = vadd.f32 %v223_v2, %v126_v53  ;;  %v541_v34 = vmul.f32 %v7784_v18, %v11382_v59 }
  0xf3   :  { %v380_v44 = vadd.f32 %v348_v7, %v251_v19  ;;  %v545_v35 = vmul.f32 %v7784_v18, %v11383_v17  ;;  %v589_v11 = vmul.f32 %v11375_v27, %v11384_v46  ;;  %v593_v54 = vmul.f32 %v11375_v27, %v11385_v49 }
  0xf4   :  { %v1435_v12 = vadd.f32 %v11394_v47, %v1355_v8  ;;  %v1439_v22 = vadd.f32 %v8376_v51, %v1359_v29  ;;  %v384_v45 = vadd.f32 %v352_v55, %v255_v0  ;;  %v653_v41 = vmul.f32 %v7800_v24, %v11386_v3 }
  0xf5   :  { %v509_v48 = vadd.f32 %v477_v15, %v380_v44  ;;  %v621_v38 = vadd.f32 %v589_v11, %v541_v34  ;;  %v625_v39 = vadd.f32 %v593_v54, %v545_v35  ;;  %v657_v23 = vmul.f32 %v7800_v24, %v11387_v31 }
  0xf6   :  { %v1467_v52 = vmax.f32 %v1435_v12, 0.0  ;;  %v1471_v56 = vmax.f32 %v1439_v22, 0.0  ;;  %v513_v53 = vadd.f32 %v481_v58, %v384_v45  ;;  %v733_v1 = vmul.f32 %v11347_v37, %v11388_v57 }
  0xf7   :  { %v685_v36 = vadd.f32 %v653_v41, %v621_v38  ;;  %v689_v50 = vadd.f32 %v657_v23, %v625_v39  ;;  %v737_v2 = vmul.f32 %v11347_v37, %v11390_v28  ;;  %v829_v7 = vmul.f32 %v7789_v20, %v11382_v59 }
  0xf8   :  { %v1487_v19 = vpack.c.bf16 %v1471_v56, %v1467_v52  ;;  %v833_v55 = vmul.f32 %v7789_v20, %v11383_v17  ;;  %v861_v15 = vmul.f32 %v7800_v24, %v11384_v46  ;;  %v865_v58 = vmul.f32 %v7800_v24, %v11385_v49 }
  0xf9   :  { %v765_v8 = vadd.f32 %v733_v1, %v685_v36  ;;  %v769_v29 = vadd.f32 %v737_v2, %v689_v50  ;;  %v941_v0 = vmul.f32 %v11378_v63, %v11386_v3  ;;  %v945_v34 = vmul.f32 %v11378_v63, %v11387_v31 }
  0xfa   :  { %1581 = vmatpush1.bf16.msra.mxu0 %v1487_v19  ;;  %v893_v44 = vadd.f32 %v861_v15, %v829_v7  ;;  %v897_v35 = vadd.f32 %v865_v58, %v833_v55  ;;  %v1021_v11 = vmul.f32 %v11358_v42, %v11388_v57  ;;  %v1025_v54 = vmul.f32 %v11358_v42, %v11390_v28  ;;  %v11396_v55 = vld [vmem:[#allocation34_spill] sm:$0xff] }
  0xfb   :  { %v797_v12 = vmax.f32 %v509_v48, %v765_v8  ;;  %v801_v22 = vmax.f32 %v513_v53, %v769_v29  ;;  %v1117_v45 = vmul.f32 %v7800_v24, %v11382_v59  ;;  %v1121_v41 = vmul.f32 %v7800_v24, %v11383_v17 }
  0xfc   :  { %v973_v38 = vadd.f32 %v941_v0, %v893_v44  ;;  %v977_v39 = vadd.f32 %v945_v34, %v897_v35  ;;  %v1149_v23 = vmul.f32 %v11347_v37, %v11384_v46  ;;  %v1153_v52 = vmul.f32 %v11347_v37, %v11385_v49  ;;  %v11395_v46 = vld [vmem:[#allocation32_spill] sm:$0xff]  ;;  %v11397_v44 = vld [vmem:[#allocation9_spill] sm:$0xff] }
  0xfd   :  { %v1213_v56 = vmul.f32 %v11358_v42, %v11386_v3  ;;  %v1217_v48 = vmul.f32 %v11358_v42, %v11387_v31  ;;  %v1293_v59 = vmul.f32 %v8370_v60, %v11388_v57  ;;  %v1297_v17 = vmul.f32 %v8370_v60, %v11390_v28 }
  0xfe   :  { %v1053_v53 = vadd.f32 %v1021_v11, %v973_v38  ;;  %v1057_v1 = vadd.f32 %v1025_v54, %v977_v39  ;;  %v1181_v36 = vadd.f32 %v1149_v23, %v1117_v45  ;;  %v1185_v50 = vadd.f32 %v1153_v52, %v1121_v41 }
  0xff   :  { %v108_v2 = vmul.f32 %v11368_v61, %v11395_v46  ;;  %v109_v49 = vmul.f32 %v11369_v32, %v11395_v46  ;;  %v110_v3 = vmul.f32 %v7817_v30, %v11395_v46  ;;  %v111_v31 = vmul.f32 %v7981_v33, %v11395_v46 }
 0x100   :  { %v1085_v57 = vmax.f32 %v797_v12, %v1053_v53  ;;  %v1089_v7 = vmax.f32 %v801_v22, %v1057_v1  ;;  %v1245_v19 = vadd.f32 %v1213_v56, %v1181_v36  ;;  %v1249_v28 = vadd.f32 %v1217_v48, %v1185_v50  ;;  %v11398_v48 = vld [vmem:[#allocation13_spill] sm:$0xff] }
 0x101   :  { %v205_v15 = vmul.f32 %v7927_v4, %v11396_v55  ;;  %v206_v58 = vmul.f32 %v7942_v9, %v11396_v55  ;;  %v207_v8 = vmul.f32 %v7784_v18, %v11396_v55  ;;  %v208_v29 = vmul.f32 %v7945_v10, %v11396_v55 }
 0x102   :  { %v1325_v0 = vadd.f32 %v1293_v59, %v1245_v19  ;;  %v1329_v34 = vadd.f32 %v1297_v17, %v1249_v28  ;;  %v334_v35 = vmul.f32 %v7930_v5, %v11397_v44  ;;  %v335_v11 = vmul.f32 %v7948_v13, %v11397_v44 }
 0x103   :  { %v237_v54 = vadd.f32 %v205_v15, %v108_v2  ;;  %v238_v12 = vadd.f32 %v206_v58, %v109_v49  ;;  %v239_v22 = vadd.f32 %v207_v8, %v110_v3  ;;  %v240_v45 = vadd.f32 %v208_v29, %v111_v31 }
 0x104   :  { %v1357_v41 = vmax.f32 %v1085_v57, %v1325_v0  ;;  %v1361_v38 = vmax.f32 %v1089_v7, %v1329_v34  ;;  %v336_v39 = vmul.f32 %v7789_v20, %v11397_v44  ;;  %v337_v23 = vmul.f32 %v7951_v14, %v11397_v44 }
 0x105   :  { %v366_v52 = vadd.f32 %v334_v35, %v237_v54  ;;  %v367_v56 = vadd.f32 %v335_v11, %v238_v12  ;;  %v463_v59 = vmul.f32 %v7933_v6, %v11398_v48  ;;  %v464_v17 = vmul.f32 %v7954_v16, %v11398_v48  ;;  %v11399_v35 = vld [vmem:[#allocation17_spill] sm:$0xff] }
 0x106   :  { %v1437_v53 = vadd.f32 %v11394_v47, %v1357_v41  ;;  %v1441_v1 = vadd.f32 %v8376_v51, %v1361_v38  ;;  %v368_v36 = vadd.f32 %v336_v39, %v239_v22  ;;  %v369_v50 = vadd.f32 %v337_v23, %v240_v45 }
 0x107   :  { %v465_v2 = vmul.f32 %v7800_v24, %v11398_v48  ;;  %v466_v49 = vmul.f32 %v7957_v21, %v11398_v48  ;;  %v8726_v3 = vadd.f32 %v463_v59, %v366_v52  ;;  %v8728_v31 = vadd.f32 %v464_v17, %v367_v56  ;;  %v11400_v56 = vld [vmem:[#allocation10_spill] sm:$0xff] }
 0x108   :  { %v1469_v57 = vmax.f32 %v1437_v53, 0.0  ;;  %v1473_v7 = vmax.f32 %v1441_v1, 0.0  ;;  %v527_v19 = vmul.f32 %v7927_v4, %v11395_v46  ;;  %v528_v51 = vmul.f32 %v7942_v9, %v11395_v46 }
 0x109   :  { %v8734_v47 = vadd.f32 %v465_v2, %v368_v36  ;;  %v8736_v28 = vadd.f32 %v466_v49, %v369_v50  ;;  %v529_v15 = vmul.f32 %v7784_v18, %v11395_v46  ;;  %v530_v58 = vmul.f32 %v7945_v10, %v11395_v46  ;;  %v11401_v50 = vld [vmem:[#allocation11_spill] sm:$0xff] }
 0x10a   :  { %v1489_v8 = vpack.c.bf16 %v1473_v7, %v1469_v57  ;;  %v575_v29 = vmul.f32 %v7997_v40, %v11396_v55  ;;  %v576_v0 = vmul.f32 %v11339_v43, %v11396_v55  ;;  %v577_v34 = vmul.f32 %v11375_v27, %v11396_v55 }
 0x10b   :  { %v578_v11 = vmul.f32 %v11399_v35, %v11396_v55  ;;  %v639_v54 = vmul.f32 %v7933_v6, %v11397_v44  ;;  %v640_v12 = vmul.f32 %v7954_v16, %v11397_v44  ;;  %v641_v22 = vmul.f32 %v7800_v24, %v11397_v44 }
 0x10c   :  { %1694 = vmatpush1.bf16.msra.mxu1 %v1489_v8  ;;  %v607_v45 = vadd.f32 %v575_v29, %v527_v19  ;;  %v608_v41 = vadd.f32 %v576_v0, %v528_v51  ;;  %v609_v38 = vadd.f32 %v577_v34, %v529_v15  ;;  %v642_v39 = vmul.f32 %v7957_v21, %v11397_v44 }
 0x10d   :  { %v610_v23 = vadd.f32 %v578_v11, %v530_v58  ;;  %v719_v52 = vmul.f32 %v11343_v62, %v11398_v48  ;;  %v720_v59 = vmul.f32 %v11400_v56, %v11398_v48  ;;  %v721_v17 = vmul.f32 %v11347_v37, %v11398_v48 }
 0x10e   :  { %v671_v53 = vadd.f32 %v639_v54, %v607_v45  ;;  %v672_v1 = vadd.f32 %v640_v12, %v608_v41  ;;  %v673_v36 = vadd.f32 %v641_v22, %v609_v38  ;;  %v722_v2 = vmul.f32 %v11401_v50, %v11398_v48 }
 0x10f   :  { %v674_v49 = vadd.f32 %v642_v39, %v610_v23  ;;  %v815_v57 = vmul.f32 %v7930_v5, %v11395_v46  ;;  %v816_v7 = vmul.f32 %v7948_v13, %v11395_v46  ;;  %v817_v19 = vmul.f32 %v7789_v20, %v11395_v46 }
 0x110   :  { %v751_v51 = vadd.f32 %v719_v52, %v671_v53  ;;  %v752_v15 = vadd.f32 %v720_v59, %v672_v1  ;;  %v753_v58 = vadd.f32 %v721_v17, %v673_v36  ;;  %v818_v8 = vmul.f32 %v7951_v14, %v11395_v46  ;;  %v11402_v59 = vld [vmem:[#allocation22_spill] sm:$0xff]  ;;  %v11403_v53 = vld [vmem:[#allocation12_spill] sm:$0xff] }
 0x111   :  { %v754_v29 = vadd.f32 %v722_v2, %v674_v49  ;;  %v847_v0 = vmul.f32 %v7933_v6, %v11396_v55  ;;  %v848_v34 = vmul.f32 %v7954_v16, %v11396_v55  ;;  %v849_v11 = vmul.f32 %v7800_v24, %v11396_v55 }
 0x112   :  { %v783_v54 = vmax.f32 %v8726_v3, %v751_v51  ;;  %v784_v12 = vmax.f32 %v8728_v31, %v752_v15  ;;  %v785_v22 = vmax.f32 %v8734_v47, %v753_v58  ;;  %v850_v45 = vmul.f32 %v7957_v21, %v11396_v55  ;;  %v11404_v31 = vld [vmem:[#allocation20_spill] sm:$0xff]  ;;  %v11406_v51 = vld [vmem:[#allocation15_spill] sm:$0xff] }
 0x113   :  { %v786_v41 = vmax.f32 %v8736_v28, %v754_v29  ;;  %v879_v38 = vadd.f32 %v847_v0, %v815_v57  ;;  %v880_v39 = vadd.f32 %v848_v34, %v816_v7  ;;  %v881_v23 = vadd.f32 %v849_v11, %v817_v19  ;;  %v11405_v28 = vld [vmem:[#allocation14_spill] sm:$0xff] }
 0x114   :  { %v882_v52 = vadd.f32 %v850_v45, %v818_v8  ;;  %v927_v17 = vmul.f32 %v11402_v59, %v11397_v44  ;;  %v928_v1 = vmul.f32 %v11403_v53, %v11397_v44  ;;  %v929_v3 = vmul.f32 %v11378_v63, %v11397_v44 }
 0x115   :  { %v930_v47 = vmul.f32 %v11404_v31, %v11397_v44  ;;  %v1007_v36 = vmul.f32 %v11354_v26, %v11398_v48  ;;  %v1008_v2 = vmul.f32 %v11405_v28, %v11398_v48  ;;  %v1009_v49 = vmul.f32 %v11358_v42, %v11398_v48 }
 0x116   :  { %v959_v57 = vadd.f32 %v927_v17, %v879_v38  ;;  %v960_v7 = vadd.f32 %v928_v1, %v880_v39  ;;  %v961_v19 = vadd.f32 %v929_v3, %v881_v23  ;;  %v1010_v15 = vmul.f32 %v11406_v51, %v11398_v48 }
 0x117   :  { %v962_v58 = vadd.f32 %v930_v47, %v882_v52  ;;  %v1103_v8 = vmul.f32 %v7933_v6, %v11395_v46  ;;  %v1104_v29 = vmul.f32 %v7954_v16, %v11395_v46  ;;  %v1105_v0 = vmul.f32 %v7800_v24, %v11395_v46 }
 0x118   :  { %v1039_v34 = vadd.f32 %v1007_v36, %v959_v57  ;;  %v1040_v11 = vadd.f32 %v1008_v2, %v960_v7  ;;  %v1041_v45 = vadd.f32 %v1009_v49, %v961_v19  ;;  %v1106_v38 = vmul.f32 %v7957_v21, %v11395_v46 }
 0x119   :  { %v1042_v39 = vadd.f32 %v1010_v15, %v962_v58  ;;  %v1135_v23 = vmul.f32 %v11343_v62, %v11396_v55  ;;  %v1136_v52 = vmul.f32 %v11400_v56, %v11396_v55  ;;  %v1137_v17 = vmul.f32 %v11347_v37, %v11396_v55 }
 0x11a   :  { %v1071_v1 = vmax.f32 %v783_v54, %v1039_v34  ;;  %v1072_v3 = vmax.f32 %v784_v12, %v1040_v11  ;;  %v1073_v47 = vmax.f32 %v785_v22, %v1041_v45  ;;  %v1138_v36 = vmul.f32 %v11401_v50, %v11396_v55  ;;  %v8831_v12 = vld [vmem:[%s11215_s0 + $0x28] ss:$0 sm:$0xff]  ;;  %v11408_v11 = vld [vmem:[#allocation33_spill] sm:$0xff] }
 0x11b   :  { %v1074_v2 = vmax.f32 %v786_v41, %v1042_v39  ;;  %v1167_v49 = vadd.f32 %v1135_v23, %v1103_v8  ;;  %v1168_v57 = vadd.f32 %v1136_v52, %v1104_v29  ;;  %v1169_v46 = vadd.f32 %v1137_v17, %v1105_v0  ;;  %11407 = vst [vmem:[#allocation18_spill] sm:$0xff] %v8831_v12 }
 0x11c   :  { %v1170_v7 = vadd.f32 %v1138_v36, %v1106_v38  ;;  %v1199_v19 = vmul.f32 %v11354_v26, %v11397_v44  ;;  %v1200_v15 = vmul.f32 %v11405_v28, %v11397_v44  ;;  %v1201_v58 = vmul.f32 %v11358_v42, %v11397_v44  ;;  %v1389_v36 = vpop.permute.xlu1 %1388 }
 0x11d   :  { %v1202_v54 = vmul.f32 %v11406_v51, %v11397_v44  ;;  %v1279_v55 = vmul.f32 %v8361_v25, %v11398_v48  ;;  %v1280_v22 = vmul.f32 %v8831_v12, %v11398_v48  ;;  %v1281_v41 = vmul.f32 %v8370_v60, %v11398_v48  ;;  %v8840_v44 = vld [vmem:[%s11215_s0 + $0x38] ss:$0 sm:$0xff] }
 0x11e   :  { %v1231_v8 = vadd.f32 %v1199_v19, %v1167_v49  ;;  %v1232_v29 = vadd.f32 %v1200_v15, %v1168_v57  ;;  %v1233_v0 = vadd.f32 %v1201_v58, %v1169_v46  ;;  %v1282_v25 = vmul.f32 %v8840_v44, %v11398_v48  ;;  %v11409_v57 = vld [vmem:[#allocation35_spill] sm:$0xff] }
 0x11f   :  { %v1234_v34 = vadd.f32 %v1202_v54, %v1170_v7  ;;  %v104_v45 = vmul.f32 %v11368_v61, %v11408_v11  ;;  %v105_v38 = vmul.f32 %v11369_v32, %v11408_v11  ;;  %v106_v60 = vmul.f32 %v7817_v30, %v11408_v11  ;;  %v11414_v30 = vld [vmem:[#allocation36_spill] sm:$0xff] }
 0x120   :  { %v1311_v39 = vadd.f32 %v1279_v55, %v1231_v8  ;;  %v1312_v23 = vadd.f32 %v1280_v22, %v1232_v29  ;;  %v1313_v52 = vadd.f32 %v1281_v41, %v1233_v0  ;;  %v107_v17 = vmul.f32 %v7981_v33, %v11408_v11 }
 0x121   :  { %v1314_v49 = vadd.f32 %v1282_v25, %v1234_v34  ;;  %v201_v48 = vmul.f32 %v7927_v4, %v11409_v57  ;;  %v202_v46 = vmul.f32 %v7942_v9, %v11409_v57  ;;  %v203_v7 = vmul.f32 %v7784_v18, %v11409_v57 }
 0x122   :  { %v1343_v19 = vmax.f32 %v1071_v1, %v1311_v39  ;;  %v1344_v15 = vmax.f32 %v1072_v3, %v1312_v23  ;;  %v1345_v58 = vmax.f32 %v1073_v47, %v1313_v52  ;;  %v204_v54 = vmul.f32 %v7945_v10, %v11409_v57 }
 0x123   :  { %v1346_v55 = vmax.f32 %v1074_v2, %v1314_v49  ;;  %v233_v22 = vadd.f32 %v201_v48, %v104_v45  ;;  %v234_v41 = vadd.f32 %v202_v46, %v105_v38  ;;  %v235_v8 = vadd.f32 %v203_v7, %v106_v60  ;;  %v11415_v45 = vld [vmem:[#allocation39_spill] sm:$0xff] }
 0x124   :  { %v8860_v29 = vadd.f32 %v1389_v36, %v1343_v19  ;;  %v8862_v0 = vadd.f32 %v1389_v36, %v1344_v15  ;;  %v8864_v25 = vadd.f32 %v1389_v36, %v1345_v58  ;;  %v236_v34 = vadd.f32 %v204_v54, %v107_v17 }
 0x125   :  { %v8866_v33 = vadd.f32 %v1389_v36, %v1346_v55  ;;  %v330_v1 = vmul.f32 %v7930_v5, %v11414_v30  ;;  %v331_v3 = vmul.f32 %v7948_v13, %v11414_v30  ;;  %v332_v47 = vmul.f32 %v7789_v20, %v11414_v30 }
 0x126   :  { %11410 = vst [vmem:[#allocation23_spill] sm:$0xff] %v8860_v29  ;;  %11411 = vst [vmem:[#allocation26_spill] sm:$0xff] %v8862_v0  ;;  %v333_v2 = vmul.f32 %v7951_v14, %v11414_v30  ;;  %v459_v38 = vmul.f32 %v7933_v6, %v11415_v45  ;;  %v460_v60 = vmul.f32 %v7954_v16, %v11415_v45 }
 0x127   :  { %11412 = vst [vmem:[#allocation25_spill] sm:$0xff] %v8864_v25  ;;  %11413 = vst [vmem:[#allocation30_spill] sm:$0xff] %v8866_v33  ;;  %v461_v39 = vmul.f32 %v7800_v24, %v11415_v45  ;;  %v362_v23 = vadd.f32 %v330_v1, %v233_v22  ;;  %v363_v52 = vadd.f32 %v331_v3, %v234_v41 }
 0x128   :  { %v364_v17 = vadd.f32 %v332_v47, %v235_v8  ;;  %v462_v36 = vmul.f32 %v7957_v21, %v11415_v45  ;;  %v365_v49 = vadd.f32 %v333_v2, %v236_v34  ;;  %v523_v48 = vmul.f32 %v7927_v4, %v11408_v11 }
 0x129   :  { %v524_v46 = vmul.f32 %v7942_v9, %v11408_v11  ;;  %v525_v7 = vmul.f32 %v7784_v18, %v11408_v11  ;;  %v8890_v19 = vadd.f32 %v459_v38, %v362_v23  ;;  %v8892_v15 = vadd.f32 %v460_v60, %v363_v52 }
 0x12a   :  { %v8894_v58 = vadd.f32 %v461_v39, %v364_v17  ;;  %v526_v54 = vmul.f32 %v7945_v10, %v11408_v11  ;;  %v8898_v55 = vadd.f32 %v462_v36, %v365_v49  ;;  %v571_v22 = vmul.f32 %v7997_v40, %v11409_v57 }
 0x12b   :  { %v572_v41 = vmul.f32 %v11339_v43, %v11409_v57  ;;  %v573_v8 = vmul.f32 %v11375_v27, %v11409_v57  ;;  %v574_v34 = vmul.f32 %v11399_v35, %v11409_v57  ;;  %v635_v1 = vmul.f32 %v7933_v6, %v11414_v30 }
 0x12c   :  { %v636_v3 = vmul.f32 %v7954_v16, %v11414_v30  ;;  %v637_v47 = vmul.f32 %v7800_v24, %v11414_v30  ;;  %v603_v2 = vadd.f32 %v571_v22, %v523_v48  ;;  %v638_v39 = vmul.f32 %v7957_v21, %v11414_v30 }
 0x12d   :  { %v604_v38 = vadd.f32 %v572_v41, %v524_v46  ;;  %v605_v60 = vadd.f32 %v573_v8, %v525_v7  ;;  %v606_v23 = vadd.f32 %v574_v34, %v526_v54  ;;  %v715_v52 = vmul.f32 %v11343_v62, %v11415_v45 }
 0x12e   :  { %v716_v17 = vmul.f32 %v11400_v56, %v11415_v45  ;;  %v717_v36 = vmul.f32 %v11347_v37, %v11415_v45  ;;  %v667_v49 = vadd.f32 %v635_v1, %v603_v2  ;;  %v718_v48 = vmul.f32 %v11401_v50, %v11415_v45 }
 0x12f   :  { %v668_v25 = vadd.f32 %v636_v3, %v604_v38  ;;  %v669_v29 = vadd.f32 %v637_v47, %v605_v60  ;;  %v670_v46 = vadd.f32 %v638_v39, %v606_v23  ;;  %v811_v7 = vmul.f32 %v7930_v5, %v11408_v11 }
 0x130   :  { %v812_v54 = vmul.f32 %v7948_v13, %v11408_v11  ;;  %v813_v22 = vmul.f32 %v7789_v20, %v11408_v11  ;;  %v747_v41 = vadd.f32 %v715_v52, %v667_v49  ;;  %v814_v1 = vmul.f32 %v7951_v14, %v11408_v11 }
 0x131   :  { %v748_v8 = vadd.f32 %v716_v17, %v668_v25  ;;  %v749_v34 = vadd.f32 %v717_v36, %v669_v29  ;;  %v750_v3 = vadd.f32 %v718_v48, %v670_v46  ;;  %v843_v47 = vmul.f32 %v7933_v6, %v11409_v57 }
 0x132   :  { %v844_v2 = vmul.f32 %v7954_v16, %v11409_v57  ;;  %v845_v38 = vmul.f32 %v7800_v24, %v11409_v57  ;;  %v779_v60 = vmax.f32 %v8890_v19, %v747_v41  ;;  %v846_v29 = vmul.f32 %v7957_v21, %v11409_v57 }
 0x133   :  { %v780_v39 = vmax.f32 %v8892_v15, %v748_v8  ;;  %v781_v25 = vmax.f32 %v8894_v58, %v749_v34  ;;  %v782_v23 = vmax.f32 %v8898_v55, %v750_v3  ;;  %v875_v52 = vadd.f32 %v843_v47, %v811_v7 }
 0x134   :  { %v876_v17 = vadd.f32 %v844_v2, %v812_v54  ;;  %v877_v36 = vadd.f32 %v845_v38, %v813_v22  ;;  %v878_v49 = vadd.f32 %v846_v29, %v814_v1  ;;  %v923_v48 = vmul.f32 %v11402_v59, %v11414_v30 }
 0x135   :  { %v924_v46 = vmul.f32 %v11403_v53, %v11414_v30  ;;  %v925_v19 = vmul.f32 %v11378_v63, %v11414_v30  ;;  %v926_v15 = vmul.f32 %v11404_v31, %v11414_v30  ;;  %v1003_v58 = vmul.f32 %v11354_v26, %v11415_v45 }
 0x136   :  { %v1004_v55 = vmul.f32 %v11405_v28, %v11415_v45  ;;  %v1005_v7 = vmul.f32 %v11358_v42, %v11415_v45  ;;  %v955_v54 = vadd.f32 %v923_v48, %v875_v52  ;;  %v1006_v8 = vmul.f32 %v11406_v51, %v11415_v45 }
 0x137   :  { %v956_v22 = vadd.f32 %v924_v46, %v876_v17  ;;  %v957_v41 = vadd.f32 %v925_v19, %v877_v36  ;;  %v958_v34 = vadd.f32 %v926_v15, %v878_v49  ;;  %v1099_v1 = vmul.f32 %v7933_v6, %v11408_v11 }
 0x138   :  { %v1100_v3 = vmul.f32 %v7954_v16, %v11408_v11  ;;  %v1101_v47 = vmul.f32 %v7800_v24, %v11408_v11  ;;  %v1035_v2 = vadd.f32 %v1003_v58, %v955_v54  ;;  %v1102_v52 = vmul.f32 %v7957_v21, %v11408_v11 }
 0x139   :  { %v1036_v38 = vadd.f32 %v1004_v55, %v956_v22  ;;  %v1037_v29 = vadd.f32 %v1005_v7, %v957_v41  ;;  %v1038_v17 = vadd.f32 %v1006_v8, %v958_v34  ;;  %v1131_v36 = vmul.f32 %v11343_v62, %v11409_v57 }
 0x13a   :  { %v1132_v49 = vmul.f32 %v11400_v56, %v11409_v57  ;;  %v1133_v48 = vmul.f32 %v11347_v37, %v11409_v57  ;;  %v1067_v46 = vmax.f32 %v779_v60, %v1035_v2  ;;  %v1134_v58 = vmul.f32 %v11401_v50, %v11409_v57  ;;  %v8987_v57 = vld [vmem:[%s11215_s0 + $0x20] ss:$0 sm:$0xff] }
 0x13b   :  { %v1068_v19 = vmax.f32 %v780_v39, %v1036_v38  ;;  %v1069_v15 = vmax.f32 %v781_v25, %v1037_v29  ;;  %v1070_v55 = vmax.f32 %v782_v23, %v1038_v17  ;;  %v1163_v7 = vadd.f32 %v1131_v36, %v1099_v1  ;;  %11416 = vst [vmem:[#allocation29_spill] sm:$0xff] %v8987_v57  ;;  %v8996_v23 = vld [vmem:[%s11215_s0 + $0x30] ss:$0 sm:$0xff]  ;;  %v11418_v29 = vld [vmem:[#allocation31_spill] sm:$0xff]  ;;  %v11419_v17 = vld [vmem:[#allocation21_spill] sm:$0xff] }
 0x13c   :  { %v1164_v54 = vadd.f32 %v1132_v49, %v1100_v3  ;;  %v1165_v11 = vadd.f32 %v1133_v48, %v1101_v47  ;;  %v1166_v22 = vadd.f32 %v1134_v58, %v1102_v52  ;;  %v1195_v41 = vmul.f32 %v11354_v26, %v11414_v30  ;;  %11417 = vst [vmem:[#allocation41_spill] sm:$0xff] %v8996_v23  ;;  %v11420_v49 = vld [vmem:[#allocation24_spill] sm:$0xff] }
 0x13d   :  { %v1196_v8 = vmul.f32 %v11405_v28, %v11414_v30  ;;  %v1197_v34 = vmul.f32 %v11358_v42, %v11414_v30  ;;  %v1198_v60 = vmul.f32 %v11406_v51, %v11414_v30  ;;  %v1275_v39 = vmul.f32 %v8987_v57, %v11415_v45  ;;  %v1384_v51 = vpop.permute.xlu0 %1383 }
 0x13e   :  { %v1276_v25 = vmul.f32 %v8831_v12, %v11415_v45  ;;  %v1277_v1 = vmul.f32 %v8996_v23, %v11415_v45  ;;  %v1227_v30 = vadd.f32 %v1195_v41, %v1163_v7  ;;  %v1278_v2 = vmul.f32 %v8840_v44, %v11415_v45  ;;  %v11421_v12 = vld [vmem:[#allocation28_spill] sm:$0xff] }
 0x13f   :  { %v1228_v3 = vadd.f32 %v1196_v8, %v1164_v54  ;;  %v1229_v47 = vadd.f32 %v1197_v34, %v1165_v11  ;;  %v1230_v38 = vadd.f32 %v1198_v60, %v1166_v22  ;;  %v1460_v52 = vmax.f32 %v11418_v29, 0.0  ;;  %v11422_v54 = vld [vmem:[#allocation7_spill] sm:$0xff] }
 0x140   :  { %v1464_v36 = vmax.f32 %v11419_v17, 0.0  ;;  %v1462_v48 = vmax.f32 %v11420_v49, 0.0  ;;  %v1307_v58 = vadd.f32 %v1275_v39, %v1227_v30  ;;  %v1466_v57 = vmax.f32 %v11421_v12, 0.0  ;;  %v11423_v39 = vld [vmem:[#allocation4_spill] sm:$0xff]  ;;  %v11425_v30 = vld [vmem:[#allocation2_spill] sm:$0xff] }
 0x141   :  { %v1308_v33 = vadd.f32 %v1276_v25, %v1228_v3  ;;  %v1309_v0 = vadd.f32 %v1277_v1, %v1229_v47  ;;  %v1310_v23 = vadd.f32 %v1278_v2, %v1230_v38  ;;  %v100_v11 = vmul.f32 %v11368_v61, %v11422_v54  ;;  %v11424_v12 = vld [vmem:[#allocation16_spill] sm:$0xff]  ;;  %v11430_v49 = vld [vmem:[#allocation42_spill] sm:$0xff] }
 0x142   :  { %v1484_v7 = vpack.c.bf16 %v1464_v36, %v1460_v52  ;;  %v101_v45 = vmul.f32 %v11369_v32, %v11422_v54  ;;  %v1339_v22 = vmax.f32 %v1067_v46, %v1307_v58  ;;  %v1486_v34 = vpack.c.bf16 %v1466_v57, %v1462_v48  ;;  %v11429_v57 = vld [vmem:[#allocation3_spill] sm:$0xff] }
 0x143   :  { %v1340_v41 = vmax.f32 %v1068_v19, %v1308_v33  ;;  %v1341_v8 = vmax.f32 %v1069_v15, %v1309_v0  ;;  %v1342_v60 = vmax.f32 %v1070_v55, %v1310_v23  ;;  %v102_v25 = vmul.f32 %v11423_v39, %v11422_v54 }
 0x144   :  { %1582 = vmatprep.subr.bf16.mxu0 %v1484_v7  ;;  %v103_v1 = vmul.f32 %v11424_v12, %v11422_v54  ;;  %v197_v3 = vmul.f32 %v7927_v4, %v11425_v30  ;;  %v9016_v47 = vadd.f32 %v1384_v51, %v1339_v22  ;;  %1695 = vmatprep.subr.bf16.mxu1 %v1486_v34 }
 0x145   :  { %v9018_v2 = vadd.f32 %v1384_v51, %v1340_v41  ;;  %v9020_v38 = vadd.f32 %v1384_v51, %v1341_v8  ;;  %v198_v33 = vmul.f32 %v7942_v9, %v11425_v30  ;;  %v9024_v0 = vadd.f32 %v1384_v51, %v1342_v60 }
 0x146   :  { %11426 = vst [vmem:[#allocation32_spill] sm:$0xff] %v9016_v47  ;;  %v199_v46 = vmul.f32 %v7784_v18, %v11425_v30  ;;  %v200_v19 = vmul.f32 %v7945_v10, %v11425_v30  ;;  %v229_v15 = vadd.f32 %v197_v3, %v100_v11  ;;  %v326_v23 = vmul.f32 %v7930_v5, %v11429_v57 }
 0x147   :  { %11427 = vst [vmem:[#allocation34_spill] sm:$0xff] %v9020_v38  ;;  %11428 = vst [vmem:[#allocation9_spill] sm:$0xff] %v9024_v0  ;;  %v230_v55 = vadd.f32 %v198_v33, %v101_v45  ;;  %v327_v29 = vmul.f32 %v7948_v13, %v11429_v57  ;;  %v328_v52 = vmul.f32 %v7789_v20, %v11429_v57 }
 0x148   :  { %v231_v17 = vadd.f32 %v199_v46, %v102_v25  ;;  %v232_v51 = vadd.f32 %v200_v19, %v103_v1  ;;  %v329_v36 = vmul.f32 %v7951_v14, %v11429_v57  ;;  %v455_v48 = vmul.f32 %v7933_v6, %v11430_v49 }
 0x149   :  { %v358_v58 = vadd.f32 %v326_v23, %v229_v15  ;;  %v359_v7 = vadd.f32 %v327_v29, %v230_v55  ;;  %v456_v11 = vmul.f32 %v7954_v16, %v11430_v49  ;;  %v457_v45 = vmul.f32 %v7800_v24, %v11430_v49 }
 0x14a   :  { %v360_v22 = vadd.f32 %v328_v52, %v231_v17  ;;  %v361_v41 = vadd.f32 %v329_v36, %v232_v51  ;;  %v458_v8 = vmul.f32 %v7957_v21, %v11430_v49  ;;  %v519_v34 = vmul.f32 %v7927_v4, %v11422_v54 }
 0x14b   :  { %v9048_v60 = vadd.f32 %v455_v48, %v358_v58  ;;  %v9050_v25 = vadd.f32 %v456_v11, %v359_v7  ;;  %v520_v1 = vmul.f32 %v7942_v9, %v11422_v54  ;;  %v521_v3 = vmul.f32 %v7784_v18, %v11422_v54 }
 0x14c   :  { %v9056_v33 = vadd.f32 %v457_v45, %v360_v22  ;;  %v9058_v46 = vadd.f32 %v458_v8, %v361_v41  ;;  %v522_v19 = vmul.f32 %v7945_v10, %v11422_v54  ;;  %v567_v15 = vmul.f32 %v7997_v40, %v11425_v30 }
 0x14d   :  { %v568_v55 = vmul.f32 %v11339_v43, %v11425_v30  ;;  %v569_v23 = vmul.f32 %v11375_v27, %v11425_v30  ;;  %v570_v29 = vmul.f32 %v11399_v35, %v11425_v30  ;;  %v631_v52 = vmul.f32 %v7933_v6, %v11429_v57 }
 0x14e   :  { %v599_v17 = vadd.f32 %v567_v15, %v519_v34  ;;  %v632_v51 = vmul.f32 %v7954_v16, %v11429_v57  ;;  %v633_v36 = vmul.f32 %v7800_v24, %v11429_v57  ;;  %v634_v48 = vmul.f32 %v7957_v21, %v11429_v57 }
 0x14f   :  { %v600_v58 = vadd.f32 %v568_v55, %v520_v1  ;;  %v601_v7 = vadd.f32 %v569_v23, %v521_v3  ;;  %v602_v11 = vadd.f32 %v570_v29, %v522_v19  ;;  %v711_v45 = vmul.f32 %v11343_v62, %v11430_v49 }
 0x150   :  { %v663_v22 = vadd.f32 %v631_v52, %v599_v17  ;;  %v712_v41 = vmul.f32 %v11400_v56, %v11430_v49  ;;  %v713_v8 = vmul.f32 %v11347_v37, %v11430_v49  ;;  %v714_v34 = vmul.f32 %v11401_v50, %v11430_v49 }
 0x151   :  { %v664_v15 = vadd.f32 %v632_v51, %v600_v58  ;;  %v665_v38 = vadd.f32 %v633_v36, %v601_v7  ;;  %v666_v47 = vadd.f32 %v634_v48, %v602_v11  ;;  %v807_v1 = vmul.f32 %v7930_v5, %v11422_v54 }
 0x152   :  { %v743_v3 = vadd.f32 %v711_v45, %v663_v22  ;;  %v808_v19 = vmul.f32 %v7948_v13, %v11422_v54  ;;  %v809_v55 = vmul.f32 %v7789_v20, %v11422_v54  ;;  %v810_v23 = vmul.f32 %v7951_v14, %v11422_v54 }
 0x153   :  { %v744_v29 = vadd.f32 %v712_v41, %v664_v15  ;;  %v745_v52 = vadd.f32 %v713_v8, %v665_v38  ;;  %v746_v17 = vadd.f32 %v714_v34, %v666_v47  ;;  %v839_v51 = vmul.f32 %v7933_v6, %v11425_v30 }
 0x154   :  { %v775_v36 = vmax.f32 %v9048_v60, %v743_v3  ;;  %v840_v48 = vmul.f32 %v7954_v16, %v11425_v30  ;;  %v841_v58 = vmul.f32 %v7800_v24, %v11425_v30  ;;  %v842_v7 = vmul.f32 %v7957_v21, %v11425_v30 }
 0x155   :  { %v776_v11 = vmax.f32 %v9050_v25, %v744_v29  ;;  %v777_v45 = vmax.f32 %v9056_v33, %v745_v52  ;;  %v778_v47 = vmax.f32 %v9058_v46, %v746_v17  ;;  %v871_v38 = vadd.f32 %v839_v51, %v807_v1 }
 0x156   :  { %v872_v22 = vadd.f32 %v840_v48, %v808_v19  ;;  %v873_v41 = vadd.f32 %v841_v58, %v809_v55  ;;  %v874_v8 = vadd.f32 %v842_v7, %v810_v23  ;;  %v919_v60 = vmul.f32 %v11402_v59, %v11429_v57  ;;  %v11431_v19 = vld [vmem:[#allocation15_spill] sm:$0xff] }
 0x157   :  { %v920_v34 = vmul.f32 %v11403_v53, %v11429_v57  ;;  %v921_v15 = vmul.f32 %v11378_v63, %v11429_v57  ;;  %v922_v25 = vmul.f32 %v11404_v31, %v11429_v57  ;;  %v999_v33 = vmul.f32 %v11354_v26, %v11430_v49 }
 0x158   :  { %v951_v46 = vadd.f32 %v919_v60, %v871_v38  ;;  %v1000_v1 = vmul.f32 %v11405_v28, %v11430_v49  ;;  %v1001_v3 = vmul.f32 %v11358_v42, %v11430_v49  ;;  %v1002_v55 = vmul.f32 %v11431_v19, %v11430_v49 }
 0x159   :  { %v952_v23 = vadd.f32 %v920_v34, %v872_v22  ;;  %v953_v29 = vadd.f32 %v921_v15, %v873_v41  ;;  %v954_v52 = vadd.f32 %v922_v25, %v874_v8  ;;  %v1095_v17 = vmul.f32 %v7933_v6, %v11422_v54 }
 0x15a   :  { %v1031_v51 = vadd.f32 %v999_v33, %v951_v46  ;;  %v1096_v48 = vmul.f32 %v7954_v16, %v11422_v54  ;;  %v1097_v58 = vmul.f32 %v7800_v24, %v11422_v54  ;;  %v1098_v7 = vmul.f32 %v7957_v21, %v11422_v54 }
 0x15b   :  { %v1032_v38 = vadd.f32 %v1000_v1, %v952_v23  ;;  %v1033_v60 = vadd.f32 %v1001_v3, %v953_v29  ;;  %v1034_v0 = vadd.f32 %v1002_v55, %v954_v52  ;;  %v1127_v22 = vmul.f32 %v11343_v62, %v11425_v30 }
 0x15c   :  { %v1063_v41 = vmax.f32 %v775_v36, %v1031_v51  ;;  %v1128_v8 = vmul.f32 %v11400_v56, %v11425_v30  ;;  %v1129_v34 = vmul.f32 %v11347_v37, %v11425_v30  ;;  %v1130_v15 = vmul.f32 %v11401_v50, %v11425_v30  ;;  %v11432_v30 = vld [vmem:[#allocation29_spill] sm:$0xff] }
 0x15d   :  { %v1064_v25 = vmax.f32 %v776_v11, %v1032_v38  ;;  %v1065_v33 = vmax.f32 %v777_v45, %v1033_v60  ;;  %v1066_v46 = vmax.f32 %v778_v47, %v1034_v0  ;;  %v1159_v54 = vadd.f32 %v1127_v22, %v1095_v17  ;;  %v11433_v45 = vld [vmem:[#allocation18_spill] sm:$0xff]  ;;  %v11434_v17 = vld [vmem:[#allocation41_spill] sm:$0xff] }
 0x15e   :  { %v1160_v1 = vadd.f32 %v1128_v8, %v1096_v48  ;;  %v1161_v3 = vadd.f32 %v1129_v34, %v1097_v58  ;;  %v1162_v55 = vadd.f32 %v1130_v15, %v1098_v7  ;;  %v1191_v23 = vmul.f32 %v11354_v26, %v11429_v57  ;;  %v11435_v60 = vld [vmem:[#allocation37_spill] sm:$0xff] }
 0x15f   :  { %v1192_v36 = vmul.f32 %v11405_v28, %v11429_v57  ;;  %v1193_v29 = vmul.f32 %v11358_v42, %v11429_v57  ;;  %v1194_v52 = vmul.f32 %v11431_v19, %v11429_v57  ;;  %v1271_v11 = vmul.f32 %v11432_v30, %v11430_v49 }
 0x160   :  { %v1223_v0 = vadd.f32 %v1191_v23, %v1159_v54  ;;  %v1272_v47 = vmul.f32 %v11433_v45, %v11430_v49  ;;  %v1273_v51 = vmul.f32 %v11434_v17, %v11430_v49  ;;  %v1274_v48 = vmul.f32 %v8840_v44, %v11430_v49  ;;  %v1379_v54 = vpop.permute.xlu1 %1378  ;;  %v11436_v49 = vld [vmem:[#allocation38_spill] sm:$0xff] }
 0x161   :  { %v1224_v58 = vadd.f32 %v1192_v36, %v1160_v1  ;;  %v1225_v7 = vadd.f32 %v1193_v29, %v1161_v3  ;;  %v1226_v38 = vadd.f32 %v1194_v52, %v1162_v55  ;;  %v96_v22 = vmul.f32 %v11368_v61, %v11435_v60 }
 0x162   :  { %v1303_v57 = vadd.f32 %v1271_v11, %v1223_v0  ;;  %v97_v8 = vmul.f32 %v11369_v32, %v11435_v60  ;;  %v98_v34 = vmul.f32 %v11423_v39, %v11435_v60  ;;  %v99_v15 = vmul.f32 %v11424_v12, %v11435_v60 }
 0x163   :  { %v1304_v23 = vadd.f32 %v1272_v47, %v1224_v58  ;;  %v1305_v45 = vadd.f32 %v1273_v51, %v1225_v7  ;;  %v1306_v44 = vadd.f32 %v1274_v48, %v1226_v38  ;;  %v193_v1 = vmul.f32 %v7927_v4, %v11436_v49  ;;  %v11437_v58 = vld [vmem:[#allocation40_spill] sm:$0xff]  ;;  %v11438_v38 = vld [vmem:[#allocation5_spill] sm:$0xff] }
 0x164   :  { %v1335_v3 = vmax.f32 %v1063_v41, %v1303_v57  ;;  %v194_v61 = vmul.f32 %v7942_v9, %v11436_v49  ;;  %v195_v32 = vmul.f32 %v7784_v18, %v11436_v49  ;;  %v196_v39 = vmul.f32 %v7945_v10, %v11436_v49 }
 0x165   :  { %v1336_v55 = vmax.f32 %v1064_v25, %v1304_v23  ;;  %v1337_v36 = vmax.f32 %v1065_v33, %v1305_v45  ;;  %v1338_v12 = vmax.f32 %v1066_v46, %v1306_v44  ;;  %v225_v29 = vadd.f32 %v193_v1, %v96_v22 }
 0x166   :  { %v9170_v52 = vadd.f32 %v1379_v54, %v1335_v3  ;;  %v226_v11 = vadd.f32 %v194_v61, %v97_v8  ;;  %v227_v0 = vadd.f32 %v195_v32, %v98_v34  ;;  %v228_v47 = vadd.f32 %v196_v39, %v99_v15 }
 0x167   :  { %v9172_v51 = vadd.f32 %v1379_v54, %v1336_v55  ;;  %v9174_v41 = vadd.f32 %v1379_v54, %v1337_v36  ;;  %v9176_v48 = vadd.f32 %v1379_v54, %v1338_v12  ;;  %v322_v7 = vmul.f32 %v7930_v5, %v11437_v58 }
 0x168   :  { %v323_v25 = vmul.f32 %v7948_v13, %v11437_v58  ;;  %v324_v33 = vmul.f32 %v7789_v20, %v11437_v58  ;;  %v325_v46 = vmul.f32 %v7951_v14, %v11437_v58  ;;  %v451_v22 = vmul.f32 %v7933_v6, %v11438_v38 }
 0x169   :  { %v354_v57 = vadd.f32 %v322_v7, %v225_v29  ;;  %v452_v8 = vmul.f32 %v7954_v16, %v11438_v38  ;;  %v453_v34 = vmul.f32 %v7800_v24, %v11438_v38  ;;  %v454_v15 = vmul.f32 %v7957_v21, %v11438_v38 }
 0x16a   :  { %v355_v54 = vadd.f32 %v323_v25, %v226_v11  ;;  %v356_v23 = vadd.f32 %v324_v33, %v227_v0  ;;  %v357_v45 = vadd.f32 %v325_v46, %v228_v47  ;;  %v515_v44 = vmul.f32 %v7927_v4, %v11435_v60 }
 0x16b   :  { %v9196_v1 = vadd.f32 %v451_v22, %v354_v57  ;;  %v516_v3 = vmul.f32 %v7942_v9, %v11435_v60  ;;  %v517_v61 = vmul.f32 %v7784_v18, %v11435_v60  ;;  %v518_v32 = vmul.f32 %v7945_v10, %v11435_v60 }
 0x16c   :  { %v9204_v39 = vadd.f32 %v452_v8, %v355_v54  ;;  %v9206_v55 = vadd.f32 %v453_v34, %v356_v23  ;;  %v9208_v36 = vadd.f32 %v454_v15, %v357_v45  ;;  %v563_v4 = vmul.f32 %v7997_v40, %v11436_v49 }
 0x16d   :  { %v564_v12 = vmul.f32 %v11339_v43, %v11436_v49  ;;  %v565_v9 = vmul.f32 %v11375_v27, %v11436_v49  ;;  %v566_v18 = vmul.f32 %v11399_v35, %v11436_v49  ;;  %v627_v10 = vmul.f32 %v7933_v6, %v11437_v58 }
 0x16e   :  { %v595_v29 = vadd.f32 %v563_v4, %v515_v44  ;;  %v628_v11 = vmul.f32 %v7954_v16, %v11437_v58  ;;  %v629_v0 = vmul.f32 %v7800_v24, %v11437_v58  ;;  %v630_v40 = vmul.f32 %v7957_v21, %v11437_v58 }
 0x16f   :  { %v596_v43 = vadd.f32 %v564_v12, %v516_v3  ;;  %v597_v47 = vadd.f32 %v565_v9, %v517_v61  ;;  %v598_v7 = vadd.f32 %v566_v18, %v518_v32  ;;  %v707_v27 = vmul.f32 %v11343_v62, %v11438_v38 }
 0x170   :  { %v659_v35 = vadd.f32 %v627_v10, %v595_v29  ;;  %v708_v25 = vmul.f32 %v11400_v56, %v11438_v38  ;;  %v709_v33 = vmul.f32 %v11347_v37, %v11438_v38  ;;  %v710_v46 = vmul.f32 %v11401_v50, %v11438_v38 }
 0x171   :  { %v660_v22 = vadd.f32 %v628_v11, %v596_v43  ;;  %v661_v57 = vadd.f32 %v629_v0, %v597_v47  ;;  %v662_v8 = vadd.f32 %v630_v40, %v598_v7  ;;  %v803_v34 = vmul.f32 %v7930_v5, %v11435_v60 }
 0x172   :  { %v739_v15 = vadd.f32 %v707_v27, %v659_v35  ;;  %v804_v54 = vmul.f32 %v7948_v13, %v11435_v60  ;;  %v805_v23 = vmul.f32 %v7789_v20, %v11435_v60  ;;  %v806_v45 = vmul.f32 %v7951_v14, %v11435_v60 }
 0x173   :  { %v740_v44 = vadd.f32 %v708_v25, %v660_v22  ;;  %v741_v3 = vadd.f32 %v709_v33, %v661_v57  ;;  %v742_v61 = vadd.f32 %v710_v46, %v662_v8  ;;  %v835_v32 = vmul.f32 %v7933_v6, %v11436_v49 }
 0x174   :  { %v771_v4 = vmax.f32 %v9196_v1, %v739_v15  ;;  %v836_v5 = vmul.f32 %v7954_v16, %v11436_v49  ;;  %v837_v13 = vmul.f32 %v7800_v24, %v11436_v49  ;;  %v838_v20 = vmul.f32 %v7957_v21, %v11436_v49 }
 0x175   :  { %v772_v12 = vmax.f32 %v9204_v39, %v740_v44  ;;  %v773_v14 = vmax.f32 %v9206_v55, %v741_v3  ;;  %v774_v9 = vmax.f32 %v9208_v36, %v742_v61  ;;  %v867_v18 = vadd.f32 %v835_v32, %v803_v34  ;;  %v7700_v61 = vld [vmem:[%s11215_s0 + $0x28] ss:$0 sm:$0xff] }
 0x176   :  { %v868_v10 = vadd.f32 %v836_v5, %v804_v54  ;;  %v869_v29 = vadd.f32 %v837_v13, %v805_v23  ;;  %v870_v11 = vadd.f32 %v838_v20, %v806_v45  ;;  %v915_v1 = vmul.f32 %v11402_v59, %v11437_v58  ;;  %v11440_v20 = vld [vmem:[#allocation27_spill] sm:$0xff] }
 0x177   :  { %v916_v0 = vmul.f32 %v11403_v53, %v11437_v58  ;;  %v917_v40 = vmul.f32 %v11378_v63, %v11437_v58  ;;  %v918_v39 = vmul.f32 %v11404_v31, %v11437_v58  ;;  %v995_v55 = vmul.f32 %v11354_v26, %v11438_v38 }
 0x178   :  { %v947_v36 = vadd.f32 %v915_v1, %v867_v18  ;;  %v996_v43 = vmul.f32 %v11405_v28, %v11438_v38  ;;  %v997_v47 = vmul.f32 %v11358_v42, %v11438_v38  ;;  %v998_v59 = vmul.f32 %v11431_v19, %v11438_v38  ;;  %v11442_v18 = vld [vmem:[#allocation8_spill] sm:$0xff] }
 0x179   :  { %v948_v53 = vadd.f32 %v916_v0, %v868_v10  ;;  %v949_v7 = vadd.f32 %v917_v40, %v869_v29  ;;  %v950_v27 = vadd.f32 %v918_v39, %v870_v11  ;;  %v1091_v63 = vmul.f32 %v7933_v6, %v11435_v60  ;;  %v1374_v29 = vpop.permute.xlu0 %1373 }
 0x17a   :  { %v1027_v31 = vadd.f32 %v995_v55, %v947_v36  ;;  %v1092_v35 = vmul.f32 %v7954_v16, %v11435_v60  ;;  %v1093_v25 = vmul.f32 %v7800_v24, %v11435_v60  ;;  %v1094_v33 = vmul.f32 %v7957_v21, %v11435_v60  ;;  %v11443_v55 = vld [vmem:[#allocation26_spill] sm:$0xff] }
 0x17b   :  { %v1028_v46 = vadd.f32 %v996_v43, %v948_v53  ;;  %v1029_v22 = vadd.f32 %v997_v47, %v949_v7  ;;  %v1030_v57 = vadd.f32 %v998_v59, %v950_v27  ;;  %v1123_v8 = vmul.f32 %v11343_v62, %v11436_v49  ;;  %v11444_v53 = vld [vmem:[#allocation9_spill] sm:$0xff] }
 0x17c   :  { %v1059_v34 = vmax.f32 %v771_v4, %v1027_v31  ;;  %v1124_v6 = vmul.f32 %v11400_v56, %v11436_v49  ;;  %v1125_v15 = vmul.f32 %v11347_v37, %v11436_v49  ;;  %v1126_v16 = vmul.f32 %v11401_v50, %v11436_v49  ;;  %v11445_v31 = vld [vmem:[#allocation30_spill] sm:$0xff] }
 0x17d   :  { %v1060_v24 = vmax.f32 %v772_v12, %v1028_v46  ;;  %v1061_v54 = vmax.f32 %v773_v14, %v1029_v22  ;;  %v1062_v23 = vmax.f32 %v774_v9, %v1030_v57  ;;  %v1155_v21 = vadd.f32 %v1123_v8, %v1091_v63  ;;  %v11441_v14 = vld [vmem:[#allocation19_spill] sm:$0xff] }
 0x17e   :  { %v1156_v60 = vadd.f32 %v1124_v6, %v1092_v35  ;;  %v1157_v45 = vadd.f32 %v1125_v15, %v1093_v25  ;;  %v1158_v44 = vadd.f32 %v1126_v16, %v1094_v33  ;;  %v1187_v62 = vmul.f32 %v11354_v26, %v11437_v58  ;;  %v11446_v25 = vld [vmem:[#allocation32_spill] sm:$0xff]  ;;  %v11447_v57 = vld [vmem:[#allocation23_spill] sm:$0xff]  ;;  %v11448_v6 = vld [vmem:[#allocation34_spill] sm:$0xff] }
 0x17f   :  { %v1188_v3 = vmul.f32 %v11405_v28, %v11437_v58  ;;  %v1189_v56 = vmul.f32 %v11358_v42, %v11437_v58  ;;  %v1190_v37 = vmul.f32 %v11431_v19, %v11437_v58  ;;  %v1267_v50 = vmul.f32 %v11432_v30, %v11438_v38  ;;  %v7701_v42 = vld [vmem:[%s11215_s0 + $0x38] ss:$0 sm:$0xff]  ;;  %v11439_v30 = vld [vmem:[#allocation6_spill] sm:$0xff] }
 0x180   :  { %v1219_v49 = vadd.f32 %v1187_v62, %v1155_v21  ;;  %v1268_v32 = vmul.f32 %v7700_v61, %v11438_v38  ;;  %v1269_v26 = vmul.f32 %v11434_v17, %v11438_v38  ;;  %v1270_v28 = vmul.f32 %v7701_v42, %v11438_v38  ;;  %v11449_v16 = vld [vmem:[#allocation25_spill] sm:$0xff]  ;;  %v6934_v42 = vld [vmem:[%s11219_s4 + $0x2c4] ss:$16 sps:$4 sm:$0xff]  }
 0x181   :  { %v1220_v19 = vadd.f32 %v1188_v3, %v1156_v60  ;;  %v1221_v58 = vadd.f32 %v1189_v56, %v1157_v45  ;;  %v1222_v4 = vadd.f32 %v1190_v37, %v1158_v44  ;;  %v1459_v5 = vmax.f32 %v11439_v30, 0.0  ;;  %v6928_v37 = vld [vmem:[%s11219_s4 + $0x2e4] ss:$16 sps:$4 sm:$0xff]   ;;  %v6931_v61 = vld [vmem:[%s11219_s4 + $0x2ec] ss:$16 sps:$4 sm:$0xff]  }
 0x182   :  { %v1299_v13 = vadd.f32 %v1267_v50, %v1219_v49  ;;  %v1463_v12 = vmax.f32 %v11440_v20, 0.0  ;;  %v1461_v9 = vmax.f32 %v11441_v14, 0.0  ;;  %v1465_v10 = vmax.f32 %v11442_v18, 0.0  ;;  %v6940_v30 = vld [vmem:[%s11219_s4 + $0x2a4] ss:$16 sps:$4 sm:$0xff]  }
 0x183   :  { %v1300_v17 = vadd.f32 %v1268_v32, %v1220_v19  ;;  %v1301_v11 = vadd.f32 %v1269_v26, %v1221_v58  ;;  %v1302_v1 = vadd.f32 %v1270_v28, %v1222_v4  ;;  %v1452_v0 = vmax.f32 %v9018_v2, 0.0  ;;  %v6926_v26 = vld [vmem:[%s11219_s4 + $0x2e0] ss:$16 sps:$4 sm:$0xff]   ;;  %v6937_v28 = vld [vmem:[%s11219_s4 + $0x2cc] ss:$16 sps:$4 sm:$0xff]  }
 0x184   :  { %v1331_v40 = vmax.f32 %v1059_v34, %v1299_v13  ;;  %v1483_v38 = vpack.c.bf16 %v1463_v12, %v1459_v5  ;;  %v1485_v39 = vpack.c.bf16 %v1465_v10, %v1461_v9  ;;  %v1456_v36 = vmax.f32 %v11443_v55, 0.0  ;;  %v6932_v19 = vld [vmem:[%s11219_s4 + $0x2c0] ss:$16 sps:$4 sm:$0xff]   ;;  %v6935_v58 = vld [vmem:[%s11219_s4 + $0x2c8] ss:$16 sps:$4 sm:$0xff]  }
 0x185   :  { %v1332_v43 = vmax.f32 %v1060_v24, %v1300_v17  ;;  %v1333_v47 = vmax.f32 %v1061_v54, %v1301_v11  ;;  %v1334_v59 = vmax.f32 %v1062_v23, %v1302_v1  ;;  %v1454_v7 = vmax.f32 %v11444_v53, 0.0  ;;  %v6943_v5 = vld [vmem:[%s11219_s4 + $0x2ac] ss:$16 sps:$4 sm:$0xff]   ;;  %v6938_v20 = vld [vmem:[%s11219_s4 + $0x2a0] ss:$16 sps:$4 sm:$0xff]  }
 0x186   :  { %v1411_v27 = vadd.f32 %v1374_v29, %v1331_v40  ;;  %1583 = vmatpush1.bf16.msra.mxu0 %v1483_v38  ;;  %1696 = vmatpush1.bf16.msra.mxu1 %v1485_v39  ;;  %v1480_v63 = vpack.c.bf16 %v1456_v36, %v1452_v0  ;;  %v1458_v35 = vmax.f32 %v11445_v31, 0.0  ;;  %v1451_v33 = vmax.f32 %v11446_v25, 0.0  ;;  %v6921_v13 = vld [vmem:[%s11218_s3 + $0x8] sm:$0xff]   ;;  %v6946_v14 = vld [vmem:[%s11219_s4 + $0x284] ss:$16 sps:$4 sm:$0xff]  }
 0x187   :  { %v1412_v46 = vadd.f32 %v1374_v29, %v1332_v43  ;;  %v1413_v2 = vadd.f32 %v1374_v29, %v1333_v47  ;;  %v1414_v22 = vadd.f32 %v1374_v29, %v1334_v59  ;;  %v1455_v8 = vmax.f32 %v11447_v57, 0.0  ;;  %v6941_v12 = vld [vmem:[%s11219_s4 + $0x2a8] ss:$16 sps:$4 sm:$0xff]   ;;  %v6949_v9 = vld [vmem:[%s11219_s4 + $0x28c] ss:$16 sps:$4 sm:$0xff]   ;;  %v6922_v11 = vld [vmem:[%s11218_s3 + $0x10] sm:$0xff]  }
 0x188   :  { %1584 = vmatprep.subr.bf16.mxu0 %v1480_v63  ;;  %v1482_v34 = vpack.c.bf16 %v1458_v35, %v1454_v7  ;;  %v1453_v15 = vmax.f32 %v11448_v6, 0.0  ;;  %v1457_v24 = vmax.f32 %v11449_v16, 0.0  ;;  %v1448_v54 = vmax.f32 %v9172_v51, 0.0  ;;  %v6944_v18 = vld [vmem:[%s11219_s4 + $0x280] ss:$16 sps:$4 sm:$0xff]   ;;  %v6923_v47 = vld [vmem:[%s11218_s3 + $0x18] sm:$0xff]  }
 0x189   :  { %v1479_v23 = vpack.c.bf16 %v1455_v8, %v1451_v33  ;;  %v1444_v21 = vmax.f32 %v1412_v46, 0.0  ;;  %v1446_v60 = vmax.f32 %v1414_v22, 0.0  ;;  %v1450_v45 = vmax.f32 %v9176_v48, 0.0  ;;  %v6947_v10 = vld [vmem:[%s11219_s4 + $0x288] ss:$16 sps:$4 sm:$0xff]   ;;  %v6924_v33 = vld [vmem:[%s11218_s3 + $0x20] sm:$0xff]  }
 0x18a   :  { %1697 = vmatprep.subr.bf16.mxu1 %v1482_v34  ;;  %v1481_v44 = vpack.c.bf16 %v1457_v24, %v1453_v15  ;;  %v1443_v62 = vmax.f32 %v1411_v27, 0.0  ;;  %v1447_v3 = vmax.f32 %v9170_v52, 0.0  ;;  %v1445_v56 = vmax.f32 %v1413_v2, 0.0  ;;  %v6920_v52 = vld [vmem:[%s11218_s3] sm:$0xff]   ;;  %v6955_v17 = vld [vmem:[%s11219_s4 + $0x26c] ss:$16 sps:$4 sm:$0xff]  }
 0x18b   :  { %1585 = vmatpush1.bf16.msra.mxu0 %v1479_v23  ;;  %v1476_v50 = vpack.c.bf16 %v1448_v54, %v1444_v21  ;;  %v1478_v49 = vpack.c.bf16 %v1450_v45, %v1446_v60  ;;  %v1449_v51 = vmax.f32 %v9174_v41, 0.0  ;;  %v6929_v41 = vld [vmem:[%s11219_s4 + $0x2e8] ss:$16 sps:$4 sm:$0xff]   ;;  %v11450_v4 = vmov 0   ;;  %v6952_v29 = vld [vmem:[%s11219_s4 + $0x264] ss:$16 sps:$4 sm:$0xff]  }
 0x18c   :  { %1698 = vmatpush1.bf16.msra.mxu1 %v1481_v44  ;;  %v1475_v48 = vpack.c.bf16 %v1447_v3, %v1443_v62  ;;  %v6950_v1 = vld [vmem:[%s11219_s4 + $0x260] ss:$16 sps:$4 sm:$0xff]   ;;  %v6953_v0 = vld [vmem:[%s11219_s4 + $0x268] ss:$16 sps:$4 sm:$0xff]   ;;  %v6958_v40 = vld [vmem:[%s11219_s4 + $0x244] ss:$16 sps:$4 sm:$0xff]  }
 0x18d   :  { %1586 = vmatprep.subr.bf16.mxu0 %v1476_v50  ;;  %1699 = vmatprep.subr.bf16.mxu1 %v1478_v49  ;;  %v1477_v32 = vpack.c.bf16 %v1449_v51, %v1445_v56  ;;  %v6961_v38 = vld [vmem:[%s11219_s4 + $0x24c] ss:$16 sps:$4 sm:$0xff]   ;;  %v6956_v39 = vld [vmem:[%s11219_s4 + $0x240] ss:$16 sps:$4 sm:$0xff]   ;;  %v6959_v55 = vld [vmem:[%s11219_s4 + $0x248] ss:$16 sps:$4 sm:$0xff]  }
 0x18e   :  { %v6964_v36 = vld [vmem:[%s11219_s4 + $0x224] ss:$16 sps:$4 sm:$0xff]   ;;  %v6967_v43 = vld [vmem:[%s11219_s4 + $0x22c] ss:$16 sps:$4 sm:$0xff]   ;;  %v6962_v59 = vld [vmem:[%s11219_s4 + $0x220] ss:$16 sps:$4 sm:$0xff]  }
 0x18f   :  { %1587 = vmatpush1.bf16.msra.mxu0 %v1475_v48  ;;  %v6965_v53 = vld [vmem:[%s11219_s4 + $0x228] ss:$16 sps:$4 sm:$0xff]   ;;  %v6970_v7 = vld [vmem:[%s11219_s4 + $0x204] ss:$16 sps:$4 sm:$0xff]   ;;  %v6973_v27 = vld [vmem:[%s11219_s4 + $0x20c] ss:$16 sps:$4 sm:$0xff]  }
 0x190   :  { %1700 = vmatpush1.bf16.msra.mxu1 %v1477_v32  ;;  %2283 = vmatprep.subr.bf16.mxu0 %v6928_v37  ;;  %v6968_v63 = vld [vmem:[%s11219_s4 + $0x200] ss:$16 sps:$4 sm:$0xff]   ;;  %v6971_v31 = vld [vmem:[%s11219_s4 + $0x208] ss:$16 sps:$4 sm:$0xff]   ;;  %v6976_v35 = vld [vmem:[%s11219_s4 + $0x3e4] ss:$16 sps:$4 sm:$0xff]  }
 0x191   :  { %2336 = vmatprep.subr.bf16.mxu1 %v6931_v61  ;;  %v6979_v25 = vld [vmem:[%s11219_s4 + $0x3ec] ss:$16 sps:$4 sm:$0xff]   ;;  %v6974_v46 = vld [vmem:[%s11219_s4 + $0x3e0] ss:$16 sps:$4 sm:$0xff]   ;;  %v6977_v2 = vld [vmem:[%s11219_s4 + $0x3e8] ss:$16 sps:$4 sm:$0xff]  }
 0x192   :  { %5962 = vmatmul.mubr.msk.bf16.vlgmr.msra.gmra.mxu0 %vm1547_vm0, %v6920_v52  ;;  %v6982_v22 = vld [vmem:[%s11219_s4 + $0x3c4] ss:$16 sps:$4 sm:$0xff]   ;;  %v6985_v57 = vld [vmem:[%s11219_s4 + $0x3cc] ss:$16 sps:$4 sm:$0xff]   ;;  %v6980_v8 = vld [vmem:[%s11219_s4 + $0x3c0] ss:$16 sps:$4 sm:$0xff]  }
 0x193   :  { %1614 = vmatprep.mubr.bf16.mxu0 %v11450_v4  ;;  %5970 = vmatmul.mubr.msk.bf16.vlgmr.msra.gmra.mxu1 %vm1547_vm0, %v6920_v52  ;;  %v6983_v34 = vld [vmem:[%s11219_s4 + $0x3c8] ss:$16 sps:$4 sm:$0xff]   ;;  %v6986_v15 = vld [vmem:[%s11219_s4 + $0x3a0] ss:$16 sps:$4 sm:$0xff]   ;;  %v6988_v16 = vld [vmem:[%s11219_s4 + $0x3a4] ss:$16 sps:$4 sm:$0xff]  }
 0x194   :  { %2284 = vmatpush1.bf16.msra.mxu0 %v6926_v26  ;;  %2337 = vmatpush1.bf16.msra.mxu1 %v6929_v41  ;;  %v6925_v6 = vld [vmem:[%s11218_s3 + $0x28] sm:$0xff]   ;;  %v6992_v23 = vld [vmem:[%s11218_s3 + $0x30] sm:$0xff]   ;;  %v7005_v50 = vld [vmem:[%s11218_s3 + $0x38] sm:$0xff]  }
 0x195   :  { %1727 = vmatprep.mubr.bf16.mxu1 %v11450_v4  ;;  %2285 = vmatprep.subr.bf16.mxu0 %v6934_v42  ;;  %v6989_v24 = vld [vmem:[%s11219_s4 + $0x3a8] ss:$16 sps:$4 sm:$0xff]   ;;  %v6991_v54 = vld [vmem:[%s11219_s4 + $0x3ac] ss:$16 sps:$4 sm:$0xff]   ;;  %v6993_v21 = vld [vmem:[%s11219_s4 + $0x380] ss:$16 sps:$4 sm:$0xff]  }
 0x196   :  { %2338 = vmatprep.subr.bf16.mxu1 %v6937_v28  ;;  %v6995_v60 = vld [vmem:[%s11219_s4 + $0x384] ss:$16 sps:$4 sm:$0xff]   ;;  %v6996_v45 = vld [vmem:[%s11219_s4 + $0x388] ss:$16 sps:$4 sm:$0xff]   ;;  %v6998_v44 = vld [vmem:[%s11219_s4 + $0x38c] ss:$16 sps:$4 sm:$0xff]  }
 0x197   :  { %v6999_v62 = vld [vmem:[%s11219_s4 + $0x360] ss:$16 sps:$4 sm:$0xff]   ;;  %v7001_v3 = vld [vmem:[%s11219_s4 + $0x364] ss:$16 sps:$4 sm:$0xff]   ;;  %v7002_v56 = vld [vmem:[%s11219_s4 + $0x368] ss:$16 sps:$4 sm:$0xff]  }
 0x198   :  { %2286 = vmatpush1.bf16.msra.mxu0 %v6932_v19  ;;  %2339 = vmatpush1.bf16.msra.mxu1 %v6935_v58  ;;  %v7004_v37 = vld [vmem:[%s11219_s4 + $0x36c] ss:$16 sps:$4 sm:$0xff]   ;;  %v7006_v49 = vld [vmem:[%s11219_s4 + $0x340] ss:$16 sps:$4 sm:$0xff]   ;;  %v7008_v51 = vld [vmem:[%s11219_s4 + $0x344] ss:$16 sps:$4 sm:$0xff]  }
 0x199   :  { %2287 = vmatprep.subr.bf16.mxu0 %v6940_v30  ;;  %2340 = vmatprep.subr.bf16.mxu1 %v6943_v5  ;;  %v7009_v61 = vld [vmem:[%s11219_s4 + $0x348] ss:$16 sps:$4 sm:$0xff]   ;;  %v7011_v48 = vld [vmem:[%s11219_s4 + $0x34c] ss:$16 sps:$4 sm:$0xff]   ;;  %v7012_v52 = vld [vmem:[%s11219_s4 + $0x320] ss:$16 sps:$4 sm:$0xff]  }
 0x19a   :  { %5963 = vmatmul.mubr.msk.bf16.gmra.mxu0 %vm1547_vm0, %v6921_v13  ;;  %v7014_v32 = vld [vmem:[%s11219_s4 + $0x324] ss:$16 sps:$4 sm:$0xff]   ;;  %v7015_v26 = vld [vmem:[%s11219_s4 + $0x328] ss:$16 sps:$4 sm:$0xff]   ;;  %v7017_v41 = vld [vmem:[%s11219_s4 + $0x32c] ss:$16 sps:$4 sm:$0xff]  }
 0x19b   :  { %1624 = vmatprep.mubr.bf16.mxu0 %v11450_v4  ;;  %5971 = vmatmul.mubr.msk.bf16.gmra.mxu1 %vm1547_vm0, %v6921_v13  ;;  %v7018_v42 = vld [vmem:[%s11219_s4 + $0x300] ss:$16 sps:$4 sm:$0xff]   ;;  %v7020_v28 = vld [vmem:[%s11219_s4 + $0x304] ss:$16 sps:$4 sm:$0xff]   ;;  %v7021_v19 = vld [vmem:[%s11219_s4 + $0x308] ss:$16 sps:$4 sm:$0xff]  }
 0x19c   :  { %2288 = vmatpush1.bf16.msra.mxu0 %v6938_v20  ;;  %2341 = vmatpush1.bf16.msra.mxu1 %v6941_v12  ;;  %v7023_v58 = vld [vmem:[%s11219_s4 + $0x30c] ss:$16 sps:$4 sm:$0xff]  }
 0x19d   :  { %1737 = vmatprep.mubr.bf16.mxu1 %v11450_v4  ;;  %2289 = vmatprep.subr.bf16.mxu0 %v6946_v14  ;;  %v7029_v30 = vld [vmem:[%s11219_s4 + $0xec] ss:$16 sps:$4 sm:$0xff]  }
 0x19e   :  { %2342 = vmatprep.subr.bf16.mxu1 %v6949_v9 }
 0x1a0   :  { %2290 = vmatpush1.bf16.msra.mxu0 %v6944_v18  ;;  %2343 = vmatpush1.bf16.msra.mxu1 %v6947_v10 }
 0x1a1   :  { %2291 = vmatprep.subr.bf16.mxu0 %v6952_v29  ;;  %2344 = vmatprep.subr.bf16.mxu1 %v6955_v17 }
 0x1a2   :  { %5964 = vmatmul.mubr.msk.bf16.gmra.mxu0 %vm1547_vm0, %v6922_v11 }
 0x1a3   :  { %1634 = vmatprep.mubr.bf16.mxu0 %v11450_v4  ;;  %5972 = vmatmul.mubr.msk.bf16.gmra.mxu1 %vm1547_vm0, %v6922_v11 }
 0x1a4   :  { %2292 = vmatpush1.bf16.msra.mxu0 %v6950_v1  ;;  %2345 = vmatpush1.bf16.msra.mxu1 %v6953_v0 }
 0x1a5   :  { %1747 = vmatprep.mubr.bf16.mxu1 %v11450_v4  ;;  %2293 = vmatprep.subr.bf16.mxu0 %v6958_v40 }
 0x1a6   :  { %2346 = vmatprep.subr.bf16.mxu1 %v6961_v38 }
 0x1a8   :  { %2294 = vmatpush1.bf16.msra.mxu0 %v6956_v39  ;;  %2347 = vmatpush1.bf16.msra.mxu1 %v6959_v55 }
 0x1a9   :  { %2295 = vmatprep.subr.bf16.mxu0 %v6964_v36  ;;  %2348 = vmatprep.subr.bf16.mxu1 %v6967_v43  ;;  %v7024_v43 = vld [vmem:[%s11219_s4 + $0xe0] ss:$16 sps:$4 sm:$0xff]  }
 0x1aa   :  { %5965 = vmatmul.mubr.msk.bf16.gmra.mxu0 %vm1547_vm0, %v6923_v47 }
 0x1ab   :  { %1644 = vmatprep.mubr.bf16.mxu0 %v11450_v4  ;;  %5973 = vmatmul.mubr.msk.bf16.gmra.mxu1 %vm1547_vm0, %v6923_v47  ;;  %v7027_v47 = vld [vmem:[%s11219_s4 + $0xe8] ss:$16 sps:$4 sm:$0xff]  }
 0x1ac   :  { %2296 = vmatpush1.bf16.msra.mxu0 %v6962_v59  ;;  %2349 = vmatpush1.bf16.msra.mxu1 %v6965_v53 }
 0x1ad   :  { %1757 = vmatprep.mubr.bf16.mxu1 %v11450_v4  ;;  %2297 = vmatprep.subr.bf16.mxu0 %v6970_v7  ;;  %v7032_v7 = vld [vmem:[%s11219_s4 + $0xc4] ss:$16 sps:$4 sm:$0xff]  }
 0x1ae   :  { %2350 = vmatprep.subr.bf16.mxu1 %v6973_v27  ;;  %v7035_v27 = vld [vmem:[%s11219_s4 + $0xcc] ss:$16 sps:$4 sm:$0xff]  }
 0x1b0   :  { %2298 = vmatpush1.bf16.msra.mxu0 %v6968_v63  ;;  %2351 = vmatpush1.bf16.msra.mxu1 %v6971_v31 }
 0x1b1   :  { %2299 = vmatprep.subr.bf16.mxu0 %v6976_v35  ;;  %2352 = vmatprep.subr.bf16.mxu1 %v6979_v25  ;;  %v7030_v25 = vld [vmem:[%s11219_s4 + $0xc0] ss:$16 sps:$4 sm:$0xff]  }
 0x1b2   :  { %5966 = vmatmul.mubr.msk.bf16.gmra.mxu0 %vm1547_vm0, %v6924_v33 }
 0x1b3   :  { %1654 = vmatprep.mubr.bf16.mxu0 %v11450_v4  ;;  %5974 = vmatmul.mubr.msk.bf16.gmra.mxu1 %vm1547_vm0, %v6924_v33  ;;  %v7033_v33 = vld [vmem:[%s11219_s4 + $0xc8] ss:$16 sps:$4 sm:$0xff]  }
 0x1b4   :  { %2300 = vmatpush2.bf16.msra.mxu0 %v6974_v46  ;;  %2353 = vmatpush2.bf16.msra.mxu1 %v6977_v2 }
 0x1b5   :  { %1767 = vmatprep.mubr.bf16.mxu1 %v11450_v4  ;;  %2301 = vmatprep.subr.bf16.mxu0 %v6982_v22  ;;  %v7038_v22 = vld [vmem:[%s11219_s4 + $0xa4] ss:$16 sps:$4 sm:$0xff]  }
 0x1b6   :  { %2354 = vmatprep.subr.bf16.mxu1 %v6985_v57  ;;  %v7041_v57 = vld [vmem:[%s11219_s4 + $0xac] ss:$16 sps:$4 sm:$0xff]  }
 0x1b8   :  { %2302 = vmatpush2.bf16.msra.mxu0 %v6980_v8  ;;  %2355 = vmatpush2.bf16.msra.mxu1 %v6983_v34 }
 0x1b9   :  { %2303 = vmatprep.subr.bf16.mxu0 %v6988_v16  ;;  %2356 = vmatprep.subr.bf16.mxu1 %v6991_v54  ;;  %v7039_v54 = vld [vmem:[%s11219_s4 + $0xa8] ss:$16 sps:$4 sm:$0xff]  }
 0x1ba   :  { %5967 = vmatmul.mubr.msk.bf16.gmra.mxu0 %vm1547_vm0, %v6925_v6 }
 0x1bb   :  { %5975 = vmatmul.mubr.msk.bf16.gmra.mxu1 %vm1547_vm0, %v6925_v6  ;;  %1664 = vmatprep.mubr.bf16.mxu0 %v11450_v4 }
 0x1bc   :  { %1777 = vmatprep.mubr.bf16.mxu1 %v11450_v4  ;;  %2304 = vmatpush2.bf16.msra.mxu0 %v6986_v15 }
 0x1bd   :  { %2357 = vmatpush2.bf16.msra.mxu1 %v6989_v24  ;;  %2305 = vmatprep.subr.bf16.mxu0 %v6995_v60  ;;  %v7036_v24 = vld [vmem:[%s11219_s4 + $0xa0] ss:$16 sps:$4 sm:$0xff]   ;;  %v7047_v60 = vld [vmem:[%s11219_s4 + $0x8c] ss:$16 sps:$4 sm:$0xff]  }
 0x1be   :  { %2358 = vmatprep.subr.bf16.mxu1 %v6998_v44 }
 0x1c0   :  { %2306 = vmatpush2.bf16.msra.mxu0 %v6993_v21  ;;  %v7044_v21 = vld [vmem:[%s11219_s4 + $0x84] ss:$16 sps:$4 sm:$0xff]  }
 0x1c1   :  { %2359 = vmatpush2.bf16.msra.mxu1 %v6996_v45  ;;  %2307 = vmatprep.subr.bf16.mxu0 %v7001_v3  ;;  %v7042_v3 = vld [vmem:[%s11219_s4 + $0x80] ss:$16 sps:$4 sm:$0xff]  }
 0x1c2   :  { %5968 = vmatmul.mubr.msk.bf16.gmra.mxu0 %vm1547_vm0, %v6992_v23  ;;  %2360 = vmatprep.subr.bf16.mxu1 %v7004_v37 }
 0x1c3   :  { %5976 = vmatmul.mubr.msk.bf16.gmra.mxu1 %vm1547_vm0, %v6992_v23  ;;  %1674 = vmatprep.mubr.bf16.mxu0 %v11450_v4 }
 0x1c4   :  { %1787 = vmatprep.mubr.bf16.mxu1 %v11450_v4  ;;  %2308 = vmatpush2.bf16.msra.mxu0 %v6999_v62  ;;  %v7026_v4 = vld [vmem:[%s11219_s4 + $0xe4] ss:$16 sps:$4 sm:$0xff]  }
 0x1c5   :  { %2361 = vmatpush2.bf16.msra.mxu1 %v7002_v56  ;;  %2309 = vmatprep.subr.bf16.mxu0 %v7008_v51  ;;  %v7045_v56 = vld [vmem:[%s11219_s4 + $0x88] ss:$16 sps:$4 sm:$0xff]  }
 0x1c6   :  { %2362 = vmatprep.subr.bf16.mxu1 %v7011_v48  ;;  %v7048_v48 = vld [vmem:[%s11219_s4 + $0x60] ss:$16 sps:$4 sm:$0xff]  }
 0x1c8   :  { %2310 = vmatpush2.bf16.msra.mxu0 %v7006_v49  ;;  %v7053_v49 = vld [vmem:[%s11219_s4 + $0x6c] ss:$16 sps:$4 sm:$0xff]  }
 0x1c9   :  { %2363 = vmatpush2.bf16.msra.mxu1 %v7009_v61  ;;  %2311 = vmatprep.subr.bf16.mxu0 %v7014_v32 }
 0x1ca   :  { %5969 = vmatmul.mubr.msk.bf16.gmra.mxu0 %vm1547_vm0, %v7005_v50  ;;  %2364 = vmatprep.subr.bf16.mxu1 %v7017_v41  ;;  %v7059_v41 = vld [vmem:[%s11219_s4 + $0x4c] ss:$16 sps:$4 sm:$0xff]  }
 0x1cb   :  { %5977 = vmatmul.mubr.msk.bf16.gmra.mxu1 %vm1547_vm0, %v7005_v50  ;;  %v7050_v50 = vld [vmem:[%s11219_s4 + $0x64] ss:$16 sps:$4 sm:$0xff]  }
 0x1cc   :  { %2312 = vmatpush2.bf16.msra.mxu0 %v7012_v52  ;;  %v7051_v52 = vld [vmem:[%s11219_s4 + $0x68] ss:$16 sps:$4 sm:$0xff]  }
 0x1cd   :  { %2365 = vmatpush2.bf16.msra.mxu1 %v7015_v26  ;;  %2313 = vmatprep.subr.bf16.mxu0 %v7020_v28  ;;  %v7056_v26 = vld [vmem:[%s11219_s4 + $0x44] ss:$16 sps:$4 sm:$0xff]   ;;  %v7054_v28 = vld [vmem:[%s11219_s4 + $0x40] ss:$16 sps:$4 sm:$0xff]  }
 0x1ce   :  { %2366 = vmatprep.subr.bf16.mxu1 %v7023_v58 }
 0x1d0   :  { %2314 = vmatpush2.bf16.msra.mxu0 %v7018_v42 }
 0x1d1   :  { %2367 = vmatpush2.bf16.msra.mxu1 %v7021_v19  ;;  %2709 = vmatprep.subr.bf16.mxu0 %v7026_v4  ;;  %v7057_v19 = vld [vmem:[%s11219_s4 + $0x48] ss:$16 sps:$4 sm:$0xff]   ;;  %v7062_v4 = vld [vmem:[%s11219_s4 + $0x24] ss:$16 sps:$4 sm:$0xff]  }
 0x1d2   :  { %2762 = vmatprep.subr.bf16.mxu1 %v7029_v30  ;;  %v7065_v30 = vld [vmem:[%s11219_s4 + $0x2c] ss:$16 sps:$4 sm:$0xff]  }
 0x252   :  { %v1606_v5 = vpop.f32.mrf.mxu0 }
 0x253   :  { %v1719_v38 = vpop.f32.mrf.mxu1 }
 0x254   :  { %v1608_v13 = vpop.f32.mrf.mxu0 }
 0x255   :  { %v1721_v55 = vpop.f32.mrf.mxu1 }
 0x256   :  { %v1610_v20 = vpop.f32.mrf.mxu0 }
 0x257   :  { %v9574_v12 = vpack.c.bf16 %v1610_v20, %v1606_v5  ;;  %v1723_v63 = vpop.f32.mrf.mxu1  ;;  %v7063_v20 = vld [vmem:[%s11219_s4 + $0x28] ss:$16 sps:$4 sm:$0xff]  }
 0x258   :  { %v1612_v14 = vpop.f32.mrf.mxu0  ;;  %v9592_v31 = vpack.c.bf16 %v1723_v63, %v1719_v38  ;;  %v7077_v38 = vld [vmem:[%s11219_s4 + $0x1ec] ss:$16 sps:$4 sm:$0xff]   ;;  %v7081_v63 = vld [vmem:[%s11219_s4 + $0x1c8] ss:$16 sps:$4 sm:$0xff]  }
 0x259   :  { %v1725_v46 = vpop.f32.mrf.mxu1  ;;  %v1799_v44 = vpack.c.bf16 %v1612_v14, %v1608_v13  ;;  %v7060_v13 = vld [vmem:[%s11219_s4 + $0x20] ss:$16 sps:$4 sm:$0xff]  }
 0x25a   :  { %v1616_v9 = vpop.f32.mrf.mxu0  ;;  %v9606_v8 = vpack.c.bf16 %v1725_v46, %v1721_v55  ;;  %v7072_v55 = vld [vmem:[%s11219_s4 + $0x1e0] ss:$16 sps:$4 sm:$0xff]  }
 0x25b   :  { %v1729_v34 = vpop.f32.mrf.mxu1 }
 0x25c   :  { %v1618_v18 = vpop.f32.mrf.mxu0 }
 0x25d   :  { %v1731_v23 = vpop.f32.mrf.mxu1 }
 0x25e   :  { %v1620_v10 = vpop.f32.mrf.mxu0 }
 0x25f   :  { %v9576_v29 = vpack.c.bf16 %v1620_v10, %v1616_v9  ;;  %v1733_v45 = vpop.f32.mrf.mxu1  ;;  %v7068_v9 = vld [vmem:[%s11219_s4 + $0x4] ss:$16 sps:$4 sm:$0xff]  }
 0x260   :  { %v1622_v17 = vpop.f32.mrf.mxu0  ;;  %v9620_v62 = vpack.c.bf16 %v1733_v45, %v1729_v34  ;;  %v7092_v34 = vld [vmem:[%s11219_s4 + $0x184] ss:$16 sps:$4 sm:$0xff]  }
 0x261   :  { %v9578_v11 = vpack.c.bf16 %v1622_v17, %v1618_v18  ;;  %v1735_v37 = vpop.f32.mrf.mxu1  ;;  %v7071_v18 = vld [vmem:[%s11219_s4 + $0xc] ss:$16 sps:$4 sm:$0xff]   ;;  %v7066_v17 = vld [vmem:[%s11219_s4] ss:$16 sps:$4 sm:$0xff]  }
 0x262   :  { %v1626_v1 = vpop.f32.mrf.mxu0  ;;  %v9634_v51 = vpack.c.bf16 %v1735_v37, %v1731_v23  ;;  %v7104_v37 = vld [vmem:[%s11219_s4 + $0x144] ss:$16 sps:$4 sm:$0xff]  }
 0x263   :  { %v9636_v61 = vpop.f32.mrf.mxu1 }
 0x264   :  { %v1628_v0 = vpop.f32.mrf.mxu0 }
 0x265   :  { %v9644_v32 = vpop.f32.mrf.mxu1 }
 0x266   :  { %v1630_v40 = vpop.f32.mrf.mxu0 }
 0x267   :  { %v1806_v59 = vpack.c.bf16 %v1630_v40, %v1626_v1  ;;  %v9652_v42 = vpop.f32.mrf.mxu1  ;;  %v7069_v1 = vld [vmem:[%s11219_s4 + $0x8] ss:$16 sps:$4 sm:$0xff]   ;;  %v7074_v40 = vld [vmem:[%s11219_s4 + $0x1e4] ss:$16 sps:$4 sm:$0xff]  }
 0x268   :  { %v1632_v39 = vpop.f32.mrf.mxu0 }
 0x269   :  { %v1807_v36 = vpack.c.bf16 %v1632_v39, %v1628_v0  ;;  %v9660_v58 = vpop.f32.mrf.mxu1 }
 0x26a   :  { %v1636_v53 = vpop.f32.mrf.mxu0 }
 0x26b   :  { %2315 = vmatprep.mubr.bf16.mxu0 %v1807_v36  ;;  %2368 = vmatprep.mubr.bf16.mxu1 %v1807_v36  ;;  %v9668_v5 = vpop.f32.mrf.mxu1  ;;  %v7075_v36 = vld [vmem:[%s11219_s4 + $0x1e8] ss:$16 sps:$4 sm:$0xff]  }
 0x26c   :  { %v1638_v35 = vpop.f32.mrf.mxu0  ;;  %2316 = vmatmul.mubr.bf16.vlgmr.msra.gmra.mxu0 %v1806_v59  ;;  %2369 = vmatmul.mubr.bf16.vlgmr.msra.gmra.mxu1 %v1806_v59  ;;  %v7083_v59 = vld [vmem:[%s11219_s4 + $0x1cc] ss:$16 sps:$4 sm:$0xff]  }
 0x26d   :  { %2710 = vmatpush1.bf16.msra.mxu0 %v7024_v43  ;;  %2763 = vmatpush1.bf16.msra.mxu1 %v7027_v47  ;;  %v9676_v14 = vpop.f32.mrf.mxu1  ;;  %v7080_v47 = vld [vmem:[%s11219_s4 + $0x1c4] ss:$16 sps:$4 sm:$0xff]  }
 0x26e   :  { %v1640_v2 = vpop.f32.mrf.mxu0  ;;  %2711 = vmatprep.subr.bf16.mxu0 %v7032_v7  ;;  %2764 = vmatprep.subr.bf16.mxu1 %v7035_v27  ;;  %v7078_v27 = vld [vmem:[%s11219_s4 + $0x1c0] ss:$16 sps:$4 sm:$0xff]  }
 0x26f   :  { %v1810_v6 = vpack.c.bf16 %v1640_v2, %v1636_v53  ;;  %v9684_v10 = vpop.f32.mrf.mxu1  ;;  %v7084_v2 = vld [vmem:[%s11219_s4 + $0x1a0] ss:$16 sps:$4 sm:$0xff]  }
 0x270   :  { %v1642_v15 = vpop.f32.mrf.mxu0 }
 0x271   :  { %v1811_v16 = vpack.c.bf16 %v1642_v15, %v1638_v35  ;;  %2712 = vmatpush1.bf16.msra.mxu0 %v7030_v25  ;;  %2765 = vmatpush1.bf16.msra.mxu1 %v7033_v33  ;;  %v9692_v0 = vpop.f32.mrf.mxu1  ;;  %v7086_v25 = vld [vmem:[%s11219_s4 + $0x1a4] ss:$16 sps:$4 sm:$0xff]   ;;  %v7089_v33 = vld [vmem:[%s11219_s4 + $0x1ac] ss:$16 sps:$4 sm:$0xff]  }
 0x272   :  { %2713 = vmatprep.subr.bf16.mxu0 %v7038_v22  ;;  %2766 = vmatprep.subr.bf16.mxu1 %v7041_v57  ;;  %v7087_v22 = vld [vmem:[%s11219_s4 + $0x1a8] ss:$16 sps:$4 sm:$0xff]  }
 0x273   :  { %2325 = vmatprep.mubr.bf16.mxu0 %v1811_v16  ;;  %2378 = vmatprep.mubr.bf16.mxu1 %v1811_v16  ;;  %v1759_v39 = vpop.f32.mrf.mxu1 }
 0x274   :  { %2326 = vmatmul.mubr.bf16.gmra.mxu0 %v1810_v6  ;;  %2379 = vmatmul.mubr.bf16.gmra.mxu1 %v1810_v6  ;;  %v7095_v6 = vld [vmem:[%s11219_s4 + $0x18c] ss:$16 sps:$4 sm:$0xff]  }
 0x275   :  { %2714 = vmatpush1.bf16.msra.mxu0 %v7036_v24  ;;  %2767 = vmatpush1.bf16.msra.mxu1 %v7039_v54  ;;  %v9706_v43 = vpop.f32.mrf.mxu1  ;;  %v7090_v24 = vld [vmem:[%s11219_s4 + $0x180] ss:$16 sps:$4 sm:$0xff]   ;;  %v7093_v54 = vld [vmem:[%s11219_s4 + $0x188] ss:$16 sps:$4 sm:$0xff]  }
 0x276   :  { %2741 = vmatprep.mubr.bf16.mxu0 %v1799_v44  ;;  %2794 = vmatprep.mubr.bf16.mxu1 %v1799_v44  ;;  %v7096_v44 = vld [vmem:[%s11219_s4 + $0x160] ss:$16 sps:$4 sm:$0xff]  }
 0x277   :  { %2715 = vmatprep.subr.bf16.mxu0 %v7044_v21  ;;  %2768 = vmatprep.subr.bf16.mxu1 %v7047_v60  ;;  %v1763_v53 = vpop.f32.mrf.mxu1  ;;  %v7098_v21 = vld [vmem:[%s11219_s4 + $0x164] ss:$16 sps:$4 sm:$0xff]   ;;  %v7101_v60 = vld [vmem:[%s11219_s4 + $0x16c] ss:$16 sps:$4 sm:$0xff]  }
 0x278   :  { %v9714_v7 = vpack.c.bf16 %v1763_v53, %v1759_v39  ;;  %v7117_v39 = vld [vmem:[%s11219_s4 + $0x108] ss:$16 sps:$4 sm:$0xff]  }
 0x279   :  { %2716 = vmatpush1.bf16.msra.mxu0 %v7042_v3  ;;  %2769 = vmatpush1.bf16.msra.mxu1 %v7045_v56  ;;  %v9722_v35 = vpop.f32.mrf.mxu1  ;;  %v7099_v3 = vld [vmem:[%s11219_s4 + $0x168] ss:$16 sps:$4 sm:$0xff]  }
 0x27a   :  { %2717 = vmatprep.subr.bf16.mxu0 %v7050_v50  ;;  %2770 = vmatprep.subr.bf16.mxu1 %v7053_v49  ;;  %v7107_v50 = vld [vmem:[%s11219_s4 + $0x14c] ss:$16 sps:$4 sm:$0xff]  }
 0x27b   :  { %v1769_v46 = vpop.f32.mrf.mxu1 }
 0x27d   :  { %2718 = vmatpush1.bf16.msra.mxu0 %v7048_v48  ;;  %2771 = vmatpush1.bf16.msra.mxu1 %v7051_v52  ;;  %v1771_v57 = vpop.f32.mrf.mxu1  ;;  %v7102_v48 = vld [vmem:[%s11219_s4 + $0x140] ss:$16 sps:$4 sm:$0xff]   ;;  %v7105_v52 = vld [vmem:[%s11219_s4 + $0x148] ss:$16 sps:$4 sm:$0xff]  }
 0x27e   :  { %2719 = vmatprep.subr.bf16.mxu0 %v7056_v26  ;;  %2772 = vmatprep.subr.bf16.mxu1 %v7059_v41  ;;  %v7110_v41 = vld [vmem:[%s11219_s4 + $0x124] ss:$16 sps:$4 sm:$0xff]  }
 0x27f   :  { %v1773_v15 = vpop.f32.mrf.mxu1 }
 0x280   :  { %v9742_v16 = vpack.c.bf16 %v1773_v15, %v1769_v46  ;;  %v7131_v46 = vld [vmem:[%s11219_s4 + $0x4cc] ss:$16 sps:$4 sm:$0xff]   ;;  %v7135_v15 = vld [vmem:[%s11219_s4 + $0x4a8] ss:$16 sps:$4 sm:$0xff]  }
 0x281   :  { %2720 = vmatpush1.bf16.msra.mxu0 %v7054_v28  ;;  %2773 = vmatpush1.bf16.msra.mxu1 %v7057_v19  ;;  %v1775_v23 = vpop.f32.mrf.mxu1  ;;  %v7113_v28 = vld [vmem:[%s11219_s4 + $0x12c] ss:$16 sps:$4 sm:$0xff]  }
 0x282   :  { %2721 = vmatprep.subr.bf16.mxu0 %v7062_v4  ;;  %2774 = vmatprep.subr.bf16.mxu1 %v7065_v30  ;;  %v9756_v45 = vpack.c.bf16 %v1775_v23, %v1771_v57  ;;  %v7138_v23 = vld [vmem:[%s11219_s4 + $0x480] ss:$16 sps:$4 sm:$0xff]  }
 0x283   :  { %v1779_v56 = vpop.f32.mrf.mxu1 }
 0x285   :  { %2722 = vmatpush1.bf16.msra.mxu0 %v7060_v13  ;;  %2775 = vmatpush1.bf16.msra.mxu1 %v7063_v20  ;;  %v1781_v49 = vpop.f32.mrf.mxu1  ;;  %v7108_v13 = vld [vmem:[%s11219_s4 + $0x120] ss:$16 sps:$4 sm:$0xff]   ;;  %v7111_v20 = vld [vmem:[%s11219_s4 + $0x128] ss:$16 sps:$4 sm:$0xff]  }
 0x286   :  { %2723 = vmatprep.subr.bf16.mxu0 %v7068_v9  ;;  %2776 = vmatprep.subr.bf16.mxu1 %v7071_v18  ;;  %v7116_v18 = vld [vmem:[%s11219_s4 + $0x104] ss:$16 sps:$4 sm:$0xff]  }
 0x287   :  { %v1783_v26 = vpop.f32.mrf.mxu1 }
 0x288   :  { %v9782_v19 = vpack.c.bf16 %v1783_v26, %v1779_v56  ;;  %v7152_v56 = vld [vmem:[%s11219_s4 + $0x444] ss:$16 sps:$4 sm:$0xff]   ;;  %v7156_v26 = vld [vmem:[%s11219_s4 + $0x420] ss:$16 sps:$4 sm:$0xff]  }
 0x289   :  { %2724 = vmatpush1.bf16.msra.mxu0 %v7066_v17  ;;  %2777 = vmatpush1.bf16.msra.mxu1 %v7069_v1  ;;  %v1785_v4 = vpop.f32.mrf.mxu1  ;;  %v7119_v17 = vld [vmem:[%s11219_s4 + $0x10c] ss:$16 sps:$4 sm:$0xff]   ;;  %v9798_v1 = vpop.f32.mrf.mxu0 }
 0x28a   :  { %2725 = vmatprep.subr.bf16.mxu0 %v7074_v40  ;;  %2778 = vmatprep.subr.bf16.mxu1 %v7077_v38  ;;  %v9784_v30 = vpack.c.bf16 %v1785_v4, %v1781_v49  ;;  %v7114_v38 = vld [vmem:[%s11219_s4 + $0x100] ss:$16 sps:$4 sm:$0xff]   ;;  %v7153_v49 = vld [vmem:[%s11219_s4 + $0x448] ss:$16 sps:$4 sm:$0xff]   ;;  %v7167_v4 = vld [vmem:[%s11219_s4 + $0x40c] ss:$16 sps:$4 sm:$0xff]  }
 0x28b   :  { %v1789_v9 = vpop.f32.mrf.mxu1 }
 0x28d   :  { %2726 = vmatpush2.bf16.msra.mxu0 %v7072_v55  ;;  %2779 = vmatpush2.bf16.msra.mxu1 %v7075_v36  ;;  %v9800_v40 = vpop.f32.mrf.mxu1  ;;  %v7122_v36 = vld [vmem:[%s11219_s4 + $0x4e4] ss:$16 sps:$4 sm:$0xff]  }
 0x28e   :  { %2727 = vmatprep.subr.bf16.mxu0 %v7080_v47  ;;  %2780 = vmatprep.subr.bf16.mxu1 %v7083_v59  ;;  %v7125_v47 = vld [vmem:[%s11219_s4 + $0x4ec] ss:$16 sps:$4 sm:$0xff]   ;;  %v1648_v59 = vpop.f32.mrf.mxu0 }
 0x28f   :  { %v1793_v55 = vpop.f32.mrf.mxu1 }
 0x290   :  { %v9814_v53 = vpack.c.bf16 %v1793_v55, %v1789_v9  ;;  %v7170_v9 = vld [vmem:[%s11219_s4 + $0x5e4] ss:$16 sps:$4 sm:$0xff]   ;;  %v7179_v55 = vld [vmem:[%s11219_s4 + $0x5cc] ss:$16 sps:$4 sm:$0xff]  }
 0x291   :  { %2728 = vmatpush2.bf16.msra.mxu0 %v7078_v27  ;;  %2781 = vmatpush2.bf16.msra.mxu1 %v7081_v63  ;;  %v7120_v27 = vld [vmem:[%s11219_s4 + $0x4e0] ss:$16 sps:$4 sm:$0xff]   ;;  %v7123_v63 = vld [vmem:[%s11219_s4 + $0x4e8] ss:$16 sps:$4 sm:$0xff]  }
 0x292   :  { %2729 = vmatprep.subr.bf16.mxu0 %v7086_v25  ;;  %2782 = vmatprep.subr.bf16.mxu1 %v7089_v33  ;;  %v9822_v25 = vpop.f32.mrf.mxu0  ;;  %v7128_v33 = vld [vmem:[%s11219_s4 + $0x4c4] ss:$16 sps:$4 sm:$0xff]  }
 0x294   :  { %v1652_v57 = vpop.f32.mrf.mxu0 }
 0x295   :  { %2730 = vmatpush2.bf16.msra.mxu0 %v7084_v2  ;;  %2783 = vmatpush2.bf16.msra.mxu1 %v7087_v22  ;;  %v7126_v2 = vld [vmem:[%s11219_s4 + $0x4c0] ss:$16 sps:$4 sm:$0xff]   ;;  %v7129_v22 = vld [vmem:[%s11219_s4 + $0x4c8] ss:$16 sps:$4 sm:$0xff]  }
 0x296   :  { %2731 = vmatprep.subr.bf16.mxu0 %v7092_v34  ;;  %2784 = vmatprep.subr.bf16.mxu1 %v7095_v6  ;;  %v1815_v34 = vpack.c.bf16 %v1652_v57, %v1648_v59  ;;  %v7132_v6 = vld [vmem:[%s11219_s4 + $0x4a0] ss:$16 sps:$4 sm:$0xff]   ;;  %v7182_v59 = vld [vmem:[%s11219_s4 + $0x5a4] ss:$16 sps:$4 sm:$0xff]   ;;  %v7189_v57 = vld [vmem:[%s11219_s4 + $0x588] ss:$16 sps:$4 sm:$0xff]  }
 0x299   :  { %2732 = vmatpush2.bf16.msra.mxu0 %v7090_v24  ;;  %2785 = vmatpush2.bf16.msra.mxu1 %v7093_v54  ;;  %v7140_v24 = vld [vmem:[%s11219_s4 + $0x484] ss:$16 sps:$4 sm:$0xff]   ;;  %v7143_v54 = vld [vmem:[%s11219_s4 + $0x48c] ss:$16 sps:$4 sm:$0xff]  }
 0x29a   :  { %2733 = vmatprep.subr.bf16.mxu0 %v7098_v21  ;;  %2786 = vmatprep.subr.bf16.mxu1 %v7101_v60  ;;  %v7141_v21 = vld [vmem:[%s11219_s4 + $0x488] ss:$16 sps:$4 sm:$0xff]   ;;  %v7146_v60 = vld [vmem:[%s11219_s4 + $0x464] ss:$16 sps:$4 sm:$0xff]  }
 0x29d   :  { %2734 = vmatpush2.bf16.msra.mxu0 %v7096_v44  ;;  %2787 = vmatpush2.bf16.msra.mxu1 %v7099_v3  ;;  %v7144_v44 = vld [vmem:[%s11219_s4 + $0x460] ss:$16 sps:$4 sm:$0xff]   ;;  %v7147_v3 = vld [vmem:[%s11219_s4 + $0x468] ss:$16 sps:$4 sm:$0xff]  }
 0x29e   :  { %2735 = vmatprep.subr.bf16.mxu0 %v7104_v37  ;;  %2788 = vmatprep.subr.bf16.mxu1 %v7107_v50  ;;  %v7155_v37 = vld [vmem:[%s11219_s4 + $0x44c] ss:$16 sps:$4 sm:$0xff]   ;;  %v7150_v50 = vld [vmem:[%s11219_s4 + $0x440] ss:$16 sps:$4 sm:$0xff]  }
 0x2a1   :  { %2736 = vmatpush2.bf16.msra.mxu0 %v7102_v48  ;;  %2789 = vmatpush2.bf16.msra.mxu1 %v7105_v52  ;;  %v7158_v48 = vld [vmem:[%s11219_s4 + $0x424] ss:$16 sps:$4 sm:$0xff]   ;;  %v7161_v52 = vld [vmem:[%s11219_s4 + $0x42c] ss:$16 sps:$4 sm:$0xff]  }
 0x2a2   :  { %2737 = vmatprep.subr.bf16.mxu0 %v7110_v41  ;;  %2790 = vmatprep.subr.bf16.mxu1 %v7113_v28  ;;  %v7159_v41 = vld [vmem:[%s11219_s4 + $0x428] ss:$16 sps:$4 sm:$0xff]   ;;  %v7164_v28 = vld [vmem:[%s11219_s4 + $0x404] ss:$16 sps:$4 sm:$0xff]  }
 0x2a5   :  { %2738 = vmatpush2.bf16.msra.mxu0 %v7108_v13  ;;  %2791 = vmatpush2.bf16.msra.mxu1 %v7111_v20  ;;  %v7162_v13 = vld [vmem:[%s11219_s4 + $0x400] ss:$16 sps:$4 sm:$0xff]   ;;  %v7165_v20 = vld [vmem:[%s11219_s4 + $0x408] ss:$16 sps:$4 sm:$0xff]  }
 0x2a6   :  { %2739 = vmatprep.subr.bf16.mxu0 %v7116_v18  ;;  %2792 = vmatprep.subr.bf16.mxu1 %v7119_v17  ;;  %v7173_v18 = vld [vmem:[%s11219_s4 + $0x5ec] ss:$16 sps:$4 sm:$0xff]   ;;  %v7168_v17 = vld [vmem:[%s11219_s4 + $0x5e0] ss:$16 sps:$4 sm:$0xff]  }
 0x2a9   :  { %2740 = vmatpush2.bf16.msra.mxu0 %v7114_v38  ;;  %2793 = vmatpush2.bf16.msra.mxu1 %v7117_v39  ;;  %v7171_v38 = vld [vmem:[%s11219_s4 + $0x5e8] ss:$16 sps:$4 sm:$0xff]   ;;  %v7176_v39 = vld [vmem:[%s11219_s4 + $0x5c4] ss:$16 sps:$4 sm:$0xff]  }
 0x2aa   :  { %3200 = vmatprep.subr.bf16.mxu0 %v7122_v36  ;;  %3253 = vmatprep.subr.bf16.mxu1 %v7125_v47  ;;  %v7174_v36 = vld [vmem:[%s11219_s4 + $0x5c0] ss:$16 sps:$4 sm:$0xff]   ;;  %v7177_v47 = vld [vmem:[%s11219_s4 + $0x5c8] ss:$16 sps:$4 sm:$0xff]  }
 0x2ac   :  { %2742 = vmatmul.mubr.bf16.vlgmr.msra.gmra.mxu0 %v9574_v12  ;;  %2795 = vmatmul.mubr.bf16.vlgmr.msra.gmra.mxu1 %v9574_v12  ;;  %v7134_v12 = vld [vmem:[%s11219_s4 + $0x4a4] ss:$16 sps:$4 sm:$0xff]  }
 0x2ad   :  { %2751 = vmatprep.mubr.bf16.mxu0 %v9578_v11  ;;  %2804 = vmatprep.mubr.bf16.mxu1 %v9578_v11  ;;  %v7137_v11 = vld [vmem:[%s11219_s4 + $0x4ac] ss:$16 sps:$4 sm:$0xff]  }
 0x2ae   :  { %3201 = vmatpush1.bf16.msra.mxu0 %v7120_v27  ;;  %3254 = vmatpush1.bf16.msra.mxu1 %v7123_v63  ;;  %v7185_v27 = vld [vmem:[%s11219_s4 + $0x5ac] ss:$16 sps:$4 sm:$0xff]   ;;  %v7180_v63 = vld [vmem:[%s11219_s4 + $0x5a0] ss:$16 sps:$4 sm:$0xff]  }
 0x2af   :  { %3202 = vmatprep.subr.bf16.mxu0 %v7128_v33  ;;  %3255 = vmatprep.subr.bf16.mxu1 %v7131_v46  ;;  %v7183_v33 = vld [vmem:[%s11219_s4 + $0x5a8] ss:$16 sps:$4 sm:$0xff]   ;;  %v7188_v46 = vld [vmem:[%s11219_s4 + $0x584] ss:$16 sps:$4 sm:$0xff]  }
 0x2b2   :  { %3203 = vmatpush1.bf16.msra.mxu0 %v7126_v2  ;;  %3256 = vmatpush1.bf16.msra.mxu1 %v7129_v22  ;;  %v7191_v2 = vld [vmem:[%s11219_s4 + $0x58c] ss:$16 sps:$4 sm:$0xff]   ;;  %v7186_v22 = vld [vmem:[%s11219_s4 + $0x580] ss:$16 sps:$4 sm:$0xff]  }
 0x2b3   :  { %3204 = vmatprep.subr.bf16.mxu0 %v7134_v12  ;;  %3257 = vmatprep.subr.bf16.mxu1 %v7137_v11  ;;  %v7194_v12 = vld [vmem:[%s11219_s4 + $0x564] ss:$16 sps:$4 sm:$0xff]   ;;  %v7197_v11 = vld [vmem:[%s11219_s4 + $0x56c] ss:$16 sps:$4 sm:$0xff]  }
 0x2b4   :  { %2752 = vmatmul.mubr.bf16.gmra.mxu0 %v9576_v29  ;;  %2805 = vmatmul.mubr.bf16.gmra.mxu1 %v9576_v29  ;;  %v7149_v29 = vld [vmem:[%s11219_s4 + $0x46c] ss:$16 sps:$4 sm:$0xff]  }
 0x2b5   :  { %3232 = vmatprep.mubr.bf16.mxu0 %v1815_v34  ;;  %3285 = vmatprep.mubr.bf16.mxu1 %v1815_v34  ;;  %v1656_v34 = vpop.f32.mrf.mxu0 }
 0x2b6   :  { %3205 = vmatpush1.bf16.msra.mxu0 %v7132_v6  ;;  %3258 = vmatpush1.bf16.msra.mxu1 %v7135_v15  ;;  %v7192_v6 = vld [vmem:[%s11219_s4 + $0x560] ss:$16 sps:$4 sm:$0xff]   ;;  %v7195_v15 = vld [vmem:[%s11219_s4 + $0x568] ss:$16 sps:$4 sm:$0xff]  }
 0x2b7   :  { %3206 = vmatprep.subr.bf16.mxu0 %v7140_v24  ;;  %3259 = vmatprep.subr.bf16.mxu1 %v7143_v54  ;;  %v7200_v24 = vld [vmem:[%s11219_s4 + $0x544] ss:$16 sps:$4 sm:$0xff]   ;;  %v7203_v54 = vld [vmem:[%s11219_s4 + $0x54c] ss:$16 sps:$4 sm:$0xff]  }
 0x2ba   :  { %3207 = vmatpush1.bf16.msra.mxu0 %v7138_v23  ;;  %3260 = vmatpush1.bf16.msra.mxu1 %v7141_v21  ;;  %v1658_v23 = vpop.f32.mrf.mxu0  ;;  %v7198_v21 = vld [vmem:[%s11219_s4 + $0x540] ss:$16 sps:$4 sm:$0xff]  }
 0x2bb   :  { %3208 = vmatprep.subr.bf16.mxu0 %v7146_v60  ;;  %3261 = vmatprep.subr.bf16.mxu1 %v7149_v29  ;;  %v7201_v60 = vld [vmem:[%s11219_s4 + $0x548] ss:$16 sps:$4 sm:$0xff]   ;;  %v7206_v29 = vld [vmem:[%s11219_s4 + $0x524] ss:$16 sps:$4 sm:$0xff]  }
 0x2be   :  { %3209 = vmatpush1.bf16.msra.mxu0 %v7144_v44  ;;  %3262 = vmatpush1.bf16.msra.mxu1 %v7147_v3  ;;  %v7209_v44 = vld [vmem:[%s11219_s4 + $0x52c] ss:$16 sps:$4 sm:$0xff]   ;;  %v1660_v3 = vpop.f32.mrf.mxu0 }
 0x2bf   :  { %3210 = vmatprep.subr.bf16.mxu0 %v7152_v56  ;;  %3263 = vmatprep.subr.bf16.mxu1 %v7155_v37  ;;  %v7204_v56 = vld [vmem:[%s11219_s4 + $0x520] ss:$16 sps:$4 sm:$0xff]   ;;  %v7207_v37 = vld [vmem:[%s11219_s4 + $0x528] ss:$16 sps:$4 sm:$0xff]  }
 0x2c2   :  { %3211 = vmatpush1.bf16.msra.mxu0 %v7150_v50  ;;  %3264 = vmatpush1.bf16.msra.mxu1 %v7153_v49  ;;  %v7212_v50 = vld [vmem:[%s11219_s4 + $0x504] ss:$16 sps:$4 sm:$0xff]   ;;  %v7215_v49 = vld [vmem:[%s11219_s4 + $0x50c] ss:$16 sps:$4 sm:$0xff]  }
 0x2c3   :  { %3212 = vmatprep.subr.bf16.mxu0 %v7158_v48  ;;  %3265 = vmatprep.subr.bf16.mxu1 %v7161_v52  ;;  %v1662_v48 = vpop.f32.mrf.mxu0 }
 0x2c5   :  { %v10004_v52 = vpop.f32.mrf.mxu0 }
 0x2c6   :  { %3213 = vmatpush1.bf16.msra.mxu0 %v7156_v26  ;;  %3266 = vmatpush1.bf16.msra.mxu1 %v7159_v41  ;;  %v7210_v26 = vld [vmem:[%s11219_s4 + $0x500] ss:$16 sps:$4 sm:$0xff]   ;;  %v7213_v41 = vld [vmem:[%s11219_s4 + $0x508] ss:$16 sps:$4 sm:$0xff]  }
 0x2c7   :  { %3214 = vmatprep.subr.bf16.mxu0 %v7164_v28  ;;  %3267 = vmatprep.subr.bf16.mxu1 %v7167_v4  ;;  %v7218_v28 = vld [vmem:[%s11219_s4 + $0x6e4] ss:$16 sps:$4 sm:$0xff]   ;;  %v7221_v4 = vld [vmem:[%s11219_s4 + $0x6ec] ss:$16 sps:$4 sm:$0xff]  }
 0x2ca   :  { %3215 = vmatpush1.bf16.msra.mxu0 %v7162_v13  ;;  %3268 = vmatpush1.bf16.msra.mxu1 %v7165_v20  ;;  %v1668_v13 = vpop.f32.mrf.mxu0  ;;  %v7216_v20 = vld [vmem:[%s11219_s4 + $0x6e0] ss:$16 sps:$4 sm:$0xff]  }
 0x2cb   :  { %3216 = vmatprep.subr.bf16.mxu0 %v7170_v9  ;;  %3269 = vmatprep.subr.bf16.mxu1 %v7173_v18  ;;  %v7219_v9 = vld [vmem:[%s11219_s4 + $0x6e8] ss:$16 sps:$4 sm:$0xff]   ;;  %v1814_v18 = vpack.c.bf16 %v9822_v25, %v9798_v1  ;;  %v7222_v1 = vld [vmem:[%s11219_s4 + $0x6c0] ss:$16 sps:$4 sm:$0xff]  }
 0x2cc   :  { %v7225_v25 = vld [vmem:[%s11219_s4 + $0x6c8] ss:$16 sps:$4 sm:$0xff]  }
 0x2ce   :  { %3217 = vmatpush2.bf16.msra.mxu0 %v7168_v17  ;;  %3270 = vmatpush2.bf16.msra.mxu1 %v7171_v38  ;;  %v7224_v17 = vld [vmem:[%s11219_s4 + $0x6c4] ss:$16 sps:$4 sm:$0xff]   ;;  %v7227_v38 = vld [vmem:[%s11219_s4 + $0x6cc] ss:$16 sps:$4 sm:$0xff]  }
 0x2cf   :  { %3218 = vmatprep.subr.bf16.mxu0 %v7176_v39  ;;  %3271 = vmatprep.subr.bf16.mxu1 %v7179_v55  ;;  %v1819_v39 = vpack.c.bf16 %v1662_v48, %v1658_v23  ;;  %v10032_v55 = vpop.f32.mrf.mxu0  ;;  %v7246_v23 = vld [vmem:[%s11219_s4 + $0x640] ss:$16 sps:$4 sm:$0xff]   ;;  %v7266_v48 = vld [vmem:[%s11219_s4 + $0x7e4] ss:$16 sps:$4 sm:$0xff]  }
 0x2d2   :  { %3219 = vmatpush2.bf16.msra.mxu0 %v7174_v36  ;;  %3272 = vmatpush2.bf16.msra.mxu1 %v7177_v47  ;;  %v7230_v36 = vld [vmem:[%s11219_s4 + $0x6a4] ss:$16 sps:$4 sm:$0xff]   ;;  %v7233_v47 = vld [vmem:[%s11219_s4 + $0x6ac] ss:$16 sps:$4 sm:$0xff]  }
 0x2d3   :  { %3220 = vmatprep.subr.bf16.mxu0 %v7182_v59  ;;  %3273 = vmatprep.subr.bf16.mxu1 %v7185_v27  ;;  %v1818_v59 = vpack.c.bf16 %v1660_v3, %v1656_v34  ;;  %v1672_v27 = vpop.f32.mrf.mxu0  ;;  %v7245_v34 = vld [vmem:[%s11219_s4 + $0x66c] ss:$16 sps:$4 sm:$0xff]   ;;  %v7255_v3 = vld [vmem:[%s11219_s4 + $0x628] ss:$16 sps:$4 sm:$0xff]  }
 0x2d6   :  { %3221 = vmatpush2.bf16.msra.mxu0 %v7180_v63  ;;  %3274 = vmatpush2.bf16.msra.mxu1 %v7183_v33  ;;  %v7228_v63 = vld [vmem:[%s11219_s4 + $0x6a0] ss:$16 sps:$4 sm:$0xff]   ;;  %v7231_v33 = vld [vmem:[%s11219_s4 + $0x6a8] ss:$16 sps:$4 sm:$0xff]  }
 0x2d7   :  { %3222 = vmatprep.subr.bf16.mxu0 %v7188_v46  ;;  %3275 = vmatprep.subr.bf16.mxu1 %v7191_v2  ;;  %v7236_v46 = vld [vmem:[%s11219_s4 + $0x684] ss:$16 sps:$4 sm:$0xff]   ;;  %v7239_v2 = vld [vmem:[%s11219_s4 + $0x68c] ss:$16 sps:$4 sm:$0xff]  }
 0x2da   :  { %3223 = vmatpush2.bf16.msra.mxu0 %v7186_v22  ;;  %3276 = vmatpush2.bf16.msra.mxu1 %v7189_v57  ;;  %v1823_v22 = vpack.c.bf16 %v1672_v27, %v1668_v13  ;;  %v7234_v57 = vld [vmem:[%s11219_s4 + $0x680] ss:$16 sps:$4 sm:$0xff]   ;;  %v7275_v13 = vld [vmem:[%s11219_s4 + $0x7cc] ss:$16 sps:$4 sm:$0xff]  }
 0x2db   :  { %3224 = vmatprep.subr.bf16.mxu0 %v7194_v12  ;;  %3277 = vmatprep.subr.bf16.mxu1 %v7197_v11  ;;  %v7237_v12 = vld [vmem:[%s11219_s4 + $0x688] ss:$16 sps:$4 sm:$0xff]   ;;  %v7242_v11 = vld [vmem:[%s11219_s4 + $0x664] ss:$16 sps:$4 sm:$0xff]   ;;  %v7293_v27 = vld [vmem:[%s11219_s4 + $0x76c] ss:$16 sps:$4 sm:$0xff]  }
 0x2de   :  { %3225 = vmatpush2.bf16.msra.mxu0 %v7192_v6  ;;  %3278 = vmatpush2.bf16.msra.mxu1 %v7195_v15  ;;  %v7240_v6 = vld [vmem:[%s11219_s4 + $0x660] ss:$16 sps:$4 sm:$0xff]   ;;  %v7243_v15 = vld [vmem:[%s11219_s4 + $0x668] ss:$16 sps:$4 sm:$0xff]  }
 0x2df   :  { %3226 = vmatprep.subr.bf16.mxu0 %v7200_v24  ;;  %3279 = vmatprep.subr.bf16.mxu1 %v7203_v54  ;;  %v7248_v24 = vld [vmem:[%s11219_s4 + $0x644] ss:$16 sps:$4 sm:$0xff]   ;;  %v7251_v54 = vld [vmem:[%s11219_s4 + $0x64c] ss:$16 sps:$4 sm:$0xff]  }
 0x2e2   :  { %3227 = vmatpush2.bf16.msra.mxu0 %v7198_v21  ;;  %3280 = vmatpush2.bf16.msra.mxu1 %v7201_v60  ;;  %v7249_v21 = vld [vmem:[%s11219_s4 + $0x648] ss:$16 sps:$4 sm:$0xff]   ;;  %v7254_v60 = vld [vmem:[%s11219_s4 + $0x624] ss:$16 sps:$4 sm:$0xff]  }
 0x2e3   :  { %3228 = vmatprep.subr.bf16.mxu0 %v7206_v29  ;;  %3281 = vmatprep.subr.bf16.mxu1 %v7209_v44  ;;  %v7257_v29 = vld [vmem:[%s11219_s4 + $0x62c] ss:$16 sps:$4 sm:$0xff]   ;;  %v7252_v44 = vld [vmem:[%s11219_s4 + $0x620] ss:$16 sps:$4 sm:$0xff]  }
 0x2e6   :  { %3229 = vmatpush2.bf16.msra.mxu0 %v7204_v56  ;;  %3282 = vmatpush2.bf16.msra.mxu1 %v7207_v37  ;;  %v7260_v56 = vld [vmem:[%s11219_s4 + $0x604] ss:$16 sps:$4 sm:$0xff]   ;;  %v7263_v37 = vld [vmem:[%s11219_s4 + $0x60c] ss:$16 sps:$4 sm:$0xff]  }
 0x2e7   :  { %3230 = vmatprep.subr.bf16.mxu0 %v7212_v50  ;;  %3283 = vmatprep.subr.bf16.mxu1 %v7215_v49  ;;  %v7258_v50 = vld [vmem:[%s11219_s4 + $0x600] ss:$16 sps:$4 sm:$0xff]   ;;  %v7261_v49 = vld [vmem:[%s11219_s4 + $0x608] ss:$16 sps:$4 sm:$0xff]  }
 0x2ea   :  { %3231 = vmatpush2.bf16.msra.mxu0 %v7210_v26  ;;  %3284 = vmatpush2.bf16.msra.mxu1 %v7213_v41  ;;  %v7269_v26 = vld [vmem:[%s11219_s4 + $0x7ec] ss:$16 sps:$4 sm:$0xff]   ;;  %v7264_v41 = vld [vmem:[%s11219_s4 + $0x7e0] ss:$16 sps:$4 sm:$0xff]  }
 0x2eb   :  { %3707 = vmatprep.subr.bf16.mxu0 %v7218_v28  ;;  %3760 = vmatprep.subr.bf16.mxu1 %v7221_v4  ;;  %v7267_v28 = vld [vmem:[%s11219_s4 + $0x7e8] ss:$16 sps:$4 sm:$0xff]   ;;  %v7272_v4 = vld [vmem:[%s11219_s4 + $0x7c4] ss:$16 sps:$4 sm:$0xff]  }
 0x2ed   :  { %3233 = vmatmul.mubr.bf16.vlgmr.msra.gmra.mxu0 %v1814_v18  ;;  %3286 = vmatmul.mubr.bf16.vlgmr.msra.gmra.mxu1 %v1814_v18  ;;  %v7278_v18 = vld [vmem:[%s11219_s4 + $0x7a4] ss:$16 sps:$4 sm:$0xff]  }
 0x2ee   :  { %3708 = vmatpush1.bf16.msra.mxu0 %v7216_v20  ;;  %3761 = vmatpush1.bf16.msra.mxu1 %v7219_v9  ;;  %v7270_v20 = vld [vmem:[%s11219_s4 + $0x7c0] ss:$16 sps:$4 sm:$0xff]   ;;  %v7273_v9 = vld [vmem:[%s11219_s4 + $0x7c8] ss:$16 sps:$4 sm:$0xff]  }
 0x2ef   :  { %3709 = vmatprep.subr.bf16.mxu0 %v7224_v17  ;;  %3762 = vmatprep.subr.bf16.mxu1 %v7227_v38  ;;  %v7281_v17 = vld [vmem:[%s11219_s4 + $0x7ac] ss:$16 sps:$4 sm:$0xff]   ;;  %v7276_v38 = vld [vmem:[%s11219_s4 + $0x7a0] ss:$16 sps:$4 sm:$0xff]  }
 0x2f0   :  { %3242 = vmatprep.mubr.bf16.mxu0 %v1819_v39  ;;  %3295 = vmatprep.mubr.bf16.mxu1 %v1819_v39  ;;  %v7279_v39 = vld [vmem:[%s11219_s4 + $0x7a8] ss:$16 sps:$4 sm:$0xff]  }
 0x2f2   :  { %3710 = vmatpush1.bf16.msra.mxu0 %v7222_v1  ;;  %3763 = vmatpush1.bf16.msra.mxu1 %v7225_v25  ;;  %v7284_v1 = vld [vmem:[%s11219_s4 + $0x784] ss:$16 sps:$4 sm:$0xff]   ;;  %v7287_v25 = vld [vmem:[%s11219_s4 + $0x78c] ss:$16 sps:$4 sm:$0xff]  }
 0x2f3   :  { %3711 = vmatprep.subr.bf16.mxu0 %v7230_v36  ;;  %3764 = vmatprep.subr.bf16.mxu1 %v7233_v47  ;;  %v7282_v36 = vld [vmem:[%s11219_s4 + $0x780] ss:$16 sps:$4 sm:$0xff]   ;;  %v7285_v47 = vld [vmem:[%s11219_s4 + $0x788] ss:$16 sps:$4 sm:$0xff]  }
 0x2f5   :  { %3243 = vmatmul.mubr.bf16.gmra.mxu0 %v1818_v59  ;;  %3296 = vmatmul.mubr.bf16.gmra.mxu1 %v1818_v59  ;;  %v7290_v59 = vld [vmem:[%s11219_s4 + $0x764] ss:$16 sps:$4 sm:$0xff]  }
 0x2f6   :  { %3712 = vmatpush1.bf16.msra.mxu0 %v7228_v63  ;;  %3765 = vmatpush1.bf16.msra.mxu1 %v7231_v33  ;;  %v7288_v63 = vld [vmem:[%s11219_s4 + $0x760] ss:$16 sps:$4 sm:$0xff]   ;;  %v7291_v33 = vld [vmem:[%s11219_s4 + $0x768] ss:$16 sps:$4 sm:$0xff]  }
 0x2f7   :  { %3713 = vmatprep.subr.bf16.mxu0 %v7236_v46  ;;  %3766 = vmatprep.subr.bf16.mxu1 %v7239_v2  ;;  %v7296_v46 = vld [vmem:[%s11219_s4 + $0x744] ss:$16 sps:$4 sm:$0xff]   ;;  %v7299_v2 = vld [vmem:[%s11219_s4 + $0x74c] ss:$16 sps:$4 sm:$0xff]  }
 0x2f8   :  { %3739 = vmatprep.mubr.bf16.mxu0 %v1823_v22  ;;  %3792 = vmatprep.mubr.bf16.mxu1 %v1823_v22  ;;  %v1676_v22 = vpop.f32.mrf.mxu0 }
 0x2fa   :  { %3714 = vmatpush1.bf16.msra.mxu0 %v7234_v57  ;;  %3767 = vmatpush1.bf16.msra.mxu1 %v7237_v12  ;;  %v7294_v57 = vld [vmem:[%s11219_s4 + $0x740] ss:$16 sps:$4 sm:$0xff]   ;;  %v7297_v12 = vld [vmem:[%s11219_s4 + $0x748] ss:$16 sps:$4 sm:$0xff]  }
 0x2fb   :  { %3715 = vmatprep.subr.bf16.mxu0 %v7242_v11  ;;  %3768 = vmatprep.subr.bf16.mxu1 %v7245_v34  ;;  %v7302_v11 = vld [vmem:[%s11219_s4 + $0x724] ss:$16 sps:$4 sm:$0xff]   ;;  %v7305_v34 = vld [vmem:[%s11219_s4 + $0x72c] ss:$16 sps:$4 sm:$0xff]  }
 0x2fe   :  { %3716 = vmatpush1.bf16.msra.mxu0 %v7240_v6  ;;  %3769 = vmatpush1.bf16.msra.mxu1 %v7243_v15  ;;  %v1678_v6 = vpop.f32.mrf.mxu0  ;;  %v7300_v15 = vld [vmem:[%s11219_s4 + $0x720] ss:$16 sps:$4 sm:$0xff]  }
 0x2ff   :  { %3717 = vmatprep.subr.bf16.mxu0 %v7248_v24  ;;  %3770 = vmatprep.subr.bf16.mxu1 %v7251_v54  ;;  %v7303_v24 = vld [vmem:[%s11219_s4 + $0x728] ss:$16 sps:$4 sm:$0xff]   ;;  %v7308_v54 = vld [vmem:[%s11219_s4 + $0x704] ss:$16 sps:$4 sm:$0xff]  }
 0x302   :  { %3718 = vmatpush1.bf16.msra.mxu0 %v7246_v23  ;;  %3771 = vmatpush1.bf16.msra.mxu1 %v7249_v21  ;;  %v7311_v23 = vld [vmem:[%s11219_s4 + $0x70c] ss:$16 sps:$4 sm:$0xff]   ;;  %v1680_v21 = vpop.f32.mrf.mxu0 }
 0x303   :  { %3719 = vmatprep.subr.bf16.mxu0 %v7254_v60  ;;  %3772 = vmatprep.subr.bf16.mxu1 %v7257_v29  ;;  %v7306_v60 = vld [vmem:[%s11219_s4 + $0x700] ss:$16 sps:$4 sm:$0xff]   ;;  %v7309_v29 = vld [vmem:[%s11219_s4 + $0x708] ss:$16 sps:$4 sm:$0xff]  }
 0x306   :  { %3720 = vmatpush1.bf16.msra.mxu0 %v7252_v44  ;;  %3773 = vmatpush1.bf16.msra.mxu1 %v7255_v3  ;;  %v7314_v44 = vld [vmem:[%s11219_s4 + $0x2e4] ss:$16 sps:$4 sm:$0xff]   ;;  %v7317_v3 = vld [vmem:[%s11219_s4 + $0x2ec] ss:$16 sps:$4 sm:$0xff]  }
 0x307   :  { %3721 = vmatprep.subr.bf16.mxu0 %v7260_v56  ;;  %3774 = vmatprep.subr.bf16.mxu1 %v7263_v37  ;;  %v1682_v56 = vpop.f32.mrf.mxu0  ;;  %v1822_v37 = vpack.c.bf16 %v10032_v55, %v10004_v52  ;;  %v7318_v52 = vld [vmem:[%s11219_s4 + $0x2c0] ss:$16 sps:$4 sm:$0xff]   ;;  %v7321_v55 = vld [vmem:[%s11219_s4 + $0x2c8] ss:$16 sps:$4 sm:$0xff]  }
 0x30a   :  { %3722 = vmatpush1.bf16.msra.mxu0 %v7258_v50  ;;  %3775 = vmatpush1.bf16.msra.mxu1 %v7261_v49  ;;  %v7312_v50 = vld [vmem:[%s11219_s4 + $0x2e0] ss:$16 sps:$4 sm:$0xff]   ;;  %v7315_v49 = vld [vmem:[%s11219_s4 + $0x2e8] ss:$16 sps:$4 sm:$0xff]  }
 0x30b   :  { %3723 = vmatprep.subr.bf16.mxu0 %v7266_v48  ;;  %3776 = vmatprep.subr.bf16.mxu1 %v7269_v26  ;;  %v1827_v48 = vpack.c.bf16 %v1682_v56, %v1678_v6  ;;  %v7320_v26 = vld [vmem:[%s11219_s4 + $0x2c4] ss:$16 sps:$4 sm:$0xff]   ;;  %v7372_v56 = vld [vmem:[%s11219_s4 + $0x3a0] ss:$16 sps:$4 sm:$0xff]  }
 0x30c   :  { %v7362_v6 = vld [vmem:[%s11219_s4 + $0x3e4] ss:$16 sps:$4 sm:$0xff]  }
 0x30e   :  { %3724 = vmatpush2.bf16.msra.mxu0 %v7264_v41  ;;  %3777 = vmatpush2.bf16.msra.mxu1 %v7267_v28  ;;  %v7323_v41 = vld [vmem:[%s11219_s4 + $0x2cc] ss:$16 sps:$4 sm:$0xff]   ;;  %v7326_v28 = vld [vmem:[%s11219_s4 + $0x2a4] ss:$16 sps:$4 sm:$0xff]  }
 0x30f   :  { %3725 = vmatprep.subr.bf16.mxu0 %v7272_v4  ;;  %3778 = vmatprep.subr.bf16.mxu1 %v7275_v13  ;;  %v7329_v4 = vld [vmem:[%s11219_s4 + $0x2ac] ss:$16 sps:$4 sm:$0xff]   ;;  %v1826_v13 = vpack.c.bf16 %v1680_v21, %v1676_v22  ;;  %v7351_v22 = vld [vmem:[%s11219_s4 + $0x228] ss:$16 sps:$4 sm:$0xff]  }
 0x310   :  { %v7371_v21 = vld [vmem:[%s11219_s4 + $0x3cc] ss:$16 sps:$4 sm:$0xff]  }
 0x312   :  { %3726 = vmatpush2.bf16.msra.mxu0 %v7270_v20  ;;  %3779 = vmatpush2.bf16.msra.mxu1 %v7273_v9  ;;  %v7324_v20 = vld [vmem:[%s11219_s4 + $0x2a0] ss:$16 sps:$4 sm:$0xff]   ;;  %v7327_v9 = vld [vmem:[%s11219_s4 + $0x2a8] ss:$16 sps:$4 sm:$0xff]  }
 0x313   :  { %3727 = vmatprep.subr.bf16.mxu0 %v7278_v18  ;;  %3780 = vmatprep.subr.bf16.mxu1 %v7281_v17  ;;  %v1809_v18 = vpack.c.bf16 %v9660_v58, %v9644_v32  ;;  %v7332_v17 = vld [vmem:[%s11219_s4 + $0x284] ss:$16 sps:$4 sm:$0xff]   ;;  %v7330_v32 = vld [vmem:[%s11219_s4 + $0x280] ss:$16 sps:$4 sm:$0xff]   ;;  %v7333_v58 = vld [vmem:[%s11219_s4 + $0x288] ss:$16 sps:$4 sm:$0xff]  }
 0x316   :  { %3728 = vmatpush2.bf16.msra.mxu0 %v7276_v38  ;;  %3781 = vmatpush2.bf16.msra.mxu1 %v7279_v39  ;;  %v7335_v38 = vld [vmem:[%s11219_s4 + $0x28c] ss:$16 sps:$4 sm:$0xff]   ;;  %v7338_v39 = vld [vmem:[%s11219_s4 + $0x264] ss:$16 sps:$4 sm:$0xff]  }
 0x317   :  { %3729 = vmatprep.subr.bf16.mxu0 %v7284_v1  ;;  %3782 = vmatprep.subr.bf16.mxu1 %v7287_v25  ;;  %v7341_v1 = vld [vmem:[%s11219_s4 + $0x26c] ss:$16 sps:$4 sm:$0xff]   ;;  %v7336_v25 = vld [vmem:[%s11219_s4 + $0x260] ss:$16 sps:$4 sm:$0xff]  }
 0x31a   :  { %3730 = vmatpush2.bf16.msra.mxu0 %v7282_v36  ;;  %3783 = vmatpush2.bf16.msra.mxu1 %v7285_v47  ;;  %v7339_v36 = vld [vmem:[%s11219_s4 + $0x268] ss:$16 sps:$4 sm:$0xff]   ;;  %v7344_v47 = vld [vmem:[%s11219_s4 + $0x244] ss:$16 sps:$4 sm:$0xff]  }
 0x31b   :  { %3731 = vmatprep.subr.bf16.mxu0 %v7290_v59  ;;  %3784 = vmatprep.subr.bf16.mxu1 %v7293_v27  ;;  %v7347_v59 = vld [vmem:[%s11219_s4 + $0x24c] ss:$16 sps:$4 sm:$0xff]   ;;  %v7342_v27 = vld [vmem:[%s11219_s4 + $0x240] ss:$16 sps:$4 sm:$0xff]  }
 0x31e   :  { %3732 = vmatpush2.bf16.msra.mxu0 %v7288_v63  ;;  %3785 = vmatpush2.bf16.msra.mxu1 %v7291_v33  ;;  %v7345_v63 = vld [vmem:[%s11219_s4 + $0x248] ss:$16 sps:$4 sm:$0xff]   ;;  %v7350_v33 = vld [vmem:[%s11219_s4 + $0x224] ss:$16 sps:$4 sm:$0xff]  }
 0x31f   :  { %3733 = vmatprep.subr.bf16.mxu0 %v7296_v46  ;;  %3786 = vmatprep.subr.bf16.mxu1 %v7299_v2  ;;  %v7353_v46 = vld [vmem:[%s11219_s4 + $0x22c] ss:$16 sps:$4 sm:$0xff]   ;;  %v7348_v2 = vld [vmem:[%s11219_s4 + $0x220] ss:$16 sps:$4 sm:$0xff]  }
 0x322   :  { %3734 = vmatpush2.bf16.msra.mxu0 %v7294_v57  ;;  %3787 = vmatpush2.bf16.msra.mxu1 %v7297_v12  ;;  %v7356_v57 = vld [vmem:[%s11219_s4 + $0x204] ss:$16 sps:$4 sm:$0xff]   ;;  %v7359_v12 = vld [vmem:[%s11219_s4 + $0x20c] ss:$16 sps:$4 sm:$0xff]  }
 0x323   :  { %3735 = vmatprep.subr.bf16.mxu0 %v7302_v11  ;;  %3788 = vmatprep.subr.bf16.mxu1 %v7305_v34  ;;  %v7354_v11 = vld [vmem:[%s11219_s4 + $0x200] ss:$16 sps:$4 sm:$0xff]   ;;  %v7357_v34 = vld [vmem:[%s11219_s4 + $0x208] ss:$16 sps:$4 sm:$0xff]  }
 0x326   :  { %3736 = vmatpush2.bf16.msra.mxu0 %v7300_v15  ;;  %3789 = vmatpush2.bf16.msra.mxu1 %v7303_v24  ;;  %v7365_v15 = vld [vmem:[%s11219_s4 + $0x3ec] ss:$16 sps:$4 sm:$0xff]   ;;  %v7360_v24 = vld [vmem:[%s11219_s4 + $0x3e0] ss:$16 sps:$4 sm:$0xff]  }
 0x327   :  { %3737 = vmatprep.subr.bf16.mxu0 %v7308_v54  ;;  %3790 = vmatprep.subr.bf16.mxu1 %v7311_v23  ;;  %v7363_v54 = vld [vmem:[%s11219_s4 + $0x3e8] ss:$16 sps:$4 sm:$0xff]   ;;  %v7368_v23 = vld [vmem:[%s11219_s4 + $0x3c4] ss:$16 sps:$4 sm:$0xff]  }
 0x32a   :  { %3738 = vmatpush2.bf16.msra.mxu0 %v7306_v60  ;;  %3791 = vmatpush2.bf16.msra.mxu1 %v7309_v29  ;;  %v7366_v60 = vld [vmem:[%s11219_s4 + $0x3c0] ss:$16 sps:$4 sm:$0xff]   ;;  %v7369_v29 = vld [vmem:[%s11219_s4 + $0x3c8] ss:$16 sps:$4 sm:$0xff]  }
 0x32b   :  { %4337 = vmatprep.subr.bf16.mxu0 %v7314_v44  ;;  %4390 = vmatprep.subr.bf16.mxu1 %v7317_v3  ;;  %v7374_v44 = vld [vmem:[%s11219_s4 + $0x3a4] ss:$16 sps:$4 sm:$0xff]   ;;  %v7377_v3 = vld [vmem:[%s11219_s4 + $0x3ac] ss:$16 sps:$4 sm:$0xff]  }
 0x32d   :  { %3740 = vmatmul.mubr.bf16.vlgmr.msra.gmra.mxu0 %v1822_v37  ;;  %3793 = vmatmul.mubr.bf16.vlgmr.msra.gmra.mxu1 %v1822_v37  ;;  %v7375_v37 = vld [vmem:[%s11219_s4 + $0x3a8] ss:$16 sps:$4 sm:$0xff]  }
 0x32e   :  { %3749 = vmatprep.mubr.bf16.mxu0 %v1827_v48  ;;  %3802 = vmatprep.mubr.bf16.mxu1 %v1827_v48  ;;  %v7378_v48 = vld [vmem:[%s11219_s4 + $0x380] ss:$16 sps:$4 sm:$0xff]  }
 0x32f   :  { %4338 = vmatpush1.bf16.msra.mxu0 %v7312_v50  ;;  %4391 = vmatpush1.bf16.msra.mxu1 %v7315_v49  ;;  %v7380_v50 = vld [vmem:[%s11219_s4 + $0x384] ss:$16 sps:$4 sm:$0xff]   ;;  %v7383_v49 = vld [vmem:[%s11219_s4 + $0x38c] ss:$16 sps:$4 sm:$0xff]  }
 0x330   :  { %4339 = vmatprep.subr.bf16.mxu0 %v7320_v26  ;;  %4392 = vmatprep.subr.bf16.mxu1 %v7323_v41  ;;  %v7381_v26 = vld [vmem:[%s11219_s4 + $0x388] ss:$16 sps:$4 sm:$0xff]   ;;  %v7386_v41 = vld [vmem:[%s11219_s4 + $0x364] ss:$16 sps:$4 sm:$0xff]  }
 0x333   :  { %4340 = vmatpush1.bf16.msra.mxu0 %v7318_v52  ;;  %4393 = vmatpush1.bf16.msra.mxu1 %v7321_v55  ;;  %v7389_v52 = vld [vmem:[%s11219_s4 + $0x36c] ss:$16 sps:$4 sm:$0xff]   ;;  %v7384_v55 = vld [vmem:[%s11219_s4 + $0x360] ss:$16 sps:$4 sm:$0xff]  }
 0x334   :  { %4341 = vmatprep.subr.bf16.mxu0 %v7326_v28  ;;  %4394 = vmatprep.subr.bf16.mxu1 %v7329_v4  ;;  %v7387_v28 = vld [vmem:[%s11219_s4 + $0x368] ss:$16 sps:$4 sm:$0xff]   ;;  %v7392_v4 = vld [vmem:[%s11219_s4 + $0x344] ss:$16 sps:$4 sm:$0xff]  }
 0x335   :  { %3750 = vmatmul.mubr.bf16.gmra.mxu0 %v1826_v13  ;;  %3803 = vmatmul.mubr.bf16.gmra.mxu1 %v1826_v13  ;;  %v7395_v13 = vld [vmem:[%s11219_s4 + $0x34c] ss:$16 sps:$4 sm:$0xff]  }
 0x336   :  { %4369 = vmatprep.mubr.bf16.mxu0 %v1809_v18  ;;  %4422 = vmatprep.mubr.bf16.mxu1 %v1809_v18  ;;  %v7398_v18 = vld [vmem:[%s11219_s4 + $0x324] ss:$16 sps:$4 sm:$0xff]  }
 0x337   :  { %4342 = vmatpush1.bf16.msra.mxu0 %v7324_v20  ;;  %4395 = vmatpush1.bf16.msra.mxu1 %v7327_v9  ;;  %v7390_v20 = vld [vmem:[%s11219_s4 + $0x340] ss:$16 sps:$4 sm:$0xff]   ;;  %v7393_v9 = vld [vmem:[%s11219_s4 + $0x348] ss:$16 sps:$4 sm:$0xff]  }
 0x338   :  { %4343 = vmatprep.subr.bf16.mxu0 %v7332_v17  ;;  %4396 = vmatprep.subr.bf16.mxu1 %v7335_v38  ;;  %v7401_v17 = vld [vmem:[%s11219_s4 + $0x32c] ss:$16 sps:$4 sm:$0xff]   ;;  %v7396_v38 = vld [vmem:[%s11219_s4 + $0x320] ss:$16 sps:$4 sm:$0xff]  }
 0x33b   :  { %4344 = vmatpush1.bf16.msra.mxu0 %v7330_v32  ;;  %4397 = vmatpush1.bf16.msra.mxu1 %v7333_v58  ;;  %v7399_v32 = vld [vmem:[%s11219_s4 + $0x328] ss:$16 sps:$4 sm:$0xff]   ;;  %v7404_v58 = vld [vmem:[%s11219_s4 + $0x304] ss:$16 sps:$4 sm:$0xff]  }
 0x33c   :  { %4345 = vmatprep.subr.bf16.mxu0 %v7338_v39  ;;  %4398 = vmatprep.subr.bf16.mxu1 %v7341_v1  ;;  %v7407_v39 = vld [vmem:[%s11219_s4 + $0x30c] ss:$16 sps:$4 sm:$0xff]   ;;  %v7402_v1 = vld [vmem:[%s11219_s4 + $0x300] ss:$16 sps:$4 sm:$0xff]  }
 0x33f   :  { %4346 = vmatpush1.bf16.msra.mxu0 %v7336_v25  ;;  %4399 = vmatpush1.bf16.msra.mxu1 %v7339_v36  ;;  %v7405_v25 = vld [vmem:[%s11219_s4 + $0x308] ss:$16 sps:$4 sm:$0xff]   ;;  %v7410_v36 = vld [vmem:[%s11219_s4 + $0xe4] ss:$16 sps:$4 sm:$0xff]  }
 0x340   :  { %4347 = vmatprep.subr.bf16.mxu0 %v7344_v47  ;;  %4400 = vmatprep.subr.bf16.mxu1 %v7347_v59  ;;  %v7413_v47 = vld [vmem:[%s11219_s4 + $0xec] ss:$16 sps:$4 sm:$0xff]   ;;  %v1808_v59 = vpack.c.bf16 %v9652_v42, %v9636_v61  ;;  %v7414_v42 = vld [vmem:[%s11219_s4 + $0xc0] ss:$16 sps:$4 sm:$0xff]  }
 0x341   :  { %v7419_v61 = vld [vmem:[%s11219_s4 + $0xcc] ss:$16 sps:$4 sm:$0xff]  }
 0x343   :  { %4348 = vmatpush1.bf16.msra.mxu0 %v7342_v27  ;;  %4401 = vmatpush1.bf16.msra.mxu1 %v7345_v63  ;;  %v7408_v27 = vld [vmem:[%s11219_s4 + $0xe0] ss:$16 sps:$4 sm:$0xff]   ;;  %v7411_v63 = vld [vmem:[%s11219_s4 + $0xe8] ss:$16 sps:$4 sm:$0xff]  }
 0x344   :  { %4349 = vmatprep.subr.bf16.mxu0 %v7350_v33  ;;  %4402 = vmatprep.subr.bf16.mxu1 %v7353_v46  ;;  %v1813_v33 = vpack.c.bf16 %v9692_v0, %v9676_v14  ;;  %v7416_v46 = vld [vmem:[%s11219_s4 + $0xc4] ss:$16 sps:$4 sm:$0xff]   ;;  %v7417_v14 = vld [vmem:[%s11219_s4 + $0xc8] ss:$16 sps:$4 sm:$0xff]  }
 0x345   :  { %v7422_v0 = vld [vmem:[%s11219_s4 + $0xa4] ss:$16 sps:$4 sm:$0xff]  }
 0x347   :  { %4350 = vmatpush1.bf16.msra.mxu0 %v7348_v2  ;;  %4403 = vmatpush1.bf16.msra.mxu1 %v7351_v22  ;;  %v7425_v2 = vld [vmem:[%s11219_s4 + $0xac] ss:$16 sps:$4 sm:$0xff]   ;;  %v1812_v22 = vpack.c.bf16 %v9684_v10, %v9668_v5  ;;  %v7426_v10 = vld [vmem:[%s11219_s4 + $0x80] ss:$16 sps:$4 sm:$0xff]  }
 0x348   :  { %4351 = vmatprep.subr.bf16.mxu0 %v7356_v57  ;;  %4404 = vmatprep.subr.bf16.mxu1 %v7359_v12  ;;  %v7420_v57 = vld [vmem:[%s11219_s4 + $0xa0] ss:$16 sps:$4 sm:$0xff]   ;;  %v7423_v12 = vld [vmem:[%s11219_s4 + $0xa8] ss:$16 sps:$4 sm:$0xff]   ;;  %v7431_v5 = vld [vmem:[%s11219_s4 + $0x8c] ss:$16 sps:$4 sm:$0xff]  }
 0x34b   :  { %4352 = vmatpush1.bf16.msra.mxu0 %v7354_v11  ;;  %4405 = vmatpush1.bf16.msra.mxu1 %v7357_v34  ;;  %v7428_v11 = vld [vmem:[%s11219_s4 + $0x84] ss:$16 sps:$4 sm:$0xff]   ;;  %v7429_v34 = vld [vmem:[%s11219_s4 + $0x88] ss:$16 sps:$4 sm:$0xff]  }
 0x34c   :  { %4353 = vmatprep.subr.bf16.mxu0 %v7362_v6  ;;  %4406 = vmatprep.subr.bf16.mxu1 %v7365_v15  ;;  %v7434_v6 = vld [vmem:[%s11219_s4 + $0x64] ss:$16 sps:$4 sm:$0xff]   ;;  %v7432_v15 = vld [vmem:[%s11219_s4 + $0x60] ss:$16 sps:$4 sm:$0xff]  }
 0x34f   :  { %4354 = vmatpush2.bf16.msra.mxu0 %v7360_v24  ;;  %4407 = vmatpush2.bf16.msra.mxu1 %v7363_v54  ;;  %v7435_v24 = vld [vmem:[%s11219_s4 + $0x68] ss:$16 sps:$4 sm:$0xff]   ;;  %v7440_v54 = vld [vmem:[%s11219_s4 + $0x44] ss:$16 sps:$4 sm:$0xff]  }
 0x350   :  { %4355 = vmatprep.subr.bf16.mxu0 %v7368_v23  ;;  %4408 = vmatprep.subr.bf16.mxu1 %v7371_v21  ;;  %v7443_v23 = vld [vmem:[%s11219_s4 + $0x4c] ss:$16 sps:$4 sm:$0xff]   ;;  %v7438_v21 = vld [vmem:[%s11219_s4 + $0x40] ss:$16 sps:$4 sm:$0xff]  }
 0x353   :  { %4356 = vmatpush2.bf16.msra.mxu0 %v7366_v60  ;;  %4409 = vmatpush2.bf16.msra.mxu1 %v7369_v29  ;;  %v7441_v60 = vld [vmem:[%s11219_s4 + $0x48] ss:$16 sps:$4 sm:$0xff]   ;;  %v7446_v29 = vld [vmem:[%s11219_s4 + $0x24] ss:$16 sps:$4 sm:$0xff]  }
 0x354   :  { %4357 = vmatprep.subr.bf16.mxu0 %v7374_v44  ;;  %4410 = vmatprep.subr.bf16.mxu1 %v7377_v3  ;;  %v7449_v44 = vld [vmem:[%s11219_s4 + $0x2c] ss:$16 sps:$4 sm:$0xff]   ;;  %v7444_v3 = vld [vmem:[%s11219_s4 + $0x20] ss:$16 sps:$4 sm:$0xff]  }
 0x357   :  { %4358 = vmatpush2.bf16.msra.mxu0 %v7372_v56  ;;  %4411 = vmatpush2.bf16.msra.mxu1 %v7375_v37  ;;  %v7447_v56 = vld [vmem:[%s11219_s4 + $0x28] ss:$16 sps:$4 sm:$0xff]   ;;  %v7452_v37 = vld [vmem:[%s11219_s4 + $0x4] ss:$16 sps:$4 sm:$0xff]  }
 0x358   :  { %4359 = vmatprep.subr.bf16.mxu0 %v7380_v50  ;;  %4412 = vmatprep.subr.bf16.mxu1 %v7383_v49  ;;  %v7455_v50 = vld [vmem:[%s11219_s4 + $0xc] ss:$16 sps:$4 sm:$0xff]   ;;  %v7450_v49 = vld [vmem:[%s11219_s4] ss:$16 sps:$4 sm:$0xff]  }
 0x35b   :  { %4360 = vmatpush2.bf16.msra.mxu0 %v7378_v48  ;;  %4413 = vmatpush2.bf16.msra.mxu1 %v7381_v26  ;;  %v7453_v48 = vld [vmem:[%s11219_s4 + $0x8] ss:$16 sps:$4 sm:$0xff]   ;;  %v7458_v26 = vld [vmem:[%s11219_s4 + $0x1e4] ss:$16 sps:$4 sm:$0xff]  }
 0x35c   :  { %4361 = vmatprep.subr.bf16.mxu0 %v7386_v41  ;;  %4414 = vmatprep.subr.bf16.mxu1 %v7389_v52  ;;  %v7461_v41 = vld [vmem:[%s11219_s4 + $0x1ec] ss:$16 sps:$4 sm:$0xff]   ;;  %v7456_v52 = vld [vmem:[%s11219_s4 + $0x1e0] ss:$16 sps:$4 sm:$0xff]  }
 0x35f   :  { %4362 = vmatpush2.bf16.msra.mxu0 %v7384_v55  ;;  %4415 = vmatpush2.bf16.msra.mxu1 %v7387_v28  ;;  %v7459_v55 = vld [vmem:[%s11219_s4 + $0x1e8] ss:$16 sps:$4 sm:$0xff]   ;;  %v7464_v28 = vld [vmem:[%s11219_s4 + $0x1c4] ss:$16 sps:$4 sm:$0xff]  }
 0x360   :  { %4363 = vmatprep.subr.bf16.mxu0 %v7392_v4  ;;  %4416 = vmatprep.subr.bf16.mxu1 %v7395_v13  ;;  %v7467_v4 = vld [vmem:[%s11219_s4 + $0x1cc] ss:$16 sps:$4 sm:$0xff]   ;;  %v7462_v13 = vld [vmem:[%s11219_s4 + $0x1c0] ss:$16 sps:$4 sm:$0xff]  }
 0x363   :  { %4364 = vmatpush2.bf16.msra.mxu0 %v7390_v20  ;;  %4417 = vmatpush2.bf16.msra.mxu1 %v7393_v9  ;;  %v7465_v20 = vld [vmem:[%s11219_s4 + $0x1c8] ss:$16 sps:$4 sm:$0xff]   ;;  %v7470_v9 = vld [vmem:[%s11219_s4 + $0x1a4] ss:$16 sps:$4 sm:$0xff]  }
 0x364   :  { %4365 = vmatprep.subr.bf16.mxu0 %v7398_v18  ;;  %4418 = vmatprep.subr.bf16.mxu1 %v7401_v17  ;;  %v7473_v18 = vld [vmem:[%s11219_s4 + $0x1ac] ss:$16 sps:$4 sm:$0xff]   ;;  %v10538_v17 = vpop.f32.mrf.mxu1 }
 0x367   :  { %4366 = vmatpush2.bf16.msra.mxu0 %v7396_v38  ;;  %4419 = vmatpush2.bf16.msra.mxu1 %v7399_v32  ;;  %v7468_v38 = vld [vmem:[%s11219_s4 + $0x1a0] ss:$16 sps:$4 sm:$0xff]   ;;  %v7471_v32 = vld [vmem:[%s11219_s4 + $0x1a8] ss:$16 sps:$4 sm:$0xff]  }
 0x368   :  { %4367 = vmatprep.subr.bf16.mxu0 %v7404_v58  ;;  %4420 = vmatprep.subr.bf16.mxu1 %v7407_v39  ;;  %v10546_v58 = vpop.f32.mrf.mxu0  ;;  %v10548_v39 = vpop.f32.mrf.mxu1 }
 0x36b   :  { %4368 = vmatpush2.bf16.msra.mxu0 %v7402_v1  ;;  %4421 = vmatpush2.bf16.msra.mxu1 %v7405_v25  ;;  %v7476_v1 = vld [vmem:[%s11219_s4 + $0x184] ss:$16 sps:$4 sm:$0xff]   ;;  %v7479_v25 = vld [vmem:[%s11219_s4 + $0x18c] ss:$16 sps:$4 sm:$0xff]  }
 0x36c   :  { %4763 = vmatprep.subr.bf16.mxu0 %v7410_v36  ;;  %4816 = vmatprep.subr.bf16.mxu1 %v7413_v47  ;;  %v7474_v36 = vld [vmem:[%s11219_s4 + $0x180] ss:$16 sps:$4 sm:$0xff]   ;;  %v7477_v47 = vld [vmem:[%s11219_s4 + $0x188] ss:$16 sps:$4 sm:$0xff]  }
 0x36e   :  { %4370 = vmatmul.mubr.bf16.vlgmr.msra.gmra.mxu0 %v1808_v59  ;;  %4423 = vmatmul.mubr.bf16.vlgmr.msra.gmra.mxu1 %v1808_v59  ;;  %v10562_v59 = vpop.f32.mrf.mxu0 }
 0x36f   :  { %4379 = vmatprep.mubr.bf16.mxu0 %v1813_v33  ;;  %4432 = vmatprep.mubr.bf16.mxu1 %v1813_v33  ;;  %v7485_v33 = vld [vmem:[%s11219_s4 + $0x16c] ss:$16 sps:$4 sm:$0xff]  }
 0x370   :  { %4764 = vmatpush1.bf16.msra.mxu0 %v7408_v27  ;;  %4817 = vmatpush1.bf16.msra.mxu1 %v7411_v63  ;;  %v10564_v27 = vpop.f32.mrf.mxu1  ;;  %v7482_v63 = vld [vmem:[%s11219_s4 + $0x164] ss:$16 sps:$4 sm:$0xff]  }
 0x371   :  { %4765 = vmatprep.subr.bf16.mxu0 %v7416_v46  ;;  %4818 = vmatprep.subr.bf16.mxu1 %v7419_v61  ;;  %v7480_v46 = vld [vmem:[%s11219_s4 + $0x160] ss:$16 sps:$4 sm:$0xff]   ;;  %v7483_v61 = vld [vmem:[%s11219_s4 + $0x168] ss:$16 sps:$4 sm:$0xff]  }
 0x374   :  { %4766 = vmatpush1.bf16.msra.mxu0 %v7414_v42  ;;  %4819 = vmatpush1.bf16.msra.mxu1 %v7417_v14  ;;  %v10578_v42 = vpop.f32.mrf.mxu0  ;;  %v10580_v14 = vpop.f32.mrf.mxu1 }
 0x375   :  { %4767 = vmatprep.subr.bf16.mxu0 %v7422_v0  ;;  %4820 = vmatprep.subr.bf16.mxu1 %v7425_v2  ;;  %v7488_v0 = vld [vmem:[%s11219_s4 + $0x144] ss:$16 sps:$4 sm:$0xff]   ;;  %v7491_v2 = vld [vmem:[%s11219_s4 + $0x14c] ss:$16 sps:$4 sm:$0xff]  }
 0x376   :  { %4380 = vmatmul.mubr.bf16.gmra.mxu0 %v1812_v22  ;;  %4433 = vmatmul.mubr.bf16.gmra.mxu1 %v1812_v22  ;;  %v7486_v22 = vld [vmem:[%s11219_s4 + $0x140] ss:$16 sps:$4 sm:$0xff]  }
 0x377   :  { %4795 = vmatprep.mubr.bf16.mxu0 %v9606_v8  ;;  %4848 = vmatprep.mubr.bf16.mxu1 %v9606_v8  ;;  %v7437_v8 = vld [vmem:[%s11219_s4 + $0x6c] ss:$16 sps:$4 sm:$0xff]  }
 0x378   :  { %4768 = vmatpush1.bf16.msra.mxu0 %v7420_v57  ;;  %4821 = vmatpush1.bf16.msra.mxu1 %v7423_v12  ;;  %v7489_v57 = vld [vmem:[%s11219_s4 + $0x148] ss:$16 sps:$4 sm:$0xff]   ;;  %v10594_v12 = vpop.f32.mrf.mxu0 }
 0x379   :  { %4769 = vmatprep.subr.bf16.mxu0 %v7428_v11  ;;  %4822 = vmatprep.subr.bf16.mxu1 %v7431_v5  ;;  %v10596_v11 = vpop.f32.mrf.mxu1  ;;  %v7494_v5 = vld [vmem:[%s11219_s4 + $0x124] ss:$16 sps:$4 sm:$0xff]  }
 0x37c   :  { %4770 = vmatpush1.bf16.msra.mxu0 %v7426_v10  ;;  %4823 = vmatpush1.bf16.msra.mxu1 %v7429_v34  ;;  %v7497_v10 = vld [vmem:[%s11219_s4 + $0x12c] ss:$16 sps:$4 sm:$0xff]   ;;  %v10604_v34 = vpop.f32.mrf.mxu0 }
 0x37d   :  { %4771 = vmatprep.subr.bf16.mxu0 %v7434_v6  ;;  %4824 = vmatprep.subr.bf16.mxu1 %v7437_v8  ;;  %v10606_v6 = vpop.f32.mrf.mxu1  ;;  %v7492_v8 = vld [vmem:[%s11219_s4 + $0x120] ss:$16 sps:$4 sm:$0xff]  }
 0x380   :  { %4772 = vmatpush1.bf16.msra.mxu0 %v7432_v15  ;;  %4825 = vmatpush1.bf16.msra.mxu1 %v7435_v24  ;;  %v7495_v15 = vld [vmem:[%s11219_s4 + $0x128] ss:$16 sps:$4 sm:$0xff]   ;;  %v7500_v24 = vld [vmem:[%s11219_s4 + $0x104] ss:$16 sps:$4 sm:$0xff]  }
 0x381   :  { %4773 = vmatprep.subr.bf16.mxu0 %v7440_v54  ;;  %4826 = vmatprep.subr.bf16.mxu1 %v7443_v23  ;;  %v7503_v54 = vld [vmem:[%s11219_s4 + $0x10c] ss:$16 sps:$4 sm:$0xff]   ;;  %v10620_v23 = vpop.f32.mrf.mxu0 }
 0x384   :  { %4774 = vmatpush1.bf16.msra.mxu0 %v7438_v21  ;;  %4827 = vmatpush1.bf16.msra.mxu1 %v7441_v60  ;;  %v10622_v21 = vpop.f32.mrf.mxu1  ;;  %v7498_v60 = vld [vmem:[%s11219_s4 + $0x100] ss:$16 sps:$4 sm:$0xff]  }
 0x385   :  { %4775 = vmatprep.subr.bf16.mxu0 %v7446_v29  ;;  %4828 = vmatprep.subr.bf16.mxu1 %v7449_v44  ;;  %v7501_v29 = vld [vmem:[%s11219_s4 + $0x108] ss:$16 sps:$4 sm:$0xff]   ;;  %v7506_v44 = vld [vmem:[%s11219_s4 + $0x4e4] ss:$16 sps:$4 sm:$0xff]  }
 0x388   :  { %4776 = vmatpush1.bf16.msra.mxu0 %v7444_v3  ;;  %4829 = vmatpush1.bf16.msra.mxu1 %v7447_v56  ;;  %v7509_v3 = vld [vmem:[%s11219_s4 + $0x4ec] ss:$16 sps:$4 sm:$0xff]   ;;  %v10636_v56 = vpop.f32.mrf.mxu0 }
 0x389   :  { %4777 = vmatprep.subr.bf16.mxu0 %v7452_v37  ;;  %4830 = vmatprep.subr.bf16.mxu1 %v7455_v50  ;;  %v10638_v37 = vpop.f32.mrf.mxu1  ;;  %v7504_v50 = vld [vmem:[%s11219_s4 + $0x4e0] ss:$16 sps:$4 sm:$0xff]  }
 0x38c   :  { %4778 = vmatpush1.bf16.msra.mxu0 %v7450_v49  ;;  %4831 = vmatpush1.bf16.msra.mxu1 %v7453_v48  ;;  %v7507_v49 = vld [vmem:[%s11219_s4 + $0x4e8] ss:$16 sps:$4 sm:$0xff]   ;;  %v7512_v48 = vld [vmem:[%s11219_s4 + $0x4c4] ss:$16 sps:$4 sm:$0xff]  }
 0x38d   :  { %4779 = vmatprep.subr.bf16.mxu0 %v7458_v26  ;;  %4832 = vmatprep.subr.bf16.mxu1 %v7461_v41  ;;  %v7515_v26 = vld [vmem:[%s11219_s4 + $0x4cc] ss:$16 sps:$4 sm:$0xff]   ;;  %v10652_v41 = vpop.f32.mrf.mxu0 }
 0x390   :  { %4780 = vmatpush2.bf16.msra.mxu0 %v7456_v52  ;;  %4833 = vmatpush2.bf16.msra.mxu1 %v7459_v55  ;;  %v10654_v52 = vpop.f32.mrf.mxu1  ;;  %v10660_v55 = vpop.f32.mrf.mxu0 }
 0x391   :  { %4781 = vmatprep.subr.bf16.mxu0 %v7464_v28  ;;  %4834 = vmatprep.subr.bf16.mxu1 %v7467_v4  ;;  %v7510_v4 = vld [vmem:[%s11219_s4 + $0x4c0] ss:$16 sps:$4 sm:$0xff]  }
 0x392   :  { %v10662_v28 = vpop.f32.mrf.mxu1 }
 0x394   :  { %4782 = vmatpush2.bf16.msra.mxu0 %v7462_v13  ;;  %4835 = vmatpush2.bf16.msra.mxu1 %v7465_v20  ;;  %v7513_v13 = vld [vmem:[%s11219_s4 + $0x4c8] ss:$16 sps:$4 sm:$0xff]   ;;  %v10676_v20 = vpop.f32.mrf.mxu0 }
 0x395   :  { %4783 = vmatprep.subr.bf16.mxu0 %v7470_v9  ;;  %4836 = vmatprep.subr.bf16.mxu1 %v7473_v18  ;;  %v10678_v9 = vpop.f32.mrf.mxu1  ;;  %v7516_v18 = vld [vmem:[%s11219_s4 + $0x4a0] ss:$16 sps:$4 sm:$0xff]  }
 0x398   :  { %4784 = vmatpush2.bf16.msra.mxu0 %v7468_v38  ;;  %4837 = vmatpush2.bf16.msra.mxu1 %v7471_v32  ;;  %v7519_v38 = vld [vmem:[%s11219_s4 + $0x4a8] ss:$16 sps:$4 sm:$0xff]   ;;  %v1817_v32 = vpack.c.bf16 %v9722_v35, %v9706_v43  ;;  %v7522_v43 = vld [vmem:[%s11219_s4 + $0x480] ss:$16 sps:$4 sm:$0xff]  }
 0x399   :  { %4785 = vmatprep.subr.bf16.mxu0 %v7476_v1  ;;  %4838 = vmatprep.subr.bf16.mxu1 %v7479_v25  ;;  %v7524_v1 = vld [vmem:[%s11219_s4 + $0x484] ss:$16 sps:$4 sm:$0xff]   ;;  %v7527_v25 = vld [vmem:[%s11219_s4 + $0x48c] ss:$16 sps:$4 sm:$0xff]   ;;  %v7525_v35 = vld [vmem:[%s11219_s4 + $0x488] ss:$16 sps:$4 sm:$0xff]  }
 0x39c   :  { %4786 = vmatpush2.bf16.msra.mxu0 %v7474_v36  ;;  %4839 = vmatpush2.bf16.msra.mxu1 %v7477_v47  ;;  %v10696_v36 = vpop.f32.mrf.mxu0  ;;  %v10698_v47 = vpop.f32.mrf.mxu1 }
 0x39d   :  { %4787 = vmatprep.subr.bf16.mxu0 %v7482_v63  ;;  %4840 = vmatprep.subr.bf16.mxu1 %v7485_v33  ;;  %v7533_v63 = vld [vmem:[%s11219_s4 + $0x46c] ss:$16 sps:$4 sm:$0xff]  }
 0x39e   :  { %v10712_v33 = vpop.f32.mrf.mxu0 }
 0x3a0   :  { %4788 = vmatpush2.bf16.msra.mxu0 %v7480_v46  ;;  %4841 = vmatpush2.bf16.msra.mxu1 %v7483_v61  ;;  %v10714_v46 = vpop.f32.mrf.mxu1  ;;  %v7528_v61 = vld [vmem:[%s11219_s4 + $0x460] ss:$16 sps:$4 sm:$0xff]  }
 0x3a1   :  { %4789 = vmatprep.subr.bf16.mxu0 %v7488_v0  ;;  %4842 = vmatprep.subr.bf16.mxu1 %v7491_v2  ;;  %v7531_v0 = vld [vmem:[%s11219_s4 + $0x468] ss:$16 sps:$4 sm:$0xff]   ;;  %v7536_v2 = vld [vmem:[%s11219_s4 + $0x444] ss:$16 sps:$4 sm:$0xff]  }
 0x3a4   :  { %4790 = vmatpush2.bf16.msra.mxu0 %v7486_v22  ;;  %4843 = vmatpush2.bf16.msra.mxu1 %v7489_v57  ;;  %v7539_v22 = vld [vmem:[%s11219_s4 + $0x44c] ss:$16 sps:$4 sm:$0xff]   ;;  %v10728_v57 = vpop.f32.mrf.mxu0 }
 0x3a5   :  { %4791 = vmatprep.subr.bf16.mxu0 %v7494_v5  ;;  %4844 = vmatprep.subr.bf16.mxu1 %v7497_v10  ;;  %v10730_v5 = vpop.f32.mrf.mxu1  ;;  %v7534_v10 = vld [vmem:[%s11219_s4 + $0x440] ss:$16 sps:$4 sm:$0xff]  }
 0x3a8   :  { %4792 = vmatpush2.bf16.msra.mxu0 %v7492_v8  ;;  %4845 = vmatpush2.bf16.msra.mxu1 %v7495_v15  ;;  %v7537_v8 = vld [vmem:[%s11219_s4 + $0x448] ss:$16 sps:$4 sm:$0xff]   ;;  %v7542_v15 = vld [vmem:[%s11219_s4 + $0x424] ss:$16 sps:$4 sm:$0xff]  }
 0x3a9   :  { %4793 = vmatprep.subr.bf16.mxu0 %v7500_v24  ;;  %4846 = vmatprep.subr.bf16.mxu1 %v7503_v54  ;;  %v7545_v24 = vld [vmem:[%s11219_s4 + $0x42c] ss:$16 sps:$4 sm:$0xff]   ;;  %v10744_v54 = vpop.f32.mrf.mxu0 }
 0x3ac   :  { %4794 = vmatpush2.bf16.msra.mxu0 %v7498_v60  ;;  %4847 = vmatpush2.bf16.msra.mxu1 %v7501_v29  ;;  %v10746_v60 = vpop.f32.mrf.mxu1  ;;  %v7540_v29 = vld [vmem:[%s11219_s4 + $0x420] ss:$16 sps:$4 sm:$0xff]  }
 0x3ad   :  { %5253 = vmatprep.subr.bf16.mxu0 %v7506_v44  ;;  %5306 = vmatprep.subr.bf16.mxu1 %v7509_v3  ;;  %v7543_v44 = vld [vmem:[%s11219_s4 + $0x428] ss:$16 sps:$4 sm:$0xff]   ;;  %v7548_v3 = vld [vmem:[%s11219_s4 + $0x404] ss:$16 sps:$4 sm:$0xff]  }
 0x3af   :  { %4796 = vmatmul.mubr.bf16.vlgmr.msra.gmra.mxu0 %v9592_v31  ;;  %4849 = vmatmul.mubr.bf16.vlgmr.msra.gmra.mxu1 %v9592_v31  ;;  %v7518_v31 = vld [vmem:[%s11219_s4 + $0x4a4] ss:$16 sps:$4 sm:$0xff]  }
 0x3b0   :  { %4805 = vmatprep.mubr.bf16.mxu0 %v9634_v51  ;;  %4858 = vmatprep.mubr.bf16.mxu1 %v9634_v51  ;;  %v7521_v51 = vld [vmem:[%s11219_s4 + $0x4ac] ss:$16 sps:$4 sm:$0xff]  }
 0x3b1   :  { %5254 = vmatpush1.bf16.msra.mxu0 %v7504_v50  ;;  %5307 = vmatpush1.bf16.msra.mxu1 %v7507_v49  ;;  %v7551_v50 = vld [vmem:[%s11219_s4 + $0x40c] ss:$16 sps:$4 sm:$0xff]   ;;  %v10760_v49 = vpop.f32.mrf.mxu0 }
 0x3b2   :  { %5255 = vmatprep.subr.bf16.mxu0 %v7512_v48  ;;  %5308 = vmatprep.subr.bf16.mxu1 %v7515_v26  ;;  %v10762_v48 = vpop.f32.mrf.mxu1  ;;  %v7546_v26 = vld [vmem:[%s11219_s4 + $0x400] ss:$16 sps:$4 sm:$0xff]  }
 0x3b5   :  { %5256 = vmatpush1.bf16.msra.mxu0 %v7510_v4  ;;  %5309 = vmatpush1.bf16.msra.mxu1 %v7513_v13  ;;  %v7549_v4 = vld [vmem:[%s11219_s4 + $0x408] ss:$16 sps:$4 sm:$0xff]   ;;  %v7554_v13 = vld [vmem:[%s11219_s4 + $0x5e4] ss:$16 sps:$4 sm:$0xff]  }
 0x3b6   :  { %5257 = vmatprep.subr.bf16.mxu0 %v7518_v31  ;;  %5310 = vmatprep.subr.bf16.mxu1 %v7521_v51  ;;  %v7557_v31 = vld [vmem:[%s11219_s4 + $0x5ec] ss:$16 sps:$4 sm:$0xff]   ;;  %v10776_v51 = vpop.f32.mrf.mxu0 }
 0x3b7   :  { %4806 = vmatmul.mubr.bf16.gmra.mxu0 %v9620_v62  ;;  %4859 = vmatmul.mubr.bf16.gmra.mxu1 %v9620_v62  ;;  %v7530_v62 = vld [vmem:[%s11219_s4 + $0x464] ss:$16 sps:$4 sm:$0xff]  }
 0x3b8   :  { %5285 = vmatprep.mubr.bf16.mxu0 %v1817_v32  ;;  %5338 = vmatprep.mubr.bf16.mxu1 %v1817_v32  ;;  %v7555_v32 = vld [vmem:[%s11219_s4 + $0x5e8] ss:$16 sps:$4 sm:$0xff]  }
 0x3b9   :  { %5258 = vmatpush1.bf16.msra.mxu0 %v7516_v18  ;;  %5311 = vmatpush1.bf16.msra.mxu1 %v7519_v38  ;;  %v10778_v18 = vpop.f32.mrf.mxu1  ;;  %v7552_v38 = vld [vmem:[%s11219_s4 + $0x5e0] ss:$16 sps:$4 sm:$0xff]  }
 0x3ba   :  { %5259 = vmatprep.subr.bf16.mxu0 %v7524_v1  ;;  %5312 = vmatprep.subr.bf16.mxu1 %v7527_v25  ;;  %v7560_v1 = vld [vmem:[%s11219_s4 + $0x5c4] ss:$16 sps:$4 sm:$0xff]   ;;  %v7563_v25 = vld [vmem:[%s11219_s4 + $0x5cc] ss:$16 sps:$4 sm:$0xff]  }
 0x3bd   :  { %5260 = vmatpush1.bf16.msra.mxu0 %v7522_v43  ;;  %5313 = vmatpush1.bf16.msra.mxu1 %v7525_v35  ;;  %v10792_v43 = vpop.f32.mrf.mxu0  ;;  %v10794_v35 = vpop.f32.mrf.mxu1 }
 0x3be   :  { %5261 = vmatprep.subr.bf16.mxu0 %v7530_v62  ;;  %5314 = vmatprep.subr.bf16.mxu1 %v7533_v63  ;;  %v7558_v62 = vld [vmem:[%s11219_s4 + $0x5c0] ss:$16 sps:$4 sm:$0xff]   ;;  %v7561_v63 = vld [vmem:[%s11219_s4 + $0x5c8] ss:$16 sps:$4 sm:$0xff]  }
 0x3c1   :  { %5262 = vmatpush1.bf16.msra.mxu0 %v7528_v61  ;;  %5315 = vmatpush1.bf16.msra.mxu1 %v7531_v0  ;;  %v7566_v61 = vld [vmem:[%s11219_s4 + $0x5a4] ss:$16 sps:$4 sm:$0xff]   ;;  %v7569_v0 = vld [vmem:[%s11219_s4 + $0x5ac] ss:$16 sps:$4 sm:$0xff]  }
 0x3c2   :  { %5263 = vmatprep.subr.bf16.mxu0 %v7536_v2  ;;  %5316 = vmatprep.subr.bf16.mxu1 %v7539_v22  ;;  %v10808_v2 = vpop.f32.mrf.mxu0  ;;  %v10810_v22 = vpop.f32.mrf.mxu1 }
 0x3c5   :  { %5264 = vmatpush1.bf16.msra.mxu0 %v7534_v10  ;;  %5317 = vmatpush1.bf16.msra.mxu1 %v7537_v8  ;;  %v7564_v10 = vld [vmem:[%s11219_s4 + $0x5a0] ss:$16 sps:$4 sm:$0xff]   ;;  %v7567_v8 = vld [vmem:[%s11219_s4 + $0x5a8] ss:$16 sps:$4 sm:$0xff]  }
 0x3c6   :  { %5265 = vmatprep.subr.bf16.mxu0 %v7542_v15  ;;  %5318 = vmatprep.subr.bf16.mxu1 %v7545_v24  ;;  %v7572_v15 = vld [vmem:[%s11219_s4 + $0x584] ss:$16 sps:$4 sm:$0xff]   ;;  %v7575_v24 = vld [vmem:[%s11219_s4 + $0x58c] ss:$16 sps:$4 sm:$0xff]  }
 0x3c9   :  { %5266 = vmatpush1.bf16.msra.mxu0 %v7540_v29  ;;  %5319 = vmatpush1.bf16.msra.mxu1 %v7543_v44  ;;  %v10824_v29 = vpop.f32.mrf.mxu0  ;;  %v10826_v44 = vpop.f32.mrf.mxu1 }
 0x3ca   :  { %5267 = vmatprep.subr.bf16.mxu0 %v7548_v3  ;;  %5320 = vmatprep.subr.bf16.mxu1 %v7551_v50  ;;  %v7570_v3 = vld [vmem:[%s11219_s4 + $0x580] ss:$16 sps:$4 sm:$0xff]   ;;  %v7573_v50 = vld [vmem:[%s11219_s4 + $0x588] ss:$16 sps:$4 sm:$0xff]  }
 0x3cd   :  { %5268 = vmatpush1.bf16.msra.mxu0 %v7546_v26  ;;  %5321 = vmatpush1.bf16.msra.mxu1 %v7549_v4  ;;  %v7578_v26 = vld [vmem:[%s11219_s4 + $0x564] ss:$16 sps:$4 sm:$0xff]   ;;  %v7581_v4 = vld [vmem:[%s11219_s4 + $0x56c] ss:$16 sps:$4 sm:$0xff]  }
 0x3ce   :  { %5269 = vmatprep.subr.bf16.mxu0 %v7554_v13  ;;  %5322 = vmatprep.subr.bf16.mxu1 %v7557_v31  ;;  %v10840_v13 = vpop.f32.mrf.mxu0  ;;  %v10842_v31 = vpop.f32.mrf.mxu1 }
 0x3d1   :  { %5270 = vmatpush2.bf16.msra.mxu0 %v7552_v38  ;;  %5323 = vmatpush2.bf16.msra.mxu1 %v7555_v32  ;;  %v7576_v38 = vld [vmem:[%s11219_s4 + $0x560] ss:$16 sps:$4 sm:$0xff]   ;;  %v7579_v32 = vld [vmem:[%s11219_s4 + $0x568] ss:$16 sps:$4 sm:$0xff]  }
 0x3d2   :  { %5271 = vmatprep.subr.bf16.mxu0 %v7560_v1  ;;  %5324 = vmatprep.subr.bf16.mxu1 %v7563_v25  ;;  %v7584_v1 = vld [vmem:[%s11219_s4 + $0x544] ss:$16 sps:$4 sm:$0xff]   ;;  %v7587_v25 = vld [vmem:[%s11219_s4 + $0x54c] ss:$16 sps:$4 sm:$0xff]  }
 0x3d5   :  { %5272 = vmatpush2.bf16.msra.mxu0 %v7558_v62  ;;  %5325 = vmatpush2.bf16.msra.mxu1 %v7561_v63  ;;  %v10856_v62 = vpop.f32.mrf.mxu0  ;;  %v10858_v63 = vpop.f32.mrf.mxu1 }
 0x3d6   :  { %5273 = vmatprep.subr.bf16.mxu0 %v7566_v61  ;;  %5326 = vmatprep.subr.bf16.mxu1 %v7569_v0  ;;  %v7582_v61 = vld [vmem:[%s11219_s4 + $0x540] ss:$16 sps:$4 sm:$0xff]   ;;  %v7585_v0 = vld [vmem:[%s11219_s4 + $0x548] ss:$16 sps:$4 sm:$0xff]  }
 0x3d9   :  { %5274 = vmatpush2.bf16.msra.mxu0 %v7564_v10  ;;  %5327 = vmatpush2.bf16.msra.mxu1 %v7567_v8  ;;  %v7590_v10 = vld [vmem:[%s11219_s4 + $0x524] ss:$16 sps:$4 sm:$0xff]   ;;  %v7593_v8 = vld [vmem:[%s11219_s4 + $0x52c] ss:$16 sps:$4 sm:$0xff]  }
 0x3da   :  { %5275 = vmatprep.subr.bf16.mxu0 %v7572_v15  ;;  %5328 = vmatprep.subr.bf16.mxu1 %v7575_v24  ;;  %v10872_v15 = vpop.f32.mrf.mxu0  ;;  %v10874_v24 = vpop.f32.mrf.mxu1 }
 0x3dd   :  { %5276 = vmatpush2.bf16.msra.mxu0 %v7570_v3  ;;  %5329 = vmatpush2.bf16.msra.mxu1 %v7573_v50  ;;  %v7588_v3 = vld [vmem:[%s11219_s4 + $0x520] ss:$16 sps:$4 sm:$0xff]   ;;  %v7591_v50 = vld [vmem:[%s11219_s4 + $0x528] ss:$16 sps:$4 sm:$0xff]  }
 0x3de   :  { %5277 = vmatprep.subr.bf16.mxu0 %v7578_v26  ;;  %5330 = vmatprep.subr.bf16.mxu1 %v7581_v4  ;;  %v7596_v26 = vld [vmem:[%s11219_s4 + $0x504] ss:$16 sps:$4 sm:$0xff]   ;;  %v7599_v4 = vld [vmem:[%s11219_s4 + $0x50c] ss:$16 sps:$4 sm:$0xff]  }
 0x3e1   :  { %5278 = vmatpush2.bf16.msra.mxu0 %v7576_v38  ;;  %5331 = vmatpush2.bf16.msra.mxu1 %v7579_v32  ;;  %v10888_v38 = vpop.f32.mrf.mxu0  ;;  %v10890_v32 = vpop.f32.mrf.mxu1 }
 0x3e2   :  { %5279 = vmatprep.subr.bf16.mxu0 %v7584_v1  ;;  %5332 = vmatprep.subr.bf16.mxu1 %v7587_v25  ;;  %v7594_v1 = vld [vmem:[%s11219_s4 + $0x500] ss:$16 sps:$4 sm:$0xff]   ;;  %v7597_v25 = vld [vmem:[%s11219_s4 + $0x508] ss:$16 sps:$4 sm:$0xff]  }
 0x3e5   :  { %5280 = vmatpush2.bf16.msra.mxu0 %v7582_v61  ;;  %5333 = vmatpush2.bf16.msra.mxu1 %v7585_v0  ;;  %v2744_v61 = vadd.f32 %v10660_v55, %v10546_v58  ;;  %v2797_v0 = vadd.f32 %v10662_v28, %v10548_v39  ;;  %v2748_v58 = vadd.f32 %v10696_v36, %v10578_v42  ;;  %v10916_v55 = vpop.f32.mrf.mxu0  ;;  %v10918_v28 = vpop.f32.mrf.mxu1 }
 0x3e6   :  { %5281 = vmatprep.subr.bf16.mxu0 %v7590_v10  ;;  %5334 = vmatprep.subr.bf16.mxu1 %v7593_v8  ;;  %v7602_v10 = vld [vmem:[%s11219_s4 + $0x6e4] ss:$16 sps:$4 sm:$0xff]   ;;  %v7605_v8 = vld [vmem:[%s11219_s4 + $0x6ec] ss:$16 sps:$4 sm:$0xff]   ;;  %v2801_v39 = vadd.f32 %v10698_v47, %v10580_v14  ;;  %v2754_v42 = vadd.f32 %v10728_v57, %v10604_v34  ;;  %v2807_v14 = vadd.f32 %v10730_v5, %v10606_v6  ;;  %v7603_v34 = vld [vmem:[%s11219_s4 + $0x6e8] ss:$16 sps:$4 sm:$0xff]  }
 0x3e7   :  { %v2756_v6 = vadd.f32 %v10744_v54, %v10620_v23  ;;  %v2758_v57 = vadd.f32 %v10760_v49, %v10636_v56  ;;  %v3310_v5 = vadd.f32 %v10824_v29, %v2748_v58 }
 0x3e8   :  { %v3312_v23 = vadd.f32 %v10826_v44, %v2801_v39 }
 0x3e9   :  { %5282 = vmatpush2.bf16.msra.mxu0 %v7588_v3  ;;  %5335 = vmatpush2.bf16.msra.mxu1 %v7591_v50  ;;  %v2746_v3 = vadd.f32 %v10676_v20, %v10562_v59  ;;  %v2799_v50 = vadd.f32 %v10678_v9, %v10564_v27  ;;  %v3306_v59 = vadd.f32 %v10792_v43, %v2744_v61 }
 0x3ea   :  { %5283 = vmatprep.subr.bf16.mxu0 %v7596_v26  ;;  %5336 = vmatprep.subr.bf16.mxu1 %v7599_v4  ;;  %v2750_v26 = vadd.f32 %v10712_v33, %v10594_v12  ;;  %v2803_v4 = vadd.f32 %v10714_v46, %v10596_v11  ;;  %v3308_v27 = vadd.f32 %v10794_v35, %v2797_v0  ;;  %v7600_v33 = vld [vmem:[%s11219_s4 + $0x6e0] ss:$16 sps:$4 sm:$0xff]  }
 0x3eb   :  { %v3307_v20 = vadd.f32 %v10808_v2, %v2746_v3  ;;  %v3309_v12 = vadd.f32 %v10810_v22, %v2799_v50  ;;  %v2809_v46 = vadd.f32 %v10746_v60, %v10622_v21  ;;  %v7608_v2 = vld [vmem:[%s11219_s4 + $0x6c4] ss:$16 sps:$4 sm:$0xff]   ;;  %v7611_v22 = vld [vmem:[%s11219_s4 + $0x6cc] ss:$16 sps:$4 sm:$0xff]   ;;  %v2813_v0 = vadd.f32 %v10778_v18, %v10654_v52 }
 0x3ec   :  { %v3311_v54 = vadd.f32 %v10840_v13, %v2750_v26  ;;  %v3313_v60 = vadd.f32 %v10842_v31, %v2803_v4  ;;  %v7609_v13 = vld [vmem:[%s11219_s4 + $0x6c8] ss:$16 sps:$4 sm:$0xff]   ;;  %v2811_v31 = vadd.f32 %v10762_v48, %v10638_v37  ;;  %v7614_v3 = vld [vmem:[%s11219_s4 + $0x6a4] ss:$16 sps:$4 sm:$0xff]   ;;  %v7617_v50 = vld [vmem:[%s11219_s4 + $0x6ac] ss:$16 sps:$4 sm:$0xff]   ;;  %v3314_v37 = vadd.f32 %v10856_v62, %v2754_v42 }
 0x3ed   :  { %5284 = vmatpush2.bf16.msra.mxu0 %v7594_v1  ;;  %5337 = vmatpush2.bf16.msra.mxu1 %v7597_v25  ;;  %v3741_v9 = vpop.f32.mrf.mxu0  ;;  %v3794_v36 = vpop.f32.mrf.mxu1  ;;  %v3315_v52 = vadd.f32 %v10872_v15, %v2756_v6  ;;  %v3317_v18 = vadd.f32 %v10874_v24, %v2809_v46  ;;  %v3318_v39 = vadd.f32 %v10888_v38, %v2758_v57  ;;  %v7612_v42 = vld [vmem:[%s11219_s4 + $0x6a0] ss:$16 sps:$4 sm:$0xff]  }
 0x3ee   :  { %v3813_v47 = vadd.f32 %v3741_v9, %v3306_v59  ;;  %v3815_v11 = vadd.f32 %v3794_v36, %v3308_v27  ;;  %5759 = vmatprep.subr.bf16.mxu0 %v7602_v10  ;;  %5812 = vmatprep.subr.bf16.mxu1 %v7605_v8  ;;  %v10981_v59 = vpop.permute.xlu0 %3843  ;;  %v3320_v15 = vadd.f32 %v10890_v32, %v2811_v31  ;;  %v7620_v36 = vld [vmem:[%s11219_s4 + $0x684] ss:$16 sps:$4 sm:$0xff]  }
 0x3ef   :  { %v3743_v43 = vpop.f32.mrf.mxu0  ;;  %v3796_v35 = vpop.f32.mrf.mxu1  ;;  %11451 = vst [vmem:[#allocation13_spill] sm:$0xff] %v10981_v59  ;;  %v3321_v6 = vadd.f32 %v10918_v28, %v2813_v0  ;;  %v7632_v31 = vld [vmem:[%s11219_s4 + $0x644] ss:$16 sps:$4 sm:$0xff]  }
 0x3f0   :  { %5286 = vmatmul.mubr.bf16.vlgmr.msra.gmra.mxu0 %v9714_v7  ;;  %5339 = vmatmul.mubr.bf16.vlgmr.msra.gmra.mxu1 %v9714_v7  ;;  %v3814_v21 = vadd.f32 %v3743_v43, %v3307_v20  ;;  %v3816_v56 = vadd.f32 %v3796_v35, %v3309_v12  ;;  %v3829_v49 = vmax.f32 %v3813_v47, %v3815_v11  ;;  %v7606_v7 = vld [vmem:[%s11219_s4 + $0x6c0] ss:$16 sps:$4 sm:$0xff]   ;;  %v7623_v12 = vld [vmem:[%s11219_s4 + $0x68c] ss:$16 sps:$4 sm:$0xff]   ;;  %v10997_v47 = vpop.permute.xlu1 %3848 }
 0x3f1   :  { %5295 = vmatprep.mubr.bf16.mxu0 %v9756_v45  ;;  %5348 = vmatprep.mubr.bf16.mxu1 %v9756_v45  ;;  %v3745_v29 = vpop.f32.mrf.mxu0  ;;  %v3798_v1 = vpop.f32.mrf.mxu1  ;;  %v2760_v45 = vadd.f32 %v10776_v51, %v10652_v41  ;;  %v3316_v51 = vadd.f32 %v10858_v63, %v2807_v14  ;;  %v7615_v63 = vld [vmem:[%s11219_s4 + $0x6a8] ss:$16 sps:$4 sm:$0xff]   ;;  %11452 = vst [vmem:[#allocation17_spill] sm:$0xff] %v10997_v47 }
 0x3f2   :  { %5760 = vmatpush1.bf16.msra.mxu0 %v7600_v33  ;;  %5813 = vmatpush1.bf16.msra.mxu1 %v7603_v34  ;;  %v3830_v44 = vmax.f32 %v3814_v21, %v3816_v56  ;;  %v3817_v25 = vadd.f32 %v3745_v29, %v3310_v5  ;;  %v3819_v61 = vadd.f32 %v3798_v1, %v3312_v23  ;;  %v7626_v21 = vld [vmem:[%s11219_s4 + $0x664] ss:$16 sps:$4 sm:$0xff]   ;;  %v7629_v56 = vld [vmem:[%s11219_s4 + $0x66c] ss:$16 sps:$4 sm:$0xff]  }
 0x3f3   :  { %5761 = vmatprep.subr.bf16.mxu0 %v7608_v2  ;;  %5814 = vmatprep.subr.bf16.mxu1 %v7611_v22  ;;  %v3747_v10 = vpop.f32.mrf.mxu0  ;;  %v3800_v8 = vpop.f32.mrf.mxu1  ;;  %v3319_v34 = vadd.f32 %v10916_v55, %v2760_v45  ;;  %v7621_v55 = vld [vmem:[%s11219_s4 + $0x688] ss:$16 sps:$4 sm:$0xff]   ;;  %v7635_v45 = vld [vmem:[%s11219_s4 + $0x64c] ss:$16 sps:$4 sm:$0xff]  }
 0x3f4   :  { %v3837_v48 = vmax.f32 %v3829_v49, %v3830_v44  ;;  %v3818_v58 = vadd.f32 %v3747_v10, %v3311_v54  ;;  %v3820_v41 = vadd.f32 %v3800_v8, %v3313_v60  ;;  %v3831_v27 = vmax.f32 %v3817_v25, %v3819_v61  ;;  %v7624_v61 = vld [vmem:[%s11219_s4 + $0x660] ss:$16 sps:$4 sm:$0xff]   ;;  %v11036_v8 = vpop.permute.xlu1 %3858 }
 0x3f5   :  { %v3751_v26 = vpop.f32.mrf.mxu0  ;;  %v3804_v4 = vpop.f32.mrf.mxu1  ;;  %11454 = vst [vmem:[#allocation11_spill] sm:$0xff] %v11036_v8 }
 0x3f6   :  { %5762 = vmatpush1.bf16.msra.mxu0 %v7606_v7  ;;  %5815 = vmatpush1.bf16.msra.mxu1 %v7609_v13  ;;  %v3832_v20 = vmax.f32 %v3818_v58, %v3820_v41  ;;  %v3821_v62 = vadd.f32 %v3751_v26, %v3314_v37  ;;  %v3861_v24 = vadd.f32 %v10981_v59, %v3837_v48  ;;  %v7627_v7 = vld [vmem:[%s11219_s4 + $0x668] ss:$16 sps:$4 sm:$0xff]   ;;  %v11024_v13 = vpop.permute.xlu0 %3853  ;;  %v7638_v48 = vld [vmem:[%s11219_s4 + $0x624] ss:$16 sps:$4 sm:$0xff]   ;;  %v7641_v58 = vld [vmem:[%s11219_s4 + $0x62c] ss:$16 sps:$4 sm:$0xff]  }
 0x3f7   :  { %v3823_v38 = vadd.f32 %v3804_v4, %v3316_v51  ;;  %5763 = vmatprep.subr.bf16.mxu0 %v7614_v3  ;;  %5816 = vmatprep.subr.bf16.mxu1 %v7617_v50  ;;  %v3753_v14 = vpop.f32.mrf.mxu0  ;;  %v3806_v9 = vpop.f32.mrf.mxu1  ;;  %11453 = vst [vmem:[#allocation10_spill] sm:$0xff] %v11024_v13  ;;  %v7630_v50 = vld [vmem:[%s11219_s4 + $0x640] ss:$16 sps:$4 sm:$0xff]   ;;  %v7633_v37 = vld [vmem:[%s11219_s4 + $0x648] ss:$16 sps:$4 sm:$0xff]  }
 0x3f8   :  { %v3838_v11 = vmax.f32 %v3831_v27, %v3832_v20  ;;  %5296 = vmatmul.mubr.bf16.gmra.mxu0 %v9742_v16  ;;  %5349 = vmatmul.mubr.bf16.gmra.mxu1 %v9742_v16  ;;  %v3822_v32 = vadd.f32 %v3753_v14, %v3315_v52  ;;  %v3824_v33 = vadd.f32 %v3806_v9, %v3317_v18  ;;  %v7618_v16 = vld [vmem:[%s11219_s4 + $0x680] ss:$16 sps:$4 sm:$0xff]   ;;  %v3865_v28 = vmax.f32 %v3861_v24, 0.0  ;;  %v7644_v26 = vld [vmem:[%s11219_s4 + $0x604] ss:$16 sps:$4 sm:$0xff]  }
 0x3f9   :  { %v3833_v46 = vmax.f32 %v3821_v62, %v3823_v38  ;;  %5791 = vmatprep.mubr.bf16.mxu0 %v9784_v30  ;;  %5844 = vmatprep.mubr.bf16.mxu1 %v9784_v30  ;;  %v3755_v57 = vpop.f32.mrf.mxu0  ;;  %v3808_v5 = vpop.f32.mrf.mxu1  ;;  %v7636_v18 = vld [vmem:[%s11219_s4 + $0x620] ss:$16 sps:$4 sm:$0xff]   ;;  %v7647_v4 = vld [vmem:[%s11219_s4 + $0x60c] ss:$16 sps:$4 sm:$0xff]   ;;  %v7645_v20 = vld [vmem:[%s11219_s4 + $0x608] ss:$16 sps:$4 sm:$0xff]  }
 0x3fa   :  { %v3862_v43 = vadd.f32 %v10997_v47, %v3838_v11  ;;  %5764 = vmatpush1.bf16.msra.mxu0 %v7612_v42  ;;  %5817 = vmatpush1.bf16.msra.mxu1 %v7615_v63  ;;  %v3834_v35 = vmax.f32 %v3822_v32, %v3824_v33  ;;  %v3825_v2 = vadd.f32 %v3755_v57, %v3318_v39  ;;  %v7639_v39 = vld [vmem:[%s11219_s4 + $0x628] ss:$16 sps:$4 sm:$0xff]   ;;  %v7642_v27 = vld [vmem:[%s11219_s4 + $0x600] ss:$16 sps:$4 sm:$0xff]   ;;  %v7650_v62 = vld [vmem:[%s11219_s4 + $0x7e4] ss:$16 sps:$4 sm:$0xff]  }
 0x3fb   :  { %v3827_v22 = vadd.f32 %v3808_v5, %v3320_v15  ;;  %5765 = vmatprep.subr.bf16.mxu0 %v7620_v36  ;;  %5818 = vmatprep.subr.bf16.mxu1 %v7623_v12  ;;  %v3757_v30 = vpop.f32.mrf.mxu0  ;;  %v3810_v23 = vpop.f32.mrf.mxu1  ;;  %v7653_v42 = vld [vmem:[%s11219_s4 + $0x7ec] ss:$16 sps:$4 sm:$0xff]   ;;  %v7648_v63 = vld [vmem:[%s11219_s4 + $0x7e0] ss:$16 sps:$4 sm:$0xff]   ;;  %v7651_v15 = vld [vmem:[%s11219_s4 + $0x7e8] ss:$16 sps:$4 sm:$0xff]  }
 0x3fc   :  { %v3866_v54 = vmax.f32 %v3862_v43, 0.0  ;;  %v3839_v60 = vmax.f32 %v3833_v46, %v3834_v35  ;;  %v3826_v49 = vadd.f32 %v3757_v30, %v3319_v34  ;;  %v3828_v29 = vadd.f32 %v3810_v23, %v3321_v6  ;;  %v7656_v24 = vld [vmem:[%s11219_s4 + $0x7c4] ss:$16 sps:$4 sm:$0xff]   ;;  %v7659_v38 = vld [vmem:[%s11219_s4 + $0x7cc] ss:$16 sps:$4 sm:$0xff]  }
 0x3fd   :  { %v3835_v44 = vmax.f32 %v3825_v2, %v3827_v22  ;;  %v7654_v14 = vld [vmem:[%s11219_s4 + $0x7c0] ss:$16 sps:$4 sm:$0xff]   ;;  %v7657_v9 = vld [vmem:[%s11219_s4 + $0x7c8] ss:$16 sps:$4 sm:$0xff]   ;;  %v7662_v36 = vld [vmem:[%s11219_s4 + $0x7a4] ss:$16 sps:$4 sm:$0xff]  }
 0x3fe   :  { %v6897_v1 = vpack.c.bf16 %v3866_v54, %v3865_v28  ;;  %5766 = vmatpush1.bf16.msra.mxu0 %v7618_v16  ;;  %5819 = vmatpush1.bf16.msra.mxu1 %v7621_v55  ;;  %v3836_v25 = vmax.f32 %v3826_v49, %v3828_v29  ;;  %v3863_v0 = vadd.f32 %v11024_v13, %v3839_v60  ;;  %v7665_v12 = vld [vmem:[%s11219_s4 + $0x7ac] ss:$16 sps:$4 sm:$0xff]   ;;  %v7660_v11 = vld [vmem:[%s11219_s4 + $0x7a0] ss:$16 sps:$4 sm:$0xff]   ;;  %v7663_v32 = vld [vmem:[%s11219_s4 + $0x7a8] ss:$16 sps:$4 sm:$0xff]  }
 0x3ff   :  { %5767 = vmatprep.subr.bf16.mxu0 %v7626_v21  ;;  %5820 = vmatprep.subr.bf16.mxu1 %v7629_v56  ;;  %v7668_v33 = vld [vmem:[%s11219_s4 + $0x784] ss:$16 sps:$4 sm:$0xff]   ;;  %v7671_v34 = vld [vmem:[%s11219_s4 + $0x78c] ss:$16 sps:$4 sm:$0xff]   ;;  %v7666_v6 = vld [vmem:[%s11219_s4 + $0x780] ss:$16 sps:$4 sm:$0xff]   ;;  %v1829_v29 = vpack.c.bf16 %v10538_v17, %v9800_v40 }
 0x400   :  { %6898 = vst [vmem:[%s11220_s6] sm:$0xff] %v6897_v1   ;;  %v3840_v10 = vmax.f32 %v3835_v44, %v3836_v25  ;;  %v3867_v41 = vmax.f32 %v3863_v0, 0.0  ;;  %v7669_v46 = vld [vmem:[%s11219_s4 + $0x788] ss:$16 sps:$4 sm:$0xff]   ;;  %v7674_v57 = vld [vmem:[%s11219_s4 + $0x764] ss:$16 sps:$4 sm:$0xff]  }
 0x401   :  { %v7677_v5 = vld [vmem:[%s11219_s4 + $0x76c] ss:$16 sps:$4 sm:$0xff]   ;;  %v7672_v43 = vld [vmem:[%s11219_s4 + $0x760] ss:$16 sps:$4 sm:$0xff]   ;;  %v7675_v35 = vld [vmem:[%s11219_s4 + $0x768] ss:$16 sps:$4 sm:$0xff]  }
 0x402   :  { %v3864_v3 = vadd.f32 %v11036_v8, %v3840_v10  ;;  %5768 = vmatpush1.bf16.msra.mxu0 %v7624_v61  ;;  %5821 = vmatpush1.bf16.msra.mxu1 %v7627_v7  ;;  %v7680_v2 = vld [vmem:[%s11219_s4 + $0x744] ss:$16 sps:$4 sm:$0xff]   ;;  %v7683_v16 = vld [vmem:[%s11219_s4 + $0x74c] ss:$16 sps:$4 sm:$0xff]   ;;  %v7678_v55 = vld [vmem:[%s11219_s4 + $0x740] ss:$16 sps:$4 sm:$0xff]  }
 0x403   :  { %5769 = vmatprep.subr.bf16.mxu0 %v7632_v31  ;;  %5822 = vmatprep.subr.bf16.mxu1 %v7635_v45  ;;  %v7681_v28 = vld [vmem:[%s11219_s4 + $0x748] ss:$16 sps:$4 sm:$0xff]   ;;  %v7686_v22 = vld [vmem:[%s11219_s4 + $0x724] ss:$16 sps:$4 sm:$0xff]   ;;  %v7689_v30 = vld [vmem:[%s11219_s4 + $0x72c] ss:$16 sps:$4 sm:$0xff]  }
 0x404   :  { %v3868_v51 = vmax.f32 %v3864_v3, 0.0  ;;  %v7684_v23 = vld [vmem:[%s11219_s4 + $0x720] ss:$16 sps:$4 sm:$0xff]   ;;  %v7687_v21 = vld [vmem:[%s11219_s4 + $0x728] ss:$16 sps:$4 sm:$0xff]  }
 0x405   :  { %v7692_v56 = vld [vmem:[%s11219_s4 + $0x704] ss:$16 sps:$4 sm:$0xff]   ;;  %v7695_v54 = vld [vmem:[%s11219_s4 + $0x70c] ss:$16 sps:$4 sm:$0xff]   ;;  %v7690_v60 = vld [vmem:[%s11219_s4 + $0x700] ss:$16 sps:$4 sm:$0xff]  }
 0x406   :  { %v6902_v52 = vpack.c.bf16 %v3868_v51, %v3867_v41  ;;  %5770 = vmatpush1.bf16.msra.mxu0 %v7630_v50  ;;  %5823 = vmatpush1.bf16.msra.mxu1 %v7633_v37  ;;  %v7693_v49 = vld [vmem:[%s11219_s4 + $0x708] ss:$16 sps:$4 sm:$0xff]  }
 0x407   :  { %5771 = vmatprep.subr.bf16.mxu0 %v7638_v48  ;;  %5824 = vmatprep.subr.bf16.mxu1 %v7641_v58 }
 0x408   :  { %6914 = vst [vmem:[%s11220_s6 + $0x8] sm:$0xff] %v6902_v52  }
 0x40a   :  { %5772 = vmatpush1.bf16.msra.mxu0 %v7636_v18  ;;  %5825 = vmatpush1.bf16.msra.mxu1 %v7639_v39 }
 0x40b   :  { %5773 = vmatprep.subr.bf16.mxu0 %v7644_v26  ;;  %5826 = vmatprep.subr.bf16.mxu1 %v7647_v4 }
 0x40e   :  { %5774 = vmatpush1.bf16.msra.mxu0 %v7642_v27  ;;  %5827 = vmatpush1.bf16.msra.mxu1 %v7645_v20 }
 0x40f   :  { %5775 = vmatprep.subr.bf16.mxu0 %v7650_v62  ;;  %5828 = vmatprep.subr.bf16.mxu1 %v7653_v42 }
 0x412   :  { %5776 = vmatpush2.bf16.msra.mxu0 %v7648_v63  ;;  %5829 = vmatpush2.bf16.msra.mxu1 %v7651_v15 }
 0x413   :  { %5777 = vmatprep.subr.bf16.mxu0 %v7656_v24  ;;  %5830 = vmatprep.subr.bf16.mxu1 %v7659_v38 }
 0x416   :  { %5778 = vmatpush2.bf16.msra.mxu0 %v7654_v14  ;;  %5831 = vmatpush2.bf16.msra.mxu1 %v7657_v9 }
 0x417   :  { %5779 = vmatprep.subr.bf16.mxu0 %v7662_v36  ;;  %5832 = vmatprep.subr.bf16.mxu1 %v7665_v12 }
 0x41a   :  { %5780 = vmatpush2.bf16.msra.mxu0 %v7660_v11  ;;  %5833 = vmatpush2.bf16.msra.mxu1 %v7663_v32 }
 0x41b   :  { %5781 = vmatprep.subr.bf16.mxu0 %v7668_v33  ;;  %5834 = vmatprep.subr.bf16.mxu1 %v7671_v34 }
 0x41e   :  { %5782 = vmatpush2.bf16.msra.mxu0 %v7666_v6  ;;  %5835 = vmatpush2.bf16.msra.mxu1 %v7669_v46 }
 0x41f   :  { %5783 = vmatprep.subr.bf16.mxu0 %v7674_v57  ;;  %5836 = vmatprep.subr.bf16.mxu1 %v7677_v5 }
 0x422   :  { %5784 = vmatpush2.bf16.msra.mxu0 %v7672_v43  ;;  %5837 = vmatpush2.bf16.msra.mxu1 %v7675_v35 }
 0x423   :  { %5785 = vmatprep.subr.bf16.mxu0 %v7680_v2  ;;  %5838 = vmatprep.subr.bf16.mxu1 %v7683_v16 }
 0x426   :  { %5786 = vmatpush2.bf16.msra.mxu0 %v7678_v55  ;;  %5839 = vmatpush2.bf16.msra.mxu1 %v7681_v28 }
 0x427   :  { %5787 = vmatprep.subr.bf16.mxu0 %v7686_v22  ;;  %5840 = vmatprep.subr.bf16.mxu1 %v7689_v30 }
 0x42a   :  { %5788 = vmatpush2.bf16.msra.mxu0 %v7684_v23  ;;  %5841 = vmatpush2.bf16.msra.mxu1 %v7687_v21 }
 0x42b   :  { %5789 = vmatprep.subr.bf16.mxu0 %v7692_v56  ;;  %5842 = vmatprep.subr.bf16.mxu1 %v7695_v54 }
 0x42e   :  { %5790 = vmatpush2.bf16.msra.mxu0 %v7690_v60  ;;  %5843 = vmatpush2.bf16.msra.mxu1 %v7693_v49  ;;  %v4371_v1 = vpop.f32.mrf.mxu0  ;;  %v4424_v44 = vpop.f32.mrf.mxu1 }
 0x430   :  { %v4373_v25 = vpop.f32.mrf.mxu0  ;;  %v4426_v61 = vpop.f32.mrf.mxu1 }
 0x431   :  { %5792 = vmatmul.mubr.bf16.vlgmr.msra.gmra.mxu0 %v9782_v19  ;;  %5845 = vmatmul.mubr.bf16.vlgmr.msra.gmra.mxu1 %v9782_v19 }
 0x432   :  { %5801 = vmatprep.mubr.bf16.mxu0 %v1829_v29  ;;  %5854 = vmatprep.mubr.bf16.mxu1 %v1829_v29  ;;  %v4375_v7 = vpop.f32.mrf.mxu0  ;;  %v4428_v31 = vpop.f32.mrf.mxu1 }
 0x434   :  { %v4377_v45 = vpop.f32.mrf.mxu0  ;;  %v4430_v0 = vpop.f32.mrf.mxu1 }
 0x436   :  { %v11174_v10 = vpop.f32.mrf.mxu0  ;;  %v11176_v40 = vpop.f32.mrf.mxu1 }
 0x438   :  { %v11178_v17 = vpop.f32.mrf.mxu0  ;;  %v11180_v19 = vpop.f32.mrf.mxu1 }
 0x439   :  { %5802 = vmatmul.mubr.bf16.gmra.mxu0 %v9814_v53  ;;  %5855 = vmatmul.mubr.bf16.gmra.mxu1 %v9814_v53 }
 0x43a   :  { %v11182_v3 = vpop.f32.mrf.mxu0  ;;  %v11184_v50 = vpop.f32.mrf.mxu1 }
 0x43c   :  { %v11186_v53 = vpop.f32.mrf.mxu0  ;;  %v11188_v37 = vpop.f32.mrf.mxu1 }
 0x46f   :  { %v4797_v48 = vpop.f32.mrf.mxu0  ;;  %v4850_v58 = vpop.f32.mrf.mxu1 }
 0x470   :  { %v4798_v35 = vadd.f32 %v4797_v48, %v4371_v1  ;;  %v4851_v2 = vadd.f32 %v4850_v58, %v4424_v44 }
 0x471   :  { %v4799_v41 = vpop.f32.mrf.mxu0  ;;  %v4852_v51 = vpop.f32.mrf.mxu1 }
 0x472   :  { %v4800_v28 = vadd.f32 %v4799_v41, %v4373_v25  ;;  %v4853_v22 = vadd.f32 %v4852_v51, %v4426_v61 }
 0x473   :  { %v4801_v52 = vpop.f32.mrf.mxu0  ;;  %v4854_v18 = vpop.f32.mrf.mxu1 }
 0x474   :  { %v4802_v21 = vadd.f32 %v4801_v52, %v4375_v7  ;;  %v4855_v56 = vadd.f32 %v4854_v18, %v4428_v31 }
 0x475   :  { %v4803_v39 = vpop.f32.mrf.mxu0  ;;  %v4856_v26 = vpop.f32.mrf.mxu1 }
 0x476   :  { %v4804_v47 = vadd.f32 %v4803_v39, %v4377_v45  ;;  %v4857_v59 = vadd.f32 %v4856_v26, %v4430_v0 }
 0x477   :  { %v4807_v4 = vpop.f32.mrf.mxu0  ;;  %v4860_v27 = vpop.f32.mrf.mxu1 }
 0x479   :  { %v4809_v20 = vpop.f32.mrf.mxu0  ;;  %v4862_v62 = vpop.f32.mrf.mxu1 }
 0x47a   :  { %v4810_v45 = vadd.f32 %v4809_v20, %v11178_v17  ;;  %v4863_v0 = vadd.f32 %v4862_v62, %v11180_v19 }
 0x47b   :  { %v4811_v42 = vpop.f32.mrf.mxu0  ;;  %v4864_v63 = vpop.f32.mrf.mxu1 }
 0x47d   :  { %v4813_v15 = vpop.f32.mrf.mxu0  ;;  %v11190_v24 = vpop.f32.mrf.mxu1 }
 0x47e   :  { %11455 = vst [vmem:[#allocation22_spill] sm:$0xff] %v11190_v24 }
 0x4b0   :  { %v5287_v38 = vpop.f32.mrf.mxu0  ;;  %v5340_v14 = vpop.f32.mrf.mxu1 }
 0x4b1   :  { %v5359_v30 = vadd.f32 %v5287_v38, %v4798_v35  ;;  %v5361_v23 = vadd.f32 %v5340_v14, %v4851_v2  ;;  %v4808_v38 = vadd.f32 %v4807_v4, %v11174_v10  ;;  %v4861_v14 = vadd.f32 %v4860_v27, %v11176_v40  ;;  %v11457_v40 = vld [vmem:[#allocation22_spill] sm:$0xff] }
 0x4b2   :  { %v5289_v9 = vpop.f32.mrf.mxu0  ;;  %v5342_v36 = vpop.f32.mrf.mxu1  ;;  %v4867_v17 = vadd.f32 %v11457_v40, %v11188_v37 }
 0x4b3   :  { %v5360_v49 = vadd.f32 %v5289_v9, %v4800_v28  ;;  %v5362_v29 = vadd.f32 %v5342_v36, %v4853_v22 }
 0x4b4   :  { %v5291_v12 = vpop.f32.mrf.mxu0  ;;  %v5344_v11 = vpop.f32.mrf.mxu1 }
 0x4b5   :  { %v5363_v44 = vadd.f32 %v5291_v12, %v4802_v21  ;;  %v5365_v48 = vadd.f32 %v5344_v11, %v4855_v56 }
 0x4b6   :  { %v5293_v32 = vpop.f32.mrf.mxu0  ;;  %v5346_v33 = vpop.f32.mrf.mxu1 }
 0x4b7   :  { %v5364_v25 = vadd.f32 %v5293_v32, %v4804_v47  ;;  %v5366_v61 = vadd.f32 %v5346_v33, %v4857_v59 }
 0x4b8   :  { %v5297_v34 = vpop.f32.mrf.mxu0  ;;  %v5350_v6 = vpop.f32.mrf.mxu1 }
 0x4b9   :  { %v5367_v36 = vadd.f32 %v5297_v34, %v4808_v38  ;;  %v5369_v12 = vadd.f32 %v5350_v6, %v4861_v14 }
 0x4ba   :  { %v5299_v46 = vpop.f32.mrf.mxu0  ;;  %v5352_v57 = vpop.f32.mrf.mxu1 }
 0x4bb   :  { %v5368_v27 = vadd.f32 %v5299_v46, %v4810_v45  ;;  %v5370_v62 = vadd.f32 %v5352_v57, %v4863_v0  ;;  %v11460_v46 = vld [vmem:[#allocation17_spill] sm:$0xff] }
 0x4bc   :  { %v5301_v5 = vpop.f32.mrf.mxu0  ;;  %v5354_v43 = vpop.f32.mrf.mxu1 }
 0x4be   :  { %v5303_v16 = vpop.f32.mrf.mxu0  ;;  %v11192_v55 = vpop.f32.mrf.mxu1 }
 0x4bf   :  { %11456 = vst [vmem:[#allocation12_spill] sm:$0xff] %v11192_v55 }
 0x4c6   :  { %v11459_v28 = vld [vmem:[#allocation12_spill] sm:$0xff] }
 0x4c7   :  { %v5374_v37 = vadd.f32 %v11459_v28, %v4867_v17 }
 0x4f1   :  { %v5793_v54 = vpop.f32.mrf.mxu0  ;;  %v5846_v60 = vpop.f32.mrf.mxu1 }
 0x4f2   :  { %v5865_v8 = vadd.f32 %v5793_v54, %v5359_v30  ;;  %v5867_v13 = vadd.f32 %v5846_v60, %v5361_v23 }
 0x4f3   :  { %v5795_v24 = vpop.f32.mrf.mxu0  ;;  %v5848_v1 = vpop.f32.mrf.mxu1 }
 0x4f4   :  { %v5866_v58 = vadd.f32 %v5795_v24, %v5360_v49  ;;  %v5868_v55 = vadd.f32 %v5848_v1, %v5362_v29  ;;  %v5881_v7 = vmax.f32 %v5865_v8, %v5867_v13  ;;  %v4812_v24 = vadd.f32 %v4811_v42, %v11182_v3 }
 0x4f5   :  { %v5797_v41 = vpop.f32.mrf.mxu0  ;;  %v5850_v51 = vpop.f32.mrf.mxu1  ;;  %v4865_v13 = vadd.f32 %v4864_v63, %v11184_v50  ;;  %v4814_v8 = vadd.f32 %v4813_v15, %v11186_v53  ;;  %v11458_v50 = vld [vmem:[#allocation13_spill] sm:$0xff] }
 0x4f6   :  { %v5882_v31 = vmax.f32 %v5866_v58, %v5868_v55  ;;  %v5869_v52 = vadd.f32 %v5797_v41, %v5363_v44  ;;  %v5871_v18 = vadd.f32 %v5850_v51, %v5365_v48  ;;  %v5371_v11 = vadd.f32 %v5301_v5, %v4812_v24  ;;  %v11461_v48 = vld [vmem:[#allocation10_spill] sm:$0xff] }
 0x4f7   :  { %v5799_v39 = vpop.f32.mrf.mxu0  ;;  %v5852_v26 = vpop.f32.mrf.mxu1  ;;  %v5373_v35 = vadd.f32 %v5354_v43, %v4865_v13  ;;  %v5372_v34 = vadd.f32 %v5303_v16, %v4814_v8 }
 0x4f8   :  { %v5889_v47 = vmax.f32 %v5881_v7, %v5882_v31  ;;  %v5870_v59 = vadd.f32 %v5799_v39, %v5364_v25  ;;  %v5872_v9 = vadd.f32 %v5852_v26, %v5366_v61  ;;  %v5883_v19 = vmax.f32 %v5869_v52, %v5871_v18  ;;  %v11462_v61 = vld [vmem:[#allocation11_spill] sm:$0xff] }
 0x4f9   :  { %v5803_v10 = vpop.f32.mrf.mxu0  ;;  %v5856_v4 = vpop.f32.mrf.mxu1 }
 0x4fa   :  { %v5884_v20 = vmax.f32 %v5870_v59, %v5872_v9  ;;  %v5873_v3 = vadd.f32 %v5803_v10, %v5367_v36  ;;  %v5875_v42 = vadd.f32 %v5856_v4, %v5369_v12  ;;  %v5893_v63 = vadd.f32 %v5889_v47, %v11458_v50 }
 0x4fb   :  { %v5805_v32 = vpop.f32.mrf.mxu0  ;;  %v5858_v33 = vpop.f32.mrf.mxu1 }
 0x4fc   :  { %v5890_v53 = vmax.f32 %v5883_v19, %v5884_v20  ;;  %v5874_v15 = vadd.f32 %v5805_v32, %v5368_v27  ;;  %v5876_v6 = vadd.f32 %v5858_v33, %v5370_v62  ;;  %v5885_v5 = vmax.f32 %v5873_v3, %v5875_v42 }
 0x4fd   :  { %v5807_v2 = vpop.f32.mrf.mxu0  ;;  %v5860_v55 = vpop.f32.mrf.mxu1  ;;  %v5897_v54 = vmax.f32 %v5893_v63, 0.0 }
 0x4fe   :  { %v5894_v22 = vadd.f32 %v5890_v53, %v11460_v46  ;;  %v5877_v30 = vadd.f32 %v5807_v2, %v5371_v11  ;;  %v5879_v57 = vadd.f32 %v5860_v55, %v5373_v35  ;;  %v5886_v23 = vmax.f32 %v5874_v15, %v5876_v6 }
 0x4ff   :  { %v5809_v21 = vpop.f32.mrf.mxu0  ;;  %v5862_v56 = vpop.f32.mrf.mxu1 }
 0x500   :  { %v5898_v43 = vmax.f32 %v5894_v22, 0.0  ;;  %v5878_v60 = vadd.f32 %v5809_v21, %v5372_v34  ;;  %v5880_v49 = vadd.f32 %v5862_v56, %v5374_v37  ;;  %v5891_v29 = vmax.f32 %v5885_v5, %v5886_v23 }
 0x501   :  { %v5887_v16 = vmax.f32 %v5877_v30, %v5879_v57 }
 0x502   :  { %v6907_v1 = vpack.c.bf16 %v5898_v43, %v5897_v54  ;;  %v5888_v44 = vmax.f32 %v5878_v60, %v5880_v49  ;;  %v5895_v58 = vadd.f32 %v5891_v29, %v11461_v48 }
 0x504   :  { %6915 = vst [vmem:[%s11220_s6 + $0x10] sm:$0xff] %v6907_v1   ;;  %v5892_v25 = vmax.f32 %v5887_v16, %v5888_v44  ;;  %v5899_v51 = vmax.f32 %v5895_v58, 0.0 }
 0x506   :  { %v5896_v41 = vadd.f32 %v5892_v25, %v11462_v61 }
 0x508   :  { %v5900_v7 = vmax.f32 %v5896_v41, 0.0 }
 0x50a   :  { %v6912_v31 = vpack.c.bf16 %v5900_v7, %v5899_v51 }
 0x50c   :  { %6916 = vst [vmem:[%s11220_s6 + $0x18] sm:$0xff] %v6912_v31  }

// kernel: fashion_mnist_forward.3
= control target key start
LH: loop header
LB: loop body
LE: loop exit
PB: predicated region body
PF: predicated region fallthrough
CT: control target
= control target key end

     0   :  { %v540_v36 = vlaneseq  ;;  %v5571_v37 = vmov 1966171168   ;;  %s7313_s0 = inlined_call_operand.vmem [shape: bf16[2,4096], index: 0, kind: input, shape index: {}]   ;;  %s7314_s1 = inlined_call_operand.vmem [shape: bf16[4096,256], index: 1, kind: input, shape index: {}]   ;;  %s7315_s2 = inlined_call_operand.vmem [shape: f32[1,256], index: 2, kind: input, shape index: {}]   ;;  %s7316_s3 = inlined_call_operand.vmem [shape: bf16[256,128], index: 3, kind: input, shape index: {}]   ;;  %s7317_s4 = inlined_call_operand.vmem [shape: f32[1,128], index: 4, kind: input, shape index: {}]   ;;  %s7318_s5 = inlined_call_operand.hbm [shape: f32[2,128], index: 5, kind: output, shape index: {}]  }
   0x1   :  { %v4757_v0 = vld [vmem:[%s7314_s1 + $0x74] ss:$8 sps:$4 sm:$0xff]   ;;  %v4761_v2 = vld [vmem:[%s7314_s1 + $0x70] ss:$8 sps:$4 sm:$0xff]   ;;  %v4763_v4 = vld [vmem:[%s7314_s1 + $0x64] ss:$8 sps:$4 sm:$0xff]   ;;  %v556_v38 = vunpack.c.l.s4 %v5571_v37 }
   0x2   :  { %v4759_v1 = vld [vmem:[%s7314_s1 + $0x174] ss:$8 sps:$4 sm:$0xff]   ;;  %3342 = vmatprep.subr.bf16.mxu0 %v4757_v0  ;;  %v4762_v3 = vld [vmem:[%s7314_s1 + $0x170] ss:$8 sps:$4 sm:$0xff]   ;;  %v4765_v5 = vld [vmem:[%s7314_s1 + $0x164] ss:$8 sps:$4 sm:$0xff]  }
   0x3   :  { %3383 = vmatprep.subr.bf16.mxu1 %v4759_v1  ;;  %3343 = vmatpush1.bf16.msra.mxu0 %v4761_v2  ;;  %v4767_v6 = vld [vmem:[%s7314_s1 + $0x60] ss:$8 sps:$4 sm:$0xff]   ;;  %v4769_v8 = vld [vmem:[%s7314_s1 + $0x54] ss:$8 sps:$4 sm:$0xff]   ;;  %v4773_v10 = vld [vmem:[%s7314_s1 + $0x50] ss:$8 sps:$4 sm:$0xff]   ;;  %v557_v43 = vunpack.c.0.s8 %v556_v38 }
   0x4   :  { %3384 = vmatpush1.bf16.msra.mxu1 %v4762_v3  ;;  %3344 = vmatprep.subr.bf16.mxu0 %v4763_v4  ;;  %v4768_v7 = vld [vmem:[%s7314_s1 + $0x160] ss:$8 sps:$4 sm:$0xff]   ;;  %v4771_v9 = vld [vmem:[%s7314_s1 + $0x154] ss:$8 sps:$4 sm:$0xff]   ;;  %v4774_v11 = vld [vmem:[%s7314_s1 + $0x150] ss:$8 sps:$4 sm:$0xff]  }
   0x5   :  { %3385 = vmatprep.subr.bf16.mxu1 %v4765_v5  ;;  %v4775_v12 = vld [vmem:[%s7314_s1 + $0x44] ss:$8 sps:$4 sm:$0xff]   ;;  %v4779_v14 = vld [vmem:[%s7314_s1 + $0x40] ss:$8 sps:$4 sm:$0xff]   ;;  %v4781_v16 = vld [vmem:[%s7314_s1 + $0x34] ss:$8 sps:$4 sm:$0xff]  }
   0x6   :  { %v4777_v13 = vld [vmem:[%s7314_s1 + $0x144] ss:$8 sps:$4 sm:$0xff]   ;;  %v4780_v15 = vld [vmem:[%s7314_s1 + $0x140] ss:$8 sps:$4 sm:$0xff]   ;;  %v4783_v17 = vld [vmem:[%s7314_s1 + $0x134] ss:$8 sps:$4 sm:$0xff]  }
   0x7   :  { %3345 = vmatpush1.bf16.msra.mxu0 %v4767_v6  ;;  %v4785_v18 = vld [vmem:[%s7314_s1 + $0x30] ss:$8 sps:$4 sm:$0xff]   ;;  %v4787_v20 = vld [vmem:[%s7314_s1 + $0x24] ss:$8 sps:$4 sm:$0xff]   ;;  %v4791_v22 = vld [vmem:[%s7314_s1 + $0x20] ss:$8 sps:$4 sm:$0xff]  }
   0x8   :  { %3386 = vmatpush1.bf16.msra.mxu1 %v4768_v7  ;;  %3346 = vmatprep.subr.bf16.mxu0 %v4769_v8  ;;  %v4786_v19 = vld [vmem:[%s7314_s1 + $0x130] ss:$8 sps:$4 sm:$0xff]   ;;  %v4789_v21 = vld [vmem:[%s7314_s1 + $0x124] ss:$8 sps:$4 sm:$0xff]   ;;  %v4792_v23 = vld [vmem:[%s7314_s1 + $0x120] ss:$8 sps:$4 sm:$0xff]  }
   0x9   :  { %3387 = vmatprep.subr.bf16.mxu1 %v4771_v9  ;;  %v4793_v24 = vld [vmem:[%s7314_s1 + $0x14] ss:$8 sps:$4 sm:$0xff]   ;;  %v4797_v26 = vld [vmem:[%s7314_s1 + $0x10] ss:$8 sps:$4 sm:$0xff]   ;;  %v4799_v28 = vld [vmem:[%s7314_s1 + $0x4] ss:$8 sps:$4 sm:$0xff]  }
   0xa   :  { %v4795_v25 = vld [vmem:[%s7314_s1 + $0x114] ss:$8 sps:$4 sm:$0xff]   ;;  %v4798_v27 = vld [vmem:[%s7314_s1 + $0x110] ss:$8 sps:$4 sm:$0xff]   ;;  %v4801_v29 = vld [vmem:[%s7314_s1 + $0x104] ss:$8 sps:$4 sm:$0xff]  }
   0xb   :  { %3347 = vmatpush1.bf16.msra.mxu0 %v4773_v10  ;;  %v4803_v30 = vld [vmem:[%s7314_s1] ss:$8 sps:$4 sm:$0xff]   ;;  %v4805_v32 = vld [vmem:[%s7314_s1 + $0xf4] ss:$8 sps:$4 sm:$0xff]   ;;  %v4809_v34 = vld [vmem:[%s7314_s1 + $0xf0] ss:$8 sps:$4 sm:$0xff]  }
   0xc   :  { %3388 = vmatpush1.bf16.msra.mxu1 %v4774_v11  ;;  %3348 = vmatprep.subr.bf16.mxu0 %v4775_v12  ;;  %v4804_v31 = vld [vmem:[%s7314_s1 + $0x100] ss:$8 sps:$4 sm:$0xff]   ;;  %v4807_v33 = vld [vmem:[%s7314_s1 + $0x1f4] ss:$8 sps:$4 sm:$0xff]   ;;  %v4810_v35 = vld [vmem:[%s7314_s1 + $0x1f0] ss:$8 sps:$4 sm:$0xff]  }
   0xd   :  { %3389 = vmatprep.subr.bf16.mxu1 %v4777_v13  ;;  %v4811_v39 = vld [vmem:[%s7314_s1 + $0xe4] ss:$8 sps:$4 sm:$0xff]   ;;  %v4815_v41 = vld [vmem:[%s7314_s1 + $0xe0] ss:$8 sps:$4 sm:$0xff]   ;;  %v5720_v42 = vshrl.u32 %v540_v36, 7 }
   0xe   :  { %v4813_v40 = vld [vmem:[%s7314_s1 + $0x1e4] ss:$8 sps:$4 sm:$0xff]   ;;  %v4816_v44 = vld [vmem:[%s7314_s1 + $0x1e0] ss:$8 sps:$4 sm:$0xff]   ;;  %v4817_v45 = vld [vmem:[%s7314_s1 + $0xd4] ss:$8 sps:$4 sm:$0xff]  }
   0xf   :  { %3349 = vmatpush1.bf16.msra.mxu0 %v4779_v14  ;;  %v4819_v46 = vld [vmem:[%s7314_s1 + $0x1d4] ss:$8 sps:$4 sm:$0xff]   ;;  %v4821_v47 = vld [vmem:[%s7314_s1 + $0xd0] ss:$8 sps:$4 sm:$0xff]   ;;  %v5738_v49 = vsub.s32 %v557_v43, %v5720_v42  ;;  %v4823_v50 = vld [vmem:[%s7314_s1 + $0xc4] ss:$8 sps:$4 sm:$0xff]  }
  0x10   :  { %3390 = vmatpush1.bf16.msra.mxu1 %v4780_v15  ;;  %3350 = vmatprep.subr.bf16.mxu0 %v4781_v16  ;;  %v4822_v48 = vld [vmem:[%s7314_s1 + $0x1d0] ss:$8 sps:$4 sm:$0xff]   ;;  %v4825_v51 = vld [vmem:[%s7314_s1 + $0x1c4] ss:$8 sps:$4 sm:$0xff]   ;;  %v4827_v53 = vld [vmem:[%s7314_s1 + $0xc0] ss:$8 sps:$4 sm:$0xff]  }
  0x11   :  { %3391 = vmatprep.subr.bf16.mxu1 %v4783_v17  ;;  %v22_v52 = vld [vmem:[%s7313_s0] sm:$0xff]  ;;  %v4829_v56 = vld [vmem:[%s7314_s1 + $0xb4] ss:$8 sps:$4 sm:$0xff]   ;;  %v4833_v59 = vld [vmem:[%s7314_s1 + $0xb0] ss:$8 sps:$4 sm:$0xff]  }
  0x12   :  { %v561_v54 = vrot.slane %v22_v52, %v5738_v49  ;;  %v4828_v55 = vld [vmem:[%s7314_s1 + $0x1c0] ss:$8 sps:$4 sm:$0xff]   ;;  %v4831_v57 = vld [vmem:[%s7314_s1 + $0x1b4] ss:$8 sps:$4 sm:$0xff]   ;;  %v4834_v61 = vld [vmem:[%s7314_s1 + $0x1b0] ss:$8 sps:$4 sm:$0xff]   ;;  %v554_v1 = vcombine.high %v22_v52, %v22_v52 }
  0x13   :  { %3351 = vmatpush1.bf16.msra.mxu0 %v4785_v18  ;;  %v4835_v62 = vld [vmem:[%s7314_s1 + $0xa4] ss:$8 sps:$4 sm:$0xff]   ;;  %v4839_v2 = vld [vmem:[%s7314_s1 + $0xa0] ss:$8 sps:$4 sm:$0xff]   ;;  %v4841_v4 = vld [vmem:[%s7314_s1 + $0x94] ss:$8 sps:$4 sm:$0xff]  }
  0x14   :  { %3392 = vmatpush1.bf16.msra.mxu1 %v4786_v19  ;;  %3352 = vmatprep.subr.bf16.mxu0 %v4787_v20  ;;  %v569_v58 = vcombine.high %v561_v54, %v561_v54  ;;  %v4837_v63 = vld [vmem:[%s7314_s1 + $0x1a4] ss:$8 sps:$4 sm:$0xff]   ;;  %v4840_v3 = vld [vmem:[%s7314_s1 + $0x1a0] ss:$8 sps:$4 sm:$0xff]   ;;  %v4843_v5 = vld [vmem:[%s7314_s1 + $0x194] ss:$8 sps:$4 sm:$0xff]   ;;  %v5788_v6 = vrot.slane %v554_v1, %v5738_v49  ;;  %v577_v13 = vrot.slane %v561_v54, %v5738_v49 }
  0x15   :  { %3393 = vmatprep.subr.bf16.mxu1 %v4789_v21  ;;  %v4845_v7 = vld [vmem:[%s7314_s1 + $0x90] ss:$8 sps:$4 sm:$0xff]   ;;  %v4847_v9 = vld [vmem:[%s7314_s1 + $0x84] ss:$8 sps:$4 sm:$0xff]   ;;  %v4851_v12 = vld [vmem:[%s7314_s1 + $0x80] ss:$8 sps:$4 sm:$0xff]  }
  0x16   :  { %v591_v60 = vrot.slane %v569_v58, %v5738_v49  ;;  %v4846_v8 = vld [vmem:[%s7314_s1 + $0x190] ss:$8 sps:$4 sm:$0xff]   ;;  %v4849_v10 = vld [vmem:[%s7314_s1 + $0x184] ss:$8 sps:$4 sm:$0xff]   ;;  %v570_v11 = vcombine.high %v5788_v6, %v5788_v6  ;;  %v4852_v14 = vld [vmem:[%s7314_s1 + $0x180] ss:$8 sps:$4 sm:$0xff]   ;;  %v599_v18 = vcombine.high %v577_v13, %v577_v13 }
  0x17   :  { %3353 = vmatpush1.bf16.msra.mxu0 %v4791_v22  ;;  %v4856_v15 = vld [vmem:[%s7314_s1 + $0x274] ss:$8 sps:$4 sm:$0xff]   ;;  %v4854_v19 = vld [vmem:[%s7314_s1 + $0x270] ss:$8 sps:$4 sm:$0xff]   ;;  %v4862_v21 = vld [vmem:[%s7314_s1 + $0x264] ss:$8 sps:$4 sm:$0xff]  }
  0x18   :  { %3394 = vmatpush1.bf16.msra.mxu1 %v4792_v23  ;;  %3354 = vmatprep.subr.bf16.mxu0 %v4793_v24  ;;  %v601_v0 = vcombine.high %v591_v60, %v591_v60  ;;  %v4859_v16 = vld [vmem:[%s7314_s1 + $0x374] ss:$8 sps:$4 sm:$0xff]   ;;  %v598_v17 = vrot.slane %v570_v11, %v5738_v49  ;;  %v4857_v20 = vld [vmem:[%s7314_s1 + $0x370] ss:$8 sps:$4 sm:$0xff]   ;;  %v4865_v22 = vld [vmem:[%s7314_s1 + $0x364] ss:$8 sps:$4 sm:$0xff]  }
  0x19   :  { %3395 = vmatprep.subr.bf16.mxu1 %v4795_v25  ;;  %3374 = vmatprep.mubr.bf16.mxu0 %v591_v60  ;;  %v4860_v24 = vld [vmem:[%s7314_s1 + $0x260] ss:$8 sps:$4 sm:$0xff]   ;;  %v4878_v36 = vld [vmem:[%s7314_s1 + $0x230] ss:$8 sps:$4 sm:$0xff]   ;;  %v4886_v38 = vld [vmem:[%s7314_s1 + $0x224] ss:$8 sps:$4 sm:$0xff]  }
  0x1a   :  { %3415 = vmatprep.mubr.bf16.mxu1 %v601_v0  ;;  %v602_v23 = vcombine.high %v598_v17, %v598_v17  ;;  %v4863_v25 = vld [vmem:[%s7314_s1 + $0x360] ss:$8 sps:$4 sm:$0xff]   ;;  %v4881_v37 = vld [vmem:[%s7314_s1 + $0x330] ss:$8 sps:$4 sm:$0xff]   ;;  %v4892_v43 = vld [vmem:[%s7314_s1 + $0x214] ss:$8 sps:$4 sm:$0xff]  }
  0x1b   :  { %3355 = vmatpush1.bf16.msra.mxu0 %v4797_v26  ;;  %v4868_v26 = vld [vmem:[%s7314_s1 + $0x254] ss:$8 sps:$4 sm:$0xff]   ;;  %v4902_v54 = vld [vmem:[%s7314_s1 + $0x2f0] ss:$8 sps:$4 sm:$0xff]   ;;  %v4908_v58 = vld [vmem:[%s7314_s1 + $0x2e0] ss:$8 sps:$4 sm:$0xff]  }
  0x1c   :  { %3396 = vmatpush1.bf16.msra.mxu1 %v4798_v27  ;;  %3356 = vmatprep.subr.bf16.mxu0 %v4799_v28  ;;  %v4871_v27 = vld [vmem:[%s7314_s1 + $0x354] ss:$8 sps:$4 sm:$0xff]   ;;  %v4866_v28 = vld [vmem:[%s7314_s1 + $0x250] ss:$8 sps:$4 sm:$0xff]   ;;  %v4922_v0 = vld [vmem:[%s7314_s1 + $0x2c4] ss:$8 sps:$4 sm:$0xff]  }
  0x1d   :  { %3397 = vmatprep.subr.bf16.mxu1 %v4801_v29  ;;  %v4869_v29 = vld [vmem:[%s7314_s1 + $0x350] ss:$8 sps:$4 sm:$0xff]   ;;  %v4904_v52 = vld [vmem:[%s7314_s1 + $0x2f4] ss:$8 sps:$4 sm:$0xff]   ;;  %v4925_v1 = vld [vmem:[%s7314_s1 + $0x3c4] ss:$8 sps:$4 sm:$0xff]  }
  0x1e   :  { %v4916_v60 = vld [vmem:[%s7314_s1 + $0x2d4] ss:$8 sps:$4 sm:$0xff]   ;;  %v4932_v11 = vld [vmem:[%s7314_s1 + $0x2a0] ss:$8 sps:$4 sm:$0xff]  }
  0x1f   :  { %3357 = vmatpush1.bf16.msra.mxu0 %v4803_v30  ;;  %v4874_v30 = vld [vmem:[%s7314_s1 + $0x244] ss:$8 sps:$4 sm:$0xff]  }
  0x20   :  { %3398 = vmatpush1.bf16.msra.mxu1 %v4804_v31  ;;  %3358 = vmatprep.subr.bf16.mxu0 %v4805_v32  ;;  %v4877_v31 = vld [vmem:[%s7314_s1 + $0x344] ss:$8 sps:$4 sm:$0xff]   ;;  %v4872_v32 = vld [vmem:[%s7314_s1 + $0x240] ss:$8 sps:$4 sm:$0xff]  }
  0x21   :  { %3399 = vmatprep.subr.bf16.mxu1 %v4807_v33  ;;  %v4875_v33 = vld [vmem:[%s7314_s1 + $0x340] ss:$8 sps:$4 sm:$0xff]  }
  0x23   :  { %3359 = vmatpush2.bf16.msra.mxu0 %v4809_v34  ;;  %v4880_v34 = vld [vmem:[%s7314_s1 + $0x234] ss:$8 sps:$4 sm:$0xff]  }
  0x24   :  { %3400 = vmatpush2.bf16.msra.mxu1 %v4810_v35  ;;  %3360 = vmatprep.subr.bf16.mxu0 %v4811_v39  ;;  %v4883_v35 = vld [vmem:[%s7314_s1 + $0x334] ss:$8 sps:$4 sm:$0xff]   ;;  %v4889_v39 = vld [vmem:[%s7314_s1 + $0x324] ss:$8 sps:$4 sm:$0xff]  }
  0x25   :  { %3401 = vmatprep.subr.bf16.mxu1 %v4813_v40  ;;  %v4884_v40 = vld [vmem:[%s7314_s1 + $0x220] ss:$8 sps:$4 sm:$0xff]  }
  0x27   :  { %3361 = vmatpush2.bf16.msra.mxu0 %v4815_v41  ;;  %v4887_v41 = vld [vmem:[%s7314_s1 + $0x320] ss:$8 sps:$4 sm:$0xff]  }
  0x28   :  { %3402 = vmatpush2.bf16.msra.mxu1 %v4816_v44  ;;  %3362 = vmatprep.subr.bf16.mxu0 %v4817_v45  ;;  %v4895_v44 = vld [vmem:[%s7314_s1 + $0x314] ss:$8 sps:$4 sm:$0xff]   ;;  %v4890_v45 = vld [vmem:[%s7314_s1 + $0x210] ss:$8 sps:$4 sm:$0xff]  }
  0x29   :  { %3403 = vmatprep.subr.bf16.mxu1 %v4819_v46  ;;  %v4893_v46 = vld [vmem:[%s7314_s1 + $0x310] ss:$8 sps:$4 sm:$0xff]  }
  0x2b   :  { %3363 = vmatpush2.bf16.msra.mxu0 %v4821_v47  ;;  %v4898_v47 = vld [vmem:[%s7314_s1 + $0x204] ss:$8 sps:$4 sm:$0xff]  }
  0x2c   :  { %3404 = vmatpush2.bf16.msra.mxu1 %v4822_v48  ;;  %3364 = vmatprep.subr.bf16.mxu0 %v4823_v50  ;;  %v4901_v48 = vld [vmem:[%s7314_s1 + $0x304] ss:$8 sps:$4 sm:$0xff]   ;;  %v4896_v50 = vld [vmem:[%s7314_s1 + $0x200] ss:$8 sps:$4 sm:$0xff]  }
  0x2d   :  { %3405 = vmatprep.subr.bf16.mxu1 %v4825_v51  ;;  %v4899_v51 = vld [vmem:[%s7314_s1 + $0x300] ss:$8 sps:$4 sm:$0xff]  }
  0x2f   :  { %3365 = vmatpush2.bf16.msra.mxu0 %v4827_v53  ;;  %v4907_v53 = vld [vmem:[%s7314_s1 + $0x3f4] ss:$8 sps:$4 sm:$0xff]  }
  0x30   :  { %3406 = vmatpush2.bf16.msra.mxu1 %v4828_v55  ;;  %3366 = vmatprep.subr.bf16.mxu0 %v4829_v56  ;;  %v4905_v55 = vld [vmem:[%s7314_s1 + $0x3f0] ss:$8 sps:$4 sm:$0xff]   ;;  %v4910_v56 = vld [vmem:[%s7314_s1 + $0x2e4] ss:$8 sps:$4 sm:$0xff]  }
  0x31   :  { %3407 = vmatprep.subr.bf16.mxu1 %v4831_v57  ;;  %v4913_v57 = vld [vmem:[%s7314_s1 + $0x3e4] ss:$8 sps:$4 sm:$0xff]  }
  0x33   :  { %3367 = vmatpush2.bf16.msra.mxu0 %v4833_v59  ;;  %v4911_v59 = vld [vmem:[%s7314_s1 + $0x3e0] ss:$8 sps:$4 sm:$0xff]  }
  0x34   :  { %3408 = vmatpush2.bf16.msra.mxu1 %v4834_v61  ;;  %3368 = vmatprep.subr.bf16.mxu0 %v4835_v62  ;;  %v4919_v61 = vld [vmem:[%s7314_s1 + $0x3d4] ss:$8 sps:$4 sm:$0xff]   ;;  %v4914_v62 = vld [vmem:[%s7314_s1 + $0x2d0] ss:$8 sps:$4 sm:$0xff]  }
  0x35   :  { %3409 = vmatprep.subr.bf16.mxu1 %v4837_v63  ;;  %v4917_v63 = vld [vmem:[%s7314_s1 + $0x3d0] ss:$8 sps:$4 sm:$0xff]  }
  0x37   :  { %3369 = vmatpush2.bf16.msra.mxu0 %v4839_v2  ;;  %v4920_v2 = vld [vmem:[%s7314_s1 + $0x2c0] ss:$8 sps:$4 sm:$0xff]  }
  0x38   :  { %3410 = vmatpush2.bf16.msra.mxu1 %v4840_v3  ;;  %3370 = vmatprep.subr.bf16.mxu0 %v4841_v4  ;;  %v4923_v3 = vld [vmem:[%s7314_s1 + $0x3c0] ss:$8 sps:$4 sm:$0xff]   ;;  %v4928_v4 = vld [vmem:[%s7314_s1 + $0x2b4] ss:$8 sps:$4 sm:$0xff]  }
  0x39   :  { %3411 = vmatprep.subr.bf16.mxu1 %v4843_v5  ;;  %v4931_v5 = vld [vmem:[%s7314_s1 + $0x3b4] ss:$8 sps:$4 sm:$0xff]  }
  0x3b   :  { %3371 = vmatpush2.bf16.msra.mxu0 %v4845_v7  ;;  %v4926_v7 = vld [vmem:[%s7314_s1 + $0x2b0] ss:$8 sps:$4 sm:$0xff]  }
  0x3c   :  { %3412 = vmatpush2.bf16.msra.mxu1 %v4846_v8  ;;  %3372 = vmatprep.subr.bf16.mxu0 %v4847_v9  ;;  %v4929_v8 = vld [vmem:[%s7314_s1 + $0x3b0] ss:$8 sps:$4 sm:$0xff]   ;;  %v4934_v9 = vld [vmem:[%s7314_s1 + $0x2a4] ss:$8 sps:$4 sm:$0xff]  }
  0x3d   :  { %3413 = vmatprep.subr.bf16.mxu1 %v4849_v10  ;;  %v4937_v10 = vld [vmem:[%s7314_s1 + $0x3a4] ss:$8 sps:$4 sm:$0xff]  }
  0x3f   :  { %3373 = vmatpush2.bf16.msra.mxu0 %v4851_v12  ;;  %v4935_v12 = vld [vmem:[%s7314_s1 + $0x3a0] ss:$8 sps:$4 sm:$0xff]  }
  0x40   :  { %3414 = vmatpush2.bf16.msra.mxu1 %v4852_v14  ;;  %3424 = vmatprep.subr.bf16.mxu0 %v4856_v15  ;;  %v4943_v14 = vld [vmem:[%s7314_s1 + $0x394] ss:$8 sps:$4 sm:$0xff]   ;;  %v4938_v15 = vld [vmem:[%s7314_s1 + $0x290] ss:$8 sps:$4 sm:$0xff]  }
  0x41   :  { %3465 = vmatprep.subr.bf16.mxu1 %v4859_v16  ;;  %v4941_v16 = vld [vmem:[%s7314_s1 + $0x390] ss:$8 sps:$4 sm:$0xff]  }
  0x42   :  { %3375 = vmatmul.mubr.bf16.vlgmr.msra.gmra.mxu0 %v577_v13  ;;  %v4940_v13 = vld [vmem:[%s7314_s1 + $0x294] ss:$8 sps:$4 sm:$0xff]  }
  0x43   :  { %3416 = vmatmul.mubr.bf16.vlgmr.msra.gmra.mxu1 %v599_v18  ;;  %3425 = vmatpush1.bf16.msra.mxu0 %v4854_v19  ;;  %v4949_v18 = vld [vmem:[%s7314_s1 + $0x384] ss:$8 sps:$4 sm:$0xff]   ;;  %v4944_v19 = vld [vmem:[%s7314_s1 + $0x280] ss:$8 sps:$4 sm:$0xff]  }
  0x44   :  { %3466 = vmatpush1.bf16.msra.mxu1 %v4857_v20  ;;  %3426 = vmatprep.subr.bf16.mxu0 %v4862_v21  ;;  %v584_v20 = vrot.slane %v5788_v6, %v5738_v49  ;;  %v4947_v21 = vld [vmem:[%s7314_s1 + $0x380] ss:$8 sps:$4 sm:$0xff]   ;;  %v4950_v6 = vld [vmem:[%s7314_s1 + $0x470] ss:$8 sps:$4 sm:$0xff]  }
  0x45   :  { %3467 = vmatprep.subr.bf16.mxu1 %v4865_v22  ;;  %3456 = vmatprep.mubr.bf16.mxu0 %v598_v17  ;;  %v4946_v17 = vld [vmem:[%s7314_s1 + $0x284] ss:$8 sps:$4 sm:$0xff]   ;;  %v4952_v22 = vld [vmem:[%s7314_s1 + $0x474] ss:$8 sps:$4 sm:$0xff]  }
  0x46   :  { %3497 = vmatprep.mubr.bf16.mxu1 %v602_v23  ;;  %v4955_v23 = vld [vmem:[%s7314_s1 + $0x574] ss:$8 sps:$4 sm:$0xff]  }
  0x47   :  { %3427 = vmatpush1.bf16.msra.mxu0 %v4860_v24  ;;  %v600_v24 = vcombine.high %v584_v20, %v584_v20 }
  0x48   :  { %3468 = vmatpush1.bf16.msra.mxu1 %v4863_v25  ;;  %3428 = vmatprep.subr.bf16.mxu0 %v4868_v26  ;;  %v4953_v25 = vld [vmem:[%s7314_s1 + $0x570] ss:$8 sps:$4 sm:$0xff]   ;;  %v6021_v26 = vld [vmem:[%s7313_s0 + $0x8] sm:$0xff] }
  0x49   :  { %3469 = vmatprep.subr.bf16.mxu1 %v4871_v27  ;;  %v4958_v27 = vld [vmem:[%s7314_s1 + $0x464] ss:$8 sps:$4 sm:$0xff]  }
  0x4b   :  { %3429 = vmatpush1.bf16.msra.mxu0 %v4866_v28  ;;  %v4961_v28 = vld [vmem:[%s7314_s1 + $0x564] ss:$8 sps:$4 sm:$0xff]  }
  0x4c   :  { %3470 = vmatpush1.bf16.msra.mxu1 %v4869_v29  ;;  %3430 = vmatprep.subr.bf16.mxu0 %v4874_v30  ;;  %v6031_v29 = vrot.slane %v6021_v26, %v5738_v49 }
  0x4d   :  { %3471 = vmatprep.subr.bf16.mxu1 %v4877_v31  ;;  %v4956_v31 = vld [vmem:[%s7314_s1 + $0x460] ss:$8 sps:$4 sm:$0xff]  }
  0x4e   :  { %v618_v30 = vcombine.high %v6031_v29, %v6031_v29 }
  0x4f   :  { %3431 = vmatpush1.bf16.msra.mxu0 %v4872_v32  ;;  %v4959_v32 = vld [vmem:[%s7314_s1 + $0x560] ss:$8 sps:$4 sm:$0xff]  }
  0x50   :  { %3472 = vmatpush1.bf16.msra.mxu1 %v4875_v33  ;;  %3432 = vmatprep.subr.bf16.mxu0 %v4880_v34  ;;  %v4964_v33 = vld [vmem:[%s7314_s1 + $0x454] ss:$8 sps:$4 sm:$0xff]  }
  0x51   :  { %3473 = vmatprep.subr.bf16.mxu1 %v4883_v35  ;;  %v4967_v34 = vld [vmem:[%s7314_s1 + $0x554] ss:$8 sps:$4 sm:$0xff]   ;;  %v640_v35 = vrot.slane %v618_v30, %v5738_v49 }
  0x53   :  { %3433 = vmatpush1.bf16.msra.mxu0 %v4878_v36  ;;  %v650_v36 = vcombine.high %v640_v35, %v640_v35 }
  0x54   :  { %3474 = vmatpush1.bf16.msra.mxu1 %v4881_v37  ;;  %3434 = vmatprep.subr.bf16.mxu0 %v4886_v38  ;;  %v4962_v37 = vld [vmem:[%s7314_s1 + $0x450] ss:$8 sps:$4 sm:$0xff]  }
  0x55   :  { %3475 = vmatprep.subr.bf16.mxu1 %v4889_v39  ;;  %v4965_v38 = vld [vmem:[%s7314_s1 + $0x550] ss:$8 sps:$4 sm:$0xff]   ;;  %v4970_v39 = vld [vmem:[%s7314_s1 + $0x444] ss:$8 sps:$4 sm:$0xff]  }
  0x57   :  { %3435 = vmatpush1.bf16.msra.mxu0 %v4884_v40  ;;  %v4973_v40 = vld [vmem:[%s7314_s1 + $0x544] ss:$8 sps:$4 sm:$0xff]  }
  0x58   :  { %3476 = vmatpush1.bf16.msra.mxu1 %v4887_v41  ;;  %3436 = vmatprep.subr.bf16.mxu0 %v4892_v43  ;;  %v4968_v41 = vld [vmem:[%s7314_s1 + $0x440] ss:$8 sps:$4 sm:$0xff]  }
  0x59   :  { %3477 = vmatprep.subr.bf16.mxu1 %v4895_v44  ;;  %v4971_v43 = vld [vmem:[%s7314_s1 + $0x540] ss:$8 sps:$4 sm:$0xff]   ;;  %v4976_v44 = vld [vmem:[%s7314_s1 + $0x434] ss:$8 sps:$4 sm:$0xff]  }
  0x5b   :  { %3437 = vmatpush1.bf16.msra.mxu0 %v4890_v45  ;;  %v4979_v45 = vld [vmem:[%s7314_s1 + $0x534] ss:$8 sps:$4 sm:$0xff]  }
  0x5c   :  { %3478 = vmatpush1.bf16.msra.mxu1 %v4893_v46  ;;  %3438 = vmatprep.subr.bf16.mxu0 %v4898_v47  ;;  %v4974_v46 = vld [vmem:[%s7314_s1 + $0x430] ss:$8 sps:$4 sm:$0xff]  }
  0x5d   :  { %3479 = vmatprep.subr.bf16.mxu1 %v4901_v48  ;;  %v4977_v47 = vld [vmem:[%s7314_s1 + $0x530] ss:$8 sps:$4 sm:$0xff]   ;;  %v4982_v48 = vld [vmem:[%s7314_s1 + $0x424] ss:$8 sps:$4 sm:$0xff]  }
  0x5f   :  { %3439 = vmatpush1.bf16.msra.mxu0 %v4896_v50  ;;  %v4985_v50 = vld [vmem:[%s7314_s1 + $0x524] ss:$8 sps:$4 sm:$0xff]  }
  0x60   :  { %3480 = vmatpush1.bf16.msra.mxu1 %v4899_v51  ;;  %3440 = vmatprep.subr.bf16.mxu0 %v4904_v52  ;;  %v4980_v51 = vld [vmem:[%s7314_s1 + $0x420] ss:$8 sps:$4 sm:$0xff]  }
  0x61   :  { %3481 = vmatprep.subr.bf16.mxu1 %v4907_v53  ;;  %v4983_v52 = vld [vmem:[%s7314_s1 + $0x520] ss:$8 sps:$4 sm:$0xff]   ;;  %v4988_v53 = vld [vmem:[%s7314_s1 + $0x414] ss:$8 sps:$4 sm:$0xff]  }
  0x63   :  { %3441 = vmatpush2.bf16.msra.mxu0 %v4902_v54  ;;  %v4991_v54 = vld [vmem:[%s7314_s1 + $0x514] ss:$8 sps:$4 sm:$0xff]  }
  0x64   :  { %3482 = vmatpush2.bf16.msra.mxu1 %v4905_v55  ;;  %3442 = vmatprep.subr.bf16.mxu0 %v4910_v56  ;;  %v4986_v55 = vld [vmem:[%s7314_s1 + $0x410] ss:$8 sps:$4 sm:$0xff]  }
  0x65   :  { %3483 = vmatprep.subr.bf16.mxu1 %v4913_v57  ;;  %v4989_v56 = vld [vmem:[%s7314_s1 + $0x510] ss:$8 sps:$4 sm:$0xff]   ;;  %v4994_v57 = vld [vmem:[%s7314_s1 + $0x404] ss:$8 sps:$4 sm:$0xff]  }
  0x67   :  { %3443 = vmatpush2.bf16.msra.mxu0 %v4908_v58  ;;  %v4997_v58 = vld [vmem:[%s7314_s1 + $0x504] ss:$8 sps:$4 sm:$0xff]  }
  0x68   :  { %3484 = vmatpush2.bf16.msra.mxu1 %v4911_v59  ;;  %3444 = vmatprep.subr.bf16.mxu0 %v4916_v60  ;;  %v4992_v59 = vld [vmem:[%s7314_s1 + $0x400] ss:$8 sps:$4 sm:$0xff]  }
  0x69   :  { %3485 = vmatprep.subr.bf16.mxu1 %v4919_v61  ;;  %v4995_v60 = vld [vmem:[%s7314_s1 + $0x500] ss:$8 sps:$4 sm:$0xff]   ;;  %v5000_v61 = vld [vmem:[%s7314_s1 + $0x4f4] ss:$8 sps:$4 sm:$0xff]  }
  0x6b   :  { %3445 = vmatpush2.bf16.msra.mxu0 %v4914_v62  ;;  %v5003_v62 = vld [vmem:[%s7314_s1 + $0x5f4] ss:$8 sps:$4 sm:$0xff]  }
  0x6c   :  { %3486 = vmatpush2.bf16.msra.mxu1 %v4917_v63  ;;  %3446 = vmatprep.subr.bf16.mxu0 %v4922_v0  ;;  %v4998_v63 = vld [vmem:[%s7314_s1 + $0x4f0] ss:$8 sps:$4 sm:$0xff]  }
  0x6d   :  { %3487 = vmatprep.subr.bf16.mxu1 %v4925_v1  ;;  %v5001_v0 = vld [vmem:[%s7314_s1 + $0x5f0] ss:$8 sps:$4 sm:$0xff]   ;;  %v5006_v1 = vld [vmem:[%s7314_s1 + $0x4e4] ss:$8 sps:$4 sm:$0xff]  }
  0x6f   :  { %3447 = vmatpush2.bf16.msra.mxu0 %v4920_v2  ;;  %v5009_v2 = vld [vmem:[%s7314_s1 + $0x5e4] ss:$8 sps:$4 sm:$0xff]  }
  0x70   :  { %3488 = vmatpush2.bf16.msra.mxu1 %v4923_v3  ;;  %3448 = vmatprep.subr.bf16.mxu0 %v4928_v4  ;;  %v5004_v3 = vld [vmem:[%s7314_s1 + $0x4e0] ss:$8 sps:$4 sm:$0xff]  }
  0x71   :  { %3489 = vmatprep.subr.bf16.mxu1 %v4931_v5  ;;  %v5007_v4 = vld [vmem:[%s7314_s1 + $0x5e0] ss:$8 sps:$4 sm:$0xff]   ;;  %v5012_v5 = vld [vmem:[%s7314_s1 + $0x4d4] ss:$8 sps:$4 sm:$0xff]  }
  0x73   :  { %3449 = vmatpush2.bf16.msra.mxu0 %v4926_v7  ;;  %v5015_v7 = vld [vmem:[%s7314_s1 + $0x5d4] ss:$8 sps:$4 sm:$0xff]  }
  0x74   :  { %3490 = vmatpush2.bf16.msra.mxu1 %v4929_v8  ;;  %3450 = vmatprep.subr.bf16.mxu0 %v4934_v9  ;;  %v5010_v8 = vld [vmem:[%s7314_s1 + $0x4d0] ss:$8 sps:$4 sm:$0xff]  }
  0x75   :  { %3491 = vmatprep.subr.bf16.mxu1 %v4937_v10  ;;  %v5013_v9 = vld [vmem:[%s7314_s1 + $0x5d0] ss:$8 sps:$4 sm:$0xff]   ;;  %v5018_v10 = vld [vmem:[%s7314_s1 + $0x4c4] ss:$8 sps:$4 sm:$0xff]  }
  0x77   :  { %3451 = vmatpush2.bf16.msra.mxu0 %v4932_v11  ;;  %v5021_v11 = vld [vmem:[%s7314_s1 + $0x5c4] ss:$8 sps:$4 sm:$0xff]  }
  0x78   :  { %3492 = vmatpush2.bf16.msra.mxu1 %v4935_v12  ;;  %3452 = vmatprep.subr.bf16.mxu0 %v4940_v13  ;;  %v5016_v12 = vld [vmem:[%s7314_s1 + $0x4c0] ss:$8 sps:$4 sm:$0xff]  }
  0x79   :  { %3493 = vmatprep.subr.bf16.mxu1 %v4943_v14  ;;  %v5019_v13 = vld [vmem:[%s7314_s1 + $0x5c0] ss:$8 sps:$4 sm:$0xff]   ;;  %v5024_v14 = vld [vmem:[%s7314_s1 + $0x4b4] ss:$8 sps:$4 sm:$0xff]  }
  0x7b   :  { %3453 = vmatpush2.bf16.msra.mxu0 %v4938_v15  ;;  %v5027_v15 = vld [vmem:[%s7314_s1 + $0x5b4] ss:$8 sps:$4 sm:$0xff]  }
  0x7c   :  { %3494 = vmatpush2.bf16.msra.mxu1 %v4941_v16  ;;  %3454 = vmatprep.subr.bf16.mxu0 %v4946_v17  ;;  %v5022_v16 = vld [vmem:[%s7314_s1 + $0x4b0] ss:$8 sps:$4 sm:$0xff]  }
  0x7d   :  { %3495 = vmatprep.subr.bf16.mxu1 %v4949_v18  ;;  %v5025_v17 = vld [vmem:[%s7314_s1 + $0x5b0] ss:$8 sps:$4 sm:$0xff]   ;;  %v5030_v18 = vld [vmem:[%s7314_s1 + $0x4a4] ss:$8 sps:$4 sm:$0xff]  }
  0x7f   :  { %3455 = vmatpush2.bf16.msra.mxu0 %v4944_v19  ;;  %v5033_v19 = vld [vmem:[%s7314_s1 + $0x5a4] ss:$8 sps:$4 sm:$0xff]  }
  0x80   :  { %3496 = vmatpush2.bf16.msra.mxu1 %v4947_v21  ;;  %3506 = vmatprep.subr.bf16.mxu0 %v4952_v22  ;;  %v5028_v21 = vld [vmem:[%s7314_s1 + $0x4a0] ss:$8 sps:$4 sm:$0xff]  }
  0x81   :  { %3547 = vmatprep.subr.bf16.mxu1 %v4955_v23  ;;  %v5031_v22 = vld [vmem:[%s7314_s1 + $0x5a0] ss:$8 sps:$4 sm:$0xff]   ;;  %v5036_v23 = vld [vmem:[%s7314_s1 + $0x494] ss:$8 sps:$4 sm:$0xff]  }
  0x82   :  { %3457 = vmatmul.mubr.bf16.vlgmr.msra.gmra.mxu0 %v584_v20  ;;  %v603_v20 = vcombine.high %v6021_v26, %v6021_v26  ;;  %v5037_v26 = vld [vmem:[%s7314_s1 + $0x590] ss:$8 sps:$4 sm:$0xff]  }
  0x83   :  { %3498 = vmatmul.mubr.bf16.vlgmr.msra.gmra.mxu1 %v600_v24  ;;  %3507 = vmatpush1.bf16.msra.mxu0 %v4950_v6  ;;  %v5039_v24 = vld [vmem:[%s7314_s1 + $0x594] ss:$8 sps:$4 sm:$0xff]  }
  0x84   :  { %3548 = vmatpush1.bf16.msra.mxu1 %v4953_v25  ;;  %3508 = vmatprep.subr.bf16.mxu0 %v4958_v27  ;;  %v6195_v6 = vrot.slane %v603_v20, %v5738_v49  ;;  %v5034_v25 = vld [vmem:[%s7314_s1 + $0x490] ss:$8 sps:$4 sm:$0xff]   ;;  %v5042_v27 = vld [vmem:[%s7314_s1 + $0x484] ss:$8 sps:$4 sm:$0xff]  }
  0x85   :  { %3549 = vmatprep.subr.bf16.mxu1 %v4961_v28  ;;  %3538 = vmatprep.mubr.bf16.mxu0 %v640_v35  ;;  %v5045_v28 = vld [vmem:[%s7314_s1 + $0x584] ss:$8 sps:$4 sm:$0xff]   ;;  %v5051_v35 = vld [vmem:[%s7314_s1 + $0x774] ss:$8 sps:$4 sm:$0xff]  }
  0x86   :  { %3579 = vmatprep.mubr.bf16.mxu1 %v650_v36  ;;  %v619_v30 = vcombine.high %v6195_v6, %v6195_v6  ;;  %v5117_v20 = vld [vmem:[%s7314_s1 + $0x7c4] ss:$8 sps:$4 sm:$0xff]  }
  0x87   :  { %3509 = vmatpush1.bf16.msra.mxu0 %v4956_v31  ;;  %v5040_v31 = vld [vmem:[%s7314_s1 + $0x480] ss:$8 sps:$4 sm:$0xff]  }
  0x88   :  { %3550 = vmatpush1.bf16.msra.mxu1 %v4959_v32  ;;  %3510 = vmatprep.subr.bf16.mxu0 %v4964_v33  ;;  %v626_v32 = vrot.slane %v6031_v29, %v5738_v49  ;;  %v5043_v33 = vld [vmem:[%s7314_s1 + $0x580] ss:$8 sps:$4 sm:$0xff]   ;;  %v647_v36 = vrot.slane %v619_v30, %v5738_v49  ;;  %v5046_v29 = vld [vmem:[%s7314_s1 + $0x670] ss:$8 sps:$4 sm:$0xff]  }
  0x89   :  { %3551 = vmatprep.subr.bf16.mxu1 %v4967_v34  ;;  %v5048_v34 = vld [vmem:[%s7314_s1 + $0x674] ss:$8 sps:$4 sm:$0xff]   ;;  %v5124_v30 = vld [vmem:[%s7314_s1 + $0x6a0] ss:$8 sps:$4 sm:$0xff]  }
  0x8b   :  { %3511 = vmatpush1.bf16.msra.mxu0 %v4962_v37  ;;  %v648_v37 = vcombine.high %v626_v32, %v626_v32 }
  0x8c   :  { %3552 = vmatpush1.bf16.msra.mxu1 %v4965_v38  ;;  %3512 = vmatprep.subr.bf16.mxu0 %v4970_v39  ;;  %v5049_v38 = vld [vmem:[%s7314_s1 + $0x770] ss:$8 sps:$4 sm:$0xff]   ;;  %v5054_v39 = vld [vmem:[%s7314_s1 + $0x664] ss:$8 sps:$4 sm:$0xff]  }
  0x8d   :  { %3553 = vmatprep.subr.bf16.mxu1 %v4973_v40  ;;  %v5057_v40 = vld [vmem:[%s7314_s1 + $0x764] ss:$8 sps:$4 sm:$0xff]  }
  0x8f   :  { %3513 = vmatpush1.bf16.msra.mxu0 %v4968_v41  ;;  %v651_v41 = vcombine.high %v647_v36, %v647_v36 }
  0x90   :  { %3554 = vmatpush1.bf16.msra.mxu1 %v4971_v43  ;;  %3514 = vmatprep.subr.bf16.mxu0 %v4976_v44  ;;  %v5052_v43 = vld [vmem:[%s7314_s1 + $0x660] ss:$8 sps:$4 sm:$0xff]  }
  0x91   :  { %3555 = vmatprep.subr.bf16.mxu1 %v4979_v45  ;;  %v5055_v44 = vld [vmem:[%s7314_s1 + $0x760] ss:$8 sps:$4 sm:$0xff]   ;;  %v5060_v45 = vld [vmem:[%s7314_s1 + $0x654] ss:$8 sps:$4 sm:$0xff]  }
  0x93   :  { %3515 = vmatpush1.bf16.msra.mxu0 %v4974_v46  ;;  %v5063_v46 = vld [vmem:[%s7314_s1 + $0x754] ss:$8 sps:$4 sm:$0xff]  }
  0x94   :  { %3556 = vmatpush1.bf16.msra.mxu1 %v4977_v47  ;;  %3516 = vmatprep.subr.bf16.mxu0 %v4982_v48  ;;  %v5058_v47 = vld [vmem:[%s7314_s1 + $0x650] ss:$8 sps:$4 sm:$0xff]  }
  0x95   :  { %3557 = vmatprep.subr.bf16.mxu1 %v4985_v50  ;;  %v5061_v48 = vld [vmem:[%s7314_s1 + $0x750] ss:$8 sps:$4 sm:$0xff]   ;;  %v5066_v50 = vld [vmem:[%s7314_s1 + $0x644] ss:$8 sps:$4 sm:$0xff]  }
  0x97   :  { %3517 = vmatpush1.bf16.msra.mxu0 %v4980_v51  ;;  %v5069_v51 = vld [vmem:[%s7314_s1 + $0x744] ss:$8 sps:$4 sm:$0xff]  }
  0x98   :  { %3558 = vmatpush1.bf16.msra.mxu1 %v4983_v52  ;;  %3518 = vmatprep.subr.bf16.mxu0 %v4988_v53  ;;  %v5064_v52 = vld [vmem:[%s7314_s1 + $0x640] ss:$8 sps:$4 sm:$0xff]  }
  0x99   :  { %3559 = vmatprep.subr.bf16.mxu1 %v4991_v54  ;;  %v5067_v53 = vld [vmem:[%s7314_s1 + $0x740] ss:$8 sps:$4 sm:$0xff]   ;;  %v5072_v54 = vld [vmem:[%s7314_s1 + $0x634] ss:$8 sps:$4 sm:$0xff]  }
  0x9b   :  { %3519 = vmatpush1.bf16.msra.mxu0 %v4986_v55  ;;  %v5075_v55 = vld [vmem:[%s7314_s1 + $0x734] ss:$8 sps:$4 sm:$0xff]  }
  0x9c   :  { %3560 = vmatpush1.bf16.msra.mxu1 %v4989_v56  ;;  %3520 = vmatprep.subr.bf16.mxu0 %v4994_v57  ;;  %v5070_v56 = vld [vmem:[%s7314_s1 + $0x630] ss:$8 sps:$4 sm:$0xff]  }
  0x9d   :  { %3561 = vmatprep.subr.bf16.mxu1 %v4997_v58  ;;  %v5073_v57 = vld [vmem:[%s7314_s1 + $0x730] ss:$8 sps:$4 sm:$0xff]   ;;  %v5078_v58 = vld [vmem:[%s7314_s1 + $0x624] ss:$8 sps:$4 sm:$0xff]  }
  0x9f   :  { %3521 = vmatpush1.bf16.msra.mxu0 %v4992_v59  ;;  %v5081_v59 = vld [vmem:[%s7314_s1 + $0x724] ss:$8 sps:$4 sm:$0xff]  }
  0xa0   :  { %3562 = vmatpush1.bf16.msra.mxu1 %v4995_v60  ;;  %3522 = vmatprep.subr.bf16.mxu0 %v5000_v61  ;;  %v5076_v60 = vld [vmem:[%s7314_s1 + $0x620] ss:$8 sps:$4 sm:$0xff]  }
  0xa1   :  { %3563 = vmatprep.subr.bf16.mxu1 %v5003_v62  ;;  %v5079_v61 = vld [vmem:[%s7314_s1 + $0x720] ss:$8 sps:$4 sm:$0xff]   ;;  %v5084_v62 = vld [vmem:[%s7314_s1 + $0x614] ss:$8 sps:$4 sm:$0xff]  }
  0xa3   :  { %3523 = vmatpush2.bf16.msra.mxu0 %v4998_v63  ;;  %v5087_v63 = vld [vmem:[%s7314_s1 + $0x714] ss:$8 sps:$4 sm:$0xff]  }
  0xa4   :  { %3564 = vmatpush2.bf16.msra.mxu1 %v5001_v0  ;;  %3524 = vmatprep.subr.bf16.mxu0 %v5006_v1  ;;  %v5082_v0 = vld [vmem:[%s7314_s1 + $0x610] ss:$8 sps:$4 sm:$0xff]  }
  0xa5   :  { %3565 = vmatprep.subr.bf16.mxu1 %v5009_v2  ;;  %v5085_v1 = vld [vmem:[%s7314_s1 + $0x710] ss:$8 sps:$4 sm:$0xff]   ;;  %v5090_v2 = vld [vmem:[%s7314_s1 + $0x604] ss:$8 sps:$4 sm:$0xff]  }
  0xa7   :  { %3525 = vmatpush2.bf16.msra.mxu0 %v5004_v3  ;;  %v5093_v3 = vld [vmem:[%s7314_s1 + $0x704] ss:$8 sps:$4 sm:$0xff]  }
  0xa8   :  { %3566 = vmatpush2.bf16.msra.mxu1 %v5007_v4  ;;  %3526 = vmatprep.subr.bf16.mxu0 %v5012_v5  ;;  %v5088_v4 = vld [vmem:[%s7314_s1 + $0x600] ss:$8 sps:$4 sm:$0xff]  }
  0xa9   :  { %3567 = vmatprep.subr.bf16.mxu1 %v5015_v7  ;;  %v5091_v5 = vld [vmem:[%s7314_s1 + $0x700] ss:$8 sps:$4 sm:$0xff]   ;;  %v5096_v7 = vld [vmem:[%s7314_s1 + $0x6f4] ss:$8 sps:$4 sm:$0xff]  }
  0xab   :  { %3527 = vmatpush2.bf16.msra.mxu0 %v5010_v8  ;;  %v5099_v8 = vld [vmem:[%s7314_s1 + $0x7f4] ss:$8 sps:$4 sm:$0xff]  }
  0xac   :  { %3568 = vmatpush2.bf16.msra.mxu1 %v5013_v9  ;;  %3528 = vmatprep.subr.bf16.mxu0 %v5018_v10  ;;  %v5094_v9 = vld [vmem:[%s7314_s1 + $0x6f0] ss:$8 sps:$4 sm:$0xff]  }
  0xad   :  { %3569 = vmatprep.subr.bf16.mxu1 %v5021_v11  ;;  %v5097_v10 = vld [vmem:[%s7314_s1 + $0x7f0] ss:$8 sps:$4 sm:$0xff]   ;;  %v5102_v11 = vld [vmem:[%s7314_s1 + $0x6e4] ss:$8 sps:$4 sm:$0xff]  }
  0xaf   :  { %3529 = vmatpush2.bf16.msra.mxu0 %v5016_v12  ;;  %v5105_v12 = vld [vmem:[%s7314_s1 + $0x7e4] ss:$8 sps:$4 sm:$0xff]  }
  0xb0   :  { %3570 = vmatpush2.bf16.msra.mxu1 %v5019_v13  ;;  %3530 = vmatprep.subr.bf16.mxu0 %v5024_v14  ;;  %v5100_v13 = vld [vmem:[%s7314_s1 + $0x6e0] ss:$8 sps:$4 sm:$0xff]  }
  0xb1   :  { %3571 = vmatprep.subr.bf16.mxu1 %v5027_v15  ;;  %v5103_v14 = vld [vmem:[%s7314_s1 + $0x7e0] ss:$8 sps:$4 sm:$0xff]   ;;  %v5108_v15 = vld [vmem:[%s7314_s1 + $0x6d4] ss:$8 sps:$4 sm:$0xff]  }
  0xb3   :  { %3531 = vmatpush2.bf16.msra.mxu0 %v5022_v16  ;;  %v5111_v16 = vld [vmem:[%s7314_s1 + $0x7d4] ss:$8 sps:$4 sm:$0xff]  }
  0xb4   :  { %3572 = vmatpush2.bf16.msra.mxu1 %v5025_v17  ;;  %3532 = vmatprep.subr.bf16.mxu0 %v5030_v18  ;;  %v5106_v17 = vld [vmem:[%s7314_s1 + $0x6d0] ss:$8 sps:$4 sm:$0xff]  }
  0xb5   :  { %3573 = vmatprep.subr.bf16.mxu1 %v5033_v19  ;;  %v5109_v18 = vld [vmem:[%s7314_s1 + $0x7d0] ss:$8 sps:$4 sm:$0xff]   ;;  %v5114_v19 = vld [vmem:[%s7314_s1 + $0x6c4] ss:$8 sps:$4 sm:$0xff]  }
  0xb7   :  { %3533 = vmatpush2.bf16.msra.mxu0 %v5028_v21  ;;  %v5112_v21 = vld [vmem:[%s7314_s1 + $0x6c0] ss:$8 sps:$4 sm:$0xff]  }
  0xb8   :  { %3574 = vmatpush2.bf16.msra.mxu1 %v5031_v22  ;;  %3534 = vmatprep.subr.bf16.mxu0 %v5036_v23  ;;  %v5115_v22 = vld [vmem:[%s7314_s1 + $0x7c0] ss:$8 sps:$4 sm:$0xff]   ;;  %v5120_v23 = vld [vmem:[%s7314_s1 + $0x6b4] ss:$8 sps:$4 sm:$0xff]  }
  0xb9   :  { %3575 = vmatprep.subr.bf16.mxu1 %v5039_v24  ;;  %v5123_v24 = vld [vmem:[%s7314_s1 + $0x7b4] ss:$8 sps:$4 sm:$0xff]  }
  0xbb   :  { %3535 = vmatpush2.bf16.msra.mxu0 %v5034_v25  ;;  %v5118_v25 = vld [vmem:[%s7314_s1 + $0x6b0] ss:$8 sps:$4 sm:$0xff]  }
  0xbc   :  { %3576 = vmatpush2.bf16.msra.mxu1 %v5037_v26  ;;  %3536 = vmatprep.subr.bf16.mxu0 %v5042_v27  ;;  %v5121_v26 = vld [vmem:[%s7314_s1 + $0x7b0] ss:$8 sps:$4 sm:$0xff]   ;;  %v5126_v27 = vld [vmem:[%s7314_s1 + $0x6a4] ss:$8 sps:$4 sm:$0xff]  }
  0xbd   :  { %3577 = vmatprep.subr.bf16.mxu1 %v5045_v28  ;;  %v5129_v28 = vld [vmem:[%s7314_s1 + $0x7a4] ss:$8 sps:$4 sm:$0xff]  }
  0xbf   :  { %3537 = vmatpush2.bf16.msra.mxu0 %v5040_v31  ;;  %v5127_v31 = vld [vmem:[%s7314_s1 + $0x7a0] ss:$8 sps:$4 sm:$0xff]  }
  0xc0   :  { %3578 = vmatpush2.bf16.msra.mxu1 %v5043_v33  ;;  %3588 = vmatprep.subr.bf16.mxu0 %v5048_v34  ;;  %v5132_v33 = vld [vmem:[%s7314_s1 + $0x694] ss:$8 sps:$4 sm:$0xff]  }
  0xc1   :  { %3629 = vmatprep.subr.bf16.mxu1 %v5051_v35  ;;  %v5135_v34 = vld [vmem:[%s7314_s1 + $0x794] ss:$8 sps:$4 sm:$0xff]  }
  0xc2   :  { %3539 = vmatmul.mubr.bf16.vlgmr.msra.gmra.mxu0 %v626_v32  ;;  %v6391_v32 = vld [vmem:[%s7313_s0 + $0x10] sm:$0xff] }
  0xc3   :  { %3580 = vmatmul.mubr.bf16.vlgmr.msra.gmra.mxu1 %v648_v37  ;;  %3589 = vmatpush1.bf16.msra.mxu0 %v5046_v29  ;;  %v6401_v35 = vrot.slane %v6391_v32, %v5738_v49  ;;  %v5133_v37 = vld [vmem:[%s7314_s1 + $0x790] ss:$8 sps:$4 sm:$0xff]   ;;  %v5138_v29 = vld [vmem:[%s7314_s1 + $0x684] ss:$8 sps:$4 sm:$0xff]  }
  0xc4   :  { %3630 = vmatpush1.bf16.msra.mxu1 %v5049_v38  ;;  %3590 = vmatprep.subr.bf16.mxu0 %v5054_v39  ;;  %v5141_v38 = vld [vmem:[%s7314_s1 + $0x784] ss:$8 sps:$4 sm:$0xff]   ;;  %v5136_v39 = vld [vmem:[%s7314_s1 + $0x680] ss:$8 sps:$4 sm:$0xff]  }
  0xc5   :  { %3631 = vmatprep.subr.bf16.mxu1 %v5057_v40  ;;  %3620 = vmatprep.mubr.bf16.mxu0 %v647_v36  ;;  %v5130_v36 = vld [vmem:[%s7314_s1 + $0x690] ss:$8 sps:$4 sm:$0xff]   ;;  %v667_v40 = vcombine.high %v6401_v35, %v6401_v35 }
  0xc6   :  { %3661 = vmatprep.mubr.bf16.mxu1 %v651_v41  ;;  %v5139_v41 = vld [vmem:[%s7314_s1 + $0x780] ss:$8 sps:$4 sm:$0xff]  }
  0xc7   :  { %3591 = vmatpush1.bf16.msra.mxu0 %v5052_v43  ;;  %v538_v43 = vld [vmem:[%s7315_s2] sm:$0x3] }
  0xc8   :  { %3632 = vmatpush1.bf16.msra.mxu1 %v5055_v44  ;;  %3592 = vmatprep.subr.bf16.mxu0 %v5060_v45  ;;  %v633_v44 = vrot.slane %v6195_v6, %v5738_v49  ;;  %v542_v45 = vsub.s32 0, %v5720_v42  ;;  %v5143_v6 = vld [vmem:[%s7314_s1 + $0x870] ss:$8 sps:$4 sm:$0xff]  }
  0xc9   :  { %3633 = vmatprep.subr.bf16.mxu1 %v5063_v46  ;;  %v5145_v46 = vld [vmem:[%s7314_s1 + $0x874] ss:$8 sps:$4 sm:$0xff]  }
  0xcb   :  { %3593 = vmatpush1.bf16.msra.mxu0 %v5058_v47  ;;  %v5148_v47 = vld [vmem:[%s7314_s1 + $0x974] ss:$8 sps:$4 sm:$0xff]  }
  0xcc   :  { %3634 = vmatpush1.bf16.msra.mxu1 %v5061_v48  ;;  %3594 = vmatprep.subr.bf16.mxu0 %v5066_v50  ;;  %v546_v48 = vsub.s32 1, %v5720_v42  ;;  %v689_v50 = vrot.slane %v667_v40, %v5738_v49  ;;  %v5154_v42 = vld [vmem:[%s7314_s1 + $0x964] ss:$8 sps:$4 sm:$0xff]   ;;  %v5197_v40 = vld [vmem:[%s7314_s1 + $0x8e0] ss:$8 sps:$4 sm:$0xff]  }
  0xcd   :  { %3635 = vmatprep.subr.bf16.mxu1 %v5069_v51  ;;  %v649_v51 = vcombine.high %v633_v44, %v633_v44 }
  0xcf   :  { %3595 = vmatpush1.bf16.msra.mxu0 %v5064_v52  ;;  %v5146_v52 = vld [vmem:[%s7314_s1 + $0x970] ss:$8 sps:$4 sm:$0xff]  }
  0xd0   :  { %3636 = vmatpush1.bf16.msra.mxu1 %v5067_v53  ;;  %3596 = vmatprep.subr.bf16.mxu0 %v5072_v54  ;;  %v543_v53 = vrot.slane %v538_v43, %v542_v45  ;;  %v5151_v54 = vld [vmem:[%s7314_s1 + $0x864] ss:$8 sps:$4 sm:$0xff]   ;;  %v5203_v45 = vld [vmem:[%s7314_s1 + $0x8d0] ss:$8 sps:$4 sm:$0xff]  }
  0xd1   :  { %3637 = vmatprep.subr.bf16.mxu1 %v5075_v55  ;;  %v547_v55 = vrot.slane %v538_v43, %v546_v48  ;;  %v5205_v43 = vld [vmem:[%s7314_s1 + $0x8d4] ss:$8 sps:$4 sm:$0xff]   ;;  %v5214_v48 = vld [vmem:[%s7314_s1 + $0x9c4] ss:$8 sps:$4 sm:$0xff]  }
  0xd3   :  { %3597 = vmatpush1.bf16.msra.mxu0 %v5070_v56  ;;  %v699_v56 = vcombine.high %v689_v50, %v689_v50 }
  0xd4   :  { %3638 = vmatpush1.bf16.msra.mxu1 %v5073_v57  ;;  %3598 = vmatprep.subr.bf16.mxu0 %v5078_v58 }
  0xd5   :  { %3639 = vmatprep.subr.bf16.mxu1 %v5081_v59  ;;  %v5149_v59 = vld [vmem:[%s7314_s1 + $0x860] ss:$8 sps:$4 sm:$0xff]  }
  0xd7   :  { %3599 = vmatpush1.bf16.msra.mxu0 %v5076_v60  ;;  %v5152_v60 = vld [vmem:[%s7314_s1 + $0x960] ss:$8 sps:$4 sm:$0xff]  }
  0xd8   :  { %3640 = vmatpush1.bf16.msra.mxu1 %v5079_v61  ;;  %3600 = vmatprep.subr.bf16.mxu0 %v5084_v62 }
  0xd9   :  { %3641 = vmatprep.subr.bf16.mxu1 %v5087_v63 }
  0xdb   :  { %3601 = vmatpush1.bf16.msra.mxu0 %v5082_v0  ;;  %v5157_v0 = vld [vmem:[%s7314_s1 + $0x854] ss:$8 sps:$4 sm:$0xff]  }
  0xdc   :  { %3642 = vmatpush1.bf16.msra.mxu1 %v5085_v1  ;;  %3602 = vmatprep.subr.bf16.mxu0 %v5090_v2  ;;  %v5160_v1 = vld [vmem:[%s7314_s1 + $0x954] ss:$8 sps:$4 sm:$0xff]  }
  0xdd   :  { %3643 = vmatprep.subr.bf16.mxu1 %v5093_v3 }
  0xdf   :  { %3603 = vmatpush1.bf16.msra.mxu0 %v5088_v4  ;;  %v5155_v4 = vld [vmem:[%s7314_s1 + $0x850] ss:$8 sps:$4 sm:$0xff]  }
  0xe0   :  { %3644 = vmatpush1.bf16.msra.mxu1 %v5091_v5  ;;  %3604 = vmatprep.subr.bf16.mxu0 %v5096_v7  ;;  %v5158_v5 = vld [vmem:[%s7314_s1 + $0x950] ss:$8 sps:$4 sm:$0xff]  }
  0xe1   :  { %3645 = vmatprep.subr.bf16.mxu1 %v5099_v8 }
  0xe3   :  { %3605 = vmatpush2.bf16.msra.mxu0 %v5094_v9 }
  0xe4   :  { %3646 = vmatpush2.bf16.msra.mxu1 %v5097_v10  ;;  %3606 = vmatprep.subr.bf16.mxu0 %v5102_v11 }
  0xe5   :  { %3647 = vmatprep.subr.bf16.mxu1 %v5105_v12  ;;  %v5163_v12 = vld [vmem:[%s7314_s1 + $0x844] ss:$8 sps:$4 sm:$0xff]  }
  0xe7   :  { %3607 = vmatpush2.bf16.msra.mxu0 %v5100_v13  ;;  %v5166_v13 = vld [vmem:[%s7314_s1 + $0x944] ss:$8 sps:$4 sm:$0xff]  }
  0xe8   :  { %3648 = vmatpush2.bf16.msra.mxu1 %v5103_v14  ;;  %3608 = vmatprep.subr.bf16.mxu0 %v5108_v15  ;;  %v5161_v14 = vld [vmem:[%s7314_s1 + $0x840] ss:$8 sps:$4 sm:$0xff]  }
  0xe9   :  { %3649 = vmatprep.subr.bf16.mxu1 %v5111_v16  ;;  %v5164_v15 = vld [vmem:[%s7314_s1 + $0x940] ss:$8 sps:$4 sm:$0xff]   ;;  %v5169_v16 = vld [vmem:[%s7314_s1 + $0x834] ss:$8 sps:$4 sm:$0xff]  }
  0xeb   :  { %3609 = vmatpush2.bf16.msra.mxu0 %v5106_v17  ;;  %v5172_v17 = vld [vmem:[%s7314_s1 + $0x934] ss:$8 sps:$4 sm:$0xff]  }
  0xec   :  { %3650 = vmatpush2.bf16.msra.mxu1 %v5109_v18  ;;  %3610 = vmatprep.subr.bf16.mxu0 %v5114_v19  ;;  %v5167_v18 = vld [vmem:[%s7314_s1 + $0x830] ss:$8 sps:$4 sm:$0xff]  }
  0xed   :  { %3651 = vmatprep.subr.bf16.mxu1 %v5117_v20  ;;  %v5170_v19 = vld [vmem:[%s7314_s1 + $0x930] ss:$8 sps:$4 sm:$0xff]   ;;  %v5175_v20 = vld [vmem:[%s7314_s1 + $0x824] ss:$8 sps:$4 sm:$0xff]  }
  0xef   :  { %3611 = vmatpush2.bf16.msra.mxu0 %v5112_v21  ;;  %v5178_v21 = vld [vmem:[%s7314_s1 + $0x924] ss:$8 sps:$4 sm:$0xff]  }
  0xf0   :  { %3652 = vmatpush2.bf16.msra.mxu1 %v5115_v22  ;;  %3612 = vmatprep.subr.bf16.mxu0 %v5120_v23  ;;  %v5173_v22 = vld [vmem:[%s7314_s1 + $0x820] ss:$8 sps:$4 sm:$0xff]  }
  0xf1   :  { %3653 = vmatprep.subr.bf16.mxu1 %v5123_v24  ;;  %v5176_v23 = vld [vmem:[%s7314_s1 + $0x920] ss:$8 sps:$4 sm:$0xff]   ;;  %v5181_v24 = vld [vmem:[%s7314_s1 + $0x814] ss:$8 sps:$4 sm:$0xff]  }
  0xf3   :  { %3613 = vmatpush2.bf16.msra.mxu0 %v5118_v25  ;;  %v5184_v25 = vld [vmem:[%s7314_s1 + $0x914] ss:$8 sps:$4 sm:$0xff]  }
  0xf4   :  { %3654 = vmatpush2.bf16.msra.mxu1 %v5121_v26  ;;  %3614 = vmatprep.subr.bf16.mxu0 %v5126_v27  ;;  %v5179_v26 = vld [vmem:[%s7314_s1 + $0x810] ss:$8 sps:$4 sm:$0xff]  }
  0xf5   :  { %3655 = vmatprep.subr.bf16.mxu1 %v5129_v28  ;;  %v5182_v27 = vld [vmem:[%s7314_s1 + $0x910] ss:$8 sps:$4 sm:$0xff]   ;;  %v5187_v28 = vld [vmem:[%s7314_s1 + $0x804] ss:$8 sps:$4 sm:$0xff]  }
  0xf7   :  { %3615 = vmatpush2.bf16.msra.mxu0 %v5124_v30  ;;  %v5190_v30 = vld [vmem:[%s7314_s1 + $0x904] ss:$8 sps:$4 sm:$0xff]  }
  0xf8   :  { %3656 = vmatpush2.bf16.msra.mxu1 %v5127_v31  ;;  %3616 = vmatprep.subr.bf16.mxu0 %v5132_v33  ;;  %v5185_v31 = vld [vmem:[%s7314_s1 + $0x800] ss:$8 sps:$4 sm:$0xff]  }
  0xf9   :  { %3657 = vmatprep.subr.bf16.mxu1 %v5135_v34  ;;  %v5188_v33 = vld [vmem:[%s7314_s1 + $0x900] ss:$8 sps:$4 sm:$0xff]   ;;  %v5193_v34 = vld [vmem:[%s7314_s1 + $0x8f4] ss:$8 sps:$4 sm:$0xff]  }
  0xfb   :  { %3617 = vmatpush2.bf16.msra.mxu0 %v5130_v36  ;;  %v5196_v36 = vld [vmem:[%s7314_s1 + $0x9f4] ss:$8 sps:$4 sm:$0xff]  }
  0xfc   :  { %3658 = vmatpush2.bf16.msra.mxu1 %v5133_v37  ;;  %3618 = vmatprep.subr.bf16.mxu0 %v5138_v29  ;;  %v5191_v37 = vld [vmem:[%s7314_s1 + $0x8f0] ss:$8 sps:$4 sm:$0xff]  }
  0xfd   :  { %3659 = vmatprep.subr.bf16.mxu1 %v5141_v38  ;;  %v5194_v29 = vld [vmem:[%s7314_s1 + $0x9f0] ss:$8 sps:$4 sm:$0xff]   ;;  %v5199_v38 = vld [vmem:[%s7314_s1 + $0x8e4] ss:$8 sps:$4 sm:$0xff]  }
  0xff   :  { %3619 = vmatpush2.bf16.msra.mxu0 %v5136_v39  ;;  %v5202_v39 = vld [vmem:[%s7314_s1 + $0x9e4] ss:$8 sps:$4 sm:$0xff]  }
 0x100   :  { %3660 = vmatpush2.bf16.msra.mxu1 %v5139_v41  ;;  %3670 = vmatprep.subr.bf16.mxu0 %v5145_v46  ;;  %v5200_v41 = vld [vmem:[%s7314_s1 + $0x9e0] ss:$8 sps:$4 sm:$0xff]   ;;  %v5206_v46 = vld [vmem:[%s7314_s1 + $0x9d0] ss:$8 sps:$4 sm:$0xff]  }
 0x101   :  { %3711 = vmatprep.subr.bf16.mxu1 %v5148_v47  ;;  %v5211_v47 = vld [vmem:[%s7314_s1 + $0x8c4] ss:$8 sps:$4 sm:$0xff]  }
 0x102   :  { %v3376_v57 = vpop.f32.mrf.mxu0  ;;  %3621 = vmatmul.mubr.bf16.vlgmr.msra.gmra.mxu0 %v633_v44  ;;  %v5208_v44 = vld [vmem:[%s7314_s1 + $0x9d4] ss:$8 sps:$4 sm:$0xff]  }
 0x103   :  { %v3417_v58 = vpop.f32.mrf.mxu1  ;;  %3662 = vmatmul.mubr.bf16.vlgmr.msra.gmra.mxu1 %v649_v51  ;;  %v3377_v61 = vadd.f32 %v3376_v57, %v543_v53  ;;  %3671 = vmatpush1.bf16.msra.mxu0 %v5143_v6  ;;  %v5212_v51 = vld [vmem:[%s7314_s1 + $0x9c0] ss:$8 sps:$4 sm:$0xff]   ;;  %v5217_v6 = vld [vmem:[%s7314_s1 + $0x8b4] ss:$8 sps:$4 sm:$0xff]   ;;  %v5215_v53 = vld [vmem:[%s7314_s1 + $0x8b0] ss:$8 sps:$4 sm:$0xff]  }
 0x104   :  { %3712 = vmatpush1.bf16.msra.mxu1 %v5146_v52  ;;  %v3378_v62 = vpop.f32.mrf.mxu0  ;;  %3672 = vmatprep.subr.bf16.mxu0 %v5151_v54  ;;  %v5220_v52 = vld [vmem:[%s7314_s1 + $0x9b4] ss:$8 sps:$4 sm:$0xff]   ;;  %v5218_v54 = vld [vmem:[%s7314_s1 + $0x9b0] ss:$8 sps:$4 sm:$0xff]   ;;  %v5221_v57 = vld [vmem:[%s7314_s1 + $0x8a0] ss:$8 sps:$4 sm:$0xff]  }
 0x105   :  { %v3419_v63 = vpop.f32.mrf.mxu1  ;;  %3713 = vmatprep.subr.bf16.mxu1 %v5154_v42  ;;  %v6461_v2 = vadd.f32 %v3417_v58, %v3377_v61  ;;  %v3379_v3 = vadd.f32 %v3378_v62, %v547_v55  ;;  %3702 = vmatprep.mubr.bf16.mxu0 %v689_v50  ;;  %v5209_v50 = vld [vmem:[%s7314_s1 + $0x8c0] ss:$8 sps:$4 sm:$0xff]   ;;  %v5223_v42 = vld [vmem:[%s7314_s1 + $0x8a4] ss:$8 sps:$4 sm:$0xff]   ;;  %v5227_v61 = vld [vmem:[%s7314_s1 + $0x890] ss:$8 sps:$4 sm:$0xff]  }
 0x106   :  { %3743 = vmatprep.mubr.bf16.mxu1 %v699_v56  ;;  %v3380_v7 = vpop.f32.mrf.mxu0  ;;  %v5226_v55 = vld [vmem:[%s7314_s1 + $0x9a4] ss:$8 sps:$4 sm:$0xff]   ;;  %v652_v56 = vcombine.high %v6391_v32, %v6391_v32  ;;  %v5224_v58 = vld [vmem:[%s7314_s1 + $0x9a0] ss:$8 sps:$4 sm:$0xff]   ;;  %v5232_v32 = vld [vmem:[%s7314_s1 + $0x994] ss:$8 sps:$4 sm:$0xff]  }
 0x107   :  { %v3421_v8 = vpop.f32.mrf.mxu1  ;;  %v6469_v9 = vadd.f32 %v3419_v63, %v3379_v3  ;;  %3673 = vmatpush1.bf16.msra.mxu0 %v5149_v59  ;;  %v5229_v59 = vld [vmem:[%s7314_s1 + $0x894] ss:$8 sps:$4 sm:$0xff]   ;;  %v5230_v62 = vld [vmem:[%s7314_s1 + $0x990] ss:$8 sps:$4 sm:$0xff]   ;;  %v5235_v63 = vld [vmem:[%s7314_s1 + $0x884] ss:$8 sps:$4 sm:$0xff]   ;;  %v675_v3 = vrot.slane %v6401_v35, %v5738_v49 }
 0x108   :  { %3714 = vmatpush1.bf16.msra.mxu1 %v5152_v60  ;;  %v3381_v10 = vpop.f32.mrf.mxu0  ;;  %3674 = vmatprep.subr.bf16.mxu0 %v5157_v0  ;;  %v6612_v60 = vrot.slane %v652_v56, %v5738_v49  ;;  %v5238_v0 = vld [vmem:[%s7314_s1 + $0x984] ss:$8 sps:$4 sm:$0xff]   ;;  %v5241_v7 = vld [vmem:[%s7314_s1 + $0xa74] ss:$8 sps:$4 sm:$0xff]   ;;  %v5239_v8 = vld [vmem:[%s7314_s1 + $0xa70] ss:$8 sps:$4 sm:$0xff]  }
 0x109   :  { %v3422_v11 = vpop.f32.mrf.mxu1  ;;  %3715 = vmatprep.subr.bf16.mxu1 %v5160_v1  ;;  %v5244_v35 = vld [vmem:[%s7314_s1 + $0xb74] ss:$8 sps:$4 sm:$0xff]   ;;  %v5242_v10 = vld [vmem:[%s7314_s1 + $0xb70] ss:$8 sps:$4 sm:$0xff]  }
 0x10a   :  { %v668_v1 = vcombine.high %v6612_v60, %v6612_v60 }
 0x10b   :  { %3675 = vmatpush1.bf16.msra.mxu0 %v5155_v4  ;;  %v5233_v4 = vld [vmem:[%s7314_s1 + $0x880] ss:$8 sps:$4 sm:$0xff]  }
 0x10c   :  { %3716 = vmatpush1.bf16.msra.mxu1 %v5158_v5  ;;  %3676 = vmatprep.subr.bf16.mxu0 %v5163_v12  ;;  %v5236_v5 = vld [vmem:[%s7314_s1 + $0x980] ss:$8 sps:$4 sm:$0xff]   ;;  %v696_v11 = vrot.slane %v668_v1, %v5738_v49  ;;  %v697_v12 = vcombine.high %v675_v3, %v675_v3 }
 0x10d   :  { %3717 = vmatprep.subr.bf16.mxu1 %v5166_v13  ;;  %v5247_v13 = vld [vmem:[%s7314_s1 + $0xa64] ss:$8 sps:$4 sm:$0xff]  }
 0x10f   :  { %3677 = vmatpush1.bf16.msra.mxu0 %v5161_v14  ;;  %v5250_v14 = vld [vmem:[%s7314_s1 + $0xb64] ss:$8 sps:$4 sm:$0xff]  }
 0x110   :  { %3718 = vmatpush1.bf16.msra.mxu1 %v5164_v15  ;;  %3678 = vmatprep.subr.bf16.mxu0 %v5169_v16  ;;  %v5245_v15 = vld [vmem:[%s7314_s1 + $0xa60] ss:$8 sps:$4 sm:$0xff]  }
 0x111   :  { %3719 = vmatprep.subr.bf16.mxu1 %v5172_v17  ;;  %v5248_v16 = vld [vmem:[%s7314_s1 + $0xb60] ss:$8 sps:$4 sm:$0xff]   ;;  %v700_v17 = vcombine.high %v696_v11, %v696_v11 }
 0x113   :  { %3679 = vmatpush1.bf16.msra.mxu0 %v5167_v18 }
 0x114   :  { %3720 = vmatpush1.bf16.msra.mxu1 %v5170_v19  ;;  %3680 = vmatprep.subr.bf16.mxu0 %v5175_v20 }
 0x115   :  { %3721 = vmatprep.subr.bf16.mxu1 %v5178_v21 }
 0x117   :  { %3681 = vmatpush1.bf16.msra.mxu0 %v5173_v22 }
 0x118   :  { %3722 = vmatpush1.bf16.msra.mxu1 %v5176_v23  ;;  %3682 = vmatprep.subr.bf16.mxu0 %v5181_v24  ;;  %v5253_v23 = vld [vmem:[%s7314_s1 + $0xa54] ss:$8 sps:$4 sm:$0xff]  }
 0x119   :  { %3723 = vmatprep.subr.bf16.mxu1 %v5184_v25  ;;  %v5256_v24 = vld [vmem:[%s7314_s1 + $0xb54] ss:$8 sps:$4 sm:$0xff]  }
 0x11b   :  { %3683 = vmatpush1.bf16.msra.mxu0 %v5179_v26 }
 0x11c   :  { %3724 = vmatpush1.bf16.msra.mxu1 %v5182_v27  ;;  %3684 = vmatprep.subr.bf16.mxu0 %v5187_v28  ;;  %v5254_v27 = vld [vmem:[%s7314_s1 + $0xb50] ss:$8 sps:$4 sm:$0xff]  }
 0x11d   :  { %3725 = vmatprep.subr.bf16.mxu1 %v5190_v30 }
 0x11f   :  { %3685 = vmatpush1.bf16.msra.mxu0 %v5185_v31 }
 0x120   :  { %3726 = vmatpush1.bf16.msra.mxu1 %v5188_v33  ;;  %3686 = vmatprep.subr.bf16.mxu0 %v5193_v34 }
 0x121   :  { %3727 = vmatprep.subr.bf16.mxu1 %v5196_v36  ;;  %v5262_v36 = vld [vmem:[%s7314_s1 + $0xb44] ss:$8 sps:$4 sm:$0xff]  }
 0x123   :  { %3687 = vmatpush2.bf16.msra.mxu0 %v5191_v37  ;;  %v5257_v37 = vld [vmem:[%s7314_s1 + $0xa40] ss:$8 sps:$4 sm:$0xff]  }
 0x124   :  { %3728 = vmatpush2.bf16.msra.mxu1 %v5194_v29  ;;  %3688 = vmatprep.subr.bf16.mxu0 %v5199_v38  ;;  %v5260_v29 = vld [vmem:[%s7314_s1 + $0xb40] ss:$8 sps:$4 sm:$0xff]   ;;  %v5265_v38 = vld [vmem:[%s7314_s1 + $0xa34] ss:$8 sps:$4 sm:$0xff]  }
 0x125   :  { %3729 = vmatprep.subr.bf16.mxu1 %v5202_v39  ;;  %v5268_v39 = vld [vmem:[%s7314_s1 + $0xb34] ss:$8 sps:$4 sm:$0xff]  }
 0x127   :  { %3689 = vmatpush2.bf16.msra.mxu0 %v5197_v40  ;;  %v5263_v40 = vld [vmem:[%s7314_s1 + $0xa30] ss:$8 sps:$4 sm:$0xff]  }
 0x128   :  { %3730 = vmatpush2.bf16.msra.mxu1 %v5200_v41  ;;  %3690 = vmatprep.subr.bf16.mxu0 %v5205_v43  ;;  %v5266_v41 = vld [vmem:[%s7314_s1 + $0xb30] ss:$8 sps:$4 sm:$0xff]   ;;  %v5271_v43 = vld [vmem:[%s7314_s1 + $0xa24] ss:$8 sps:$4 sm:$0xff]  }
 0x129   :  { %3731 = vmatprep.subr.bf16.mxu1 %v5208_v44  ;;  %v5274_v44 = vld [vmem:[%s7314_s1 + $0xb24] ss:$8 sps:$4 sm:$0xff]  }
 0x12b   :  { %3691 = vmatpush2.bf16.msra.mxu0 %v5203_v45 }
 0x12c   :  { %3732 = vmatpush2.bf16.msra.mxu1 %v5206_v46  ;;  %3692 = vmatprep.subr.bf16.mxu0 %v5211_v47 }
 0x12d   :  { %3733 = vmatprep.subr.bf16.mxu1 %v5214_v48 }
 0x12f   :  { %3693 = vmatpush2.bf16.msra.mxu0 %v5209_v50 }
 0x130   :  { %3734 = vmatpush2.bf16.msra.mxu1 %v5212_v51  ;;  %3694 = vmatprep.subr.bf16.mxu0 %v5217_v6 }
 0x131   :  { %3735 = vmatprep.subr.bf16.mxu1 %v5220_v52 }
 0x133   :  { %3695 = vmatpush2.bf16.msra.mxu0 %v5215_v53 }
 0x134   :  { %3736 = vmatpush2.bf16.msra.mxu1 %v5218_v54  ;;  %3696 = vmatprep.subr.bf16.mxu0 %v5223_v42 }
 0x135   :  { %3737 = vmatprep.subr.bf16.mxu1 %v5226_v55 }
 0x137   :  { %3697 = vmatpush2.bf16.msra.mxu0 %v5221_v57 }
 0x138   :  { %3738 = vmatpush2.bf16.msra.mxu1 %v5224_v58  ;;  %3698 = vmatprep.subr.bf16.mxu0 %v5229_v59 }
 0x139   :  { %3739 = vmatprep.subr.bf16.mxu1 %v5232_v32 }
 0x13b   :  { %3699 = vmatpush2.bf16.msra.mxu0 %v5227_v61 }
 0x13c   :  { %3740 = vmatpush2.bf16.msra.mxu1 %v5230_v62  ;;  %3700 = vmatprep.subr.bf16.mxu0 %v5235_v63 }
 0x13d   :  { %3741 = vmatprep.subr.bf16.mxu1 %v5238_v0 }
 0x13f   :  { %3701 = vmatpush2.bf16.msra.mxu0 %v5233_v4 }
 0x140   :  { %3742 = vmatpush2.bf16.msra.mxu1 %v5236_v5  ;;  %3752 = vmatprep.subr.bf16.mxu0 %v5241_v7 }
 0x141   :  { %3793 = vmatprep.subr.bf16.mxu1 %v5244_v35 }
 0x142   :  { %v3458_v18 = vpop.f32.mrf.mxu0  ;;  %3703 = vmatmul.mubr.bf16.vlgmr.msra.gmra.mxu0 %v675_v3 }
 0x143   :  { %v3499_v19 = vpop.f32.mrf.mxu1  ;;  %3744 = vmatmul.mubr.bf16.vlgmr.msra.gmra.mxu1 %v697_v12  ;;  %v3459_v20 = vadd.f32 %v3458_v18, %v6461_v2  ;;  %3753 = vmatpush1.bf16.msra.mxu0 %v5239_v8  ;;  %v5251_v2 = vld [vmem:[%s7314_s1 + $0xa50] ss:$8 sps:$4 sm:$0xff]  }
 0x144   :  { %3794 = vmatpush1.bf16.msra.mxu1 %v5242_v10  ;;  %v3460_v21 = vpop.f32.mrf.mxu0  ;;  %3754 = vmatprep.subr.bf16.mxu0 %v5247_v13 }
 0x145   :  { %v3501_v22 = vpop.f32.mrf.mxu1  ;;  %3795 = vmatprep.subr.bf16.mxu1 %v5250_v14  ;;  %v6668_v25 = vadd.f32 %v3499_v19, %v3459_v20  ;;  %v3461_v26 = vadd.f32 %v3460_v21, %v6469_v9  ;;  %3784 = vmatprep.mubr.bf16.mxu0 %v696_v11  ;;  %v5259_v9 = vld [vmem:[%s7314_s1 + $0xa44] ss:$8 sps:$4 sm:$0xff]  }
 0x146   :  { %3825 = vmatprep.mubr.bf16.mxu1 %v700_v17  ;;  %v3462_v28 = vpop.f32.mrf.mxu0 }
 0x147   :  { %v3503_v30 = vpop.f32.mrf.mxu1  ;;  %v6677_v31 = vadd.f32 %v3501_v22, %v3461_v26  ;;  %3755 = vmatpush1.bf16.msra.mxu0 %v5245_v15 }
 0x148   :  { %3796 = vmatpush1.bf16.msra.mxu1 %v5248_v16  ;;  %v3463_v33 = vpop.f32.mrf.mxu0  ;;  %3756 = vmatprep.subr.bf16.mxu0 %v5253_v23 }
 0x149   :  { %v3504_v34 = vpop.f32.mrf.mxu1  ;;  %3797 = vmatprep.subr.bf16.mxu1 %v5256_v24 }
 0x14b   :  { %3757 = vmatpush1.bf16.msra.mxu0 %v5251_v2 }
 0x14c   :  { %3798 = vmatpush1.bf16.msra.mxu1 %v5254_v27  ;;  %3758 = vmatprep.subr.bf16.mxu0 %v5259_v9 }
 0x14d   :  { %3799 = vmatprep.subr.bf16.mxu1 %v5262_v36 }
 0x14f   :  { %3759 = vmatpush1.bf16.msra.mxu0 %v5257_v37 }
 0x150   :  { %3800 = vmatpush1.bf16.msra.mxu1 %v5260_v29  ;;  %3760 = vmatprep.subr.bf16.mxu0 %v5265_v38 }
 0x151   :  { %3801 = vmatprep.subr.bf16.mxu1 %v5268_v39 }
 0x152   :  { %10 = vsyncpa [#allocation3], 0  ;;  %v5269_v45 = vld [vmem:[%s7314_s1 + $0xa20] ss:$8 sps:$4 sm:$0xff]   ;;  %v5277_v47 = vld [vmem:[%s7314_s1 + $0xa14] ss:$8 sps:$4 sm:$0xff]   ;;  %v682_v26 = vrot.slane %v6612_v60, %v5738_v49 }
 0x153   :  { %3761 = vmatpush1.bf16.msra.mxu0 %v5263_v40  ;;  %v5272_v46 = vld [vmem:[%s7314_s1 + $0xb20] ss:$8 sps:$4 sm:$0xff]   ;;  %v5280_v48 = vld [vmem:[%s7314_s1 + $0xb14] ss:$8 sps:$4 sm:$0xff]   ;;  %v5275_v50 = vld [vmem:[%s7314_s1 + $0xa10] ss:$8 sps:$4 sm:$0xff]  }
 0x154   :  { %3802 = vmatpush1.bf16.msra.mxu1 %v5266_v41  ;;  %3762 = vmatprep.subr.bf16.mxu0 %v5271_v43  ;;  %v5278_v51 = vld [vmem:[%s7314_s1 + $0xb10] ss:$8 sps:$4 sm:$0xff]   ;;  %v5283_v6 = vld [vmem:[%s7314_s1 + $0xa04] ss:$8 sps:$4 sm:$0xff]   ;;  %v5281_v53 = vld [vmem:[%s7314_s1 + $0xa00] ss:$8 sps:$4 sm:$0xff]   ;;  %v698_v33 = vcombine.high %v682_v26, %v682_v26 }
 0x155   :  { %3803 = vmatprep.subr.bf16.mxu1 %v5274_v44  ;;  %v5286_v52 = vld [vmem:[%s7314_s1 + $0xb04] ss:$8 sps:$4 sm:$0xff]   ;;  %v5284_v54 = vld [vmem:[%s7314_s1 + $0xb00] ss:$8 sps:$4 sm:$0xff]   ;;  %v5289_v42 = vld [vmem:[%s7314_s1 + $0xaf4] ss:$8 sps:$4 sm:$0xff]  }
 0x156   :  { %v5292_v55 = vld [vmem:[%s7314_s1 + $0xbf4] ss:$8 sps:$4 sm:$0xff]   ;;  %v5287_v56 = vld [vmem:[%s7314_s1 + $0xaf0] ss:$8 sps:$4 sm:$0xff]   ;;  %v5295_v58 = vld [vmem:[%s7314_s1 + $0xae4] ss:$8 sps:$4 sm:$0xff]  }
 0x157   :  { %3763 = vmatpush1.bf16.msra.mxu0 %v5269_v45  ;;  %v5290_v57 = vld [vmem:[%s7314_s1 + $0xbf0] ss:$8 sps:$4 sm:$0xff]   ;;  %v5298_v59 = vld [vmem:[%s7314_s1 + $0xbe4] ss:$8 sps:$4 sm:$0xff]   ;;  %v5293_v32 = vld [vmem:[%s7314_s1 + $0xae0] ss:$8 sps:$4 sm:$0xff]  }
 0x158   :  { %3804 = vmatpush1.bf16.msra.mxu1 %v5272_v46  ;;  %3764 = vmatprep.subr.bf16.mxu0 %v5277_v47  ;;  %v5296_v61 = vld [vmem:[%s7314_s1 + $0xbe0] ss:$8 sps:$4 sm:$0xff]   ;;  %v5301_v62 = vld [vmem:[%s7314_s1 + $0xad4] ss:$8 sps:$4 sm:$0xff]   ;;  %v5299_v0 = vld [vmem:[%s7314_s1 + $0xad0] ss:$8 sps:$4 sm:$0xff]  }
 0x159   :  { %3805 = vmatprep.subr.bf16.mxu1 %v5280_v48  ;;  %v5304_v63 = vld [vmem:[%s7314_s1 + $0xbd4] ss:$8 sps:$4 sm:$0xff]   ;;  %v5302_v1 = vld [vmem:[%s7314_s1 + $0xbd0] ss:$8 sps:$4 sm:$0xff]   ;;  %v5307_v3 = vld [vmem:[%s7314_s1 + $0xac4] ss:$8 sps:$4 sm:$0xff]  }
 0x15a   :  { %v5310_v4 = vld [vmem:[%s7314_s1 + $0xbc4] ss:$8 sps:$4 sm:$0xff]   ;;  %v5305_v5 = vld [vmem:[%s7314_s1 + $0xac0] ss:$8 sps:$4 sm:$0xff]   ;;  %v5313_v35 = vld [vmem:[%s7314_s1 + $0xab4] ss:$8 sps:$4 sm:$0xff]  }
 0x15b   :  { %3765 = vmatpush1.bf16.msra.mxu0 %v5275_v50  ;;  %v5308_v7 = vld [vmem:[%s7314_s1 + $0xbc0] ss:$8 sps:$4 sm:$0xff]   ;;  %v5316_v8 = vld [vmem:[%s7314_s1 + $0xbb4] ss:$8 sps:$4 sm:$0xff]   ;;  %v5311_v10 = vld [vmem:[%s7314_s1 + $0xab0] ss:$8 sps:$4 sm:$0xff]  }
 0x15c   :  { %3806 = vmatpush1.bf16.msra.mxu1 %v5278_v51  ;;  %3766 = vmatprep.subr.bf16.mxu0 %v5283_v6  ;;  %v5314_v11 = vld [vmem:[%s7314_s1 + $0xbb0] ss:$8 sps:$4 sm:$0xff]   ;;  %v5319_v12 = vld [vmem:[%s7314_s1 + $0xaa4] ss:$8 sps:$4 sm:$0xff]   ;;  %v5317_v15 = vld [vmem:[%s7314_s1 + $0xaa0] ss:$8 sps:$4 sm:$0xff]  }
 0x15d   :  { %3807 = vmatprep.subr.bf16.mxu1 %v5286_v52  ;;  %v5322_v13 = vld [vmem:[%s7314_s1 + $0xba4] ss:$8 sps:$4 sm:$0xff]   ;;  %v6808_v14 = vld [vmem:[%s7313_s0 + $0x18] sm:$0xff]  ;;  %v5320_v16 = vld [vmem:[%s7314_s1 + $0xba0] ss:$8 sps:$4 sm:$0xff]   ;;  %vm4177_vm0 = vcmask 1041408  }
 0x15e   :  { %v5325_v17 = vld [vmem:[%s7314_s1 + $0xa94] ss:$8 sps:$4 sm:$0xff]   ;;  %v6824_v19 = vrot.slane %v6808_v14, %v5738_v49  ;;  %v5323_v20 = vld [vmem:[%s7314_s1 + $0xa90] ss:$8 sps:$4 sm:$0xff]   ;;  %v5331_v22 = vld [vmem:[%s7314_s1 + $0xa84] ss:$8 sps:$4 sm:$0xff]  }
 0x15f   :  { %3767 = vmatpush1.bf16.msra.mxu0 %v5281_v53  ;;  %v5328_v18 = vld [vmem:[%s7314_s1 + $0xb94] ss:$8 sps:$4 sm:$0xff]   ;;  %v5326_v21 = vld [vmem:[%s7314_s1 + $0xb90] ss:$8 sps:$4 sm:$0xff]   ;;  %v5334_v23 = vld [vmem:[%s7314_s1 + $0xb84] ss:$8 sps:$4 sm:$0xff]  }
 0x160   :  { %3808 = vmatpush1.bf16.msra.mxu1 %v5284_v54  ;;  %3768 = vmatprep.subr.bf16.mxu0 %v5289_v42  ;;  %v716_v24 = vcombine.high %v6824_v19, %v6824_v19  ;;  %v5329_v2 = vld [vmem:[%s7314_s1 + $0xa80] ss:$8 sps:$4 sm:$0xff]   ;;  %v5338_v28 = vld [vmem:[%s7314_s1 + $0xc74] ss:$8 sps:$4 sm:$0xff]   ;;  %v5336_v34 = vld [vmem:[%s7314_s1 + $0xc70] ss:$8 sps:$4 sm:$0xff]  }
 0x161   :  { %3809 = vmatprep.subr.bf16.mxu1 %v5292_v55  ;;  %v5332_v27 = vld [vmem:[%s7314_s1 + $0xb80] ss:$8 sps:$4 sm:$0xff]   ;;  %v5341_v60 = vld [vmem:[%s7314_s1 + $0xd74] ss:$8 sps:$4 sm:$0xff]   ;;  %v5339_v9 = vld [vmem:[%s7314_s1 + $0xd70] ss:$8 sps:$4 sm:$0xff]  }
 0x162   :  { %v738_v30 = vrot.slane %v716_v24, %v5738_v49  ;;  %v5344_v36 = vld [vmem:[%s7314_s1 + $0xc64] ss:$8 sps:$4 sm:$0xff]   ;;  %v5342_v41 = vld [vmem:[%s7314_s1 + $0xc60] ss:$8 sps:$4 sm:$0xff]   ;;  %v5350_v46 = vld [vmem:[%s7314_s1 + $0xc54] ss:$8 sps:$4 sm:$0xff]  }
 0x163   :  { %3769 = vmatpush2.bf16.msra.mxu0 %v5287_v56  ;;  %v5347_v37 = vld [vmem:[%s7314_s1 + $0xd64] ss:$8 sps:$4 sm:$0xff]   ;;  %v5345_v43 = vld [vmem:[%s7314_s1 + $0xd60] ss:$8 sps:$4 sm:$0xff]   ;;  %v5348_v52 = vld [vmem:[%s7314_s1 + $0xc50] ss:$8 sps:$4 sm:$0xff]  }
 0x164   :  { %3810 = vmatpush2.bf16.msra.mxu1 %v5290_v57  ;;  %3770 = vmatprep.subr.bf16.mxu0 %v5295_v58  ;;  %v748_v29 = vcombine.high %v738_v30, %v738_v30  ;;  %v5351_v53 = vld [vmem:[%s7314_s1 + $0xd50] ss:$8 sps:$4 sm:$0xff]   ;;  %v5359_v55 = vld [vmem:[%s7314_s1 + $0xd44] ss:$8 sps:$4 sm:$0xff]   ;;  %v5354_v56 = vld [vmem:[%s7314_s1 + $0xc40] ss:$8 sps:$4 sm:$0xff]  }
 0x165   :  { %3811 = vmatprep.subr.bf16.mxu1 %v5298_v59  ;;  %v5357_v57 = vld [vmem:[%s7314_s1 + $0xd40] ss:$8 sps:$4 sm:$0xff]   ;;  %v5362_v58 = vld [vmem:[%s7314_s1 + $0xc34] ss:$8 sps:$4 sm:$0xff]   ;;  %v5396_v24 = vld [vmem:[%s7314_s1 + $0xcd0] ss:$8 sps:$4 sm:$0xff]  }
 0x166   :  { %v5365_v59 = vld [vmem:[%s7314_s1 + $0xd34] ss:$8 sps:$4 sm:$0xff]   ;;  %s5572_s25 = smov [#allocation2]  }
 0x167   :  { %3771 = vmatpush2.bf16.msra.mxu0 %v5293_v32  ;;  %v5360_v32 = vld [vmem:[%s7314_s1 + $0xc30] ss:$8 sps:$4 sm:$0xff]   ;;  %s4196_s26 = sshll.u32 %s5572_s25, 4  ;;  %s4197_s26 = int_to_ptr.vmem [resolvable:$true] %s4196_s26 }
 0x168   :  { %3812 = vmatpush2.bf16.msra.mxu1 %v5296_v61  ;;  %3772 = vmatprep.subr.bf16.mxu0 %v5301_v62  ;;  %v5363_v61 = vld [vmem:[%s7314_s1 + $0xd30] ss:$8 sps:$4 sm:$0xff]   ;;  %v5368_v62 = vld [vmem:[%s7314_s1 + $0xc24] ss:$8 sps:$4 sm:$0xff]   ;;  %p5554_p1 = scmp.lt.s32.totalorder %s4197_s26, %s4197_s26 }
 0x169   :  { %3813 = vmatprep.subr.bf16.mxu1 %v5304_v63  ;;  %v5371_v63 = vld [vmem:[%s7314_s1 + $0xd24] ss:$8 sps:$4 sm:$0xff]  }
 0x16b   :  { %3773 = vmatpush2.bf16.msra.mxu0 %v5299_v0  ;;  %v5366_v0 = vld [vmem:[%s7314_s1 + $0xc20] ss:$8 sps:$4 sm:$0xff]  }
 0x16c   :  { %3814 = vmatpush2.bf16.msra.mxu1 %v5302_v1  ;;  %3774 = vmatprep.subr.bf16.mxu0 %v5307_v3  ;;  %v5369_v1 = vld [vmem:[%s7314_s1 + $0xd20] ss:$8 sps:$4 sm:$0xff]   ;;  %v5374_v3 = vld [vmem:[%s7314_s1 + $0xc14] ss:$8 sps:$4 sm:$0xff]  }
 0x16d   :  { %3815 = vmatprep.subr.bf16.mxu1 %v5310_v4  ;;  %v5377_v4 = vld [vmem:[%s7314_s1 + $0xd14] ss:$8 sps:$4 sm:$0xff]  }
 0x16f   :  { %3775 = vmatpush2.bf16.msra.mxu0 %v5305_v5  ;;  %v5372_v5 = vld [vmem:[%s7314_s1 + $0xc10] ss:$8 sps:$4 sm:$0xff]  }
 0x170   :  { %3816 = vmatpush2.bf16.msra.mxu1 %v5308_v7  ;;  %3776 = vmatprep.subr.bf16.mxu0 %v5313_v35  ;;  %v5375_v7 = vld [vmem:[%s7314_s1 + $0xd10] ss:$8 sps:$4 sm:$0xff]   ;;  %v5380_v35 = vld [vmem:[%s7314_s1 + $0xc04] ss:$8 sps:$4 sm:$0xff]  }
 0x171   :  { %3817 = vmatprep.subr.bf16.mxu1 %v5316_v8  ;;  %v5383_v8 = vld [vmem:[%s7314_s1 + $0xd04] ss:$8 sps:$4 sm:$0xff]  }
 0x173   :  { %3777 = vmatpush2.bf16.msra.mxu0 %v5311_v10  ;;  %v5378_v10 = vld [vmem:[%s7314_s1 + $0xc00] ss:$8 sps:$4 sm:$0xff]  }
 0x174   :  { %3818 = vmatpush2.bf16.msra.mxu1 %v5314_v11  ;;  %3778 = vmatprep.subr.bf16.mxu0 %v5319_v12  ;;  %v5381_v11 = vld [vmem:[%s7314_s1 + $0xd00] ss:$8 sps:$4 sm:$0xff]   ;;  %v5386_v12 = vld [vmem:[%s7314_s1 + $0xcf4] ss:$8 sps:$4 sm:$0xff]  }
 0x175   :  { %3819 = vmatprep.subr.bf16.mxu1 %v5322_v13  ;;  %v5389_v13 = vld [vmem:[%s7314_s1 + $0xdf4] ss:$8 sps:$4 sm:$0xff]  }
 0x177   :  { %3779 = vmatpush2.bf16.msra.mxu0 %v5317_v15  ;;  %v5384_v15 = vld [vmem:[%s7314_s1 + $0xcf0] ss:$8 sps:$4 sm:$0xff]  }
 0x178   :  { %3820 = vmatpush2.bf16.msra.mxu1 %v5320_v16  ;;  %3780 = vmatprep.subr.bf16.mxu0 %v5325_v17  ;;  %v5387_v16 = vld [vmem:[%s7314_s1 + $0xdf0] ss:$8 sps:$4 sm:$0xff]   ;;  %v5392_v17 = vld [vmem:[%s7314_s1 + $0xce4] ss:$8 sps:$4 sm:$0xff]  }
 0x179   :  { %3821 = vmatprep.subr.bf16.mxu1 %v5328_v18  ;;  %v5395_v18 = vld [vmem:[%s7314_s1 + $0xde4] ss:$8 sps:$4 sm:$0xff]  }
 0x17b   :  { %3781 = vmatpush2.bf16.msra.mxu0 %v5323_v20  ;;  %v5390_v20 = vld [vmem:[%s7314_s1 + $0xce0] ss:$8 sps:$4 sm:$0xff]  }
 0x17c   :  { %3822 = vmatpush2.bf16.msra.mxu1 %v5326_v21  ;;  %3782 = vmatprep.subr.bf16.mxu0 %v5331_v22  ;;  %v5393_v21 = vld [vmem:[%s7314_s1 + $0xde0] ss:$8 sps:$4 sm:$0xff]   ;;  %v5398_v22 = vld [vmem:[%s7314_s1 + $0xcd4] ss:$8 sps:$4 sm:$0xff]  }
 0x17d   :  { %3823 = vmatprep.subr.bf16.mxu1 %v5334_v23  ;;  %v5401_v23 = vld [vmem:[%s7314_s1 + $0xdd4] ss:$8 sps:$4 sm:$0xff]  }
 0x17f   :  { %3783 = vmatpush2.bf16.msra.mxu0 %v5329_v2  ;;  %v5404_v2 = vld [vmem:[%s7314_s1 + $0xcc4] ss:$8 sps:$4 sm:$0xff]  }
 0x180   :  { %3824 = vmatpush2.bf16.msra.mxu1 %v5332_v27  ;;  %3834 = vmatprep.subr.bf16.mxu0 %v5338_v28  ;;  %v5407_v27 = vld [vmem:[%s7314_s1 + $0xdc4] ss:$8 sps:$4 sm:$0xff]   ;;  %v5402_v28 = vld [vmem:[%s7314_s1 + $0xcc0] ss:$8 sps:$4 sm:$0xff]  }
 0x181   :  { %3875 = vmatprep.subr.bf16.mxu1 %v5341_v60  ;;  %v5405_v60 = vld [vmem:[%s7314_s1 + $0xdc0] ss:$8 sps:$4 sm:$0xff]  }
 0x182   :  { %v3540_v38 = vpop.f32.mrf.mxu0  ;;  %3785 = vmatmul.mubr.bf16.vlgmr.msra.gmra.mxu0 %v682_v26  ;;  %v5399_v26 = vld [vmem:[%s7314_s1 + $0xdd0] ss:$8 sps:$4 sm:$0xff]  }
 0x183   :  { %v3581_v39 = vpop.f32.mrf.mxu1  ;;  %3826 = vmatmul.mubr.bf16.vlgmr.msra.gmra.mxu1 %v698_v33  ;;  %v3541_v40 = vadd.f32 %v3540_v38, %v6668_v25  ;;  %3835 = vmatpush1.bf16.msra.mxu0 %v5336_v34  ;;  %v5353_v25 = vld [vmem:[%s7314_s1 + $0xd54] ss:$8 sps:$4 sm:$0xff]   ;;  %v5408_v34 = vld [vmem:[%s7314_s1 + $0xcb0] ss:$8 sps:$4 sm:$0xff]   ;;  %v5414_v38 = vld [vmem:[%s7314_s1 + $0xca0] ss:$8 sps:$4 sm:$0xff]  }
 0x184   :  { %3876 = vmatpush1.bf16.msra.mxu1 %v5339_v9  ;;  %v3542_v44 = vpop.f32.mrf.mxu0  ;;  %3836 = vmatprep.subr.bf16.mxu0 %v5344_v36  ;;  %v5413_v33 = vld [vmem:[%s7314_s1 + $0xdb4] ss:$8 sps:$4 sm:$0xff]   ;;  %v5411_v9 = vld [vmem:[%s7314_s1 + $0xdb0] ss:$8 sps:$4 sm:$0xff]   ;;  %v5416_v36 = vld [vmem:[%s7314_s1 + $0xca4] ss:$8 sps:$4 sm:$0xff]  }
 0x185   :  { %v3583_v45 = vpop.f32.mrf.mxu1  ;;  %3877 = vmatprep.subr.bf16.mxu1 %v5347_v37  ;;  %v6880_v47 = vadd.f32 %v3581_v39, %v3541_v40  ;;  %v3543_v48 = vadd.f32 %v3542_v44, %v6677_v31  ;;  %3866 = vmatprep.mubr.bf16.mxu0 %v738_v30  ;;  %v5356_v31 = vld [vmem:[%s7314_s1 + $0xc44] ss:$8 sps:$4 sm:$0xff]   ;;  %v5410_v30 = vld [vmem:[%s7314_s1 + $0xcb4] ss:$8 sps:$4 sm:$0xff]   ;;  %v5417_v39 = vld [vmem:[%s7314_s1 + $0xda0] ss:$8 sps:$4 sm:$0xff]  }
 0x186   :  { %3907 = vmatprep.mubr.bf16.mxu1 %v748_v29  ;;  %v3544_v50 = vpop.f32.mrf.mxu0  ;;  %v5419_v37 = vld [vmem:[%s7314_s1 + $0xda4] ss:$8 sps:$4 sm:$0xff]   ;;  %v701_v29 = vcombine.high %v6808_v14, %v6808_v14  ;;  %v5422_v40 = vld [vmem:[%s7314_s1 + $0xc94] ss:$8 sps:$4 sm:$0xff]   ;;  %v5423_v44 = vld [vmem:[%s7314_s1 + $0xd90] ss:$8 sps:$4 sm:$0xff]  }
 0x187   :  { %v3585_v51 = vpop.f32.mrf.mxu1  ;;  %v6883_v6 = vadd.f32 %v3583_v45, %v3543_v48  ;;  %3837 = vmatpush1.bf16.msra.mxu0 %v5342_v41  ;;  %v5425_v14 = vld [vmem:[%s7314_s1 + $0xd94] ss:$8 sps:$4 sm:$0xff]   ;;  %v5428_v45 = vld [vmem:[%s7314_s1 + $0xc84] ss:$8 sps:$4 sm:$0xff]   ;;  %v724_v48 = vrot.slane %v6824_v19, %v5738_v49  ;;  %v5426_v50 = vld [vmem:[%s7314_s1 + $0xc80] ss:$8 sps:$4 sm:$0xff]  }
 0x188   :  { %3878 = vmatpush1.bf16.msra.mxu1 %v5345_v43  ;;  %v3545_v54 = vpop.f32.mrf.mxu0  ;;  %3838 = vmatprep.subr.bf16.mxu0 %v5350_v46  ;;  %v7032_v41 = vrot.slane %v701_v29, %v5738_v49  ;;  %v5420_v43 = vld [vmem:[%s7314_s1 + $0xc90] ss:$8 sps:$4 sm:$0xff]   ;;  %v5431_v46 = vld [vmem:[%s7314_s1 + $0xd84] ss:$8 sps:$4 sm:$0xff]   ;;  %v5429_v51 = vld [vmem:[%s7314_s1 + $0xd80] ss:$8 sps:$4 sm:$0xff]  }
 0x189   :  { %v3586_v42 = vpop.f32.mrf.mxu1  ;;  %3879 = vmatprep.subr.bf16.mxu1 %v5353_v25  ;;  %v5437_v19 = vld [vmem:[%s7314_s1 + $0xf74] ss:$8 sps:$4 sm:$0xff]   ;;  %v746_v54 = vcombine.high %v724_v48, %v724_v48  ;;  %v5480_v29 = vld [vmem:[%s7314_s1 + $0xef0] ss:$8 sps:$4 sm:$0xff]  }
 0x18a   :  { %v717_v25 = vcombine.high %v7032_v41, %v7032_v41  ;;  %v5432_v42 = vld [vmem:[%s7314_s1 + $0xe70] ss:$8 sps:$4 sm:$0xff]  }
 0x18b   :  { %3839 = vmatpush1.bf16.msra.mxu0 %v5348_v52  ;;  %v5434_v52 = vld [vmem:[%s7314_s1 + $0xe74] ss:$8 sps:$4 sm:$0xff]  }
 0x18c   :  { %3880 = vmatpush1.bf16.msra.mxu1 %v5351_v53  ;;  %3840 = vmatprep.subr.bf16.mxu0 %v5356_v31  ;;  %v745_v53 = vrot.slane %v717_v25, %v5738_v49  ;;  %v5435_v31 = vld [vmem:[%s7314_s1 + $0xf70] ss:$8 sps:$4 sm:$0xff]  }
 0x18d   :  { %3881 = vmatprep.subr.bf16.mxu1 %v5359_v55  ;;  %v5440_v55 = vld [vmem:[%s7314_s1 + $0xe64] ss:$8 sps:$4 sm:$0xff]   ;;  %v5495_v25 = vld [vmem:[%s7314_s1 + $0xfd0] ss:$8 sps:$4 sm:$0xff]  }
 0x18f   :  { %3841 = vmatpush1.bf16.msra.mxu0 %v5354_v56  ;;  %v5443_v56 = vld [vmem:[%s7314_s1 + $0xf64] ss:$8 sps:$4 sm:$0xff]  }
 0x190   :  { %3882 = vmatpush1.bf16.msra.mxu1 %v5357_v57  ;;  %3842 = vmatprep.subr.bf16.mxu0 %v5362_v58  ;;  %v749_v57 = vcombine.high %v745_v53, %v745_v53 }
 0x191   :  { %3883 = vmatprep.subr.bf16.mxu1 %v5365_v59 }
 0x193   :  { %3843 = vmatpush1.bf16.msra.mxu0 %v5360_v32 }
 0x194   :  { %3884 = vmatpush1.bf16.msra.mxu1 %v5363_v61  ;;  %3844 = vmatprep.subr.bf16.mxu0 %v5368_v62  ;;  %v5438_v61 = vld [vmem:[%s7314_s1 + $0xe60] ss:$8 sps:$4 sm:$0xff]  }
 0x195   :  { %3885 = vmatprep.subr.bf16.mxu1 %v5371_v63  ;;  %v5441_v62 = vld [vmem:[%s7314_s1 + $0xf60] ss:$8 sps:$4 sm:$0xff]  }
 0x197   :  { %3845 = vmatpush1.bf16.msra.mxu0 %v5366_v0 }
 0x198   :  { %3886 = vmatpush1.bf16.msra.mxu1 %v5369_v1  ;;  %3846 = vmatprep.subr.bf16.mxu0 %v5374_v3  ;;  %v5446_v1 = vld [vmem:[%s7314_s1 + $0xe54] ss:$8 sps:$4 sm:$0xff]  }
 0x199   :  { %3887 = vmatprep.subr.bf16.mxu1 %v5377_v4 }
 0x19b   :  { %3847 = vmatpush1.bf16.msra.mxu0 %v5372_v5 }
 0x19c   :  { %3888 = vmatpush1.bf16.msra.mxu1 %v5375_v7  ;;  %3848 = vmatprep.subr.bf16.mxu0 %v5380_v35 }
 0x19d   :  { %3889 = vmatprep.subr.bf16.mxu1 %v5383_v8  ;;  %v5444_v8 = vld [vmem:[%s7314_s1 + $0xe50] ss:$8 sps:$4 sm:$0xff]  }
 0x19f   :  { %3849 = vmatpush1.bf16.msra.mxu0 %v5378_v10  ;;  %v5447_v10 = vld [vmem:[%s7314_s1 + $0xf50] ss:$8 sps:$4 sm:$0xff]  }
 0x1a0   :  { %3890 = vmatpush1.bf16.msra.mxu1 %v5381_v11  ;;  %3850 = vmatprep.subr.bf16.mxu0 %v5386_v12 }
 0x1a1   :  { %3891 = vmatprep.subr.bf16.mxu1 %v5389_v13  ;;  %v5455_v13 = vld [vmem:[%s7314_s1 + $0xf44] ss:$8 sps:$4 sm:$0xff]  }
 0x1a3   :  { %3851 = vmatpush2.bf16.msra.mxu0 %v5384_v15  ;;  %v5450_v15 = vld [vmem:[%s7314_s1 + $0xe40] ss:$8 sps:$4 sm:$0xff]  }
 0x1a4   :  { %3892 = vmatpush2.bf16.msra.mxu1 %v5387_v16  ;;  %3852 = vmatprep.subr.bf16.mxu0 %v5392_v17  ;;  %v5453_v16 = vld [vmem:[%s7314_s1 + $0xf40] ss:$8 sps:$4 sm:$0xff]   ;;  %v5458_v17 = vld [vmem:[%s7314_s1 + $0xe34] ss:$8 sps:$4 sm:$0xff]  }
 0x1a5   :  { %3893 = vmatprep.subr.bf16.mxu1 %v5395_v18  ;;  %v5461_v18 = vld [vmem:[%s7314_s1 + $0xf34] ss:$8 sps:$4 sm:$0xff]  }
 0x1a7   :  { %3853 = vmatpush2.bf16.msra.mxu0 %v5390_v20  ;;  %v5456_v20 = vld [vmem:[%s7314_s1 + $0xe30] ss:$8 sps:$4 sm:$0xff]  }
 0x1a8   :  { %3894 = vmatpush2.bf16.msra.mxu1 %v5393_v21  ;;  %3854 = vmatprep.subr.bf16.mxu0 %v5398_v22  ;;  %v5459_v21 = vld [vmem:[%s7314_s1 + $0xf30] ss:$8 sps:$4 sm:$0xff]   ;;  %v5464_v22 = vld [vmem:[%s7314_s1 + $0xe24] ss:$8 sps:$4 sm:$0xff]  }
 0x1a9   :  { %3895 = vmatprep.subr.bf16.mxu1 %v5401_v23  ;;  %v5467_v23 = vld [vmem:[%s7314_s1 + $0xf24] ss:$8 sps:$4 sm:$0xff]  }
 0x1ab   :  { %3855 = vmatpush2.bf16.msra.mxu0 %v5396_v24  ;;  %v5462_v24 = vld [vmem:[%s7314_s1 + $0xe20] ss:$8 sps:$4 sm:$0xff]  }
 0x1ac   :  { %3896 = vmatpush2.bf16.msra.mxu1 %v5399_v26  ;;  %3856 = vmatprep.subr.bf16.mxu0 %v5404_v2  ;;  %v5465_v26 = vld [vmem:[%s7314_s1 + $0xf20] ss:$8 sps:$4 sm:$0xff]   ;;  %v5470_v2 = vld [vmem:[%s7314_s1 + $0xe14] ss:$8 sps:$4 sm:$0xff]  }
 0x1ad   :  { %3897 = vmatprep.subr.bf16.mxu1 %v5407_v27  ;;  %v5473_v27 = vld [vmem:[%s7314_s1 + $0xf14] ss:$8 sps:$4 sm:$0xff]  }
 0x1af   :  { %3857 = vmatpush2.bf16.msra.mxu0 %v5402_v28  ;;  %v5468_v28 = vld [vmem:[%s7314_s1 + $0xe10] ss:$8 sps:$4 sm:$0xff]  }
 0x1b0   :  { %3898 = vmatpush2.bf16.msra.mxu1 %v5405_v60  ;;  %3858 = vmatprep.subr.bf16.mxu0 %v5410_v30  ;;  %v5471_v60 = vld [vmem:[%s7314_s1 + $0xf10] ss:$8 sps:$4 sm:$0xff]   ;;  %v5476_v30 = vld [vmem:[%s7314_s1 + $0xe04] ss:$8 sps:$4 sm:$0xff]  }
 0x1b1   :  { %3899 = vmatprep.subr.bf16.mxu1 %v5413_v33  ;;  %v5479_v33 = vld [vmem:[%s7314_s1 + $0xf04] ss:$8 sps:$4 sm:$0xff]  }
 0x1b3   :  { %3859 = vmatpush2.bf16.msra.mxu0 %v5408_v34  ;;  %v5474_v34 = vld [vmem:[%s7314_s1 + $0xe00] ss:$8 sps:$4 sm:$0xff]  }
 0x1b4   :  { %3900 = vmatpush2.bf16.msra.mxu1 %v5411_v9  ;;  %3860 = vmatprep.subr.bf16.mxu0 %v5416_v36  ;;  %v5477_v9 = vld [vmem:[%s7314_s1 + $0xf00] ss:$8 sps:$4 sm:$0xff]   ;;  %v5482_v36 = vld [vmem:[%s7314_s1 + $0xef4] ss:$8 sps:$4 sm:$0xff]  }
 0x1b5   :  { %3901 = vmatprep.subr.bf16.mxu1 %v5419_v37  ;;  %v5485_v37 = vld [vmem:[%s7314_s1 + $0xff4] ss:$8 sps:$4 sm:$0xff]  }
 0x1b7   :  { %3861 = vmatpush2.bf16.msra.mxu0 %v5414_v38  ;;  %v5483_v38 = vld [vmem:[%s7314_s1 + $0xff0] ss:$8 sps:$4 sm:$0xff]  }
 0x1b8   :  { %3902 = vmatpush2.bf16.msra.mxu1 %v5417_v39  ;;  %3862 = vmatprep.subr.bf16.mxu0 %v5422_v40  ;;  %v5488_v39 = vld [vmem:[%s7314_s1 + $0xee4] ss:$8 sps:$4 sm:$0xff]  }
 0x1b9   :  { %3903 = vmatprep.subr.bf16.mxu1 %v5425_v14  ;;  %v5491_v40 = vld [vmem:[%s7314_s1 + $0xfe4] ss:$8 sps:$4 sm:$0xff]   ;;  %v5486_v14 = vld [vmem:[%s7314_s1 + $0xee0] ss:$8 sps:$4 sm:$0xff]  }
 0x1bb   :  { %3863 = vmatpush2.bf16.msra.mxu0 %v5420_v43  ;;  %v5489_v43 = vld [vmem:[%s7314_s1 + $0xfe0] ss:$8 sps:$4 sm:$0xff]  }
 0x1bc   :  { %3904 = vmatpush2.bf16.msra.mxu1 %v5423_v44  ;;  %3864 = vmatprep.subr.bf16.mxu0 %v5428_v45  ;;  %v5494_v44 = vld [vmem:[%s7314_s1 + $0xed4] ss:$8 sps:$4 sm:$0xff]  }
 0x1bd   :  { %3905 = vmatprep.subr.bf16.mxu1 %v5431_v46  ;;  %v5497_v45 = vld [vmem:[%s7314_s1 + $0xfd4] ss:$8 sps:$4 sm:$0xff]   ;;  %v5492_v46 = vld [vmem:[%s7314_s1 + $0xed0] ss:$8 sps:$4 sm:$0xff]  }
 0x1bf   :  { %3865 = vmatpush2.bf16.msra.mxu0 %v5426_v50  ;;  %v5503_v50 = vld [vmem:[%s7314_s1 + $0xfc4] ss:$8 sps:$4 sm:$0xff]  }
 0x1c0   :  { %3906 = vmatpush2.bf16.msra.mxu1 %v5429_v51  ;;  %3916 = vmatprep.subr.bf16.mxu0 %v5434_v52  ;;  %v5498_v51 = vld [vmem:[%s7314_s1 + $0xec0] ss:$8 sps:$4 sm:$0xff]  }
 0x1c1   :  { %3957 = vmatprep.subr.bf16.mxu1 %v5437_v19  ;;  %v5501_v52 = vld [vmem:[%s7314_s1 + $0xfc0] ss:$8 sps:$4 sm:$0xff]   ;;  %v5506_v19 = vld [vmem:[%s7314_s1 + $0xeb4] ss:$8 sps:$4 sm:$0xff]  }
 0x1c2   :  { %v3622_v58 = vpop.f32.mrf.mxu0  ;;  %3867 = vmatmul.mubr.bf16.vlgmr.msra.gmra.mxu0 %v724_v48  ;;  %v5500_v48 = vld [vmem:[%s7314_s1 + $0xec4] ss:$8 sps:$4 sm:$0xff]  }
 0x1c3   :  { %v3663_v59 = vpop.f32.mrf.mxu1  ;;  %3908 = vmatmul.mubr.bf16.vlgmr.msra.gmra.mxu1 %v746_v54  ;;  %v3623_v32 = vadd.f32 %v3622_v58, %v6880_v47  ;;  %3917 = vmatpush1.bf16.msra.mxu0 %v5432_v42  ;;  %v5449_v47 = vld [vmem:[%s7314_s1 + $0xf54] ss:$8 sps:$4 sm:$0xff]   ;;  %v5504_v54 = vld [vmem:[%s7314_s1 + $0xeb0] ss:$8 sps:$4 sm:$0xff]  }
 0x1c4   :  { %3958 = vmatpush1.bf16.msra.mxu1 %v5435_v31  ;;  %v3624_v63 = vpop.f32.mrf.mxu0  ;;  %3918 = vmatprep.subr.bf16.mxu0 %v5440_v55  ;;  %v5507_v42 = vld [vmem:[%s7314_s1 + $0xfb0] ss:$8 sps:$4 sm:$0xff]   ;;  %v5512_v31 = vld [vmem:[%s7314_s1 + $0xea4] ss:$8 sps:$4 sm:$0xff]   ;;  %v5518_v58 = vld [vmem:[%s7314_s1 + $0xe94] ss:$8 sps:$4 sm:$0xff]  }
 0x1c5   :  { %v3665_v0 = vpop.f32.mrf.mxu1  ;;  %3959 = vmatprep.subr.bf16.mxu1 %v5443_v56  ;;  %v7088_v3 = vadd.f32 %v3663_v59, %v3623_v32  ;;  %v3625_v4 = vadd.f32 %v3624_v63, %v6883_v6  ;;  %3948 = vmatprep.mubr.bf16.mxu0 %v745_v53  ;;  %v5452_v6 = vld [vmem:[%s7314_s1 + $0xe44] ss:$8 sps:$4 sm:$0xff]   ;;  %v5509_v53 = vld [vmem:[%s7314_s1 + $0xfb4] ss:$8 sps:$4 sm:$0xff]   ;;  %v5510_v56 = vld [vmem:[%s7314_s1 + $0xea0] ss:$8 sps:$4 sm:$0xff]  }
 0x1c6   :  { %3989 = vmatprep.mubr.bf16.mxu1 %v749_v57  ;;  %v3626_v5 = vpop.f32.mrf.mxu0  ;;  %v5515_v55 = vld [vmem:[%s7314_s1 + $0xfa4] ss:$8 sps:$4 sm:$0xff]   ;;  %v5513_v57 = vld [vmem:[%s7314_s1 + $0xfa0] ss:$8 sps:$4 sm:$0xff]   ;;  %v5521_v59 = vld [vmem:[%s7314_s1 + $0xf94] ss:$8 sps:$4 sm:$0xff]  }
 0x1c7   :  { %v3667_v7 = vpop.f32.mrf.mxu1  ;;  %v7091_v35 = vadd.f32 %v3665_v0, %v3625_v4  ;;  %3919 = vmatpush1.bf16.msra.mxu0 %v5438_v61  ;;  %v5516_v32 = vld [vmem:[%s7314_s1 + $0xe90] ss:$8 sps:$4 sm:$0xff]   ;;  %v5527_v63 = vld [vmem:[%s7314_s1 + $0xf84] ss:$8 sps:$4 sm:$0xff]   ;;  %v731_v0 = vrot.slane %v7032_v41, %v5738_v49 }
 0x1c8   :  { %3960 = vmatpush1.bf16.msra.mxu1 %v5441_v62  ;;  %v3627_v11 = vpop.f32.mrf.mxu0  ;;  %3920 = vmatprep.subr.bf16.mxu0 %v5446_v1  ;;  %v5519_v61 = vld [vmem:[%s7314_s1 + $0xf90] ss:$8 sps:$4 sm:$0xff]   ;;  %v5524_v62 = vld [vmem:[%s7314_s1 + $0xe84] ss:$8 sps:$4 sm:$0xff]   ;;  %v5522_v1 = vld [vmem:[%s7314_s1 + $0xe80] ss:$8 sps:$4 sm:$0xff]  }
 0x1c9   :  { %v3668_v12 = vpop.f32.mrf.mxu1  ;;  %3961 = vmatprep.subr.bf16.mxu1 %v5449_v47  ;;  %v5525_v47 = vld [vmem:[%s7314_s1 + $0xf80] ss:$8 sps:$4 sm:$0xff]   ;;  %v747_v4 = vcombine.high %v731_v0, %v731_v0 }
 0x1cb   :  { %3921 = vmatpush1.bf16.msra.mxu0 %v5444_v8 }
 0x1cc   :  { %3962 = vmatpush1.bf16.msra.mxu1 %v5447_v10  ;;  %3922 = vmatprep.subr.bf16.mxu0 %v5452_v6 }
 0x1cd   :  { %3963 = vmatprep.subr.bf16.mxu1 %v5455_v13 }
 0x1cf   :  { %3923 = vmatpush1.bf16.msra.mxu0 %v5450_v15 }
 0x1d0   :  { %3964 = vmatpush1.bf16.msra.mxu1 %v5453_v16  ;;  %3924 = vmatprep.subr.bf16.mxu0 %v5458_v17  ;;  %v5529_v17 = vld [vmem:[%s7316_s3 + $0x78] sm:$0xff]  }
 0x1d1   :  { %3965 = vmatprep.subr.bf16.mxu1 %v5461_v18  ;;  %v5530_v18 = vld [vmem:[%s7316_s3 + $0x38] sm:$0xff]  }
 0x1d3   :  { %3925 = vmatpush1.bf16.msra.mxu0 %v5456_v20  ;;  %v5533_v20 = vld [vmem:[%s7316_s3 + $0x68] sm:$0xff]  }
 0x1d4   :  { %3966 = vmatpush1.bf16.msra.mxu1 %v5459_v21  ;;  %3926 = vmatprep.subr.bf16.mxu0 %v5464_v22  ;;  %v5534_v21 = vld [vmem:[%s7316_s3 + $0x28] sm:$0xff]   ;;  %v5535_v22 = vld [vmem:[%s7316_s3 + $0x60] sm:$0xff]  }
 0x1d5   :  { %3967 = vmatprep.subr.bf16.mxu1 %v5467_v23  ;;  %v5536_v23 = vld [vmem:[%s7316_s3 + $0x20] sm:$0xff]  }
 0x1d7   :  { %3927 = vmatpush1.bf16.msra.mxu0 %v5462_v24  ;;  %v5537_v24 = vld [vmem:[%s7316_s3 + $0x58] sm:$0xff]  }
 0x1d8   :  { %3968 = vmatpush1.bf16.msra.mxu1 %v5465_v26  ;;  %3928 = vmatprep.subr.bf16.mxu0 %v5470_v2  ;;  %v5538_v26 = vld [vmem:[%s7316_s3 + $0x18] sm:$0xff]   ;;  %v5539_v2 = vld [vmem:[%s7316_s3 + $0x50] sm:$0xff]  }
 0x1d9   :  { %3969 = vmatprep.subr.bf16.mxu1 %v5473_v27  ;;  %v5540_v27 = vld [vmem:[%s7316_s3 + $0x10] sm:$0xff]  }
 0x1db   :  { %3929 = vmatpush1.bf16.msra.mxu0 %v5468_v28 }
 0x1dc   :  { %3970 = vmatpush1.bf16.msra.mxu1 %v5471_v60  ;;  %3930 = vmatprep.subr.bf16.mxu0 %v5476_v30 }
 0x1dd   :  { %3971 = vmatprep.subr.bf16.mxu1 %v5479_v33 }
 0x1df   :  { %3931 = vmatpush1.bf16.msra.mxu0 %v5474_v34 }
 0x1e0   :  { %3972 = vmatpush1.bf16.msra.mxu1 %v5477_v9  ;;  %3932 = vmatprep.subr.bf16.mxu0 %v5482_v36  ;;  %v5541_v9 = vld [vmem:[%s7316_s3 + $0x48] sm:$0xff]  }
 0x1e1   :  { %3973 = vmatprep.subr.bf16.mxu1 %v5485_v37 }
 0x1e3   :  { %3933 = vmatpush2.bf16.msra.mxu0 %v5480_v29  ;;  %v5542_v29 = vld [vmem:[%s7316_s3 + $0x8] sm:$0xff]  }
 0x1e4   :  { %3974 = vmatpush2.bf16.msra.mxu1 %v5483_v38  ;;  %3934 = vmatprep.subr.bf16.mxu0 %v5488_v39 }
 0x1e5   :  { %3975 = vmatprep.subr.bf16.mxu1 %v5491_v40 }
 0x1e7   :  { %3935 = vmatpush2.bf16.msra.mxu0 %v5486_v14 }
 0x1e8   :  { %3976 = vmatpush2.bf16.msra.mxu1 %v5489_v43  ;;  %3936 = vmatprep.subr.bf16.mxu0 %v5494_v44  ;;  %v5543_v44 = vld [vmem:[%s7316_s3 + $0x40] sm:$0xff]  }
 0x1e9   :  { %3977 = vmatprep.subr.bf16.mxu1 %v5497_v45  ;;  %v5544_v45 = vld [vmem:[%s7316_s3] sm:$0xff]  }
 0x1eb   :  { %3937 = vmatpush2.bf16.msra.mxu0 %v5492_v46 }
 0x1ec   :  { %3978 = vmatpush2.bf16.msra.mxu1 %v5495_v25  ;;  %3938 = vmatprep.subr.bf16.mxu0 %v5500_v48 }
 0x1ed   :  { %3979 = vmatprep.subr.bf16.mxu1 %v5503_v50 }
 0x1ef   :  { %3939 = vmatpush2.bf16.msra.mxu0 %v5498_v51 }
 0x1f0   :  { %3980 = vmatpush2.bf16.msra.mxu1 %v5501_v52  ;;  %3940 = vmatprep.subr.bf16.mxu0 %v5506_v19 }
 0x1f1   :  { %3981 = vmatprep.subr.bf16.mxu1 %v5509_v53 }
 0x1f3   :  { %3941 = vmatpush2.bf16.msra.mxu0 %v5504_v54 }
 0x1f4   :  { %3982 = vmatpush2.bf16.msra.mxu1 %v5507_v42  ;;  %3942 = vmatprep.subr.bf16.mxu0 %v5512_v31 }
 0x1f5   :  { %3983 = vmatprep.subr.bf16.mxu1 %v5515_v55 }
 0x1f7   :  { %3943 = vmatpush2.bf16.msra.mxu0 %v5510_v56 }
 0x1f8   :  { %3984 = vmatpush2.bf16.msra.mxu1 %v5513_v57  ;;  %3944 = vmatprep.subr.bf16.mxu0 %v5518_v58 }
 0x1f9   :  { %3985 = vmatprep.subr.bf16.mxu1 %v5521_v59 }
 0x1fb   :  { %3945 = vmatpush2.bf16.msra.mxu0 %v5516_v32 }
 0x1fc   :  { %3986 = vmatpush2.bf16.msra.mxu1 %v5519_v61  ;;  %3946 = vmatprep.subr.bf16.mxu0 %v5524_v62 }
 0x1fd   :  { %3987 = vmatprep.subr.bf16.mxu1 %v5527_v63 }
 0x1ff   :  { %3947 = vmatpush2.bf16.msra.mxu0 %v5522_v1 }
 0x200   :  { %3988 = vmatpush2.bf16.msra.mxu1 %v5525_v47  ;;  %4733 = vmatprep.subr.bf16.mxu0 %v5529_v17 }
 0x202   :  { %v3704_v5 = vpop.f32.mrf.mxu0  ;;  %3949 = vmatmul.mubr.bf16.vlgmr.msra.gmra.mxu0 %v731_v0 }
 0x203   :  { %v3745_v7 = vpop.f32.mrf.mxu1  ;;  %3990 = vmatmul.mubr.bf16.vlgmr.msra.gmra.mxu1 %v747_v4  ;;  %v3705_v49 = vadd.f32 %v3704_v5, %v7088_v3  ;;  %v5531_v3 = vld [vmem:[%s7316_s3 + $0x70] sm:$0xff]   ;;  %4734 = vmatpush3.bf16.msra.mxu0 %v5530_v18 }
 0x204   :  { %v3706_v41 = vpop.f32.mrf.mxu0  ;;  %4735 = vmatprep.subr.bf16.mxu0 %v5531_v3 }
 0x205   :  { %v3747_v8 = vpop.f32.mrf.mxu1  ;;  %v3746_v10 = vadd.f32 %v3745_v7, %v3705_v49  ;;  %v3707_v11 = vadd.f32 %v3706_v41, %v7091_v35  ;;  %v5532_v35 = vld [vmem:[%s7316_s3 + $0x30] sm:$0xff]  }
 0x206   :  { %v3708_v12 = vpop.f32.mrf.mxu0 }
 0x207   :  { %v3749_v6 = vpop.f32.mrf.mxu1  ;;  %v3748_v13 = vadd.f32 %v3747_v8, %v3707_v11  ;;  %4736 = vmatpush3.bf16.msra.mxu0 %v5532_v35  ;;  %v4716_v11 = vld [vmem:[%s7317_s4] ss:$0 sm:$0xff]  ;;  %s5549_s4 = scalar_lea.vmem %s4197_s26, 32 }
 0x208   :  { %v3709_v15 = vpop.f32.mrf.mxu0  ;;  %4737 = vmatprep.subr.bf16.mxu0 %v5533_v20  ;;  %p5550_p0 = scmp.ne.s32.totalorder %s4197_s26, %s5549_s4  ;;  %p5555_p2 = scmp.lt.s32.totalorder %s5549_s4, %s5549_s4 }
 0x209   :  { %v3750_v16 = vpop.f32.mrf.mxu1 }
 0x20a   :  { %p5556_p3 = por %p5555_p2, %p5554_p1 }
 0x20b   :  { %4738 = vmatpush3.bf16.msra.mxu0 %v5534_v21 }
 0x20c   :  { %4739 = vmatprep.subr.bf16.mxu0 %v5535_v22  ;;  %p5557_p4 = pnand %p5556_p3, %p5550_p0 }
 0x20f   :  { %4740 = vmatpush3.bf16.msra.mxu0 %v5536_v23 }
 0x210   :  { %4741 = vmatprep.subr.bf16.mxu0 %v5537_v24 }
 0x213   :  { %4742 = vmatpush3.bf16.msra.mxu0 %v5538_v26 }
 0x214   :  { %4743 = vmatprep.subr.bf16.mxu0 %v5539_v2 }
 0x217   :  { %4744 = vmatpush3.bf16.msra.mxu0 %v5540_v27 }
 0x218   :  { %4745 = vmatprep.subr.bf16.mxu0 %v5541_v9 }
 0x21b   :  { %4746 = vmatpush3.bf16.msra.mxu0 %v5542_v29 }
 0x21c   :  { %4747 = vmatprep.subr.bf16.mxu0 %v5543_v44 }
 0x21f   :  { %4748 = vmatpush3.bf16.msra.mxu0 %v5544_v45 }
 0x242   :  { %v3786_v28 = vpop.f32.mrf.mxu0 }
 0x243   :  { %v3827_v60 = vpop.f32.mrf.mxu1  ;;  %v3787_v30 = vadd.f32 %v3786_v28, %v3746_v10 }
 0x244   :  { %v3788_v33 = vpop.f32.mrf.mxu0 }
 0x245   :  { %v3829_v34 = vpop.f32.mrf.mxu1  ;;  %v3828_v36 = vadd.f32 %v3827_v60, %v3787_v30  ;;  %v3789_v37 = vadd.f32 %v3788_v33, %v3748_v13 }
 0x246   :  { %v3790_v38 = vpop.f32.mrf.mxu0 }
 0x247   :  { %v3831_v39 = vpop.f32.mrf.mxu1  ;;  %v3830_v40 = vadd.f32 %v3829_v34, %v3789_v37 }
 0x248   :  { %v3791_v14 = vpop.f32.mrf.mxu0 }
 0x249   :  { %v3832_v43 = vpop.f32.mrf.mxu1 }
 0x282   :  { %v3868_v46 = vpop.f32.mrf.mxu0 }
 0x283   :  { %v3909_v25 = vpop.f32.mrf.mxu1  ;;  %v3869_v48 = vadd.f32 %v3868_v46, %v3828_v36 }
 0x284   :  { %v3870_v50 = vpop.f32.mrf.mxu0 }
 0x285   :  { %v3911_v51 = vpop.f32.mrf.mxu1  ;;  %v3910_v52 = vadd.f32 %v3909_v25, %v3869_v48  ;;  %v3871_v31 = vadd.f32 %v3870_v50, %v3830_v40 }
 0x286   :  { %v3872_v19 = vpop.f32.mrf.mxu0 }
 0x287   :  { %v3913_v53 = vpop.f32.mrf.mxu1  ;;  %v3912_v57 = vadd.f32 %v3911_v51, %v3871_v31 }
 0x288   :  { %v3873_v54 = vpop.f32.mrf.mxu0 }
 0x289   :  { %v3914_v42 = vpop.f32.mrf.mxu1 }
 0x2c2   :  { %v3950_v55 = vpop.f32.mrf.mxu0 }
 0x2c3   :  { %v3991_v56 = vpop.f32.mrf.mxu1  ;;  %v3951_v58 = vadd.f32 %v3950_v55, %v3910_v52 }
 0x2c4   :  { %v3952_v59 = vpop.f32.mrf.mxu0 }
 0x2c5   :  { %v3993_v32 = vpop.f32.mrf.mxu1  ;;  %v3992_v61 = vadd.f32 %v3991_v56, %v3951_v58  ;;  %v3953_v62 = vadd.f32 %v3952_v59, %v3912_v57 }
 0x2c6   :  { %v3954_v63 = vpop.f32.mrf.mxu0 }
 0x2c7   :  { %v3995_v0 = vpop.f32.mrf.mxu1  ;;  %v3994_v1 = vadd.f32 %v3993_v32, %v3953_v62  ;;  %v3998_v47 = vmax.f32 %v3992_v61, 0.0 }
 0x2c8   :  { %v3955_v4 = vpop.f32.mrf.mxu0 }
 0x2c9   :  { %v3996_v5 = vpop.f32.mrf.mxu1  ;;  %v3999_v7 = vmax.f32 %v3994_v1, 0.0  ;;  %v4000_v41 = vpack.c.bf16 %v3998_v47, %v3998_v47 }
 0x2cb   :  { %v4001_v49 = vpack.c.bf16 %v3999_v7, %v3999_v7 }
 0x2cd   :  { %4169 = vmatprep.mubr.bf16.mxu0 %v4001_v49 }
 0x2ce   :  { %4170 = vmatmul.mubr.bf16.vlgmr.msra.gmra.mxu0 %v4000_v41 }
 0x38e   :  { %v4749_v8 = vpop.f32.mrf.mxu0 }
 0x390   :  { %v4750_v10 = vpop.f32.mrf.mxu0 }
 0x391   :  { %v4751_v12 = vadd.f32 %v4750_v10, %v4749_v8 }
 0x392   :  { %v4752_v6 = vpop.f32.mrf.mxu0 }
 0x393   :  { %v4172_v13 = vadd.f32 %v4751_v12, %v4716_v11 }
 0x394   :  { %v4753_v15 = vpop.f32.mrf.mxu0 }
 0x395   :  { %v4178_v16 = vsel %vm4177_vm0, %v4172_v13, -inf }
 0x396   :  { %4179 = vmax.xlane.f32.xlu0 %v4178_v16 }
 0x41f   :  { %v4180_v17 = vpop.xlane.xlu0 %4179 }
 0x420   :  { %v4181_v18 = vsub.f32 %v4172_v13, %v4180_v17 }
 0x422   :  { %v4182_v3 = vmul.f32 1.442695, %v4181_v18 }
 0x424   :  { %5545 = vpow2.f32 %v4182_v3 }
 0x431   :  { %v5546_v35 = vpop.eup %5545 }
 0x432   :  { %v4184_v20 = vsel %vm4177_vm0, %v5546_v35, 0.0 }
 0x433   :  { %4185 = vadd.xlane.f32.xlu0 %v4184_v20 }
 0x4bc   :  { %v4186_v21 = vpop.xlane.xlu0 %4185 }
 0x4bd   :  { %5547 = vrcp.f32 %v4186_v21 }
 0x4ca   :  { %v5548_v22 = vpop.eup %5547 }
 0x4cb   :  { %v4188_v23 = vmul.f32 %v5548_v22, %v5546_v35 }
 0x4cd   :  { %4189 = vst [vmem:[#allocation2] sm:$0x3] %v4188_v23 }
 0x4ce   :  { %5560 = shalt.err (!%p5557_p4)
}
 0x4cf   :  { %4199 = dma.vmem_to_hbm [thread:$0]  %s4197_s26, 32, %s7318_s5, [#allocation3]  }
 0x4d0   :  { %5569 = dma.done.wait [#allocation3], 32  }
 0x4d1   :  { %5570 = vsyncadd [#allocation3], 4294967264 }
 0x4d2   :  { %4203 = vsyncpa [#allocation3], 1 }

</bundles_post_ra>
